<compile_context>
chip_gen: v7x
topology: tpu7x:2x2x1
jax: 0.10.0
libtpu: 0.0.40
codegen_flags: <defaults>
</compile_context>

<pallas_src>
import math
from functools import partial

import jax
import jax.numpy as jnp
from jax import lax
from jax.experimental import pallas as pl
from jax.experimental.pallas import tpu as pltpu

VMEM = pltpu.MemorySpace.VMEM


# ----------------------------- in-kernel helpers -----------------------------

def _layernorm(x, g, b, eps=1e-5):
    mu = jnp.mean(x, axis=-1, keepdims=True)
    xc = x - mu
    var = jnp.mean(xc * xc, axis=-1, keepdims=True)
    return xc * lax.rsqrt(var + eps) * g + b


def _softmax_rows(s):
    m = jnp.max(s, axis=-1, keepdims=True)
    p = jnp.exp(s - m)
    return p * pl.reciprocal(jnp.sum(p, axis=-1, keepdims=True), approx=True)


def _mha_proj(q_all, k_all, v_all, o_w_ref, B, Lq, Lk, H, causal):
    """Multi-head attention + output projection on flat (B*L, D) activations.

    The per-head output projection is folded in:
        concat_h(head_h) @ Wo  ==  sum_h head_h @ Wo[h*E:(h+1)*E, :]
    so no lane-concat is needed; o_w_ref is the (D, D) VMEM ref.
    """
    D = q_all.shape[1]
    E = D // H
    scale = 1.0 / math.sqrt(E)
    outs = []
    for b in range(B):
        acc = None
        for h in range(H):
            q = q_all[b * Lq:(b + 1) * Lq, h * E:(h + 1) * E]   # (Lq, E)
            k = k_all[b * Lk:(b + 1) * Lk, h * E:(h + 1) * E]   # (Lk, E)
            v = v_all[b * Lk:(b + 1) * Lk, h * E:(h + 1) * E]   # (Lk, E)
            s = jnp.dot(q, k.T, preferred_element_type=jnp.float32) * scale
            if causal:
                row = lax.broadcasted_iota(jnp.int32, (Lq, Lk), 0)
                col = lax.broadcasted_iota(jnp.int32, (Lq, Lk), 1)
                s = jnp.where(col > row, -1e30, s)
            p = _softmax_rows(s)
            oh = jnp.dot(p, v, preferred_element_type=jnp.float32)          # (Lq, E)
            contrib = jnp.dot(oh, o_w_ref[h * E:(h + 1) * E, :],
                              preferred_element_type=jnp.float32)           # (Lq, D)
            acc = contrib if acc is None else acc + contrib
        outs.append(acc)
    return jnp.concatenate(outs, axis=0)                                     # (B*Lq, D)


# ----------------------------- fused Pallas kernels -----------------------------

def _embed_kernel(B, x_ref, mark_ref, sm1_ref, sp1_ref,
                  w0_ref, w1_ref, w2_ref, timew_ref, pe_ref, o_ref):
    # TokenEmbedding (circular conv3, no bias) + TimeFeatureEmbedding (no bias) + PE.
    x = x_ref[...]                                                       # (B*L, Cin)
    xm1 = jnp.dot(sm1_ref[...], x, preferred_element_type=jnp.float32)   # x[t-1] (circ)
    xp1 = jnp.dot(sp1_ref[...], x, preferred_element_type=jnp.float32)   # x[t+1] (circ)
    val = (jnp.dot(xm1, w0_ref[...], preferred_element_type=jnp.float32)
           + jnp.dot(x, w1_ref[...], preferred_element_type=jnp.float32)
           + jnp.dot(xp1, w2_ref[...], preferred_element_type=jnp.float32))
    tmp = jnp.dot(mark_ref[...], timew_ref[...], preferred_element_type=jnp.float32)
    pe = pe_ref[...]                                                     # (L, D)
    pe_t = jnp.concatenate([pe] * B, axis=0)                             # (B*L, D)
    o_ref[...] = (val + tmp + pe_t).astype(o_ref.dtype)
    # TODO(synk): dropout(p=0.0) is an identity here; non-zero dropout not modeled.


def _encoder_layer_kernel(B, L, H, with_norm,
                          x_ref, qkv_w, qkv_b, o_w, o_b,
                          ln1_g, ln1_b, f1_w, f1_b, f2_w, f2_b, ln2_g, ln2_b,
                          *rest):
    if with_norm:
        ng, nb, o_ref = rest
    else:
        (o_ref,) = rest
    x = x_ref[...]                                                       # (B*L, D)
    D = x.shape[1]
    # fused QKV projection (lane-dense 3D-wide matmul)
    qkv = jnp.dot(x, qkv_w[...], preferred_element_type=jnp.float32) + qkv_b[...]
    a = _mha_proj(qkv[:, 0:D], qkv[:, D:2 * D], qkv[:, 2 * D:3 * D],
                  o_w, B, L, L, H, causal=False) + o_b[...]
    x = _layernorm(x + a, ln1_g[...], ln1_b[...])
    y = jnp.maximum(jnp.dot(x, f1_w[...], preferred_element_type=jnp.float32) + f1_b[...], 0.0)
    y = jnp.dot(y, f2_w[...], preferred_element_type=jnp.float32) + f2_b[...]
    x = _layernorm(x + y, ln2_g[...], ln2_b[...])
    if with_norm:                       # Encoder's trailing LayerNorm fused into the last layer
        x = _layernorm(x, ng[...], nb[...])
    o_ref[...] = x.astype(o_ref.dtype)


def _distil_conv_kernel(x_ref, scm1, scp1, snm1, snp1, mask_l, mask_r, sel,
                        w0, w1, w2, b, bn_g, bn_b, o_ref):
    # ConvLayer: circular conv3 -> BatchNorm1d -> ELU -> MaxPool1d(k=3, s=2, p=1)
    x = x_ref[...]                                                       # (B*L, C)
    xm1 = jnp.dot(scm1[...], x, preferred_element_type=jnp.float32)
    xp1 = jnp.dot(scp1[...], x, preferred_element_type=jnp.float32)
    y = (jnp.dot(xm1, w0[...], preferred_element_type=jnp.float32)
         + jnp.dot(x, w1[...], preferred_element_type=jnp.float32)
         + jnp.dot(xp1, w2[...], preferred_element_type=jnp.float32)) + b[...]
    # TODO(synk): BatchNorm1d uses training-mode batch statistics (biased variance),
    #             eval-mode running stats are not modeled.
    mu = jnp.mean(y, axis=0, keepdims=True)
    yc = y - mu
    var = jnp.mean(yc * yc, axis=0, keepdims=True)
    y = yc * lax.rsqrt(var + 1e-5) * bn_g[...] + bn_b[...]
    y = jnp.where(y > 0, y, jnp.exp(y) - 1.0)                            # ELU
    # MaxPool neighbours via no-wrap shift matrices + (-1e30) edge masks, then
    # a stride-2 row selection done as a 0/1 matmul (no strided sublane slicing).
    yl = jnp.dot(snm1[...], y, preferred_element_type=jnp.float32) + mask_l[...]
    yr = jnp.dot(snp1[...], y, preferred_element_type=jnp.float32) + mask_r[...]
    m = jnp.maximum(jnp.maximum(yl, y), yr)
    o_ref[...] = jnp.dot(sel[...], m, preferred_element_type=jnp.float32).astype(o_ref.dtype)


def _decoder_layer_kernel(B, Ld, Lc, H, with_final,
                          x_ref, cross_ref,
                          sqkv_w, sqkv_b, so_w, so_b,
                          cq_w, cq_b, ckv_w, ckv_b, co_w, co_b,
                          ln1_g, ln1_b, ln2_g, ln2_b,
                          f1_w, f1_b, f2_w, f2_b, ln3_g, ln3_b,
                          *rest):
    if with_final:
        ng, nb, pw, pb, o_ref = rest
    else:
        (o_ref,) = rest
    x = x_ref[...]                                                       # (B*Ld, D)
    cross = cross_ref[...]                                               # (B*Lc, D)
    D = x.shape[1]
    # self attention (causal), fused QKV
    qkv = jnp.dot(x, sqkv_w[...], preferred_element_type=jnp.float32) + sqkv_b[...]
    a = _mha_proj(qkv[:, 0:D], qkv[:, D:2 * D], qkv[:, 2 * D:3 * D],
                  so_w, B, Ld, Ld, H, causal=True) + so_b[...]
    x = _layernorm(x + a, ln1_g[...], ln1_b[...])
    # cross attention, fused KV
    q = jnp.dot(x, cq_w[...], preferred_element_type=jnp.float32) + cq_b[...]
    kv = jnp.dot(cross, ckv_w[...], preferred_element_type=jnp.float32) + ckv_b[...]
    a = _mha_proj(q, kv[:, 0:D], kv[:, D:2 * D],
                  co_w, B, Ld, Lc, H, causal=False) + co_b[...]
    x = _layernorm(x + a, ln2_g[...], ln2_b[...])
    # feed-forward
    y = jnp.maximum(jnp.dot(x, f1_w[...], preferred_element_type=jnp.float32) + f1_b[...], 0.0)
    y = jnp.dot(y, f2_w[...], preferred_element_type=jnp.float32) + f2_b[...]
    x = _layernorm(x + y, ln3_g[...], ln3_b[...])
    if with_final:                      # Decoder norm + projection fused into the last layer
        x = _layernorm(x, ng[...], nb[...])
        x = jnp.dot(x, pw[...], preferred_element_type=jnp.float32) + pb[...]
    o_ref[...] = x.astype(o_ref.dtype)


# ----------------------------- wrapper glue (plain JAX) -----------------------------

def _vmem_specs(n):
    return [pl.BlockSpec(memory_space=VMEM) for _ in range(n)]


def _circ_shift_matrix(B, L, delta):
    # y = S @ x  with  y[t] = x[(t + delta) mod L]  within each length-L batch block.
    t = jnp.arange(L)
    src = (t + delta) % L
    m = (src[:, None] == t[None, :]).astype(jnp.float32)
    return jnp.kron(jnp.eye(B, dtype=jnp.float32), m)


def _shift_matrix_nowrap(B, L, delta):
    t = jnp.arange(L)
    src = t + delta
    valid = (src >= 0) & (src < L)
    m = ((src[:, None] == t[None, :]) & valid[:, None]).astype(jnp.float32)
    return jnp.kron(jnp.eye(B, dtype=jnp.float32), m)


def _edge_mask(B, L, delta):
    # -1e30 at rows whose shifted neighbour falls outside the block, else 0. Shape (B*L, 1).
    t = jnp.arange(L)
    src = t + delta
    invalid = (src < 0) | (src >= L)
    col = jnp.where(invalid, -1e30, 0.0).astype(jnp.float32)
    return jnp.tile(col, (B,))[:, None]


def _pool_select_matrix(B, L):
    Lo = (L + 2 - 3) // 2 + 1
    o = jnp.arange(Lo)
    m = (2 * o[:, None] == jnp.arange(L)[None, :]).astype(jnp.float32)    # (Lo, L)
    return jnp.kron(jnp.eye(B, dtype=jnp.float32), m), Lo


def run_embed(p, x, x_mark, pe):
    B, L, Ci = x.shape
    D = p["time_w"].shape[1]
    sm1 = _circ_shift_matrix(B, L, -1)
    sp1 = _circ_shift_matrix(B, L, +1)
    args = (x.reshape(B * L, Ci), x_mark.reshape(B * L, -1), sm1, sp1,
            p["tok_w0"], p["tok_w1"], p["tok_w2"], p["time_w"], pe[:L])
    out = pl.pallas_call(
        partial(_embed_kernel, B),
        out_shape=jax.ShapeDtypeStruct((B * L, D), jnp.float32),
        in_specs=_vmem_specs(len(args)),
        out_specs=pl.BlockSpec(memory_space=VMEM),
    )(*args)
    return out.reshape(B, L, D)


def run_encoder_layer(p, x3, n_heads, final_norm=None):
    B, L, D = x3.shape
    args = [x3.reshape(B * L, D), p["qkv_w"], p["qkv_b"], p["o_w"], p["o_b"],
            p["ln1_g"], p["ln1_b"], p["ffn1_w"], p["ffn1_b"],
            p["ffn2_w"], p["ffn2_b"], p["ln2_g"], p["ln2_b"]]
    with_norm = final_norm is not None
    if with_norm:
        args += [final_norm[0], final_norm[1]]
    out = pl.pallas_call(
        partial(_encoder_layer_kernel, B, L, n_heads, with_norm),
        out_shape=jax.ShapeDtypeStruct((B * L, D), jnp.float32),
        in_specs=_vmem_specs(len(args)),
        out_specs=pl.BlockSpec(memory_space=VMEM),
    )(*args)
    return out.reshape(B, L, D)


def run_distil_conv(p, x3):
    B, L, C = x3.shape
    scm1 = _circ_shift_matrix(B, L, -1)
    scp1 = _circ_shift_matrix(B, L, +1)
    snm1 = _shift_matrix_nowrap(B, L, -1)
    snp1 = _shift_matrix_nowrap(B, L, +1)
    ml = _edge_mask(B, L, -1)
    mr = _edge_mask(B, L, +1)
    sel, Lo = _pool_select_matrix(B, L)
    args = (x3.reshape(B * L, C), scm1, scp1, snm1, snp1, ml, mr, sel,
            p["w0"], p["w1"], p["w2"], p["b"], p["bn_g"], p["bn_b"])
    out = pl.pallas_call(
        _distil_conv_kernel,
        out_shape=jax.ShapeDtypeStruct((B * Lo, C), jnp.float32),
        in_specs=_vmem_specs(len(args)),
        out_specs=pl.BlockSpec(memory_space=VMEM),
    )(*args)
    return out.reshape(B, Lo, C)


def run_decoder_layer(p, x3, cross3, n_heads, final=None):
    B, Ld, D = x3.shape
    Lc = cross3.shape[1]
    args = [x3.reshape(B * Ld, D), cross3.reshape(B * Lc, D),
            p["sqkv_w"], p["sqkv_b"], p["so_w"], p["so_b"],
            p["cq_w"], p["cq_b"], p["ckv_w"], p["ckv_b"], p["co_w"], p["co_b"],
            p["ln1_g"], p["ln1_b"], p["ln2_g"], p["ln2_b"],
            p["ffn1_w"], p["ffn1_b"], p["ffn2_w"], p["ffn2_b"],
            p["ln3_g"], p["ln3_b"]]
    with_final = final is not None
    if with_final:
        args += list(final)                       # (norm_g, norm_b, proj_w, proj_b)
        n_out = final[2].shape[1]
    else:
        n_out = D
    out = pl.pallas_call(
        partial(_decoder_layer_kernel, B, Ld, Lc, n_heads, with_final),
        out_shape=jax.ShapeDtypeStruct((B * Ld, n_out), jnp.float32),
        in_specs=_vmem_specs(len(args)),
        out_specs=pl.BlockSpec(memory_space=VMEM),
    )(*args)
    return out.reshape(B, Ld, n_out)


def encoder_branch_forward(p, x3, n_heads):
    for lp, cp in zip(p["layers"][:-1], p["convs"]):
        x3 = run_encoder_layer(lp, x3, n_heads)
        x3 = run_distil_conv(cp, x3)
    return run_encoder_layer(p["layers"][-1], x3, n_heads,
                             final_norm=(p["norm_g"], p["norm_b"]))


def encoder_stack_forward(p, x3, inp_lens, n_heads):
    outs = []
    for i_len, ep in zip(inp_lens, p["encoders"]):
        inp_len = x3.shape[1] // (2 ** i_len)
        outs.append(encoder_branch_forward(ep, x3[:, -inp_len:, :], n_heads))
    return jnp.concatenate(outs, axis=-2)


def decoder_forward(p, x3, cross3, n_heads):
    for lp in p["layers"][:-1]:
        x3 = run_decoder_layer(lp, x3, cross3, n_heads)
    return run_decoder_layer(p["layers"][-1], x3, cross3, n_heads,
                             final=(p["norm_g"], p["norm_b"], p["proj_w"], p["proj_b"]))


def model_forward(params, cfg, x_enc, x_mark_enc, x_dec, x_mark_dec):
    pe = params["pe"]
    enc_out = run_embed(params["enc_emb"], x_enc, x_mark_enc, pe)
    enc_out = encoder_stack_forward(params["enc_stack"], enc_out,
                                    cfg["inp_lens"], cfg["n_heads"])
    dec_out = run_embed(params["dec_emb"], x_dec, x_mark_dec, pe)
    dec_out = decoder_forward(params["decoder"], dec_out, enc_out, cfg["n_heads"])
    return dec_out[:, -cfg["pred_len"]:, :]


# ----------------------------- parameter init -----------------------------

def positional_embedding(d_model, max_len=5000):
    position = jnp.arange(max_len, dtype=jnp.float32)[:, None]
    div_term = jnp.exp(jnp.arange(0, d_model, 2, dtype=jnp.float32)
                       * -(math.log(10000.0) / d_model))
    pe = jnp.zeros((max_len, d_model), jnp.float32)
    pe = pe.at[:, 0::2].set(jnp.sin(position * div_term))
    pe = pe.at[:, 1::2].set(jnp.cos(position * div_term))
    return pe


def init_params(key, cfg):
    d, dff = cfg["d_model"], cfg["d_ff"]
    enc_in, dec_in, c_out, mark = cfg["enc_in"], cfg["dec_in"], cfg["c_out"], cfg["mark_in"]
    kit = iter(jax.random.split(key, 512))

    def rnd(shape, scale=0.08):
        return jax.random.normal(next(kit), shape, jnp.float32) * scale

    def ones(n):
        return jnp.ones((1, n), jnp.float32)

    def zeros(n):
        return jnp.zeros((1, n), jnp.float32)

    def enc_layer():
        return {"qkv_w": rnd((d, 3 * d)), "qkv_b": rnd((1, 3 * d)),
                "o_w": rnd((d, d)), "o_b": rnd((1, d)),
                "ffn1_w": rnd((d, dff)), "ffn1_b": rnd((1, dff)),
                "ffn2_w": rnd((dff, d)), "ffn2_b": rnd((1, d)),
                "ln1_g": ones(d), "ln1_b": zeros(d),
                "ln2_g": ones(d), "ln2_b": zeros(d)}

    def conv_layer():
        return {"w0": rnd((d, d)), "w1": rnd((d, d)), "w2": rnd((d, d)),
                "b": rnd((1, d)), "bn_g": ones(d), "bn_b": zeros(d)}

    def dec_layer():
        return {"sqkv_w": rnd((d, 3 * d)), "sqkv_b": rnd((1, 3 * d)),
                "so_w": rnd((d, d)), "so_b": rnd((1, d)),
                "cq_w": rnd((d, d)), "cq_b": rnd((1, d)),
                "ckv_w": rnd((d, 2 * d)), "ckv_b": rnd((1, 2 * d)),
                "co_w": rnd((d, d)), "co_b": rnd((1, d)),
                "ffn1_w": rnd((d, dff)), "ffn1_b": rnd((1, dff)),
                "ffn2_w": rnd((dff, d)), "ffn2_b": rnd((1, d)),
                "ln1_g": ones(d), "ln1_b": zeros(d),
                "ln2_g": ones(d), "ln2_b": zeros(d),
                "ln3_g": ones(d), "ln3_b": zeros(d)}

    inp_lens = list(range(cfg["e_layers"]))
    els = [i + 1 for i in inp_lens][::-1]          # e.g. e_layers=2 -> [2, 1]
    encoders = [{"layers": [enc_layer() for _ in range(el)],
                 "convs": [conv_layer() for _ in range(el - 1)],   # distil=True
                 "norm_g": ones(d), "norm_b": zeros(d)}
                for el in els]

    params = {
        "pe": positional_embedding(d),
        "enc_emb": {"tok_w0": rnd((enc_in, d)), "tok_w1": rnd((enc_in, d)),
                    "tok_w2": rnd((enc_in, d)), "time_w": rnd((mark, d))},
        "dec_emb": {"tok_w0": rnd((dec_in, d)), "tok_w1": rnd((dec_in, d)),
                    "tok_w2": rnd((dec_in, d)), "time_w": rnd((mark, d))},
        "enc_stack": {"encoders": encoders},
        "decoder": {"layers": [dec_layer() for _ in range(cfg["d_layers"])],
                    "norm_g": ones(d), "norm_b": zeros(d),
                    "proj_w": rnd((d, c_out)), "proj_b": rnd((1, c_out))},
    }
    return params, inp_lens


# ----------------------------- main -----------------------------

if __name__ == "__main__":
    cfg = dict(seq_len=16, label_len=8, pred_len=8,
               enc_in=4, dec_in=4, c_out=4, mark_in=4,
               d_model=32, n_heads=4, e_layers=2, d_layers=1, d_ff=64)

    key = jax.random.PRNGKey(0)
    pkey, k1, k2, k3, k4 = jax.random.split(key, 5)
    params, inp_lens = init_params(pkey, cfg)
    cfg["inp_lens"] = inp_lens

    B = 2
    dec_len = cfg["label_len"] + cfg["pred_len"]
    x_enc = jax.random.normal(k1, (B, cfg["seq_len"], cfg["enc_in"]), jnp.float32)
    x_mark_enc = jax.random.normal(k2, (B, cfg["seq_len"], cfg["mark_in"]), jnp.float32)
    x_dec = jax.random.normal(k3, (B, dec_len, cfg["dec_in"]), jnp.float32)
    x_mark_dec = jax.random.normal(k4, (B, dec_len, cfg["mark_in"]), jnp.float32)

    @jax.jit
    def fwd(p, xe, me, xd, md):
        return model_forward(p, cfg, xe, me, xd, md)

    out = fwd(params, x_enc, x_mark_enc, x_dec, x_mark_dec)
    jax.block_until_ready(out)
    assert out.shape == (B, cfg["pred_len"], cfg["c_out"]), out.shape
    assert bool(jnp.all(jnp.isfinite(out)))
    print("KERNEL_OK")
</pallas_src>

<mosaic_0001>
module attributes {stable_mosaic.version = 11 : i64} {
  func.func @_embed_kernel(%arg0: memref<32x4xf32, #tpu.memory_space<vmem>>, %arg1: memref<32x4xf32, #tpu.memory_space<vmem>>, %arg2: memref<32x32xf32, #tpu.memory_space<vmem>>, %arg3: memref<32x32xf32, #tpu.memory_space<vmem>>, %arg4: memref<4x32xf32, #tpu.memory_space<vmem>>, %arg5: memref<4x32xf32, #tpu.memory_space<vmem>>, %arg6: memref<4x32xf32, #tpu.memory_space<vmem>>, %arg7: memref<4x32xf32, #tpu.memory_space<vmem>>, %arg8: memref<16x32xf32, #tpu.memory_space<vmem>>, %arg9: memref<32x32xf32, #tpu.memory_space<vmem>>) attributes {dimension_semantics = [], scalar_prefetch = 0 : i64, scratch_operands = 0 : i64, tpu.core_type = #tpu.core_type<tc>} {
    %c0 = arith.constant 0 : index
    %c0_0 = arith.constant 0 : index
    %0 = vector.load %arg0[%c0, %c0_0] : memref<32x4xf32, #tpu.memory_space<vmem>>, vector<32x4xf32>
    %c0_1 = arith.constant 0 : index
    %c0_2 = arith.constant 0 : index
    %1 = vector.load %arg2[%c0_1, %c0_2] : memref<32x32xf32, #tpu.memory_space<vmem>>, vector<32x32xf32>
    %cst = arith.constant dense<0.000000e+00> : vector<32x4xf32>
    %2 = tpu.matmul %1, %0, %cst {dimension_numbers = #tpu.dot_dimension_numbers<[1], [0], [0], [1], [0, 0, 1, 1], [], []>} : vector<32x32xf32>, vector<32x4xf32>, vector<32x4xf32> -> vector<32x4xf32>
    %c0_3 = arith.constant 0 : index
    %c0_4 = arith.constant 0 : index
    %3 = vector.load %arg3[%c0_3, %c0_4] : memref<32x32xf32, #tpu.memory_space<vmem>>, vector<32x32xf32>
    %cst_5 = arith.constant dense<0.000000e+00> : vector<32x4xf32>
    %4 = tpu.matmul %3, %0, %cst_5 {dimension_numbers = #tpu.dot_dimension_numbers<[1], [0], [0], [1], [0, 0, 1, 1], [], []>} : vector<32x32xf32>, vector<32x4xf32>, vector<32x4xf32> -> vector<32x4xf32>
    %c0_6 = arith.constant 0 : index
    %c0_7 = arith.constant 0 : index
    %5 = vector.load %arg4[%c0_6, %c0_7] : memref<4x32xf32, #tpu.memory_space<vmem>>, vector<4x32xf32>
    %cst_8 = arith.constant dense<0.000000e+00> : vector<32x32xf32>
    %6 = tpu.matmul %2, %5, %cst_8 {dimension_numbers = #tpu.dot_dimension_numbers<[1], [0], [0], [1], [0, 0, 1, 1], [], []>} : vector<32x4xf32>, vector<4x32xf32>, vector<32x32xf32> -> vector<32x32xf32>
    %c0_9 = arith.constant 0 : index
    %c0_10 = arith.constant 0 : index
    %7 = vector.load %arg5[%c0_9, %c0_10] : memref<4x32xf32, #tpu.memory_space<vmem>>, vector<4x32xf32>
    %cst_11 = arith.constant dense<0.000000e+00> : vector<32x32xf32>
    %8 = tpu.matmul %0, %7, %cst_11 {dimension_numbers = #tpu.dot_dimension_numbers<[1], [0], [0], [1], [0, 0, 1, 1], [], []>} : vector<32x4xf32>, vector<4x32xf32>, vector<32x32xf32> -> vector<32x32xf32>
    %9 = arith.addf %6, %8 : vector<32x32xf32>
    %c0_12 = arith.constant 0 : index
    %c0_13 = arith.constant 0 : index
    %10 = vector.load %arg6[%c0_12, %c0_13] : memref<4x32xf32, #tpu.memory_space<vmem>>, vector<4x32xf32>
    %cst_14 = arith.constant dense<0.000000e+00> : vector<32x32xf32>
    %11 = tpu.matmul %4, %10, %cst_14 {dimension_numbers = #tpu.dot_dimension_numbers<[1], [0], [0], [1], [0, 0, 1, 1], [], []>} : vector<32x4xf32>, vector<4x32xf32>, vector<32x32xf32> -> vector<32x32xf32>
    %12 = arith.addf %9, %11 : vector<32x32xf32>
    %c0_15 = arith.constant 0 : index
    %c0_16 = arith.constant 0 : index
    %13 = vector.load %arg1[%c0_15, %c0_16] : memref<32x4xf32, #tpu.memory_space<vmem>>, vector<32x4xf32>
    %c0_17 = arith.constant 0 : index
    %c0_18 = arith.constant 0 : index
    %14 = vector.load %arg7[%c0_17, %c0_18] : memref<4x32xf32, #tpu.memory_space<vmem>>, vector<4x32xf32>
    %cst_19 = arith.constant dense<0.000000e+00> : vector<32x32xf32>
    %15 = tpu.matmul %13, %14, %cst_19 {dimension_numbers = #tpu.dot_dimension_numbers<[1], [0], [0], [1], [0, 0, 1, 1], [], []>} : vector<32x4xf32>, vector<4x32xf32>, vector<32x32xf32> -> vector<32x32xf32>
    %c0_20 = arith.constant 0 : index
    %c0_21 = arith.constant 0 : index
    %16 = vector.load %arg8[%c0_20, %c0_21] : memref<16x32xf32, #tpu.memory_space<vmem>>, vector<16x32xf32>
    %17 = tpu.concatenate %16, %16 in 0 : vector<16x32xf32>, vector<16x32xf32> -> vector<32x32xf32>
    %18 = arith.addf %12, %15 : vector<32x32xf32>
    %19 = arith.addf %18, %17 : vector<32x32xf32>
    %c0_22 = arith.constant 0 : index
    %c0_23 = arith.constant 0 : index
    %20 = vector.load %arg9[%c0_22, %c0_23] : memref<32x32xf32, #tpu.memory_space<vmem>>, vector<32x32xf32>
    tpu.vector_store %arg9[%c0_22, %c0_23], %19 {strides = array<i32>} : memref<32x32xf32, #tpu.memory_space<vmem>>, vector<32x32xf32>,
    return
  }
}

module attributes {stable_mosaic.version = 11 : i64} {
  func.func @_encoder_layer_kernel(%arg0: memref<32x32xf32, #tpu.memory_space<vmem>>, %arg1: memref<32x96xf32, #tpu.memory_space<vmem>>, %arg2: memref<1x96xf32, #tpu.memory_space<vmem>>, %arg3: memref<32x32xf32, #tpu.memory_space<vmem>>, %arg4: memref<1x32xf32, #tpu.memory_space<vmem>>, %arg5: memref<1x32xf32, #tpu.memory_space<vmem>>, %arg6: memref<1x32xf32, #tpu.memory_space<vmem>>, %arg7: memref<32x64xf32, #tpu.memory_space<vmem>>, %arg8: memref<1x64xf32, #tpu.memory_space<vmem>>, %arg9: memref<64x32xf32, #tpu.memory_space<vmem>>, %arg10: memref<1x32xf32, #tpu.memory_space<vmem>>, %arg11: memref<1x32xf32, #tpu.memory_space<vmem>>, %arg12: memref<1x32xf32, #tpu.memory_space<vmem>>, %arg13: memref<32x32xf32, #tpu.memory_space<vmem>>) attributes {dimension_semantics = [], scalar_prefetch = 0 : i64, scratch_operands = 0 : i64, tpu.core_type = #tpu.core_type<tc>} {
    %c0 = arith.constant 0 : index
    %c0_0 = arith.constant 0 : index
    %0 = vector.load %arg0[%c0, %c0_0] : memref<32x32xf32, #tpu.memory_space<vmem>>, vector<32x32xf32>
    %c0_1 = arith.constant 0 : index
    %c0_2 = arith.constant 0 : index
    %1 = vector.load %arg1[%c0_1, %c0_2] : memref<32x96xf32, #tpu.memory_space<vmem>>, vector<32x96xf32>
    %cst = arith.constant dense<0.000000e+00> : vector<32x96xf32>
    %2 = tpu.matmul %0, %1, %cst {dimension_numbers = #tpu.dot_dimension_numbers<[1], [0], [0], [1], [0, 0, 1, 1], [], []>} : vector<32x32xf32>, vector<32x96xf32>, vector<32x96xf32> -> vector<32x96xf32>
    %c0_3 = arith.constant 0 : index
    %c0_4 = arith.constant 0 : index
    %3 = vector.load %arg2[%c0_3, %c0_4] : memref<1x96xf32, #tpu.memory_space<vmem>>, vector<1x96xf32>
    %4 = vector.broadcast %3 : vector<1x96xf32> to vector<32x96xf32>
    %5 = arith.addf %2, %4 : vector<32x96xf32>
    %6 = vector.extract_strided_slice %5 {offsets = [0, 0], sizes = [32, 32], strides = [1, 1]} : vector<32x96xf32> to vector<32x32xf32>
    %7 = vector.extract_strided_slice %5 {offsets = [0, 32], sizes = [32, 32], strides = [1, 1]} : vector<32x96xf32> to vector<32x32xf32>
    %8 = vector.extract_strided_slice %5 {offsets = [0, 64], sizes = [32, 32], strides = [1, 1]} : vector<32x96xf32> to vector<32x32xf32>
    %9 = vector.extract_strided_slice %6 {offsets = [0, 0], sizes = [16, 8], strides = [1, 1]} : vector<32x32xf32> to vector<16x8xf32>
    %10 = vector.extract_strided_slice %7 {offsets = [0, 0], sizes = [16, 8], strides = [1, 1]} : vector<32x32xf32> to vector<16x8xf32>
    %11 = vector.extract_strided_slice %8 {offsets = [0, 0], sizes = [16, 8], strides = [1, 1]} : vector<32x32xf32> to vector<16x8xf32>
    %12 = tpu.transpose %10, [1, 0] : vector<16x8xf32> -> vector<8x16xf32>
    %cst_5 = arith.constant dense<0.000000e+00> : vector<16x16xf32>
    %13 = tpu.matmul %9, %12, %cst_5 {dimension_numbers = #tpu.dot_dimension_numbers<[1], [0], [0], [1], [0, 0, 1, 1], [], []>} : vector<16x8xf32>, vector<8x16xf32>, vector<16x16xf32> -> vector<16x16xf32>
    %cst_6 = arith.constant 0.353553385 : f32
    %14 = vector.broadcast %cst_6 : f32 to vector<16x16xf32>
    %15 = arith.mulf %13, %14 : vector<16x16xf32>
    %cst_7 = arith.constant dense<0xFF800000> : vector<16xf32>
    %16 = vector.multi_reduction <maximumf>, %15, %cst_7 [1] : vector<16x16xf32> to vector<16xf32>
    %17 = vector.shape_cast %16 : vector<16xf32> to vector<16x1xf32>
    %18 = vector.broadcast %17 : vector<16x1xf32> to vector<16x16xf32>
    %19 = arith.subf %15, %18 : vector<16x16xf32>
    %20 = math.exp %19 : vector<16x16xf32>
    %cst_8 = arith.constant dense<0.000000e+00> : vector<16xf32>
    %21 = vector.multi_reduction <add>, %20, %cst_8 [1] : vector<16x16xf32> to vector<16xf32>
    %22 = vector.shape_cast %21 : vector<16xf32> to vector<16x1xf32>
    %23 = tpu.reciprocal %22 {approx = true} : vector<16x1xf32> -> vector<16x1xf32>
    %24 = vector.broadcast %23 : vector<16x1xf32> to vector<16x16xf32>
    %25 = arith.mulf %20, %24 : vector<16x16xf32>
    %cst_9 = arith.constant dense<0.000000e+00> : vector<16x8xf32>
    %26 = tpu.matmul %25, %11, %cst_9 {dimension_numbers = #tpu.dot_dimension_numbers<[1], [0], [0], [1], [0, 0, 1, 1], [], []>} : vector<16x16xf32>, vector<16x8xf32>, vector<16x8xf32> -> vector<16x8xf32>
    %c0_10 = arith.constant 0 : index
    %c0_11 = arith.constant 0 : index
    %27 = vector.load %arg3[%c0_10, %c0_11] : memref<32x32xf32, #tpu.memory_space<vmem>>, vector<8x32xf32>
    %cst_12 = arith.constant dense<0.000000e+00> : vector<16x32xf32>
    %28 = tpu.matmul %26, %27, %cst_12 {dimension_numbers = #tpu.dot_dimension_numbers<[1], [0], [0], [1], [0, 0, 1, 1], [], []>} : vector<16x8xf32>, vector<8x32xf32>, vector<16x32xf32> -> vector<16x32xf32>
    %29 = vector.extract_strided_slice %6 {offsets = [0, 8], sizes = [16, 8], strides = [1, 1]} : vector<32x32xf32> to vector<16x8xf32>
    %30 = vector.extract_strided_slice %7 {offsets = [0, 8], sizes = [16, 8], strides = [1, 1]} : vector<32x32xf32> to vector<16x8xf32>
    %31 = vector.extract_strided_slice %8 {offsets = [0, 8], sizes = [16, 8], strides = [1, 1]} : vector<32x32xf32> to vector<16x8xf32>
    %32 = tpu.transpose %30, [1, 0] : vector<16x8xf32> -> vector<8x16xf32>
    %cst_13 = arith.constant dense<0.000000e+00> : vector<16x16xf32>
    %33 = tpu.matmul %29, %32, %cst_13 {dimension_numbers = #tpu.dot_dimension_numbers<[1], [0], [0], [1], [0, 0, 1, 1], [], []>} : vector<16x8xf32>, vector<8x16xf32>, vector<16x16xf32> -> vector<16x16xf32>
    %cst_14 = arith.constant 0.353553385 : f32
    %34 = vector.broadcast %cst_14 : f32 to vector<16x16xf32>
    %35 = arith.mulf %33, %34 : vector<16x16xf32>
    %cst_15 = arith.constant dense<0xFF800000> : vector<16xf32>
    %36 = vector.multi_reduction <maximumf>, %35, %cst_15 [1] : vector<16x16xf32> to vector<16xf32>
    %37 = vector.shape_cast %36 : vector<16xf32> to vector<16x1xf32>
    %38 = vector.broadcast %37 : vector<16x1xf32> to vector<16x16xf32>
    %39 = arith.subf %35, %38 : vector<16x16xf32>
    %40 = math.exp %39 : vector<16x16xf32>
    %cst_16 = arith.constant dense<0.000000e+00> : vector<16xf32>
    %41 = vector.multi_reduction <add>, %40, %cst_16 [1] : vector<16x16xf32> to vector<16xf32>
    %42 = vector.shape_cast %41 : vector<16xf32> to vector<16x1xf32>
    %43 = tpu.reciprocal %42 {approx = true} : vector<16x1xf32> -> vector<16x1xf32>
    %44 = vector.broadcast %43 : vector<16x1xf32> to vector<16x16xf32>
    %45 = arith.mulf %40, %44 : vector<16x16xf32>
    %cst_17 = arith.constant dense<0.000000e+00> : vector<16x8xf32>
    %46 = tpu.matmul %45, %31, %cst_17 {dimension_numbers = #tpu.dot_dimension_numbers<[1], [0], [0], [1], [0, 0, 1, 1], [], []>} : vector<16x16xf32>, vector<16x8xf32>, vector<16x8xf32> -> vector<16x8xf32>
    %c8 = arith.constant 8 : index
    %c0_18 = arith.constant 0 : index
    %47 = vector.load %arg3[%c8, %c0_18] : memref<32x32xf32, #tpu.memory_space<vmem>>, vector<8x32xf32>
    %cst_19 = arith.constant dense<0.000000e+00> : vector<16x32xf32>
    %48 = tpu.matmul %46, %47, %cst_19 {dimension_numbers = #tpu.dot_dimension_numbers<[1], [0], [0], [1], [0, 0, 1, 1], [], []>} : vector<16x8xf32>, vector<8x32xf32>, vector<16x32xf32> -> vector<16x32xf32>
    %49 = arith.addf %28, %48 : vector<16x32xf32>
    %50 = vector.extract_strided_slice %6 {offsets = [0, 16], sizes = [16, 8], strides = [1, 1]} : vector<32x32xf32> to vector<16x8xf32>
    %51 = vector.extract_strided_slice %7 {offsets = [0, 16], sizes = [16, 8], strides = [1, 1]} : vector<32x32xf32> to vector<16x8xf32>
    %52 = vector.extract_strided_slice %8 {offsets = [0, 16], sizes = [16, 8], strides = [1, 1]} : vector<32x32xf32> to vector<16x8xf32>
    %53 = tpu.transpose %51, [1, 0] : vector<16x8xf32> -> vector<8x16xf32>
    %cst_20 = arith.constant dense<0.000000e+00> : vector<16x16xf32>
    %54 = tpu.matmul %50, %53, %cst_20 {dimension_numbers = #tpu.dot_dimension_numbers<[1], [0], [0], [1], [0, 0, 1, 1], [], []>} : vector<16x8xf32>, vector<8x16xf32>, vector<16x16xf32> -> vector<16x16xf32>
    %cst_21 = arith.constant 0.353553385 : f32
    %55 = vector.broadcast %cst_21 : f32 to vector<16x16xf32>
    %56 = arith.mulf %54, %55 : vector<16x16xf32>
    %cst_22 = arith.constant dense<0xFF800000> : vector<16xf32>
    %57 = vector.multi_reduction <maximumf>, %56, %cst_22 [1] : vector<16x16xf32> to vector<16xf32>
    %58 = vector.shape_cast %57 : vector<16xf32> to vector<16x1xf32>
    %59 = vector.broadcast %58 : vector<16x1xf32> to vector<16x16xf32>
    %60 = arith.subf %56, %59 : vector<16x16xf32>
    %61 = math.exp %60 : vector<16x16xf32>
    %cst_23 = arith.constant dense<0.000000e+00> : vector<16xf32>
    %62 = vector.multi_reduction <add>, %61, %cst_23 [1] : vector<16x16xf32> to vector<16xf32>
    %63 = vector.shape_cast %62 : vector<16xf32> to vector<16x1xf32>
    %64 = tpu.reciprocal %63 {approx = true} : vector<16x1xf32> -> vector<16x1xf32>
    %65 = vector.broadcast %64 : vector<16x1xf32> to vector<16x16xf32>
    %66 = arith.mulf %61, %65 : vector<16x16xf32>
    %cst_24 = arith.constant dense<0.000000e+00> : vector<16x8xf32>
    %67 = tpu.matmul %66, %52, %cst_24 {dimension_numbers = #tpu.dot_dimension_numbers<[1], [0], [0], [1], [0, 0, 1, 1], [], []>} : vector<16x16xf32>, vector<16x8xf32>, vector<16x8xf32> -> vector<16x8xf32>
    %c16 = arith.constant 16 : index
    %c0_25 = arith.constant 0 : index
    %68 = vector.load %arg3[%c16, %c0_25] : memref<32x32xf32, #tpu.memory_space<vmem>>, vector<8x32xf32>
    %cst_26 = arith.constant dense<0.000000e+00> : vector<16x32xf32>
    %69 = tpu.matmul %67, %68, %cst_26 {dimension_numbers = #tpu.dot_dimension_numbers<[1], [0], [0], [1], [0, 0, 1, 1], [], []>} : vector<16x8xf32>, vector<8x32xf32>, vector<16x32xf32> -> vector<16x32xf32>
    %70 = arith.addf %49, %69 : vector<16x32xf32>
    %71 = vector.extract_strided_slice %6 {offsets = [0, 24], sizes = [16, 8], strides = [1, 1]} : vector<32x32xf32> to vector<16x8xf32>
    %72 = vector.extract_strided_slice %7 {offsets = [0, 24], sizes = [16, 8], strides = [1, 1]} : vector<32x32xf32> to vector<16x8xf32>
    %73 = vector.extract_strided_slice %8 {offsets = [0, 24], sizes = [16, 8], strides = [1, 1]} : vector<32x32xf32> to vector<16x8xf32>
    %74 = tpu.transpose %72, [1, 0] : vector<16x8xf32> -> vector<8x16xf32>
    %cst_27 = arith.constant dense<0.000000e+00> : vector<16x16xf32>
    %75 = tpu.matmul %71, %74, %cst_27 {dimension_numbers = #tpu.dot_dimension_numbers<[1], [0], [0], [1], [0, 0, 1, 1], [], []>} : vector<16x8xf32>, vector<8x16xf32>, vector<16x16xf32> -> vector<16x16xf32>
    %cst_28 = arith.constant 0.353553385 : f32
    %76 = vector.broadcast %cst_28 : f32 to vector<16x16xf32>
    %77 = arith.mulf %75, %76 : vector<16x16xf32>
    %cst_29 = arith.constant dense<0xFF800000> : vector<16xf32>
    %78 = vector.multi_reduction <maximumf>, %77, %cst_29 [1] : vector<16x16xf32> to vector<16xf32>
    %79 = vector.shape_cast %78 : vector<16xf32> to vector<16x1xf32>
    %80 = vector.broadcast %79 : vector<16x1xf32> to vector<16x16xf32>
    %81 = arith.subf %77, %80 : vector<16x16xf32>
    %82 = math.exp %81 : vector<16x16xf32>
    %cst_30 = arith.constant dense<0.000000e+00> : vector<16xf32>
    %83 = vector.multi_reduction <add>, %82, %cst_30 [1] : vector<16x16xf32> to vector<16xf32>
    %84 = vector.shape_cast %83 : vector<16xf32> to vector<16x1xf32>
    %85 = tpu.reciprocal %84 {approx = true} : vector<16x1xf32> -> vector<16x1xf32>
    %86 = vector.broadcast %85 : vector<16x1xf32> to vector<16x16xf32>
    %87 = arith.mulf %82, %86 : vector<16x16xf32>
    %cst_31 = arith.constant dense<0.000000e+00> : vector<16x8xf32>
    %88 = tpu.matmul %87, %73, %cst_31 {dimension_numbers = #tpu.dot_dimension_numbers<[1], [0], [0], [1], [0, 0, 1, 1], [], []>} : vector<16x16xf32>, vector<16x8xf32>, vector<16x8xf32> -> vector<16x8xf32>
    %c24 = arith.constant 24 : index
    %c0_32 = arith.constant 0 : index
    %89 = vector.load %arg3[%c24, %c0_32] : memref<32x32xf32, #tpu.memory_space<vmem>>, vector<8x32xf32>
    %cst_33 = arith.constant dense<0.000000e+00> : vector<16x32xf32>
    %90 = tpu.matmul %88, %89, %cst_33 {dimension_numbers = #tpu.dot_dimension_numbers<[1], [0], [0], [1], [0, 0, 1, 1], [], []>} : vector<16x8xf32>, vector<8x32xf32>, vector<16x32xf32> -> vector<16x32xf32>
    %91 = arith.addf %70, %90 : vector<16x32xf32>
    %92 = vector.extract_strided_slice %6 {offsets = [16, 0], sizes = [16, 8], strides = [1, 1]} : vector<32x32xf32> to vector<16x8xf32>
    %93 = vector.extract_strided_slice %7 {offsets = [16, 0], sizes = [16, 8], strides = [1, 1]} : vector<32x32xf32> to vector<16x8xf32>
    %94 = vector.extract_strided_slice %8 {offsets = [16, 0], sizes = [16, 8], strides = [1, 1]} : vector<32x32xf32> to vector<16x8xf32>
    %95 = tpu.transpose %93, [1, 0] : vector<16x8xf32> -> vector<8x16xf32>
    %cst_34 = arith.constant dense<0.000000e+00> : vector<16x16xf32>
    %96 = tpu.matmul %92, %95, %cst_34 {dimension_numbers = #tpu.dot_dimension_numbers<[1], [0], [0], [1], [0, 0, 1, 1], [], []>} : vector<16x8xf32>, vector<8x16xf32>, vector<16x16xf32> -> vector<16x16xf32>
    %cst_35 = arith.constant 0.353553385 : f32
    %97 = vector.broadcast %cst_35 : f32 to vector<16x16xf32>
    %98 = arith.mulf %96, %97 : vector<16x16xf32>
    %cst_36 = arith.constant dense<0xFF800000> : vector<16xf32>
    %99 = vector.multi_reduction <maximumf>, %98, %cst_36 [1] : vector<16x16xf32> to vector<16xf32>
    %100 = vector.shape_cast %99 : vector<16xf32> to vector<16x1xf32>
    %101 = vector.broadcast %100 : vector<16x1xf32> to vector<16x16xf32>
    %102 = arith.subf %98, %101 : vector<16x16xf32>
    %103 = math.exp %102 : vector<16x16xf32>
    %cst_37 = arith.constant dense<0.000000e+00> : vector<16xf32>
    %104 = vector.multi_reduction <add>, %103, %cst_37 [1] : vector<16x16xf32> to vector<16xf32>
    %105 = vector.shape_cast %104 : vector<16xf32> to vector<16x1xf32>
    %106 = tpu.reciprocal %105 {approx = true} : vector<16x1xf32> -> vector<16x1xf32>
    %107 = vector.broadcast %106 : vector<16x1xf32> to vector<16x16xf32>
    %108 = arith.mulf %103, %107 : vector<16x16xf32>
    %cst_38 = arith.constant dense<0.000000e+00> : vector<16x8xf32>
    %109 = tpu.matmul %108, %94, %cst_38 {dimension_numbers = #tpu.dot_dimension_numbers<[1], [0], [0], [1], [0, 0, 1, 1], [], []>} : vector<16x16xf32>, vector<16x8xf32>, vector<16x8xf32> -> vector<16x8xf32>
    %c0_39 = arith.constant 0 : index
    %c0_40 = arith.constant 0 : index
    %110 = vector.load %arg3[%c0_39, %c0_40] : memref<32x32xf32, #tpu.memory_space<vmem>>, vector<8x32xf32>
    %cst_41 = arith.constant dense<0.000000e+00> : vector<16x32xf32>
    %111 = tpu.matmul %109, %110, %cst_41 {dimension_numbers = #tpu.dot_dimension_numbers<[1], [0], [0], [1], [0, 0, 1, 1], [], []>} : vector<16x8xf32>, vector<8x32xf32>, vector<16x32xf32> -> vector<16x32xf32>
    %112 = vector.extract_strided_slice %6 {offsets = [16, 8], sizes = [16, 8], strides = [1, 1]} : vector<32x32xf32> to vector<16x8xf32>
    %113 = vector.extract_strided_slice %7 {offsets = [16, 8], sizes = [16, 8], strides = [1, 1]} : vector<32x32xf32> to vector<16x8xf32>
    %114 = vector.extract_strided_slice %8 {offsets = [16, 8], sizes = [16, 8], strides = [1, 1]} : vector<32x32xf32> to vector<16x8xf32>
    %115 = tpu.transpose %113, [1, 0] : vector<16x8xf32> -> vector<8x16xf32>
    %cst_42 = arith.constant dense<0.000000e+00> : vector<16x16xf32>
    %116 = tpu.matmul %112, %115, %cst_42 {dimension_numbers = #tpu.dot_dimension_numbers<[1], [0], [0], [1], [0, 0, 1, 1], [], []>} : vector<16x8xf32>, vector<8x16xf32>, vector<16x16xf32> -> vector<16x16xf32>
    %cst_43 = arith.constant 0.353553385 : f32
    %117 = vector.broadcast %cst_43 : f32 to vector<16x16xf32>
    %118 = arith.mulf %116, %117 : vector<16x16xf32>
    %cst_44 = arith.constant dense<0xFF800000> : vector<16xf32>
    %119 = vector.multi_reduction <maximumf>, %118, %cst_44 [1] : vector<16x16xf32> to vector<16xf32>
    %120 = vector.shape_cast %119 : vector<16xf32> to vector<16x1xf32>
    %121 = vector.broadcast %120 : vector<16x1xf32> to vector<16x16xf32>
    %122 = arith.subf %118, %121 : vector<16x16xf32>
    %123 = math.exp %122 : vector<16x16xf32>
    %cst_45 = arith.constant dense<0.000000e+00> : vector<16xf32>
    %124 = vector.multi_reduction <add>, %123, %cst_45 [1] : vector<16x16xf32> to vector<16xf32>
    %125 = vector.shape_cast %124 : vector<16xf32> to vector<16x1xf32>
    %126 = tpu.reciprocal %125 {approx = true} : vector<16x1xf32> -> vector<16x1xf32>
    %127 = vector.broadcast %126 : vector<16x1xf32> to vector<16x16xf32>
    %128 = arith.mulf %123, %127 : vector<16x16xf32>
    %cst_46 = arith.constant dense<0.000000e+00> : vector<16x8xf32>
    %129 = tpu.matmul %128, %114, %cst_46 {dimension_numbers = #tpu.dot_dimension_numbers<[1], [0], [0], [1], [0, 0, 1, 1], [], []>} : vector<16x16xf32>, vector<16x8xf32>, vector<16x8xf32> -> vector<16x8xf32>
    %c8_47 = arith.constant 8 : index
    %c0_48 = arith.constant 0 : index
    %130 = vector.load %arg3[%c8_47, %c0_48] : memref<32x32xf32, #tpu.memory_space<vmem>>, vector<8x32xf32>
    %cst_49 = arith.constant dense<0.000000e+00> : vector<16x32xf32>
    %131 = tpu.matmul %129, %130, %cst_49 {dimension_numbers = #tpu.dot_dimension_numbers<[1], [0], [0], [1], [0, 0, 1, 1], [], []>} : vector<16x8xf32>, vector<8x32xf32>, vector<16x32xf32> -> vector<16x32xf32>
    %132 = arith.addf %111, %131 : vector<16x32xf32>
    %133 = vector.extract_strided_slice %6 {offsets = [16, 16], sizes = [16, 8], strides = [1, 1]} : vector<32x32xf32> to vector<16x8xf32>
    %134 = vector.extract_strided_slice %7 {offsets = [16, 16], sizes = [16, 8], strides = [1, 1]} : vector<32x32xf32> to vector<16x8xf32>
    %135 = vector.extract_strided_slice %8 {offsets = [16, 16], sizes = [16, 8], strides = [1, 1]} : vector<32x32xf32> to vector<16x8xf32>
    %136 = tpu.transpose %134, [1, 0] : vector<16x8xf32> -> vector<8x16xf32>
    %cst_50 = arith.constant dense<0.000000e+00> : vector<16x16xf32>
    %137 = tpu.matmul %133, %136, %cst_50 {dimension_numbers = #tpu.dot_dimension_numbers<[1], [0], [0], [1], [0, 0, 1, 1], [], []>} : vector<16x8xf32>, vector<8x16xf32>, vector<16x16xf32> -> vector<16x16xf32>
    %cst_51 = arith.constant 0.353553385 : f32
    %138 = vector.broadcast %cst_51 : f32 to vector<16x16xf32>
    %139 = arith.mulf %137, %138 : vector<16x16xf32>
    %cst_52 = arith.constant dense<0xFF800000> : vector<16xf32>
    %140 = vector.multi_reduction <maximumf>, %139, %cst_52 [1] : vector<16x16xf32> to vector<16xf32>
    %141 = vector.shape_cast %140 : vector<16xf32> to vector<16x1xf32>
    %142 = vector.broadcast %141 : vector<16x1xf32> to vector<16x16xf32>
    %143 = arith.subf %139, %142 : vector<16x16xf32>
    %144 = math.exp %143 : vector<16x16xf32>
    %cst_53 = arith.constant dense<0.000000e+00> : vector<16xf32>
    %145 = vector.multi_reduction <add>, %144, %cst_53 [1] : vector<16x16xf32> to vector<16xf32>
    %146 = vector.shape_cast %145 : vector<16xf32> to vector<16x1xf32>
    %147 = tpu.reciprocal %146 {approx = true} : vector<16x1xf32> -> vector<16x1xf32>
    %148 = vector.broadcast %147 : vector<16x1xf32> to vector<16x16xf32>
    %149 = arith.mulf %144, %148 : vector<16x16xf32>
    %cst_54 = arith.constant dense<0.000000e+00> : vector<16x8xf32>
    %150 = tpu.matmul %149, %135, %cst_54 {dimension_numbers = #tpu.dot_dimension_numbers<[1], [0], [0], [1], [0, 0, 1, 1], [], []>} : vector<16x16xf32>, vector<16x8xf32>, vector<16x8xf32> -> vector<16x8xf32>
    %c16_55 = arith.constant 16 : index
    %c0_56 = arith.constant 0 : index
    %151 = vector.load %arg3[%c16_55, %c0_56] : memref<32x32xf32, #tpu.memory_space<vmem>>, vector<8x32xf32>
    %cst_57 = arith.constant dense<0.000000e+00> : vector<16x32xf32>
    %152 = tpu.matmul %150, %151, %cst_57 {dimension_numbers = #tpu.dot_dimension_numbers<[1], [0], [0], [1], [0, 0, 1, 1], [], []>} : vector<16x8xf32>, vector<8x32xf32>, vector<16x32xf32> -> vector<16x32xf32>
    %153 = arith.addf %132, %152 : vector<16x32xf32>
    %154 = vector.extract_strided_slice %6 {offsets = [16, 24], sizes = [16, 8], strides = [1, 1]} : vector<32x32xf32> to vector<16x8xf32>
    %155 = vector.extract_strided_slice %7 {offsets = [16, 24], sizes = [16, 8], strides = [1, 1]} : vector<32x32xf32> to vector<16x8xf32>
    %156 = vector.extract_strided_slice %8 {offsets = [16, 24], sizes = [16, 8], strides = [1, 1]} : vector<32x32xf32> to vector<16x8xf32>
    %157 = tpu.transpose %155, [1, 0] : vector<16x8xf32> -> vector<8x16xf32>
    %cst_58 = arith.constant dense<0.000000e+00> : vector<16x16xf32>
    %158 = tpu.matmul %154, %157, %cst_58 {dimension_numbers = #tpu.dot_dimension_numbers<[1], [0], [0], [1], [0, 0, 1, 1], [], []>} : vector<16x8xf32>, vector<8x16xf32>, vector<16x16xf32> -> vector<16x16xf32>
    %cst_59 = arith.constant 0.353553385 : f32
    %159 = vector.broadcast %cst_59 : f32 to vector<16x16xf32>
    %160 = arith.mulf %158, %159 : vector<16x16xf32>
    %cst_60 = arith.constant dense<0xFF800000> : vector<16xf32>
    %161 = vector.multi_reduction <maximumf>, %160, %cst_60 [1] : vector<16x16xf32> to vector<16xf32>
    %162 = vector.shape_cast %161 : vector<16xf32> to vector<16x1xf32>
    %163 = vector.broadcast %162 : vector<16x1xf32> to vector<16x16xf32>
    %164 = arith.subf %160, %163 : vector<16x16xf32>
    %165 = math.exp %164 : vector<16x16xf32>
    %cst_61 = arith.constant dense<0.000000e+00> : vector<16xf32>
    %166 = vector.multi_reduction <add>, %165, %cst_61 [1] : vector<16x16xf32> to vector<16xf32>
    %167 = vector.shape_cast %166 : vector<16xf32> to vector<16x1xf32>
    %168 = tpu.reciprocal %167 {approx = true} : vector<16x1xf32> -> vector<16x1xf32>
    %169 = vector.broadcast %168 : vector<16x1xf32> to vector<16x16xf32>
    %170 = arith.mulf %165, %169 : vector<16x16xf32>
    %cst_62 = arith.constant dense<0.000000e+00> : vector<16x8xf32>
    %171 = tpu.matmul %170, %156, %cst_62 {dimension_numbers = #tpu.dot_dimension_numbers<[1], [0], [0], [1], [0, 0, 1, 1], [], []>} : vector<16x16xf32>, vector<16x8xf32>, vector<16x8xf32> -> vector<16x8xf32>
    %c24_63 = arith.constant 24 : index
    %c0_64 = arith.constant 0 : index
    %172 = vector.load %arg3[%c24_63, %c0_64] : memref<32x32xf32, #tpu.memory_space<vmem>>, vector<8x32xf32>
    %cst_65 = arith.constant dense<0.000000e+00> : vector<16x32xf32>
    %173 = tpu.matmul %171, %172, %cst_65 {dimension_numbers = #tpu.dot_dimension_numbers<[1], [0], [0], [1], [0, 0, 1, 1], [], []>} : vector<16x8xf32>, vector<8x32xf32>, vector<16x32xf32> -> vector<16x32xf32>
    %174 = arith.addf %153, %173 : vector<16x32xf32>
    %175 = tpu.concatenate %91, %174 in 0 : vector<16x32xf32>, vector<16x32xf32> -> vector<32x32xf32>
    %c0_66 = arith.constant 0 : index
    %c0_67 = arith.constant 0 : index
    %176 = vector.load %arg4[%c0_66, %c0_67] : memref<1x32xf32, #tpu.memory_space<vmem>>, vector<1x32xf32>
    %177 = vector.broadcast %176 : vector<1x32xf32> to vector<32x32xf32>
    %178 = arith.addf %175, %177 : vector<32x32xf32>
    %179 = arith.addf %0, %178 : vector<32x32xf32>
    %c0_68 = arith.constant 0 : index
    %c0_69 = arith.constant 0 : index
    %180 = vector.load %arg5[%c0_68, %c0_69] : memref<1x32xf32, #tpu.memory_space<vmem>>, vector<1x32xf32>
    %c0_70 = arith.constant 0 : index
    %c0_71 = arith.constant 0 : index
    %181 = vector.load %arg6[%c0_70, %c0_71] : memref<1x32xf32, #tpu.memory_space<vmem>>, vector<1x32xf32>
    %cst_72 = arith.constant dense<0.000000e+00> : vector<32xf32>
    %182 = vector.multi_reduction <add>, %179, %cst_72 [1] : vector<32x32xf32> to vector<32xf32>
    %183 = vector.shape_cast %182 : vector<32xf32> to vector<32x1xf32>
    %cst_73 = arith.constant 3.200000e+01 : f32
    %184 = vector.broadcast %cst_73 : f32 to vector<32x1xf32>
    %185 = arith.divf %183, %184 : vector<32x1xf32>
    %186 = vector.broadcast %185 : vector<32x1xf32> to vector<32x32xf32>
    %187 = arith.subf %179, %186 : vector<32x32xf32>
    %188 = arith.mulf %187, %187 : vector<32x32xf32>
    %cst_74 = arith.constant dense<0.000000e+00> : vector<32xf32>
    %189 = vector.multi_reduction <add>, %188, %cst_74 [1] : vector<32x32xf32> to vector<32xf32>
    %190 = vector.shape_cast %189 : vector<32xf32> to vector<32x1xf32>
    %cst_75 = arith.constant 3.200000e+01 : f32
    %191 = vector.broadcast %cst_75 : f32 to vector<32x1xf32>
    %192 = arith.divf %190, %191 : vector<32x1xf32>
    %cst_76 = arith.constant 9.99999974E-6 : f32
    %193 = vector.broadcast %cst_76 : f32 to vector<32x1xf32>
    %194 = arith.addf %192, %193 : vector<32x1xf32>
    %195 = math.rsqrt %194 : vector<32x1xf32>
    %196 = vector.broadcast %195 : vector<32x1xf32> to vector<32x32xf32>
    %197 = arith.mulf %187, %196 : vector<32x32xf32>
    %198 = vector.broadcast %180 : vector<1x32xf32> to vector<32x32xf32>
    %199 = arith.mulf %197, %198 : vector<32x32xf32>
    %200 = vector.broadcast %181 : vector<1x32xf32> to vector<32x32xf32>
    %201 = arith.addf %199, %200 : vector<32x32xf32>
    %c0_77 = arith.constant 0 : index
    %c0_78 = arith.constant 0 : index
    %202 = vector.load %arg7[%c0_77, %c0_78] : memref<32x64xf32, #tpu.memory_space<vmem>>, vector<32x64xf32>
    %cst_79 = arith.constant dense<0.000000e+00> : vector<32x64xf32>
    %203 = tpu.matmul %201, %202, %cst_79 {dimension_numbers = #tpu.dot_dimension_numbers<[1], [0], [0], [1], [0, 0, 1, 1], [], []>} : vector<32x32xf32>, vector<32x64xf32>, vector<32x64xf32> -> vector<32x64xf32>
    %c0_80 = arith.constant 0 : index
    %c0_81 = arith.constant 0 : index
    %204 = vector.load %arg8[%c0_80, %c0_81] : memref<1x64xf32, #tpu.memory_space<vmem>>, vector<1x64xf32>
    %205 = vector.broadcast %204 : vector<1x64xf32> to vector<32x64xf32>
    %206 = arith.addf %203, %205 : vector<32x64xf32>
    %cst_82 = arith.constant 0.000000e+00 : f32
    %207 = vector.broadcast %cst_82 : f32 to vector<32x64xf32>
    %208 = arith.maximumf %206, %207 : vector<32x64xf32>
    %c0_83 = arith.constant 0 : index
    %c0_84 = arith.constant 0 : index
    %209 = vector.load %arg9[%c0_83, %c0_84] : memref<64x32xf32, #tpu.memory_space<vmem>>, vector<64x32xf32>
    %cst_85 = arith.constant dense<0.000000e+00> : vector<32x32xf32>
    %210 = tpu.matmul %208, %209, %cst_85 {dimension_numbers = #tpu.dot_dimension_numbers<[1], [0], [0], [1], [0, 0, 1, 1], [], []>} : vector<32x64xf32>, vector<64x32xf32>, vector<32x32xf32> -> vector<32x32xf32>
    %c0_86 = arith.constant 0 : index
    %c0_87 = arith.constant 0 : index
    %211 = vector.load %arg10[%c0_86, %c0_87] : memref<1x32xf32, #tpu.memory_space<vmem>>, vector<1x32xf32>
    %212 = vector.broadcast %211 : vector<1x32xf32> to vector<32x32xf32>
    %213 = arith.addf %210, %212 : vector<32x32xf32>
    %214 = arith.addf %201, %213 : vector<32x32xf32>
    %c0_88 = arith.constant 0 : index
    %c0_89 = arith.constant 0 : index
    %215 = vector.load %arg11[%c0_88, %c0_89] : memref<1x32xf32, #tpu.memory_space<vmem>>, vector<1x32xf32>
    %c0_90 = arith.constant 0 : index
    %c0_91 = arith.constant 0 : index
    %216 = vector.load %arg12[%c0_90, %c0_91] : memref<1x32xf32, #tpu.memory_space<vmem>>, vector<1x32xf32>
    %cst_92 = arith.constant dense<0.000000e+00> : vector<32xf32>
    %217 = vector.multi_reduction <add>, %214, %cst_92 [1] : vector<32x32xf32> to vector<32xf32>
    %218 = vector.shape_cast %217 : vector<32xf32> to vector<32x1xf32>
    %cst_93 = arith.constant 3.200000e+01 : f32
    %219 = vector.broadcast %cst_93 : f32 to vector<32x1xf32>
    %220 = arith.divf %218, %219 : vector<32x1xf32>
    %221 = vector.broadcast %220 : vector<32x1xf32> to vector<32x32xf32>
    %222 = arith.subf %214, %221 : vector<32x32xf32>
    %223 = arith.mulf %222, %222 : vector<32x32xf32>
    %cst_94 = arith.constant dense<0.000000e+00> : vector<32xf32>
    %224 = vector.multi_reduction <add>, %223, %cst_94 [1] : vector<32x32xf32> to vector<32xf32>
    %225 = vector.shape_cast %224 : vector<32xf32> to vector<32x1xf32>
    %cst_95 = arith.constant 3.200000e+01 : f32
    %226 = vector.broadcast %cst_95 : f32 to vector<32x1xf32>
    %227 = arith.divf %225, %226 : vector<32x1xf32>
    %cst_96 = arith.constant 9.99999974E-6 : f32
    %228 = vector.broadcast %cst_96 : f32 to vector<32x1xf32>
    %229 = arith.addf %227, %228 : vector<32x1xf32>
    %230 = math.rsqrt %229 : vector<32x1xf32>
    %231 = vector.broadcast %230 : vector<32x1xf32> to vector<32x32xf32>
    %232 = arith.mulf %222, %231 : vector<32x32xf32>
    %233 = vector.broadcast %215 : vector<1x32xf32> to vector<32x32xf32>
    %234 = arith.mulf %232, %233 : vector<32x32xf32>
    %235 = vector.broadcast %216 : vector<1x32xf32> to vector<32x32xf32>
    %236 = arith.addf %234, %235 : vector<32x32xf32>
    %c0_97 = arith.constant 0 : index
    %c0_98 = arith.constant 0 : index
    %237 = vector.load %arg13[%c0_97, %c0_98] : memref<32x32xf32, #tpu.memory_space<vmem>>, vector<32x32xf32>
    tpu.vector_store %arg13[%c0_97, %c0_98], %236 {strides = array<i32>} : memref<32x32xf32, #tpu.memory_space<vmem>>, vector<32x32xf32>,
    return
  }
}

module attributes {stable_mosaic.version = 11 : i64} {
  func.func @_distil_conv_kernel(%arg0: memref<32x32xf32, #tpu.memory_space<vmem>>, %arg1: memref<32x32xf32, #tpu.memory_space<vmem>>, %arg2: memref<32x32xf32, #tpu.memory_space<vmem>>, %arg3: memref<32x32xf32, #tpu.memory_space<vmem>>, %arg4: memref<32x32xf32, #tpu.memory_space<vmem>>, %arg5: memref<32x1xf32, #tpu.memory_space<vmem>>, %arg6: memref<32x1xf32, #tpu.memory_space<vmem>>, %arg7: memref<16x32xf32, #tpu.memory_space<vmem>>, %arg8: memref<32x32xf32, #tpu.memory_space<vmem>>, %arg9: memref<32x32xf32, #tpu.memory_space<vmem>>, %arg10: memref<32x32xf32, #tpu.memory_space<vmem>>, %arg11: memref<1x32xf32, #tpu.memory_space<vmem>>, %arg12: memref<1x32xf32, #tpu.memory_space<vmem>>, %arg13: memref<1x32xf32, #tpu.memory_space<vmem>>, %arg14: memref<16x32xf32, #tpu.memory_space<vmem>>) attributes {dimension_semantics = [], scalar_prefetch = 0 : i64, scratch_operands = 0 : i64, tpu.core_type = #tpu.core_type<tc>} {
    %c0 = arith.constant 0 : index
    %c0_0 = arith.constant 0 : index
    %0 = vector.load %arg0[%c0, %c0_0] : memref<32x32xf32, #tpu.memory_space<vmem>>, vector<32x32xf32>
    %c0_1 = arith.constant 0 : index
    %c0_2 = arith.constant 0 : index
    %1 = vector.load %arg1[%c0_1, %c0_2] : memref<32x32xf32, #tpu.memory_space<vmem>>, vector<32x32xf32>
    %cst = arith.constant dense<0.000000e+00> : vector<32x32xf32>
    %2 = tpu.matmul %1, %0, %cst {dimension_numbers = #tpu.dot_dimension_numbers<[1], [0], [0], [1], [0, 0, 1, 1], [], []>} : vector<32x32xf32>, vector<32x32xf32>, vector<32x32xf32> -> vector<32x32xf32>
    %c0_3 = arith.constant 0 : index
    %c0_4 = arith.constant 0 : index
    %3 = vector.load %arg2[%c0_3, %c0_4] : memref<32x32xf32, #tpu.memory_space<vmem>>, vector<32x32xf32>
    %cst_5 = arith.constant dense<0.000000e+00> : vector<32x32xf32>
    %4 = tpu.matmul %3, %0, %cst_5 {dimension_numbers = #tpu.dot_dimension_numbers<[1], [0], [0], [1], [0, 0, 1, 1], [], []>} : vector<32x32xf32>, vector<32x32xf32>, vector<32x32xf32> -> vector<32x32xf32>
    %c0_6 = arith.constant 0 : index
    %c0_7 = arith.constant 0 : index
    %5 = vector.load %arg8[%c0_6, %c0_7] : memref<32x32xf32, #tpu.memory_space<vmem>>, vector<32x32xf32>
    %cst_8 = arith.constant dense<0.000000e+00> : vector<32x32xf32>
    %6 = tpu.matmul %2, %5, %cst_8 {dimension_numbers = #tpu.dot_dimension_numbers<[1], [0], [0], [1], [0, 0, 1, 1], [], []>} : vector<32x32xf32>, vector<32x32xf32>, vector<32x32xf32> -> vector<32x32xf32>
    %c0_9 = arith.constant 0 : index
    %c0_10 = arith.constant 0 : index
    %7 = vector.load %arg9[%c0_9, %c0_10] : memref<32x32xf32, #tpu.memory_space<vmem>>, vector<32x32xf32>
    %cst_11 = arith.constant dense<0.000000e+00> : vector<32x32xf32>
    %8 = tpu.matmul %0, %7, %cst_11 {dimension_numbers = #tpu.dot_dimension_numbers<[1], [0], [0], [1], [0, 0, 1, 1], [], []>} : vector<32x32xf32>, vector<32x32xf32>, vector<32x32xf32> -> vector<32x32xf32>
    %9 = arith.addf %6, %8 : vector<32x32xf32>
    %c0_12 = arith.constant 0 : index
    %c0_13 = arith.constant 0 : index
    %10 = vector.load %arg10[%c0_12, %c0_13] : memref<32x32xf32, #tpu.memory_space<vmem>>, vector<32x32xf32>
    %cst_14 = arith.constant dense<0.000000e+00> : vector<32x32xf32>
    %11 = tpu.matmul %4, %10, %cst_14 {dimension_numbers = #tpu.dot_dimension_numbers<[1], [0], [0], [1], [0, 0, 1, 1], [], []>} : vector<32x32xf32>, vector<32x32xf32>, vector<32x32xf32> -> vector<32x32xf32>
    %12 = arith.addf %9, %11 : vector<32x32xf32>
    %c0_15 = arith.constant 0 : index
    %c0_16 = arith.constant 0 : index
    %13 = vector.load %arg11[%c0_15, %c0_16] : memref<1x32xf32, #tpu.memory_space<vmem>>, vector<1x32xf32>
    %14 = vector.broadcast %13 : vector<1x32xf32> to vector<32x32xf32>
    %15 = arith.addf %12, %14 : vector<32x32xf32>
    %cst_17 = arith.constant dense<0.000000e+00> : vector<32xf32>
    %16 = vector.multi_reduction <add>, %15, %cst_17 [0] : vector<32x32xf32> to vector<32xf32>
    %17 = vector.shape_cast %16 : vector<32xf32> to vector<1x32xf32>
    %cst_18 = arith.constant 3.200000e+01 : f32
    %18 = vector.broadcast %cst_18 : f32 to vector<1x32xf32>
    %19 = arith.divf %17, %18 : vector<1x32xf32>
    %20 = vector.broadcast %19 : vector<1x32xf32> to vector<32x32xf32>
    %21 = arith.subf %15, %20 : vector<32x32xf32>
    %22 = arith.mulf %21, %21 : vector<32x32xf32>
    %cst_19 = arith.constant dense<0.000000e+00> : vector<32xf32>
    %23 = vector.multi_reduction <add>, %22, %cst_19 [0] : vector<32x32xf32> to vector<32xf32>
    %24 = vector.shape_cast %23 : vector<32xf32> to vector<1x32xf32>
    %cst_20 = arith.constant 3.200000e+01 : f32
    %25 = vector.broadcast %cst_20 : f32 to vector<1x32xf32>
    %26 = arith.divf %24, %25 : vector<1x32xf32>
    %cst_21 = arith.constant 9.99999974E-6 : f32
    %27 = vector.broadcast %cst_21 : f32 to vector<1x32xf32>
    %28 = arith.addf %26, %27 : vector<1x32xf32>
    %29 = math.rsqrt %28 : vector<1x32xf32>
    %30 = vector.broadcast %29 : vector<1x32xf32> to vector<32x32xf32>
    %31 = arith.mulf %21, %30 : vector<32x32xf32>
    %c0_22 = arith.constant 0 : index
    %c0_23 = arith.constant 0 : index
    %32 = vector.load %arg12[%c0_22, %c0_23] : memref<1x32xf32, #tpu.memory_space<vmem>>, vector<1x32xf32>
    %33 = vector.broadcast %32 : vector<1x32xf32> to vector<32x32xf32>
    %34 = arith.mulf %31, %33 : vector<32x32xf32>
    %c0_24 = arith.constant 0 : index
    %c0_25 = arith.constant 0 : index
    %35 = vector.load %arg13[%c0_24, %c0_25] : memref<1x32xf32, #tpu.memory_space<vmem>>, vector<1x32xf32>
    %36 = vector.broadcast %35 : vector<1x32xf32> to vector<32x32xf32>
    %37 = arith.addf %34, %36 : vector<32x32xf32>
    %cst_26 = arith.constant 0.000000e+00 : f32
    %38 = vector.broadcast %cst_26 : f32 to vector<32x32xf32>
    %39 = arith.cmpf ogt, %37, %38 : vector<32x32xf32>
    %40 = math.exp %37 : vector<32x32xf32>
    %cst_27 = arith.constant 1.000000e+00 : f32
    %41 = vector.broadcast %cst_27 : f32 to vector<32x32xf32>
    %42 = arith.subf %40, %41 : vector<32x32xf32>
    %43 = arith.select %39, %37, %42 : vector<32x32xi1>, vector<32x32xf32>
    %c0_28 = arith.constant 0 : index
    %c0_29 = arith.constant 0 : index
    %44 = vector.load %arg3[%c0_28, %c0_29] : memref<32x32xf32, #tpu.memory_space<vmem>>, vector<32x32xf32>
    %cst_30 = arith.constant dense<0.000000e+00> : vector<32x32xf32>
    %45 = tpu.matmul %44, %43, %cst_30 {dimension_numbers = #tpu.dot_dimension_numbers<[1], [0], [0], [1], [0, 0, 1, 1], [], []>} : vector<32x32xf32>, vector<32x32xf32>, vector<32x32xf32> -> vector<32x32xf32>
    %c0_31 = arith.constant 0 : index
    %c0_32 = arith.constant 0 : index
    %46 = vector.load %arg5[%c0_31, %c0_32] : memref<32x1xf32, #tpu.memory_space<vmem>>, vector<32x1xf32>
    %47 = vector.broadcast %46 : vector<32x1xf32> to vector<32x32xf32>
    %48 = arith.addf %45, %47 : vector<32x32xf32>
    %c0_33 = arith.constant 0 : index
    %c0_34 = arith.constant 0 : index
    %49 = vector.load %arg4[%c0_33, %c0_34] : memref<32x32xf32, #tpu.memory_space<vmem>>, vector<32x32xf32>
    %cst_35 = arith.constant dense<0.000000e+00> : vector<32x32xf32>
    %50 = tpu.matmul %49, %43, %cst_35 {dimension_numbers = #tpu.dot_dimension_numbers<[1], [0], [0], [1], [0, 0, 1, 1], [], []>} : vector<32x32xf32>, vector<32x32xf32>, vector<32x32xf32> -> vector<32x32xf32>
    %c0_36 = arith.constant 0 : index
    %c0_37 = arith.constant 0 : index
    %51 = vector.load %arg6[%c0_36, %c0_37] : memref<32x1xf32, #tpu.memory_space<vmem>>, vector<32x1xf32>
    %52 = vector.broadcast %51 : vector<32x1xf32> to vector<32x32xf32>
    %53 = arith.addf %50, %52 : vector<32x32xf32>
    %54 = arith.maximumf %48, %43 : vector<32x32xf32>
    %55 = arith.maximumf %54, %53 : vector<32x32xf32>
    %c0_38 = arith.constant 0 : index
    %c0_39 = arith.constant 0 : index
    %56 = vector.load %arg7[%c0_38, %c0_39] : memref<16x32xf32, #tpu.memory_space<vmem>>, vector<16x32xf32>
    %cst_40 = arith.constant dense<0.000000e+00> : vector<16x32xf32>
    %57 = tpu.matmul %56, %55, %cst_40 {dimension_numbers = #tpu.dot_dimension_numbers<[1], [0], [0], [1], [0, 0, 1, 1], [], []>} : vector<16x32xf32>, vector<32x32xf32>, vector<16x32xf32> -> vector<16x32xf32>
    %c0_41 = arith.constant 0 : index
    %c0_42 = arith.constant 0 : index
    %58 = vector.load %arg14[%c0_41, %c0_42] : memref<16x32xf32, #tpu.memory_space<vmem>>, vector<16x32xf32>
    tpu.vector_store %arg14[%c0_41, %c0_42], %57 {strides = array<i32>} : memref<16x32xf32, #tpu.memory_space<vmem>>, vector<16x32xf32>,
    return
  }
}

module attributes {stable_mosaic.version = 11 : i64} {
  func.func @_encoder_layer_kernel(%arg0: memref<16x32xf32, #tpu.memory_space<vmem>>, %arg1: memref<32x96xf32, #tpu.memory_space<vmem>>, %arg2: memref<1x96xf32, #tpu.memory_space<vmem>>, %arg3: memref<32x32xf32, #tpu.memory_space<vmem>>, %arg4: memref<1x32xf32, #tpu.memory_space<vmem>>, %arg5: memref<1x32xf32, #tpu.memory_space<vmem>>, %arg6: memref<1x32xf32, #tpu.memory_space<vmem>>, %arg7: memref<32x64xf32, #tpu.memory_space<vmem>>, %arg8: memref<1x64xf32, #tpu.memory_space<vmem>>, %arg9: memref<64x32xf32, #tpu.memory_space<vmem>>, %arg10: memref<1x32xf32, #tpu.memory_space<vmem>>, %arg11: memref<1x32xf32, #tpu.memory_space<vmem>>, %arg12: memref<1x32xf32, #tpu.memory_space<vmem>>, %arg13: memref<1x32xf32, #tpu.memory_space<vmem>>, %arg14: memref<1x32xf32, #tpu.memory_space<vmem>>, %arg15: memref<16x32xf32, #tpu.memory_space<vmem>>) attributes {dimension_semantics = [], scalar_prefetch = 0 : i64, scratch_operands = 0 : i64, tpu.core_type = #tpu.core_type<tc>} {
    %c0 = arith.constant 0 : index
    %c0_0 = arith.constant 0 : index
    %0 = vector.load %arg0[%c0, %c0_0] : memref<16x32xf32, #tpu.memory_space<vmem>>, vector<16x32xf32>
    %c0_1 = arith.constant 0 : index
    %c0_2 = arith.constant 0 : index
    %1 = vector.load %arg1[%c0_1, %c0_2] : memref<32x96xf32, #tpu.memory_space<vmem>>, vector<32x96xf32>
    %cst = arith.constant dense<0.000000e+00> : vector<16x96xf32>
    %2 = tpu.matmul %0, %1, %cst {dimension_numbers = #tpu.dot_dimension_numbers<[1], [0], [0], [1], [0, 0, 1, 1], [], []>} : vector<16x32xf32>, vector<32x96xf32>, vector<16x96xf32> -> vector<16x96xf32>
    %c0_3 = arith.constant 0 : index
    %c0_4 = arith.constant 0 : index
    %3 = vector.load %arg2[%c0_3, %c0_4] : memref<1x96xf32, #tpu.memory_space<vmem>>, vector<1x96xf32>
    %4 = vector.broadcast %3 : vector<1x96xf32> to vector<16x96xf32>
    %5 = arith.addf %2, %4 : vector<16x96xf32>
    %6 = vector.extract_strided_slice %5 {offsets = [0, 0], sizes = [16, 32], strides = [1, 1]} : vector<16x96xf32> to vector<16x32xf32>
    %7 = vector.extract_strided_slice %5 {offsets = [0, 32], sizes = [16, 32], strides = [1, 1]} : vector<16x96xf32> to vector<16x32xf32>
    %8 = vector.extract_strided_slice %5 {offsets = [0, 64], sizes = [16, 32], strides = [1, 1]} : vector<16x96xf32> to vector<16x32xf32>
    %9 = vector.extract_strided_slice %6 {offsets = [0, 0], sizes = [8, 8], strides = [1, 1]} : vector<16x32xf32> to vector<8x8xf32>
    %10 = vector.extract_strided_slice %7 {offsets = [0, 0], sizes = [8, 8], strides = [1, 1]} : vector<16x32xf32> to vector<8x8xf32>
    %11 = vector.extract_strided_slice %8 {offsets = [0, 0], sizes = [8, 8], strides = [1, 1]} : vector<16x32xf32> to vector<8x8xf32>
    %12 = tpu.transpose %10, [1, 0] : vector<8x8xf32> -> vector<8x8xf32>
    %cst_5 = arith.constant dense<0.000000e+00> : vector<8x8xf32>
    %13 = tpu.matmul %9, %12, %cst_5 {dimension_numbers = #tpu.dot_dimension_numbers<[1], [0], [0], [1], [0, 0, 1, 1], [], []>} : vector<8x8xf32>, vector<8x8xf32>, vector<8x8xf32> -> vector<8x8xf32>
    %cst_6 = arith.constant 0.353553385 : f32
    %14 = vector.broadcast %cst_6 : f32 to vector<8x8xf32>
    %15 = arith.mulf %13, %14 : vector<8x8xf32>
    %cst_7 = arith.constant dense<0xFF800000> : vector<8xf32>
    %16 = vector.multi_reduction <maximumf>, %15, %cst_7 [1] : vector<8x8xf32> to vector<8xf32>
    %17 = vector.shape_cast %16 : vector<8xf32> to vector<8x1xf32>
    %18 = vector.broadcast %17 : vector<8x1xf32> to vector<8x8xf32>
    %19 = arith.subf %15, %18 : vector<8x8xf32>
    %20 = math.exp %19 : vector<8x8xf32>
    %cst_8 = arith.constant dense<0.000000e+00> : vector<8xf32>
    %21 = vector.multi_reduction <add>, %20, %cst_8 [1] : vector<8x8xf32> to vector<8xf32>
    %22 = vector.shape_cast %21 : vector<8xf32> to vector<8x1xf32>
    %23 = tpu.reciprocal %22 {approx = true} : vector<8x1xf32> -> vector<8x1xf32>
    %24 = vector.broadcast %23 : vector<8x1xf32> to vector<8x8xf32>
    %25 = arith.mulf %20, %24 : vector<8x8xf32>
    %cst_9 = arith.constant dense<0.000000e+00> : vector<8x8xf32>
    %26 = tpu.matmul %25, %11, %cst_9 {dimension_numbers = #tpu.dot_dimension_numbers<[1], [0], [0], [1], [0, 0, 1, 1], [], []>} : vector<8x8xf32>, vector<8x8xf32>, vector<8x8xf32> -> vector<8x8xf32>
    %c0_10 = arith.constant 0 : index
    %c0_11 = arith.constant 0 : index
    %27 = vector.load %arg3[%c0_10, %c0_11] : memref<32x32xf32, #tpu.memory_space<vmem>>, vector<8x32xf32>
    %cst_12 = arith.constant dense<0.000000e+00> : vector<8x32xf32>
    %28 = tpu.matmul %26, %27, %cst_12 {dimension_numbers = #tpu.dot_dimension_numbers<[1], [0], [0], [1], [0, 0, 1, 1], [], []>} : vector<8x8xf32>, vector<8x32xf32>, vector<8x32xf32> -> vector<8x32xf32>
    %29 = vector.extract_strided_slice %6 {offsets = [0, 8], sizes = [8, 8], strides = [1, 1]} : vector<16x32xf32> to vector<8x8xf32>
    %30 = vector.extract_strided_slice %7 {offsets = [0, 8], sizes = [8, 8], strides = [1, 1]} : vector<16x32xf32> to vector<8x8xf32>
    %31 = vector.extract_strided_slice %8 {offsets = [0, 8], sizes = [8, 8], strides = [1, 1]} : vector<16x32xf32> to vector<8x8xf32>
    %32 = tpu.transpose %30, [1, 0] : vector<8x8xf32> -> vector<8x8xf32>
    %cst_13 = arith.constant dense<0.000000e+00> : vector<8x8xf32>
    %33 = tpu.matmul %29, %32, %cst_13 {dimension_numbers = #tpu.dot_dimension_numbers<[1], [0], [0], [1], [0, 0, 1, 1], [], []>} : vector<8x8xf32>, vector<8x8xf32>, vector<8x8xf32> -> vector<8x8xf32>
    %cst_14 = arith.constant 0.353553385 : f32
    %34 = vector.broadcast %cst_14 : f32 to vector<8x8xf32>
    %35 = arith.mulf %33, %34 : vector<8x8xf32>
    %cst_15 = arith.constant dense<0xFF800000> : vector<8xf32>
    %36 = vector.multi_reduction <maximumf>, %35, %cst_15 [1] : vector<8x8xf32> to vector<8xf32>
    %37 = vector.shape_cast %36 : vector<8xf32> to vector<8x1xf32>
    %38 = vector.broadcast %37 : vector<8x1xf32> to vector<8x8xf32>
    %39 = arith.subf %35, %38 : vector<8x8xf32>
    %40 = math.exp %39 : vector<8x8xf32>
    %cst_16 = arith.constant dense<0.000000e+00> : vector<8xf32>
    %41 = vector.multi_reduction <add>, %40, %cst_16 [1] : vector<8x8xf32> to vector<8xf32>
    %42 = vector.shape_cast %41 : vector<8xf32> to vector<8x1xf32>
    %43 = tpu.reciprocal %42 {approx = true} : vector<8x1xf32> -> vector<8x1xf32>
    %44 = vector.broadcast %43 : vector<8x1xf32> to vector<8x8xf32>
    %45 = arith.mulf %40, %44 : vector<8x8xf32>
    %cst_17 = arith.constant dense<0.000000e+00> : vector<8x8xf32>
    %46 = tpu.matmul %45, %31, %cst_17 {dimension_numbers = #tpu.dot_dimension_numbers<[1], [0], [0], [1], [0, 0, 1, 1], [], []>} : vector<8x8xf32>, vector<8x8xf32>, vector<8x8xf32> -> vector<8x8xf32>
    %c8 = arith.constant 8 : index
    %c0_18 = arith.constant 0 : index
    %47 = vector.load %arg3[%c8, %c0_18] : memref<32x32xf32, #tpu.memory_space<vmem>>, vector<8x32xf32>
    %cst_19 = arith.constant dense<0.000000e+00> : vector<8x32xf32>
    %48 = tpu.matmul %46, %47, %cst_19 {dimension_numbers = #tpu.dot_dimension_numbers<[1], [0], [0], [1], [0, 0, 1, 1], [], []>} : vector<8x8xf32>, vector<8x32xf32>, vector<8x32xf32> -> vector<8x32xf32>
    %49 = arith.addf %28, %48 : vector<8x32xf32>
    %50 = vector.extract_strided_slice %6 {offsets = [0, 16], sizes = [8, 8], strides = [1, 1]} : vector<16x32xf32> to vector<8x8xf32>
    %51 = vector.extract_strided_slice %7 {offsets = [0, 16], sizes = [8, 8], strides = [1, 1]} : vector<16x32xf32> to vector<8x8xf32>
    %52 = vector.extract_strided_slice %8 {offsets = [0, 16], sizes = [8, 8], strides = [1, 1]} : vector<16x32xf32> to vector<8x8xf32>
    %53 = tpu.transpose %51, [1, 0] : vector<8x8xf32> -> vector<8x8xf32>
    %cst_20 = arith.constant dense<0.000000e+00> : vector<8x8xf32>
    %54 = tpu.matmul %50, %53, %cst_20 {dimension_numbers = #tpu.dot_dimension_numbers<[1], [0], [0], [1], [0, 0, 1, 1], [], []>} : vector<8x8xf32>, vector<8x8xf32>, vector<8x8xf32> -> vector<8x8xf32>
    %cst_21 = arith.constant 0.353553385 : f32
    %55 = vector.broadcast %cst_21 : f32 to vector<8x8xf32>
    %56 = arith.mulf %54, %55 : vector<8x8xf32>
    %cst_22 = arith.constant dense<0xFF800000> : vector<8xf32>
    %57 = vector.multi_reduction <maximumf>, %56, %cst_22 [1] : vector<8x8xf32> to vector<8xf32>
    %58 = vector.shape_cast %57 : vector<8xf32> to vector<8x1xf32>
    %59 = vector.broadcast %58 : vector<8x1xf32> to vector<8x8xf32>
    %60 = arith.subf %56, %59 : vector<8x8xf32>
    %61 = math.exp %60 : vector<8x8xf32>
    %cst_23 = arith.constant dense<0.000000e+00> : vector<8xf32>
    %62 = vector.multi_reduction <add>, %61, %cst_23 [1] : vector<8x8xf32> to vector<8xf32>
    %63 = vector.shape_cast %62 : vector<8xf32> to vector<8x1xf32>
    %64 = tpu.reciprocal %63 {approx = true} : vector<8x1xf32> -> vector<8x1xf32>
    %65 = vector.broadcast %64 : vector<8x1xf32> to vector<8x8xf32>
    %66 = arith.mulf %61, %65 : vector<8x8xf32>
    %cst_24 = arith.constant dense<0.000000e+00> : vector<8x8xf32>
    %67 = tpu.matmul %66, %52, %cst_24 {dimension_numbers = #tpu.dot_dimension_numbers<[1], [0], [0], [1], [0, 0, 1, 1], [], []>} : vector<8x8xf32>, vector<8x8xf32>, vector<8x8xf32> -> vector<8x8xf32>
    %c16 = arith.constant 16 : index
    %c0_25 = arith.constant 0 : index
    %68 = vector.load %arg3[%c16, %c0_25] : memref<32x32xf32, #tpu.memory_space<vmem>>, vector<8x32xf32>
    %cst_26 = arith.constant dense<0.000000e+00> : vector<8x32xf32>
    %69 = tpu.matmul %67, %68, %cst_26 {dimension_numbers = #tpu.dot_dimension_numbers<[1], [0], [0], [1], [0, 0, 1, 1], [], []>} : vector<8x8xf32>, vector<8x32xf32>, vector<8x32xf32> -> vector<8x32xf32>
    %70 = arith.addf %49, %69 : vector<8x32xf32>
    %71 = vector.extract_strided_slice %6 {offsets = [0, 24], sizes = [8, 8], strides = [1, 1]} : vector<16x32xf32> to vector<8x8xf32>
    %72 = vector.extract_strided_slice %7 {offsets = [0, 24], sizes = [8, 8], strides = [1, 1]} : vector<16x32xf32> to vector<8x8xf32>
    %73 = vector.extract_strided_slice %8 {offsets = [0, 24], sizes = [8, 8], strides = [1, 1]} : vector<16x32xf32> to vector<8x8xf32>
    %74 = tpu.transpose %72, [1, 0] : vector<8x8xf32> -> vector<8x8xf32>
    %cst_27 = arith.constant dense<0.000000e+00> : vector<8x8xf32>
    %75 = tpu.matmul %71, %74, %cst_27 {dimension_numbers = #tpu.dot_dimension_numbers<[1], [0], [0], [1], [0, 0, 1, 1], [], []>} : vector<8x8xf32>, vector<8x8xf32>, vector<8x8xf32> -> vector<8x8xf32>
    %cst_28 = arith.constant 0.353553385 : f32
    %76 = vector.broadcast %cst_28 : f32 to vector<8x8xf32>
    %77 = arith.mulf %75, %76 : vector<8x8xf32>
    %cst_29 = arith.constant dense<0xFF800000> : vector<8xf32>
    %78 = vector.multi_reduction <maximumf>, %77, %cst_29 [1] : vector<8x8xf32> to vector<8xf32>
    %79 = vector.shape_cast %78 : vector<8xf32> to vector<8x1xf32>
    %80 = vector.broadcast %79 : vector<8x1xf32> to vector<8x8xf32>
    %81 = arith.subf %77, %80 : vector<8x8xf32>
    %82 = math.exp %81 : vector<8x8xf32>
    %cst_30 = arith.constant dense<0.000000e+00> : vector<8xf32>
    %83 = vector.multi_reduction <add>, %82, %cst_30 [1] : vector<8x8xf32> to vector<8xf32>
    %84 = vector.shape_cast %83 : vector<8xf32> to vector<8x1xf32>
    %85 = tpu.reciprocal %84 {approx = true} : vector<8x1xf32> -> vector<8x1xf32>
    %86 = vector.broadcast %85 : vector<8x1xf32> to vector<8x8xf32>
    %87 = arith.mulf %82, %86 : vector<8x8xf32>
    %cst_31 = arith.constant dense<0.000000e+00> : vector<8x8xf32>
    %88 = tpu.matmul %87, %73, %cst_31 {dimension_numbers = #tpu.dot_dimension_numbers<[1], [0], [0], [1], [0, 0, 1, 1], [], []>} : vector<8x8xf32>, vector<8x8xf32>, vector<8x8xf32> -> vector<8x8xf32>
    %c24 = arith.constant 24 : index
    %c0_32 = arith.constant 0 : index
    %89 = vector.load %arg3[%c24, %c0_32] : memref<32x32xf32, #tpu.memory_space<vmem>>, vector<8x32xf32>
    %cst_33 = arith.constant dense<0.000000e+00> : vector<8x32xf32>
    %90 = tpu.matmul %88, %89, %cst_33 {dimension_numbers = #tpu.dot_dimension_numbers<[1], [0], [0], [1], [0, 0, 1, 1], [], []>} : vector<8x8xf32>, vector<8x32xf32>, vector<8x32xf32> -> vector<8x32xf32>
    %91 = arith.addf %70, %90 : vector<8x32xf32>
    %92 = vector.extract_strided_slice %6 {offsets = [8, 0], sizes = [8, 8], strides = [1, 1]} : vector<16x32xf32> to vector<8x8xf32>
    %93 = vector.extract_strided_slice %7 {offsets = [8, 0], sizes = [8, 8], strides = [1, 1]} : vector<16x32xf32> to vector<8x8xf32>
    %94 = vector.extract_strided_slice %8 {offsets = [8, 0], sizes = [8, 8], strides = [1, 1]} : vector<16x32xf32> to vector<8x8xf32>
    %95 = tpu.transpose %93, [1, 0] : vector<8x8xf32> -> vector<8x8xf32>
    %cst_34 = arith.constant dense<0.000000e+00> : vector<8x8xf32>
    %96 = tpu.matmul %92, %95, %cst_34 {dimension_numbers = #tpu.dot_dimension_numbers<[1], [0], [0], [1], [0, 0, 1, 1], [], []>} : vector<8x8xf32>, vector<8x8xf32>, vector<8x8xf32> -> vector<8x8xf32>
    %cst_35 = arith.constant 0.353553385 : f32
    %97 = vector.broadcast %cst_35 : f32 to vector<8x8xf32>
    %98 = arith.mulf %96, %97 : vector<8x8xf32>
    %cst_36 = arith.constant dense<0xFF800000> : vector<8xf32>
    %99 = vector.multi_reduction <maximumf>, %98, %cst_36 [1] : vector<8x8xf32> to vector<8xf32>
    %100 = vector.shape_cast %99 : vector<8xf32> to vector<8x1xf32>
    %101 = vector.broadcast %100 : vector<8x1xf32> to vector<8x8xf32>
    %102 = arith.subf %98, %101 : vector<8x8xf32>
    %103 = math.exp %102 : vector<8x8xf32>
    %cst_37 = arith.constant dense<0.000000e+00> : vector<8xf32>
    %104 = vector.multi_reduction <add>, %103, %cst_37 [1] : vector<8x8xf32> to vector<8xf32>
    %105 = vector.shape_cast %104 : vector<8xf32> to vector<8x1xf32>
    %106 = tpu.reciprocal %105 {approx = true} : vector<8x1xf32> -> vector<8x1xf32>
    %107 = vector.broadcast %106 : vector<8x1xf32> to vector<8x8xf32>
    %108 = arith.mulf %103, %107 : vector<8x8xf32>
    %cst_38 = arith.constant dense<0.000000e+00> : vector<8x8xf32>
    %109 = tpu.matmul %108, %94, %cst_38 {dimension_numbers = #tpu.dot_dimension_numbers<[1], [0], [0], [1], [0, 0, 1, 1], [], []>} : vector<8x8xf32>, vector<8x8xf32>, vector<8x8xf32> -> vector<8x8xf32>
    %c0_39 = arith.constant 0 : index
    %c0_40 = arith.constant 0 : index
    %110 = vector.load %arg3[%c0_39, %c0_40] : memref<32x32xf32, #tpu.memory_space<vmem>>, vector<8x32xf32>
    %cst_41 = arith.constant dense<0.000000e+00> : vector<8x32xf32>
    %111 = tpu.matmul %109, %110, %cst_41 {dimension_numbers = #tpu.dot_dimension_numbers<[1], [0], [0], [1], [0, 0, 1, 1], [], []>} : vector<8x8xf32>, vector<8x32xf32>, vector<8x32xf32> -> vector<8x32xf32>
    %112 = vector.extract_strided_slice %6 {offsets = [8, 8], sizes = [8, 8], strides = [1, 1]} : vector<16x32xf32> to vector<8x8xf32>
    %113 = vector.extract_strided_slice %7 {offsets = [8, 8], sizes = [8, 8], strides = [1, 1]} : vector<16x32xf32> to vector<8x8xf32>
    %114 = vector.extract_strided_slice %8 {offsets = [8, 8], sizes = [8, 8], strides = [1, 1]} : vector<16x32xf32> to vector<8x8xf32>
    %115 = tpu.transpose %113, [1, 0] : vector<8x8xf32> -> vector<8x8xf32>
    %cst_42 = arith.constant dense<0.000000e+00> : vector<8x8xf32>
    %116 = tpu.matmul %112, %115, %cst_42 {dimension_numbers = #tpu.dot_dimension_numbers<[1], [0], [0], [1], [0, 0, 1, 1], [], []>} : vector<8x8xf32>, vector<8x8xf32>, vector<8x8xf32> -> vector<8x8xf32>
    %cst_43 = arith.constant 0.353553385 : f32
    %117 = vector.broadcast %cst_43 : f32 to vector<8x8xf32>
    %118 = arith.mulf %116, %117 : vector<8x8xf32>
    %cst_44 = arith.constant dense<0xFF800000> : vector<8xf32>
    %119 = vector.multi_reduction <maximumf>, %118, %cst_44 [1] : vector<8x8xf32> to vector<8xf32>
    %120 = vector.shape_cast %119 : vector<8xf32> to vector<8x1xf32>
    %121 = vector.broadcast %120 : vector<8x1xf32> to vector<8x8xf32>
    %122 = arith.subf %118, %121 : vector<8x8xf32>
    %123 = math.exp %122 : vector<8x8xf32>
    %cst_45 = arith.constant dense<0.000000e+00> : vector<8xf32>
    %124 = vector.multi_reduction <add>, %123, %cst_45 [1] : vector<8x8xf32> to vector<8xf32>
    %125 = vector.shape_cast %124 : vector<8xf32> to vector<8x1xf32>
    %126 = tpu.reciprocal %125 {approx = true} : vector<8x1xf32> -> vector<8x1xf32>
    %127 = vector.broadcast %126 : vector<8x1xf32> to vector<8x8xf32>
    %128 = arith.mulf %123, %127 : vector<8x8xf32>
    %cst_46 = arith.constant dense<0.000000e+00> : vector<8x8xf32>
    %129 = tpu.matmul %128, %114, %cst_46 {dimension_numbers = #tpu.dot_dimension_numbers<[1], [0], [0], [1], [0, 0, 1, 1], [], []>} : vector<8x8xf32>, vector<8x8xf32>, vector<8x8xf32> -> vector<8x8xf32>
    %c8_47 = arith.constant 8 : index
    %c0_48 = arith.constant 0 : index
    %130 = vector.load %arg3[%c8_47, %c0_48] : memref<32x32xf32, #tpu.memory_space<vmem>>, vector<8x32xf32>
    %cst_49 = arith.constant dense<0.000000e+00> : vector<8x32xf32>
    %131 = tpu.matmul %129, %130, %cst_49 {dimension_numbers = #tpu.dot_dimension_numbers<[1], [0], [0], [1], [0, 0, 1, 1], [], []>} : vector<8x8xf32>, vector<8x32xf32>, vector<8x32xf32> -> vector<8x32xf32>
    %132 = arith.addf %111, %131 : vector<8x32xf32>
    %133 = vector.extract_strided_slice %6 {offsets = [8, 16], sizes = [8, 8], strides = [1, 1]} : vector<16x32xf32> to vector<8x8xf32>
    %134 = vector.extract_strided_slice %7 {offsets = [8, 16], sizes = [8, 8], strides = [1, 1]} : vector<16x32xf32> to vector<8x8xf32>
    %135 = vector.extract_strided_slice %8 {offsets = [8, 16], sizes = [8, 8], strides = [1, 1]} : vector<16x32xf32> to vector<8x8xf32>
    %136 = tpu.transpose %134, [1, 0] : vector<8x8xf32> -> vector<8x8xf32>
    %cst_50 = arith.constant dense<0.000000e+00> : vector<8x8xf32>
    %137 = tpu.matmul %133, %136, %cst_50 {dimension_numbers = #tpu.dot_dimension_numbers<[1], [0], [0], [1], [0, 0, 1, 1], [], []>} : vector<8x8xf32>, vector<8x8xf32>, vector<8x8xf32> -> vector<8x8xf32>
    %cst_51 = arith.constant 0.353553385 : f32
    %138 = vector.broadcast %cst_51 : f32 to vector<8x8xf32>
    %139 = arith.mulf %137, %138 : vector<8x8xf32>
    %cst_52 = arith.constant dense<0xFF800000> : vector<8xf32>
    %140 = vector.multi_reduction <maximumf>, %139, %cst_52 [1] : vector<8x8xf32> to vector<8xf32>
    %141 = vector.shape_cast %140 : vector<8xf32> to vector<8x1xf32>
    %142 = vector.broadcast %141 : vector<8x1xf32> to vector<8x8xf32>
    %143 = arith.subf %139, %142 : vector<8x8xf32>
    %144 = math.exp %143 : vector<8x8xf32>
    %cst_53 = arith.constant dense<0.000000e+00> : vector<8xf32>
    %145 = vector.multi_reduction <add>, %144, %cst_53 [1] : vector<8x8xf32> to vector<8xf32>
    %146 = vector.shape_cast %145 : vector<8xf32> to vector<8x1xf32>
    %147 = tpu.reciprocal %146 {approx = true} : vector<8x1xf32> -> vector<8x1xf32>
    %148 = vector.broadcast %147 : vector<8x1xf32> to vector<8x8xf32>
    %149 = arith.mulf %144, %148 : vector<8x8xf32>
    %cst_54 = arith.constant dense<0.000000e+00> : vector<8x8xf32>
    %150 = tpu.matmul %149, %135, %cst_54 {dimension_numbers = #tpu.dot_dimension_numbers<[1], [0], [0], [1], [0, 0, 1, 1], [], []>} : vector<8x8xf32>, vector<8x8xf32>, vector<8x8xf32> -> vector<8x8xf32>
    %c16_55 = arith.constant 16 : index
    %c0_56 = arith.constant 0 : index
    %151 = vector.load %arg3[%c16_55, %c0_56] : memref<32x32xf32, #tpu.memory_space<vmem>>, vector<8x32xf32>
    %cst_57 = arith.constant dense<0.000000e+00> : vector<8x32xf32>
    %152 = tpu.matmul %150, %151, %cst_57 {dimension_numbers = #tpu.dot_dimension_numbers<[1], [0], [0], [1], [0, 0, 1, 1], [], []>} : vector<8x8xf32>, vector<8x32xf32>, vector<8x32xf32> -> vector<8x32xf32>
    %153 = arith.addf %132, %152 : vector<8x32xf32>
    %154 = vector.extract_strided_slice %6 {offsets = [8, 24], sizes = [8, 8], strides = [1, 1]} : vector<16x32xf32> to vector<8x8xf32>
    %155 = vector.extract_strided_slice %7 {offsets = [8, 24], sizes = [8, 8], strides = [1, 1]} : vector<16x32xf32> to vector<8x8xf32>
    %156 = vector.extract_strided_slice %8 {offsets = [8, 24], sizes = [8, 8], strides = [1, 1]} : vector<16x32xf32> to vector<8x8xf32>
    %157 = tpu.transpose %155, [1, 0] : vector<8x8xf32> -> vector<8x8xf32>
    %cst_58 = arith.constant dense<0.000000e+00> : vector<8x8xf32>
    %158 = tpu.matmul %154, %157, %cst_58 {dimension_numbers = #tpu.dot_dimension_numbers<[1], [0], [0], [1], [0, 0, 1, 1], [], []>} : vector<8x8xf32>, vector<8x8xf32>, vector<8x8xf32> -> vector<8x8xf32>
    %cst_59 = arith.constant 0.353553385 : f32
    %159 = vector.broadcast %cst_59 : f32 to vector<8x8xf32>
    %160 = arith.mulf %158, %159 : vector<8x8xf32>
    %cst_60 = arith.constant dense<0xFF800000> : vector<8xf32>
    %161 = vector.multi_reduction <maximumf>, %160, %cst_60 [1] : vector<8x8xf32> to vector<8xf32>
    %162 = vector.shape_cast %161 : vector<8xf32> to vector<8x1xf32>
    %163 = vector.broadcast %162 : vector<8x1xf32> to vector<8x8xf32>
    %164 = arith.subf %160, %163 : vector<8x8xf32>
    %165 = math.exp %164 : vector<8x8xf32>
    %cst_61 = arith.constant dense<0.000000e+00> : vector<8xf32>
    %166 = vector.multi_reduction <add>, %165, %cst_61 [1] : vector<8x8xf32> to vector<8xf32>
    %167 = vector.shape_cast %166 : vector<8xf32> to vector<8x1xf32>
    %168 = tpu.reciprocal %167 {approx = true} : vector<8x1xf32> -> vector<8x1xf32>
    %169 = vector.broadcast %168 : vector<8x1xf32> to vector<8x8xf32>
    %170 = arith.mulf %165, %169 : vector<8x8xf32>
    %cst_62 = arith.constant dense<0.000000e+00> : vector<8x8xf32>
    %171 = tpu.matmul %170, %156, %cst_62 {dimension_numbers = #tpu.dot_dimension_numbers<[1], [0], [0], [1], [0, 0, 1, 1], [], []>} : vector<8x8xf32>, vector<8x8xf32>, vector<8x8xf32> -> vector<8x8xf32>
    %c24_63 = arith.constant 24 : index
    %c0_64 = arith.constant 0 : index
    %172 = vector.load %arg3[%c24_63, %c0_64] : memref<32x32xf32, #tpu.memory_space<vmem>>, vector<8x32xf32>
    %cst_65 = arith.constant dense<0.000000e+00> : vector<8x32xf32>
    %173 = tpu.matmul %171, %172, %cst_65 {dimension_numbers = #tpu.dot_dimension_numbers<[1], [0], [0], [1], [0, 0, 1, 1], [], []>} : vector<8x8xf32>, vector<8x32xf32>, vector<8x32xf32> -> vector<8x32xf32>
    %174 = arith.addf %153, %173 : vector<8x32xf32>
    %175 = tpu.concatenate %91, %174 in 0 : vector<8x32xf32>, vector<8x32xf32> -> vector<16x32xf32>
    %c0_66 = arith.constant 0 : index
    %c0_67 = arith.constant 0 : index
    %176 = vector.load %arg4[%c0_66, %c0_67] : memref<1x32xf32, #tpu.memory_space<vmem>>, vector<1x32xf32>
    %177 = vector.broadcast %176 : vector<1x32xf32> to vector<16x32xf32>
    %178 = arith.addf %175, %177 : vector<16x32xf32>
    %179 = arith.addf %0, %178 : vector<16x32xf32>
    %c0_68 = arith.constant 0 : index
    %c0_69 = arith.constant 0 : index
    %180 = vector.load %arg5[%c0_68, %c0_69] : memref<1x32xf32, #tpu.memory_space<vmem>>, vector<1x32xf32>
    %c0_70 = arith.constant 0 : index
    %c0_71 = arith.constant 0 : index
    %181 = vector.load %arg6[%c0_70, %c0_71] : memref<1x32xf32, #tpu.memory_space<vmem>>, vector<1x32xf32>
    %cst_72 = arith.constant dense<0.000000e+00> : vector<16xf32>
    %182 = vector.multi_reduction <add>, %179, %cst_72 [1] : vector<16x32xf32> to vector<16xf32>
    %183 = vector.shape_cast %182 : vector<16xf32> to vector<16x1xf32>
    %cst_73 = arith.constant 3.200000e+01 : f32
    %184 = vector.broadcast %cst_73 : f32 to vector<16x1xf32>
    %185 = arith.divf %183, %184 : vector<16x1xf32>
    %186 = vector.broadcast %185 : vector<16x1xf32> to vector<16x32xf32>
    %187 = arith.subf %179, %186 : vector<16x32xf32>
    %188 = arith.mulf %187, %187 : vector<16x32xf32>
    %cst_74 = arith.constant dense<0.000000e+00> : vector<16xf32>
    %189 = vector.multi_reduction <add>, %188, %cst_74 [1] : vector<16x32xf32> to vector<16xf32>
    %190 = vector.shape_cast %189 : vector<16xf32> to vector<16x1xf32>
    %cst_75 = arith.constant 3.200000e+01 : f32
    %191 = vector.broadcast %cst_75 : f32 to vector<16x1xf32>
    %192 = arith.divf %190, %191 : vector<16x1xf32>
    %cst_76 = arith.constant 9.99999974E-6 : f32
    %193 = vector.broadcast %cst_76 : f32 to vector<16x1xf32>
    %194 = arith.addf %192, %193 : vector<16x1xf32>
    %195 = math.rsqrt %194 : vector<16x1xf32>
    %196 = vector.broadcast %195 : vector<16x1xf32> to vector<16x32xf32>
    %197 = arith.mulf %187, %196 : vector<16x32xf32>
    %198 = vector.broadcast %180 : vector<1x32xf32> to vector<16x32xf32>
    %199 = arith.mulf %197, %198 : vector<16x32xf32>
    %200 = vector.broadcast %181 : vector<1x32xf32> to vector<16x32xf32>
    %201 = arith.addf %199, %200 : vector<16x32xf32>
    %c0_77 = arith.constant 0 : index
    %c0_78 = arith.constant 0 : index
    %202 = vector.load %arg7[%c0_77, %c0_78] : memref<32x64xf32, #tpu.memory_space<vmem>>, vector<32x64xf32>
    %cst_79 = arith.constant dense<0.000000e+00> : vector<16x64xf32>
    %203 = tpu.matmul %201, %202, %cst_79 {dimension_numbers = #tpu.dot_dimension_numbers<[1], [0], [0], [1], [0, 0, 1, 1], [], []>} : vector<16x32xf32>, vector<32x64xf32>, vector<16x64xf32> -> vector<16x64xf32>
    %c0_80 = arith.constant 0 : index
    %c0_81 = arith.constant 0 : index
    %204 = vector.load %arg8[%c0_80, %c0_81] : memref<1x64xf32, #tpu.memory_space<vmem>>, vector<1x64xf32>
    %205 = vector.broadcast %204 : vector<1x64xf32> to vector<16x64xf32>
    %206 = arith.addf %203, %205 : vector<16x64xf32>
    %cst_82 = arith.constant 0.000000e+00 : f32
    %207 = vector.broadcast %cst_82 : f32 to vector<16x64xf32>
    %208 = arith.maximumf %206, %207 : vector<16x64xf32>
    %c0_83 = arith.constant 0 : index
    %c0_84 = arith.constant 0 : index
    %209 = vector.load %arg9[%c0_83, %c0_84] : memref<64x32xf32, #tpu.memory_space<vmem>>, vector<64x32xf32>
    %cst_85 = arith.constant dense<0.000000e+00> : vector<16x32xf32>
    %210 = tpu.matmul %208, %209, %cst_85 {dimension_numbers = #tpu.dot_dimension_numbers<[1], [0], [0], [1], [0, 0, 1, 1], [], []>} : vector<16x64xf32>, vector<64x32xf32>, vector<16x32xf32> -> vector<16x32xf32>
    %c0_86 = arith.constant 0 : index
    %c0_87 = arith.constant 0 : index
    %211 = vector.load %arg10[%c0_86, %c0_87] : memref<1x32xf32, #tpu.memory_space<vmem>>, vector<1x32xf32>
    %212 = vector.broadcast %211 : vector<1x32xf32> to vector<16x32xf32>
    %213 = arith.addf %210, %212 : vector<16x32xf32>
    %214 = arith.addf %201, %213 : vector<16x32xf32>
    %c0_88 = arith.constant 0 : index
    %c0_89 = arith.constant 0 : index
    %215 = vector.load %arg11[%c0_88, %c0_89] : memref<1x32xf32, #tpu.memory_space<vmem>>, vector<1x32xf32>
    %c0_90 = arith.constant 0 : index
    %c0_91 = arith.constant 0 : index
    %216 = vector.load %arg12[%c0_90, %c0_91] : memref<1x32xf32, #tpu.memory_space<vmem>>, vector<1x32xf32>
    %cst_92 = arith.constant dense<0.000000e+00> : vector<16xf32>
    %217 = vector.multi_reduction <add>, %214, %cst_92 [1] : vector<16x32xf32> to vector<16xf32>
    %218 = vector.shape_cast %217 : vector<16xf32> to vector<16x1xf32>
    %cst_93 = arith.constant 3.200000e+01 : f32
    %219 = vector.broadcast %cst_93 : f32 to vector<16x1xf32>
    %220 = arith.divf %218, %219 : vector<16x1xf32>
    %221 = vector.broadcast %220 : vector<16x1xf32> to vector<16x32xf32>
    %222 = arith.subf %214, %221 : vector<16x32xf32>
    %223 = arith.mulf %222, %222 : vector<16x32xf32>
    %cst_94 = arith.constant dense<0.000000e+00> : vector<16xf32>
    %224 = vector.multi_reduction <add>, %223, %cst_94 [1] : vector<16x32xf32> to vector<16xf32>
    %225 = vector.shape_cast %224 : vector<16xf32> to vector<16x1xf32>
    %cst_95 = arith.constant 3.200000e+01 : f32
    %226 = vector.broadcast %cst_95 : f32 to vector<16x1xf32>
    %227 = arith.divf %225, %226 : vector<16x1xf32>
    %cst_96 = arith.constant 9.99999974E-6 : f32
    %228 = vector.broadcast %cst_96 : f32 to vector<16x1xf32>
    %229 = arith.addf %227, %228 : vector<16x1xf32>
    %230 = math.rsqrt %229 : vector<16x1xf32>
    %231 = vector.broadcast %230 : vector<16x1xf32> to vector<16x32xf32>
    %232 = arith.mulf %222, %231 : vector<16x32xf32>
    %233 = vector.broadcast %215 : vector<1x32xf32> to vector<16x32xf32>
    %234 = arith.mulf %232, %233 : vector<16x32xf32>
    %235 = vector.broadcast %216 : vector<1x32xf32> to vector<16x32xf32>
    %236 = arith.addf %234, %235 : vector<16x32xf32>
    %c0_97 = arith.constant 0 : index
    %c0_98 = arith.constant 0 : index
    %237 = vector.load %arg13[%c0_97, %c0_98] : memref<1x32xf32, #tpu.memory_space<vmem>>, vector<1x32xf32>
    %c0_99 = arith.constant 0 : index
    %c0_100 = arith.constant 0 : index
    %238 = vector.load %arg14[%c0_99, %c0_100] : memref<1x32xf32, #tpu.memory_space<vmem>>, vector<1x32xf32>
    %cst_101 = arith.constant dense<0.000000e+00> : vector<16xf32>
    %239 = vector.multi_reduction <add>, %236, %cst_101 [1] : vector<16x32xf32> to vector<16xf32>
    %240 = vector.shape_cast %239 : vector<16xf32> to vector<16x1xf32>
    %cst_102 = arith.constant 3.200000e+01 : f32
    %241 = vector.broadcast %cst_102 : f32 to vector<16x1xf32>
    %242 = arith.divf %240, %241 : vector<16x1xf32>
    %243 = vector.broadcast %242 : vector<16x1xf32> to vector<16x32xf32>
    %244 = arith.subf %236, %243 : vector<16x32xf32>
    %245 = arith.mulf %244, %244 : vector<16x32xf32>
    %cst_103 = arith.constant dense<0.000000e+00> : vector<16xf32>
    %246 = vector.multi_reduction <add>, %245, %cst_103 [1] : vector<16x32xf32> to vector<16xf32>
    %247 = vector.shape_cast %246 : vector<16xf32> to vector<16x1xf32>
    %cst_104 = arith.constant 3.200000e+01 : f32
    %248 = vector.broadcast %cst_104 : f32 to vector<16x1xf32>
    %249 = arith.divf %247, %248 : vector<16x1xf32>
    %cst_105 = arith.constant 9.99999974E-6 : f32
    %250 = vector.broadcast %cst_105 : f32 to vector<16x1xf32>
    %251 = arith.addf %249, %250 : vector<16x1xf32>
    %252 = math.rsqrt %251 : vector<16x1xf32>
    %253 = vector.broadcast %252 : vector<16x1xf32> to vector<16x32xf32>
    %254 = arith.mulf %244, %253 : vector<16x32xf32>
    %255 = vector.broadcast %237 : vector<1x32xf32> to vector<16x32xf32>
    %256 = arith.mulf %254, %255 : vector<16x32xf32>
    %257 = vector.broadcast %238 : vector<1x32xf32> to vector<16x32xf32>
    %258 = arith.addf %256, %257 : vector<16x32xf32>
    %c0_106 = arith.constant 0 : index
    %c0_107 = arith.constant 0 : index
    %259 = vector.load %arg15[%c0_106, %c0_107] : memref<16x32xf32, #tpu.memory_space<vmem>>, vector<16x32xf32>
    tpu.vector_store %arg15[%c0_106, %c0_107], %258 {strides = array<i32>} : memref<16x32xf32, #tpu.memory_space<vmem>>, vector<16x32xf32>,
    return
  }
}

module attributes {stable_mosaic.version = 11 : i64} {
  func.func @_decoder_layer_kernel(%arg0: memref<32x32xf32, #tpu.memory_space<vmem>>, %arg1: memref<32x32xf32, #tpu.memory_space<vmem>>, %arg2: memref<32x96xf32, #tpu.memory_space<vmem>>, %arg3: memref<1x96xf32, #tpu.memory_space<vmem>>, %arg4: memref<32x32xf32, #tpu.memory_space<vmem>>, %arg5: memref<1x32xf32, #tpu.memory_space<vmem>>, %arg6: memref<32x32xf32, #tpu.memory_space<vmem>>, %arg7: memref<1x32xf32, #tpu.memory_space<vmem>>, %arg8: memref<32x64xf32, #tpu.memory_space<vmem>>, %arg9: memref<1x64xf32, #tpu.memory_space<vmem>>, %arg10: memref<32x32xf32, #tpu.memory_space<vmem>>, %arg11: memref<1x32xf32, #tpu.memory_space<vmem>>, %arg12: memref<1x32xf32, #tpu.memory_space<vmem>>, %arg13: memref<1x32xf32, #tpu.memory_space<vmem>>, %arg14: memref<1x32xf32, #tpu.memory_space<vmem>>, %arg15: memref<1x32xf32, #tpu.memory_space<vmem>>, %arg16: memref<32x64xf32, #tpu.memory_space<vmem>>, %arg17: memref<1x64xf32, #tpu.memory_space<vmem>>, %arg18: memref<64x32xf32, #tpu.memory_space<vmem>>, %arg19: memref<1x32xf32, #tpu.memory_space<vmem>>, %arg20: memref<1x32xf32, #tpu.memory_space<vmem>>, %arg21: memref<1x32xf32, #tpu.memory_space<vmem>>, %arg22: memref<1x32xf32, #tpu.memory_space<vmem>>, %arg23: memref<1x32xf32, #tpu.memory_space<vmem>>, %arg24: memref<32x4xf32, #tpu.memory_space<vmem>>, %arg25: memref<1x4xf32, #tpu.memory_space<vmem>>, %arg26: memref<32x4xf32, #tpu.memory_space<vmem>>) attributes {dimension_semantics = [], scalar_prefetch = 0 : i64, scratch_operands = 0 : i64, tpu.core_type = #tpu.core_type<tc>} {
    %c0 = arith.constant 0 : index
    %c0_0 = arith.constant 0 : index
    %0 = vector.load %arg0[%c0, %c0_0] : memref<32x32xf32, #tpu.memory_space<vmem>>, vector<32x32xf32>
    %c0_1 = arith.constant 0 : index
    %c0_2 = arith.constant 0 : index
    %1 = vector.load %arg1[%c0_1, %c0_2] : memref<32x32xf32, #tpu.memory_space<vmem>>, vector<32x32xf32>
    %c0_3 = arith.constant 0 : index
    %c0_4 = arith.constant 0 : index
    %2 = vector.load %arg2[%c0_3, %c0_4] : memref<32x96xf32, #tpu.memory_space<vmem>>, vector<32x96xf32>
    %cst = arith.constant dense<0.000000e+00> : vector<32x96xf32>
    %3 = tpu.matmul %0, %2, %cst {dimension_numbers = #tpu.dot_dimension_numbers<[1], [0], [0], [1], [0, 0, 1, 1], [], []>} : vector<32x32xf32>, vector<32x96xf32>, vector<32x96xf32> -> vector<32x96xf32>
    %c0_5 = arith.constant 0 : index
    %c0_6 = arith.constant 0 : index
    %4 = vector.load %arg3[%c0_5, %c0_6] : memref<1x96xf32, #tpu.memory_space<vmem>>, vector<1x96xf32>
    %5 = vector.broadcast %4 : vector<1x96xf32> to vector<32x96xf32>
    %6 = arith.addf %3, %5 : vector<32x96xf32>
    %7 = vector.extract_strided_slice %6 {offsets = [0, 0], sizes = [32, 32], strides = [1, 1]} : vector<32x96xf32> to vector<32x32xf32>
    %8 = vector.extract_strided_slice %6 {offsets = [0, 32], sizes = [32, 32], strides = [1, 1]} : vector<32x96xf32> to vector<32x32xf32>
    %9 = vector.extract_strided_slice %6 {offsets = [0, 64], sizes = [32, 32], strides = [1, 1]} : vector<32x96xf32> to vector<32x32xf32>
    %10 = vector.extract_strided_slice %7 {offsets = [0, 0], sizes = [16, 8], strides = [1, 1]} : vector<32x32xf32> to vector<16x8xf32>
    %11 = vector.extract_strided_slice %8 {offsets = [0, 0], sizes = [16, 8], strides = [1, 1]} : vector<32x32xf32> to vector<16x8xf32>
    %12 = vector.extract_strided_slice %9 {offsets = [0, 0], sizes = [16, 8], strides = [1, 1]} : vector<32x32xf32> to vector<16x8xf32>
    %13 = tpu.transpose %11, [1, 0] : vector<16x8xf32> -> vector<8x16xf32>
    %cst_7 = arith.constant dense<0.000000e+00> : vector<16x16xf32>
    %14 = tpu.matmul %10, %13, %cst_7 {dimension_numbers = #tpu.dot_dimension_numbers<[1], [0], [0], [1], [0, 0, 1, 1], [], []>} : vector<16x8xf32>, vector<8x16xf32>, vector<16x16xf32> -> vector<16x16xf32>
    %cst_8 = arith.constant 0.353553385 : f32
    %15 = vector.broadcast %cst_8 : f32 to vector<16x16xf32>
    %16 = arith.mulf %14, %15 : vector<16x16xf32>
    %17 = tpu.iota {dimensions = array<i32: 0>} : vector<16x16xi32>
    %18 = tpu.iota {dimensions = array<i32: 1>} : vector<16x16xi32>
    %19 = arith.cmpi sgt, %18, %17 : vector<16x16xi32>
    %cst_9 = arith.constant -1.000000e+30 : f32
    %20 = vector.broadcast %cst_9 : f32 to vector<16x16xf32>
    %21 = arith.select %19, %20, %16 : vector<16x16xi1>, vector<16x16xf32>
    %cst_10 = arith.constant dense<0xFF800000> : vector<16xf32>
    %22 = vector.multi_reduction <maximumf>, %21, %cst_10 [1] : vector<16x16xf32> to vector<16xf32>
    %23 = vector.shape_cast %22 : vector<16xf32> to vector<16x1xf32>
    %24 = vector.broadcast %23 : vector<16x1xf32> to vector<16x16xf32>
    %25 = arith.subf %21, %24 : vector<16x16xf32>
    %26 = math.exp %25 : vector<16x16xf32>
    %cst_11 = arith.constant dense<0.000000e+00> : vector<16xf32>
    %27 = vector.multi_reduction <add>, %26, %cst_11 [1] : vector<16x16xf32> to vector<16xf32>
    %28 = vector.shape_cast %27 : vector<16xf32> to vector<16x1xf32>
    %29 = tpu.reciprocal %28 {approx = true} : vector<16x1xf32> -> vector<16x1xf32>
    %30 = vector.broadcast %29 : vector<16x1xf32> to vector<16x16xf32>
    %31 = arith.mulf %26, %30 : vector<16x16xf32>
    %cst_12 = arith.constant dense<0.000000e+00> : vector<16x8xf32>
    %32 = tpu.matmul %31, %12, %cst_12 {dimension_numbers = #tpu.dot_dimension_numbers<[1], [0], [0], [1], [0, 0, 1, 1], [], []>} : vector<16x16xf32>, vector<16x8xf32>, vector<16x8xf32> -> vector<16x8xf32>
    %c0_13 = arith.constant 0 : index
    %c0_14 = arith.constant 0 : index
    %33 = vector.load %arg4[%c0_13, %c0_14] : memref<32x32xf32, #tpu.memory_space<vmem>>, vector<8x32xf32>
    %cst_15 = arith.constant dense<0.000000e+00> : vector<16x32xf32>
    %34 = tpu.matmul %32, %33, %cst_15 {dimension_numbers = #tpu.dot_dimension_numbers<[1], [0], [0], [1], [0, 0, 1, 1], [], []>} : vector<16x8xf32>, vector<8x32xf32>, vector<16x32xf32> -> vector<16x32xf32>
    %35 = vector.extract_strided_slice %7 {offsets = [0, 8], sizes = [16, 8], strides = [1, 1]} : vector<32x32xf32> to vector<16x8xf32>
    %36 = vector.extract_strided_slice %8 {offsets = [0, 8], sizes = [16, 8], strides = [1, 1]} : vector<32x32xf32> to vector<16x8xf32>
    %37 = vector.extract_strided_slice %9 {offsets = [0, 8], sizes = [16, 8], strides = [1, 1]} : vector<32x32xf32> to vector<16x8xf32>
    %38 = tpu.transpose %36, [1, 0] : vector<16x8xf32> -> vector<8x16xf32>
    %cst_16 = arith.constant dense<0.000000e+00> : vector<16x16xf32>
    %39 = tpu.matmul %35, %38, %cst_16 {dimension_numbers = #tpu.dot_dimension_numbers<[1], [0], [0], [1], [0, 0, 1, 1], [], []>} : vector<16x8xf32>, vector<8x16xf32>, vector<16x16xf32> -> vector<16x16xf32>
    %cst_17 = arith.constant 0.353553385 : f32
    %40 = vector.broadcast %cst_17 : f32 to vector<16x16xf32>
    %41 = arith.mulf %39, %40 : vector<16x16xf32>
    %42 = tpu.iota {dimensions = array<i32: 0>} : vector<16x16xi32>
    %43 = tpu.iota {dimensions = array<i32: 1>} : vector<16x16xi32>
    %44 = arith.cmpi sgt, %43, %42 : vector<16x16xi32>
    %cst_18 = arith.constant -1.000000e+30 : f32
    %45 = vector.broadcast %cst_18 : f32 to vector<16x16xf32>
    %46 = arith.select %44, %45, %41 : vector<16x16xi1>, vector<16x16xf32>
    %cst_19 = arith.constant dense<0xFF800000> : vector<16xf32>
    %47 = vector.multi_reduction <maximumf>, %46, %cst_19 [1] : vector<16x16xf32> to vector<16xf32>
    %48 = vector.shape_cast %47 : vector<16xf32> to vector<16x1xf32>
    %49 = vector.broadcast %48 : vector<16x1xf32> to vector<16x16xf32>
    %50 = arith.subf %46, %49 : vector<16x16xf32>
    %51 = math.exp %50 : vector<16x16xf32>
    %cst_20 = arith.constant dense<0.000000e+00> : vector<16xf32>
    %52 = vector.multi_reduction <add>, %51, %cst_20 [1] : vector<16x16xf32> to vector<16xf32>
    %53 = vector.shape_cast %52 : vector<16xf32> to vector<16x1xf32>
    %54 = tpu.reciprocal %53 {approx = true} : vector<16x1xf32> -> vector<16x1xf32>
    %55 = vector.broadcast %54 : vector<16x1xf32> to vector<16x16xf32>
    %56 = arith.mulf %51, %55 : vector<16x16xf32>
    %cst_21 = arith.constant dense<0.000000e+00> : vector<16x8xf32>
    %57 = tpu.matmul %56, %37, %cst_21 {dimension_numbers = #tpu.dot_dimension_numbers<[1], [0], [0], [1], [0, 0, 1, 1], [], []>} : vector<16x16xf32>, vector<16x8xf32>, vector<16x8xf32> -> vector<16x8xf32>
    %c8 = arith.constant 8 : index
    %c0_22 = arith.constant 0 : index
    %58 = vector.load %arg4[%c8, %c0_22] : memref<32x32xf32, #tpu.memory_space<vmem>>, vector<8x32xf32>
    %cst_23 = arith.constant dense<0.000000e+00> : vector<16x32xf32>
    %59 = tpu.matmul %57, %58, %cst_23 {dimension_numbers = #tpu.dot_dimension_numbers<[1], [0], [0], [1], [0, 0, 1, 1], [], []>} : vector<16x8xf32>, vector<8x32xf32>, vector<16x32xf32> -> vector<16x32xf32>
    %60 = arith.addf %34, %59 : vector<16x32xf32>
    %61 = vector.extract_strided_slice %7 {offsets = [0, 16], sizes = [16, 8], strides = [1, 1]} : vector<32x32xf32> to vector<16x8xf32>
    %62 = vector.extract_strided_slice %8 {offsets = [0, 16], sizes = [16, 8], strides = [1, 1]} : vector<32x32xf32> to vector<16x8xf32>
    %63 = vector.extract_strided_slice %9 {offsets = [0, 16], sizes = [16, 8], strides = [1, 1]} : vector<32x32xf32> to vector<16x8xf32>
    %64 = tpu.transpose %62, [1, 0] : vector<16x8xf32> -> vector<8x16xf32>
    %cst_24 = arith.constant dense<0.000000e+00> : vector<16x16xf32>
    %65 = tpu.matmul %61, %64, %cst_24 {dimension_numbers = #tpu.dot_dimension_numbers<[1], [0], [0], [1], [0, 0, 1, 1], [], []>} : vector<16x8xf32>, vector<8x16xf32>, vector<16x16xf32> -> vector<16x16xf32>
    %cst_25 = arith.constant 0.353553385 : f32
    %66 = vector.broadcast %cst_25 : f32 to vector<16x16xf32>
    %67 = arith.mulf %65, %66 : vector<16x16xf32>
    %68 = tpu.iota {dimensions = array<i32: 0>} : vector<16x16xi32>
    %69 = tpu.iota {dimensions = array<i32: 1>} : vector<16x16xi32>
    %70 = arith.cmpi sgt, %69, %68 : vector<16x16xi32>
    %cst_26 = arith.constant -1.000000e+30 : f32
    %71 = vector.broadcast %cst_26 : f32 to vector<16x16xf32>
    %72 = arith.select %70, %71, %67 : vector<16x16xi1>, vector<16x16xf32>
    %cst_27 = arith.constant dense<0xFF800000> : vector<16xf32>
    %73 = vector.multi_reduction <maximumf>, %72, %cst_27 [1] : vector<16x16xf32> to vector<16xf32>
    %74 = vector.shape_cast %73 : vector<16xf32> to vector<16x1xf32>
    %75 = vector.broadcast %74 : vector<16x1xf32> to vector<16x16xf32>
    %76 = arith.subf %72, %75 : vector<16x16xf32>
    %77 = math.exp %76 : vector<16x16xf32>
    %cst_28 = arith.constant dense<0.000000e+00> : vector<16xf32>
    %78 = vector.multi_reduction <add>, %77, %cst_28 [1] : vector<16x16xf32> to vector<16xf32>
    %79 = vector.shape_cast %78 : vector<16xf32> to vector<16x1xf32>
    %80 = tpu.reciprocal %79 {approx = true} : vector<16x1xf32> -> vector<16x1xf32>
    %81 = vector.broadcast %80 : vector<16x1xf32> to vector<16x16xf32>
    %82 = arith.mulf %77, %81 : vector<16x16xf32>
    %cst_29 = arith.constant dense<0.000000e+00> : vector<16x8xf32>
    %83 = tpu.matmul %82, %63, %cst_29 {dimension_numbers = #tpu.dot_dimension_numbers<[1], [0], [0], [1], [0, 0, 1, 1], [], []>} : vector<16x16xf32>, vector<16x8xf32>, vector<16x8xf32> -> vector<16x8xf32>
    %c16 = arith.constant 16 : index
    %c0_30 = arith.constant 0 : index
    %84 = vector.load %arg4[%c16, %c0_30] : memref<32x32xf32, #tpu.memory_space<vmem>>, vector<8x32xf32>
    %cst_31 = arith.constant dense<0.000000e+00> : vector<16x32xf32>
    %85 = tpu.matmul %83, %84, %cst_31 {dimension_numbers = #tpu.dot_dimension_numbers<[1], [0], [0], [1], [0, 0, 1, 1], [], []>} : vector<16x8xf32>, vector<8x32xf32>, vector<16x32xf32> -> vector<16x32xf32>
    %86 = arith.addf %60, %85 : vector<16x32xf32>
    %87 = vector.extract_strided_slice %7 {offsets = [0, 24], sizes = [16, 8], strides = [1, 1]} : vector<32x32xf32> to vector<16x8xf32>
    %88 = vector.extract_strided_slice %8 {offsets = [0, 24], sizes = [16, 8], strides = [1, 1]} : vector<32x32xf32> to vector<16x8xf32>
    %89 = vector.extract_strided_slice %9 {offsets = [0, 24], sizes = [16, 8], strides = [1, 1]} : vector<32x32xf32> to vector<16x8xf32>
    %90 = tpu.transpose %88, [1, 0] : vector<16x8xf32> -> vector<8x16xf32>
    %cst_32 = arith.constant dense<0.000000e+00> : vector<16x16xf32>
    %91 = tpu.matmul %87, %90, %cst_32 {dimension_numbers = #tpu.dot_dimension_numbers<[1], [0], [0], [1], [0, 0, 1, 1], [], []>} : vector<16x8xf32>, vector<8x16xf32>, vector<16x16xf32> -> vector<16x16xf32>
    %cst_33 = arith.constant 0.353553385 : f32
    %92 = vector.broadcast %cst_33 : f32 to vector<16x16xf32>
    %93 = arith.mulf %91, %92 : vector<16x16xf32>
    %94 = tpu.iota {dimensions = array<i32: 0>} : vector<16x16xi32>
    %95 = tpu.iota {dimensions = array<i32: 1>} : vector<16x16xi32>
    %96 = arith.cmpi sgt, %95, %94 : vector<16x16xi32>
    %cst_34 = arith.constant -1.000000e+30 : f32
    %97 = vector.broadcast %cst_34 : f32 to vector<16x16xf32>
    %98 = arith.select %96, %97, %93 : vector<16x16xi1>, vector<16x16xf32>
    %cst_35 = arith.constant dense<0xFF800000> : vector<16xf32>
    %99 = vector.multi_reduction <maximumf>, %98, %cst_35 [1] : vector<16x16xf32> to vector<16xf32>
    %100 = vector.shape_cast %99 : vector<16xf32> to vector<16x1xf32>
    %101 = vector.broadcast %100 : vector<16x1xf32> to vector<16x16xf32>
    %102 = arith.subf %98, %101 : vector<16x16xf32>
    %103 = math.exp %102 : vector<16x16xf32>
    %cst_36 = arith.constant dense<0.000000e+00> : vector<16xf32>
    %104 = vector.multi_reduction <add>, %103, %cst_36 [1] : vector<16x16xf32> to vector<16xf32>
    %105 = vector.shape_cast %104 : vector<16xf32> to vector<16x1xf32>
    %106 = tpu.reciprocal %105 {approx = true} : vector<16x1xf32> -> vector<16x1xf32>
    %107 = vector.broadcast %106 : vector<16x1xf32> to vector<16x16xf32>
    %108 = arith.mulf %103, %107 : vector<16x16xf32>
    %cst_37 = arith.constant dense<0.000000e+00> : vector<16x8xf32>
    %109 = tpu.matmul %108, %89, %cst_37 {dimension_numbers = #tpu.dot_dimension_numbers<[1], [0], [0], [1], [0, 0, 1, 1], [], []>} : vector<16x16xf32>, vector<16x8xf32>, vector<16x8xf32> -> vector<16x8xf32>
    %c24 = arith.constant 24 : index
    %c0_38 = arith.constant 0 : index
    %110 = vector.load %arg4[%c24, %c0_38] : memref<32x32xf32, #tpu.memory_space<vmem>>, vector<8x32xf32>
    %cst_39 = arith.constant dense<0.000000e+00> : vector<16x32xf32>
    %111 = tpu.matmul %109, %110, %cst_39 {dimension_numbers = #tpu.dot_dimension_numbers<[1], [0], [0], [1], [0, 0, 1, 1], [], []>} : vector<16x8xf32>, vector<8x32xf32>, vector<16x32xf32> -> vector<16x32xf32>
    %112 = arith.addf %86, %111 : vector<16x32xf32>
    %113 = vector.extract_strided_slice %7 {offsets = [16, 0], sizes = [16, 8], strides = [1, 1]} : vector<32x32xf32> to vector<16x8xf32>
    %114 = vector.extract_strided_slice %8 {offsets = [16, 0], sizes = [16, 8], strides = [1, 1]} : vector<32x32xf32> to vector<16x8xf32>
    %115 = vector.extract_strided_slice %9 {offsets = [16, 0], sizes = [16, 8], strides = [1, 1]} : vector<32x32xf32> to vector<16x8xf32>
    %116 = tpu.transpose %114, [1, 0] : vector<16x8xf32> -> vector<8x16xf32>
    %cst_40 = arith.constant dense<0.000000e+00> : vector<16x16xf32>
    %117 = tpu.matmul %113, %116, %cst_40 {dimension_numbers = #tpu.dot_dimension_numbers<[1], [0], [0], [1], [0, 0, 1, 1], [], []>} : vector<16x8xf32>, vector<8x16xf32>, vector<16x16xf32> -> vector<16x16xf32>
    %cst_41 = arith.constant 0.353553385 : f32
    %118 = vector.broadcast %cst_41 : f32 to vector<16x16xf32>
    %119 = arith.mulf %117, %118 : vector<16x16xf32>
    %120 = tpu.iota {dimensions = array<i32: 0>} : vector<16x16xi32>
    %121 = tpu.iota {dimensions = array<i32: 1>} : vector<16x16xi32>
    %122 = arith.cmpi sgt, %121, %120 : vector<16x16xi32>
    %cst_42 = arith.constant -1.000000e+30 : f32
    %123 = vector.broadcast %cst_42 : f32 to vector<16x16xf32>
    %124 = arith.select %122, %123, %119 : vector<16x16xi1>, vector<16x16xf32>
    %cst_43 = arith.constant dense<0xFF800000> : vector<16xf32>
    %125 = vector.multi_reduction <maximumf>, %124, %cst_43 [1] : vector<16x16xf32> to vector<16xf32>
    %126 = vector.shape_cast %125 : vector<16xf32> to vector<16x1xf32>
    %127 = vector.broadcast %126 : vector<16x1xf32> to vector<16x16xf32>
    %128 = arith.subf %124, %127 : vector<16x16xf32>
    %129 = math.exp %128 : vector<16x16xf32>
    %cst_44 = arith.constant dense<0.000000e+00> : vector<16xf32>
    %130 = vector.multi_reduction <add>, %129, %cst_44 [1] : vector<16x16xf32> to vector<16xf32>
    %131 = vector.shape_cast %130 : vector<16xf32> to vector<16x1xf32>
    %132 = tpu.reciprocal %131 {approx = true} : vector<16x1xf32> -> vector<16x1xf32>
    %133 = vector.broadcast %132 : vector<16x1xf32> to vector<16x16xf32>
    %134 = arith.mulf %129, %133 : vector<16x16xf32>
    %cst_45 = arith.constant dense<0.000000e+00> : vector<16x8xf32>
    %135 = tpu.matmul %134, %115, %cst_45 {dimension_numbers = #tpu.dot_dimension_numbers<[1], [0], [0], [1], [0, 0, 1, 1], [], []>} : vector<16x16xf32>, vector<16x8xf32>, vector<16x8xf32> -> vector<16x8xf32>
    %c0_46 = arith.constant 0 : index
    %c0_47 = arith.constant 0 : index
    %136 = vector.load %arg4[%c0_46, %c0_47] : memref<32x32xf32, #tpu.memory_space<vmem>>, vector<8x32xf32>
    %cst_48 = arith.constant dense<0.000000e+00> : vector<16x32xf32>
    %137 = tpu.matmul %135, %136, %cst_48 {dimension_numbers = #tpu.dot_dimension_numbers<[1], [0], [0], [1], [0, 0, 1, 1], [], []>} : vector<16x8xf32>, vector<8x32xf32>, vector<16x32xf32> -> vector<16x32xf32>
    %138 = vector.extract_strided_slice %7 {offsets = [16, 8], sizes = [16, 8], strides = [1, 1]} : vector<32x32xf32> to vector<16x8xf32>
    %139 = vector.extract_strided_slice %8 {offsets = [16, 8], sizes = [16, 8], strides = [1, 1]} : vector<32x32xf32> to vector<16x8xf32>
    %140 = vector.extract_strided_slice %9 {offsets = [16, 8], sizes = [16, 8], strides = [1, 1]} : vector<32x32xf32> to vector<16x8xf32>
    %141 = tpu.transpose %139, [1, 0] : vector<16x8xf32> -> vector<8x16xf32>
    %cst_49 = arith.constant dense<0.000000e+00> : vector<16x16xf32>
    %142 = tpu.matmul %138, %141, %cst_49 {dimension_numbers = #tpu.dot_dimension_numbers<[1], [0], [0], [1], [0, 0, 1, 1], [], []>} : vector<16x8xf32>, vector<8x16xf32>, vector<16x16xf32> -> vector<16x16xf32>
    %cst_50 = arith.constant 0.353553385 : f32
    %143 = vector.broadcast %cst_50 : f32 to vector<16x16xf32>
    %144 = arith.mulf %142, %143 : vector<16x16xf32>
    %145 = tpu.iota {dimensions = array<i32: 0>} : vector<16x16xi32>
    %146 = tpu.iota {dimensions = array<i32: 1>} : vector<16x16xi32>
    %147 = arith.cmpi sgt, %146, %145 : vector<16x16xi32>
    %cst_51 = arith.constant -1.000000e+30 : f32
    %148 = vector.broadcast %cst_51 : f32 to vector<16x16xf32>
    %149 = arith.select %147, %148, %144 : vector<16x16xi1>, vector<16x16xf32>
    %cst_52 = arith.constant dense<0xFF800000> : vector<16xf32>
    %150 = vector.multi_reduction <maximumf>, %149, %cst_52 [1] : vector<16x16xf32> to vector<16xf32>
    %151 = vector.shape_cast %150 : vector<16xf32> to vector<16x1xf32>
    %152 = vector.broadcast %151 : vector<16x1xf32> to vector<16x16xf32>
    %153 = arith.subf %149, %152 : vector<16x16xf32>
    %154 = math.exp %153 : vector<16x16xf32>
    %cst_53 = arith.constant dense<0.000000e+00> : vector<16xf32>
    %155 = vector.multi_reduction <add>, %154, %cst_53 [1] : vector<16x16xf32> to vector<16xf32>
    %156 = vector.shape_cast %155 : vector<16xf32> to vector<16x1xf32>
    %157 = tpu.reciprocal %156 {approx = true} : vector<16x1xf32> -> vector<16x1xf32>
    %158 = vector.broadcast %157 : vector<16x1xf32> to vector<16x16xf32>
    %159 = arith.mulf %154, %158 : vector<16x16xf32>
    %cst_54 = arith.constant dense<0.000000e+00> : vector<16x8xf32>
    %160 = tpu.matmul %159, %140, %cst_54 {dimension_numbers = #tpu.dot_dimension_numbers<[1], [0], [0], [1], [0, 0, 1, 1], [], []>} : vector<16x16xf32>, vector<16x8xf32>, vector<16x8xf32> -> vector<16x8xf32>
    %c8_55 = arith.constant 8 : index
    %c0_56 = arith.constant 0 : index
    %161 = vector.load %arg4[%c8_55, %c0_56] : memref<32x32xf32, #tpu.memory_space<vmem>>, vector<8x32xf32>
    %cst_57 = arith.constant dense<0.000000e+00> : vector<16x32xf32>
    %162 = tpu.matmul %160, %161, %cst_57 {dimension_numbers = #tpu.dot_dimension_numbers<[1], [0], [0], [1], [0, 0, 1, 1], [], []>} : vector<16x8xf32>, vector<8x32xf32>, vector<16x32xf32> -> vector<16x32xf32>
    %163 = arith.addf %137, %162 : vector<16x32xf32>
    %164 = vector.extract_strided_slice %7 {offsets = [16, 16], sizes = [16, 8], strides = [1, 1]} : vector<32x32xf32> to vector<16x8xf32>
    %165 = vector.extract_strided_slice %8 {offsets = [16, 16], sizes = [16, 8], strides = [1, 1]} : vector<32x32xf32> to vector<16x8xf32>
    %166 = vector.extract_strided_slice %9 {offsets = [16, 16], sizes = [16, 8], strides = [1, 1]} : vector<32x32xf32> to vector<16x8xf32>
    %167 = tpu.transpose %165, [1, 0] : vector<16x8xf32> -> vector<8x16xf32>
    %cst_58 = arith.constant dense<0.000000e+00> : vector<16x16xf32>
    %168 = tpu.matmul %164, %167, %cst_58 {dimension_numbers = #tpu.dot_dimension_numbers<[1], [0], [0], [1], [0, 0, 1, 1], [], []>} : vector<16x8xf32>, vector<8x16xf32>, vector<16x16xf32> -> vector<16x16xf32>
    %cst_59 = arith.constant 0.353553385 : f32
    %169 = vector.broadcast %cst_59 : f32 to vector<16x16xf32>
    %170 = arith.mulf %168, %169 : vector<16x16xf32>
    %171 = tpu.iota {dimensions = array<i32: 0>} : vector<16x16xi32>
    %172 = tpu.iota {dimensions = array<i32: 1>} : vector<16x16xi32>
    %173 = arith.cmpi sgt, %172, %171 : vector<16x16xi32>
    %cst_60 = arith.constant -1.000000e+30 : f32
    %174 = vector.broadcast %cst_60 : f32 to vector<16x16xf32>
    %175 = arith.select %173, %174, %170 : vector<16x16xi1>, vector<16x16xf32>
    %cst_61 = arith.constant dense<0xFF800000> : vector<16xf32>
    %176 = vector.multi_reduction <maximumf>, %175, %cst_61 [1] : vector<16x16xf32> to vector<16xf32>
    %177 = vector.shape_cast %176 : vector<16xf32> to vector<16x1xf32>
    %178 = vector.broadcast %177 : vector<16x1xf32> to vector<16x16xf32>
    %179 = arith.subf %175, %178 : vector<16x16xf32>
    %180 = math.exp %179 : vector<16x16xf32>
    %cst_62 = arith.constant dense<0.000000e+00> : vector<16xf32>
    %181 = vector.multi_reduction <add>, %180, %cst_62 [1] : vector<16x16xf32> to vector<16xf32>
    %182 = vector.shape_cast %181 : vector<16xf32> to vector<16x1xf32>
    %183 = tpu.reciprocal %182 {approx = true} : vector<16x1xf32> -> vector<16x1xf32>
    %184 = vector.broadcast %183 : vector<16x1xf32> to vector<16x16xf32>
    %185 = arith.mulf %180, %184 : vector<16x16xf32>
    %cst_63 = arith.constant dense<0.000000e+00> : vector<16x8xf32>
    %186 = tpu.matmul %185, %166, %cst_63 {dimension_numbers = #tpu.dot_dimension_numbers<[1], [0], [0], [1], [0, 0, 1, 1], [], []>} : vector<16x16xf32>, vector<16x8xf32>, vector<16x8xf32> -> vector<16x8xf32>
    %c16_64 = arith.constant 16 : index
    %c0_65 = arith.constant 0 : index
    %187 = vector.load %arg4[%c16_64, %c0_65] : memref<32x32xf32, #tpu.memory_space<vmem>>, vector<8x32xf32>
    %cst_66 = arith.constant dense<0.000000e+00> : vector<16x32xf32>
    %188 = tpu.matmul %186, %187, %cst_66 {dimension_numbers = #tpu.dot_dimension_numbers<[1], [0], [0], [1], [0, 0, 1, 1], [], []>} : vector<16x8xf32>, vector<8x32xf32>, vector<16x32xf32> -> vector<16x32xf32>
    %189 = arith.addf %163, %188 : vector<16x32xf32>
    %190 = vector.extract_strided_slice %7 {offsets = [16, 24], sizes = [16, 8], strides = [1, 1]} : vector<32x32xf32> to vector<16x8xf32>
    %191 = vector.extract_strided_slice %8 {offsets = [16, 24], sizes = [16, 8], strides = [1, 1]} : vector<32x32xf32> to vector<16x8xf32>
    %192 = vector.extract_strided_slice %9 {offsets = [16, 24], sizes = [16, 8], strides = [1, 1]} : vector<32x32xf32> to vector<16x8xf32>
    %193 = tpu.transpose %191, [1, 0] : vector<16x8xf32> -> vector<8x16xf32>
    %cst_67 = arith.constant dense<0.000000e+00> : vector<16x16xf32>
    %194 = tpu.matmul %190, %193, %cst_67 {dimension_numbers = #tpu.dot_dimension_numbers<[1], [0], [0], [1], [0, 0, 1, 1], [], []>} : vector<16x8xf32>, vector<8x16xf32>, vector<16x16xf32> -> vector<16x16xf32>
    %cst_68 = arith.constant 0.353553385 : f32
    %195 = vector.broadcast %cst_68 : f32 to vector<16x16xf32>
    %196 = arith.mulf %194, %195 : vector<16x16xf32>
    %197 = tpu.iota {dimensions = array<i32: 0>} : vector<16x16xi32>
    %198 = tpu.iota {dimensions = array<i32: 1>} : vector<16x16xi32>
    %199 = arith.cmpi sgt, %198, %197 : vector<16x16xi32>
    %cst_69 = arith.constant -1.000000e+30 : f32
    %200 = vector.broadcast %cst_69 : f32 to vector<16x16xf32>
    %201 = arith.select %199, %200, %196 : vector<16x16xi1>, vector<16x16xf32>
    %cst_70 = arith.constant dense<0xFF800000> : vector<16xf32>
    %202 = vector.multi_reduction <maximumf>, %201, %cst_70 [1] : vector<16x16xf32> to vector<16xf32>
    %203 = vector.shape_cast %202 : vector<16xf32> to vector<16x1xf32>
    %204 = vector.broadcast %203 : vector<16x1xf32> to vector<16x16xf32>
    %205 = arith.subf %201, %204 : vector<16x16xf32>
    %206 = math.exp %205 : vector<16x16xf32>
    %cst_71 = arith.constant dense<0.000000e+00> : vector<16xf32>
    %207 = vector.multi_reduction <add>, %206, %cst_71 [1] : vector<16x16xf32> to vector<16xf32>
    %208 = vector.shape_cast %207 : vector<16xf32> to vector<16x1xf32>
    %209 = tpu.reciprocal %208 {approx = true} : vector<16x1xf32> -> vector<16x1xf32>
    %210 = vector.broadcast %209 : vector<16x1xf32> to vector<16x16xf32>
    %211 = arith.mulf %206, %210 : vector<16x16xf32>
    %cst_72 = arith.constant dense<0.000000e+00> : vector<16x8xf32>
    %212 = tpu.matmul %211, %192, %cst_72 {dimension_numbers = #tpu.dot_dimension_numbers<[1], [0], [0], [1], [0, 0, 1, 1], [], []>} : vector<16x16xf32>, vector<16x8xf32>, vector<16x8xf32> -> vector<16x8xf32>
    %c24_73 = arith.constant 24 : index
    %c0_74 = arith.constant 0 : index
    %213 = vector.load %arg4[%c24_73, %c0_74] : memref<32x32xf32, #tpu.memory_space<vmem>>, vector<8x32xf32>
    %cst_75 = arith.constant dense<0.000000e+00> : vector<16x32xf32>
    %214 = tpu.matmul %212, %213, %cst_75 {dimension_numbers = #tpu.dot_dimension_numbers<[1], [0], [0], [1], [0, 0, 1, 1], [], []>} : vector<16x8xf32>, vector<8x32xf32>, vector<16x32xf32> -> vector<16x32xf32>
    %215 = arith.addf %189, %214 : vector<16x32xf32>
    %216 = tpu.concatenate %112, %215 in 0 : vector<16x32xf32>, vector<16x32xf32> -> vector<32x32xf32>
    %c0_76 = arith.constant 0 : index
    %c0_77 = arith.constant 0 : index
    %217 = vector.load %arg5[%c0_76, %c0_77] : memref<1x32xf32, #tpu.memory_space<vmem>>, vector<1x32xf32>
    %218 = vector.broadcast %217 : vector<1x32xf32> to vector<32x32xf32>
    %219 = arith.addf %216, %218 : vector<32x32xf32>
    %220 = arith.addf %0, %219 : vector<32x32xf32>
    %c0_78 = arith.constant 0 : index
    %c0_79 = arith.constant 0 : index
    %221 = vector.load %arg12[%c0_78, %c0_79] : memref<1x32xf32, #tpu.memory_space<vmem>>, vector<1x32xf32>
    %c0_80 = arith.constant 0 : index
    %c0_81 = arith.constant 0 : index
    %222 = vector.load %arg13[%c0_80, %c0_81] : memref<1x32xf32, #tpu.memory_space<vmem>>, vector<1x32xf32>
    %cst_82 = arith.constant dense<0.000000e+00> : vector<32xf32>
    %223 = vector.multi_reduction <add>, %220, %cst_82 [1] : vector<32x32xf32> to vector<32xf32>
    %224 = vector.shape_cast %223 : vector<32xf32> to vector<32x1xf32>
    %cst_83 = arith.constant 3.200000e+01 : f32
    %225 = vector.broadcast %cst_83 : f32 to vector<32x1xf32>
    %226 = arith.divf %224, %225 : vector<32x1xf32>
    %227 = vector.broadcast %226 : vector<32x1xf32> to vector<32x32xf32>
    %228 = arith.subf %220, %227 : vector<32x32xf32>
    %229 = arith.mulf %228, %228 : vector<32x32xf32>
    %cst_84 = arith.constant dense<0.000000e+00> : vector<32xf32>
    %230 = vector.multi_reduction <add>, %229, %cst_84 [1] : vector<32x32xf32> to vector<32xf32>
    %231 = vector.shape_cast %230 : vector<32xf32> to vector<32x1xf32>
    %cst_85 = arith.constant 3.200000e+01 : f32
    %232 = vector.broadcast %cst_85 : f32 to vector<32x1xf32>
    %233 = arith.divf %231, %232 : vector<32x1xf32>
    %cst_86 = arith.constant 9.99999974E-6 : f32
    %234 = vector.broadcast %cst_86 : f32 to vector<32x1xf32>
    %235 = arith.addf %233, %234 : vector<32x1xf32>
    %236 = math.rsqrt %235 : vector<32x1xf32>
    %237 = vector.broadcast %236 : vector<32x1xf32> to vector<32x32xf32>
    %238 = arith.mulf %228, %237 : vector<32x32xf32>
    %239 = vector.broadcast %221 : vector<1x32xf32> to vector<32x32xf32>
    %240 = arith.mulf %238, %239 : vector<32x32xf32>
    %241 = vector.broadcast %222 : vector<1x32xf32> to vector<32x32xf32>
    %242 = arith.addf %240, %241 : vector<32x32xf32>
    %c0_87 = arith.constant 0 : index
    %c0_88 = arith.constant 0 : index
    %243 = vector.load %arg6[%c0_87, %c0_88] : memref<32x32xf32, #tpu.memory_space<vmem>>, vector<32x32xf32>
    %cst_89 = arith.constant dense<0.000000e+00> : vector<32x32xf32>
    %244 = tpu.matmul %242, %243, %cst_89 {dimension_numbers = #tpu.dot_dimension_numbers<[1], [0], [0], [1], [0, 0, 1, 1], [], []>} : vector<32x32xf32>, vector<32x32xf32>, vector<32x32xf32> -> vector<32x32xf32>
    %c0_90 = arith.constant 0 : index
    %c0_91 = arith.constant 0 : index
    %245 = vector.load %arg7[%c0_90, %c0_91] : memref<1x32xf32, #tpu.memory_space<vmem>>, vector<1x32xf32>
    %246 = vector.broadcast %245 : vector<1x32xf32> to vector<32x32xf32>
    %247 = arith.addf %244, %246 : vector<32x32xf32>
    %c0_92 = arith.constant 0 : index
    %c0_93 = arith.constant 0 : index
    %248 = vector.load %arg8[%c0_92, %c0_93] : memref<32x64xf32, #tpu.memory_space<vmem>>, vector<32x64xf32>
    %cst_94 = arith.constant dense<0.000000e+00> : vector<32x64xf32>
    %249 = tpu.matmul %1, %248, %cst_94 {dimension_numbers = #tpu.dot_dimension_numbers<[1], [0], [0], [1], [0, 0, 1, 1], [], []>} : vector<32x32xf32>, vector<32x64xf32>, vector<32x64xf32> -> vector<32x64xf32>
    %c0_95 = arith.constant 0 : index
    %c0_96 = arith.constant 0 : index
    %250 = vector.load %arg9[%c0_95, %c0_96] : memref<1x64xf32, #tpu.memory_space<vmem>>, vector<1x64xf32>
    %251 = vector.broadcast %250 : vector<1x64xf32> to vector<32x64xf32>
    %252 = arith.addf %249, %251 : vector<32x64xf32>
    %253 = vector.extract_strided_slice %252 {offsets = [0, 0], sizes = [32, 32], strides = [1, 1]} : vector<32x64xf32> to vector<32x32xf32>
    %254 = vector.extract_strided_slice %252 {offsets = [0, 32], sizes = [32, 32], strides = [1, 1]} : vector<32x64xf32> to vector<32x32xf32>
    %255 = vector.extract_strided_slice %247 {offsets = [0, 0], sizes = [16, 8], strides = [1, 1]} : vector<32x32xf32> to vector<16x8xf32>
    %256 = vector.extract_strided_slice %253 {offsets = [0, 0], sizes = [16, 8], strides = [1, 1]} : vector<32x32xf32> to vector<16x8xf32>
    %257 = vector.extract_strided_slice %254 {offsets = [0, 0], sizes = [16, 8], strides = [1, 1]} : vector<32x32xf32> to vector<16x8xf32>
    %258 = tpu.transpose %256, [1, 0] : vector<16x8xf32> -> vector<8x16xf32>
    %cst_97 = arith.constant dense<0.000000e+00> : vector<16x16xf32>
    %259 = tpu.matmul %255, %258, %cst_97 {dimension_numbers = #tpu.dot_dimension_numbers<[1], [0], [0], [1], [0, 0, 1, 1], [], []>} : vector<16x8xf32>, vector<8x16xf32>, vector<16x16xf32> -> vector<16x16xf32>
    %cst_98 = arith.constant 0.353553385 : f32
    %260 = vector.broadcast %cst_98 : f32 to vector<16x16xf32>
    %261 = arith.mulf %259, %260 : vector<16x16xf32>
    %cst_99 = arith.constant dense<0xFF800000> : vector<16xf32>
    %262 = vector.multi_reduction <maximumf>, %261, %cst_99 [1] : vector<16x16xf32> to vector<16xf32>
    %263 = vector.shape_cast %262 : vector<16xf32> to vector<16x1xf32>
    %264 = vector.broadcast %263 : vector<16x1xf32> to vector<16x16xf32>
    %265 = arith.subf %261, %264 : vector<16x16xf32>
    %266 = math.exp %265 : vector<16x16xf32>
    %cst_100 = arith.constant dense<0.000000e+00> : vector<16xf32>
    %267 = vector.multi_reduction <add>, %266, %cst_100 [1] : vector<16x16xf32> to vector<16xf32>
    %268 = vector.shape_cast %267 : vector<16xf32> to vector<16x1xf32>
    %269 = tpu.reciprocal %268 {approx = true} : vector<16x1xf32> -> vector<16x1xf32>
    %270 = vector.broadcast %269 : vector<16x1xf32> to vector<16x16xf32>
    %271 = arith.mulf %266, %270 : vector<16x16xf32>
    %cst_101 = arith.constant dense<0.000000e+00> : vector<16x8xf32>
    %272 = tpu.matmul %271, %257, %cst_101 {dimension_numbers = #tpu.dot_dimension_numbers<[1], [0], [0], [1], [0, 0, 1, 1], [], []>} : vector<16x16xf32>, vector<16x8xf32>, vector<16x8xf32> -> vector<16x8xf32>
    %c0_102 = arith.constant 0 : index
    %c0_103 = arith.constant 0 : index
    %273 = vector.load %arg10[%c0_102, %c0_103] : memref<32x32xf32, #tpu.memory_space<vmem>>, vector<8x32xf32>
    %cst_104 = arith.constant dense<0.000000e+00> : vector<16x32xf32>
    %274 = tpu.matmul %272, %273, %cst_104 {dimension_numbers = #tpu.dot_dimension_numbers<[1], [0], [0], [1], [0, 0, 1, 1], [], []>} : vector<16x8xf32>, vector<8x32xf32>, vector<16x32xf32> -> vector<16x32xf32>
    %275 = vector.extract_strided_slice %247 {offsets = [0, 8], sizes = [16, 8], strides = [1, 1]} : vector<32x32xf32> to vector<16x8xf32>
    %276 = vector.extract_strided_slice %253 {offsets = [0, 8], sizes = [16, 8], strides = [1, 1]} : vector<32x32xf32> to vector<16x8xf32>
    %277 = vector.extract_strided_slice %254 {offsets = [0, 8], sizes = [16, 8], strides = [1, 1]} : vector<32x32xf32> to vector<16x8xf32>
    %278 = tpu.transpose %276, [1, 0] : vector<16x8xf32> -> vector<8x16xf32>
    %cst_105 = arith.constant dense<0.000000e+00> : vector<16x16xf32>
    %279 = tpu.matmul %275, %278, %cst_105 {dimension_numbers = #tpu.dot_dimension_numbers<[1], [0], [0], [1], [0, 0, 1, 1], [], []>} : vector<16x8xf32>, vector<8x16xf32>, vector<16x16xf32> -> vector<16x16xf32>
    %cst_106 = arith.constant 0.353553385 : f32
    %280 = vector.broadcast %cst_106 : f32 to vector<16x16xf32>
    %281 = arith.mulf %279, %280 : vector<16x16xf32>
    %cst_107 = arith.constant dense<0xFF800000> : vector<16xf32>
    %282 = vector.multi_reduction <maximumf>, %281, %cst_107 [1] : vector<16x16xf32> to vector<16xf32>
    %283 = vector.shape_cast %282 : vector<16xf32> to vector<16x1xf32>
    %284 = vector.broadcast %283 : vector<16x1xf32> to vector<16x16xf32>
    %285 = arith.subf %281, %284 : vector<16x16xf32>
    %286 = math.exp %285 : vector<16x16xf32>
    %cst_108 = arith.constant dense<0.000000e+00> : vector<16xf32>
    %287 = vector.multi_reduction <add>, %286, %cst_108 [1] : vector<16x16xf32> to vector<16xf32>
    %288 = vector.shape_cast %287 : vector<16xf32> to vector<16x1xf32>
    %289 = tpu.reciprocal %288 {approx = true} : vector<16x1xf32> -> vector<16x1xf32>
    %290 = vector.broadcast %289 : vector<16x1xf32> to vector<16x16xf32>
    %291 = arith.mulf %286, %290 : vector<16x16xf32>
    %cst_109 = arith.constant dense<0.000000e+00> : vector<16x8xf32>
    %292 = tpu.matmul %291, %277, %cst_109 {dimension_numbers = #tpu.dot_dimension_numbers<[1], [0], [0], [1], [0, 0, 1, 1], [], []>} : vector<16x16xf32>, vector<16x8xf32>, vector<16x8xf32> -> vector<16x8xf32>
    %c8_110 = arith.constant 8 : index
    %c0_111 = arith.constant 0 : index
    %293 = vector.load %arg10[%c8_110, %c0_111] : memref<32x32xf32, #tpu.memory_space<vmem>>, vector<8x32xf32>
    %cst_112 = arith.constant dense<0.000000e+00> : vector<16x32xf32>
    %294 = tpu.matmul %292, %293, %cst_112 {dimension_numbers = #tpu.dot_dimension_numbers<[1], [0], [0], [1], [0, 0, 1, 1], [], []>} : vector<16x8xf32>, vector<8x32xf32>, vector<16x32xf32> -> vector<16x32xf32>
    %295 = arith.addf %274, %294 : vector<16x32xf32>
    %296 = vector.extract_strided_slice %247 {offsets = [0, 16], sizes = [16, 8], strides = [1, 1]} : vector<32x32xf32> to vector<16x8xf32>
    %297 = vector.extract_strided_slice %253 {offsets = [0, 16], sizes = [16, 8], strides = [1, 1]} : vector<32x32xf32> to vector<16x8xf32>
    %298 = vector.extract_strided_slice %254 {offsets = [0, 16], sizes = [16, 8], strides = [1, 1]} : vector<32x32xf32> to vector<16x8xf32>
    %299 = tpu.transpose %297, [1, 0] : vector<16x8xf32> -> vector<8x16xf32>
    %cst_113 = arith.constant dense<0.000000e+00> : vector<16x16xf32>
    %300 = tpu.matmul %296, %299, %cst_113 {dimension_numbers = #tpu.dot_dimension_numbers<[1], [0], [0], [1], [0, 0, 1, 1], [], []>} : vector<16x8xf32>, vector<8x16xf32>, vector<16x16xf32> -> vector<16x16xf32>
    %cst_114 = arith.constant 0.353553385 : f32
    %301 = vector.broadcast %cst_114 : f32 to vector<16x16xf32>
    %302 = arith.mulf %300, %301 : vector<16x16xf32>
    %cst_115 = arith.constant dense<0xFF800000> : vector<16xf32>
    %303 = vector.multi_reduction <maximumf>, %302, %cst_115 [1] : vector<16x16xf32> to vector<16xf32>
    %304 = vector.shape_cast %303 : vector<16xf32> to vector<16x1xf32>
    %305 = vector.broadcast %304 : vector<16x1xf32> to vector<16x16xf32>
    %306 = arith.subf %302, %305 : vector<16x16xf32>
    %307 = math.exp %306 : vector<16x16xf32>
    %cst_116 = arith.constant dense<0.000000e+00> : vector<16xf32>
    %308 = vector.multi_reduction <add>, %307, %cst_116 [1] : vector<16x16xf32> to vector<16xf32>
    %309 = vector.shape_cast %308 : vector<16xf32> to vector<16x1xf32>
    %310 = tpu.reciprocal %309 {approx = true} : vector<16x1xf32> -> vector<16x1xf32>
    %311 = vector.broadcast %310 : vector<16x1xf32> to vector<16x16xf32>
    %312 = arith.mulf %307, %311 : vector<16x16xf32>
    %cst_117 = arith.constant dense<0.000000e+00> : vector<16x8xf32>
    %313 = tpu.matmul %312, %298, %cst_117 {dimension_numbers = #tpu.dot_dimension_numbers<[1], [0], [0], [1], [0, 0, 1, 1], [], []>} : vector<16x16xf32>, vector<16x8xf32>, vector<16x8xf32> -> vector<16x8xf32>
    %c16_118 = arith.constant 16 : index
    %c0_119 = arith.constant 0 : index
    %314 = vector.load %arg10[%c16_118, %c0_119] : memref<32x32xf32, #tpu.memory_space<vmem>>, vector<8x32xf32>
    %cst_120 = arith.constant dense<0.000000e+00> : vector<16x32xf32>
    %315 = tpu.matmul %313, %314, %cst_120 {dimension_numbers = #tpu.dot_dimension_numbers<[1], [0], [0], [1], [0, 0, 1, 1], [], []>} : vector<16x8xf32>, vector<8x32xf32>, vector<16x32xf32> -> vector<16x32xf32>
    %316 = arith.addf %295, %315 : vector<16x32xf32>
    %317 = vector.extract_strided_slice %247 {offsets = [0, 24], sizes = [16, 8], strides = [1, 1]} : vector<32x32xf32> to vector<16x8xf32>
    %318 = vector.extract_strided_slice %253 {offsets = [0, 24], sizes = [16, 8], strides = [1, 1]} : vector<32x32xf32> to vector<16x8xf32>
    %319 = vector.extract_strided_slice %254 {offsets = [0, 24], sizes = [16, 8], strides = [1, 1]} : vector<32x32xf32> to vector<16x8xf32>
    %320 = tpu.transpose %318, [1, 0] : vector<16x8xf32> -> vector<8x16xf32>
    %cst_121 = arith.constant dense<0.000000e+00> : vector<16x16xf32>
    %321 = tpu.matmul %317, %320, %cst_121 {dimension_numbers = #tpu.dot_dimension_numbers<[1], [0], [0], [1], [0, 0, 1, 1], [], []>} : vector<16x8xf32>, vector<8x16xf32>, vector<16x16xf32> -> vector<16x16xf32>
    %cst_122 = arith.constant 0.353553385 : f32
    %322 = vector.broadcast %cst_122 : f32 to vector<16x16xf32>
    %323 = arith.mulf %321, %322 : vector<16x16xf32>
    %cst_123 = arith.constant dense<0xFF800000> : vector<16xf32>
    %324 = vector.multi_reduction <maximumf>, %323, %cst_123 [1] : vector<16x16xf32> to vector<16xf32>
    %325 = vector.shape_cast %324 : vector<16xf32> to vector<16x1xf32>
    %326 = vector.broadcast %325 : vector<16x1xf32> to vector<16x16xf32>
    %327 = arith.subf %323, %326 : vector<16x16xf32>
    %328 = math.exp %327 : vector<16x16xf32>
    %cst_124 = arith.constant dense<0.000000e+00> : vector<16xf32>
    %329 = vector.multi_reduction <add>, %328, %cst_124 [1] : vector<16x16xf32> to vector<16xf32>
    %330 = vector.shape_cast %329 : vector<16xf32> to vector<16x1xf32>
    %331 = tpu.reciprocal %330 {approx = true} : vector<16x1xf32> -> vector<16x1xf32>
    %332 = vector.broadcast %331 : vector<16x1xf32> to vector<16x16xf32>
    %333 = arith.mulf %328, %332 : vector<16x16xf32>
    %cst_125 = arith.constant dense<0.000000e+00> : vector<16x8xf32>
    %334 = tpu.matmul %333, %319, %cst_125 {dimension_numbers = #tpu.dot_dimension_numbers<[1], [0], [0], [1], [0, 0, 1, 1], [], []>} : vector<16x16xf32>, vector<16x8xf32>, vector<16x8xf32> -> vector<16x8xf32>
    %c24_126 = arith.constant 24 : index
    %c0_127 = arith.constant 0 : index
    %335 = vector.load %arg10[%c24_126, %c0_127] : memref<32x32xf32, #tpu.memory_space<vmem>>, vector<8x32xf32>
    %cst_128 = arith.constant dense<0.000000e+00> : vector<16x32xf32>
    %336 = tpu.matmul %334, %335, %cst_128 {dimension_numbers = #tpu.dot_dimension_numbers<[1], [0], [0], [1], [0, 0, 1, 1], [], []>} : vector<16x8xf32>, vector<8x32xf32>, vector<16x32xf32> -> vector<16x32xf32>
    %337 = arith.addf %316, %336 : vector<16x32xf32>
    %338 = vector.extract_strided_slice %247 {offsets = [16, 0], sizes = [16, 8], strides = [1, 1]} : vector<32x32xf32> to vector<16x8xf32>
    %339 = vector.extract_strided_slice %253 {offsets = [16, 0], sizes = [16, 8], strides = [1, 1]} : vector<32x32xf32> to vector<16x8xf32>
    %340 = vector.extract_strided_slice %254 {offsets = [16, 0], sizes = [16, 8], strides = [1, 1]} : vector<32x32xf32> to vector<16x8xf32>
    %341 = tpu.transpose %339, [1, 0] : vector<16x8xf32> -> vector<8x16xf32>
    %cst_129 = arith.constant dense<0.000000e+00> : vector<16x16xf32>
    %342 = tpu.matmul %338, %341, %cst_129 {dimension_numbers = #tpu.dot_dimension_numbers<[1], [0], [0], [1], [0, 0, 1, 1], [], []>} : vector<16x8xf32>, vector<8x16xf32>, vector<16x16xf32> -> vector<16x16xf32>
    %cst_130 = arith.constant 0.353553385 : f32
    %343 = vector.broadcast %cst_130 : f32 to vector<16x16xf32>
    %344 = arith.mulf %342, %343 : vector<16x16xf32>
    %cst_131 = arith.constant dense<0xFF800000> : vector<16xf32>
    %345 = vector.multi_reduction <maximumf>, %344, %cst_131 [1] : vector<16x16xf32> to vector<16xf32>
    %346 = vector.shape_cast %345 : vector<16xf32> to vector<16x1xf32>
    %347 = vector.broadcast %346 : vector<16x1xf32> to vector<16x16xf32>
    %348 = arith.subf %344, %347 : vector<16x16xf32>
    %349 = math.exp %348 : vector<16x16xf32>
    %cst_132 = arith.constant dense<0.000000e+00> : vector<16xf32>
    %350 = vector.multi_reduction <add>, %349, %cst_132 [1] : vector<16x16xf32> to vector<16xf32>
    %351 = vector.shape_cast %350 : vector<16xf32> to vector<16x1xf32>
    %352 = tpu.reciprocal %351 {approx = true} : vector<16x1xf32> -> vector<16x1xf32>
    %353 = vector.broadcast %352 : vector<16x1xf32> to vector<16x16xf32>
    %354 = arith.mulf %349, %353 : vector<16x16xf32>
    %cst_133 = arith.constant dense<0.000000e+00> : vector<16x8xf32>
    %355 = tpu.matmul %354, %340, %cst_133 {dimension_numbers = #tpu.dot_dimension_numbers<[1], [0], [0], [1], [0, 0, 1, 1], [], []>} : vector<16x16xf32>, vector<16x8xf32>, vector<16x8xf32> -> vector<16x8xf32>
    %c0_134 = arith.constant 0 : index
    %c0_135 = arith.constant 0 : index
    %356 = vector.load %arg10[%c0_134, %c0_135] : memref<32x32xf32, #tpu.memory_space<vmem>>, vector<8x32xf32>
    %cst_136 = arith.constant dense<0.000000e+00> : vector<16x32xf32>
    %357 = tpu.matmul %355, %356, %cst_136 {dimension_numbers = #tpu.dot_dimension_numbers<[1], [0], [0], [1], [0, 0, 1, 1], [], []>} : vector<16x8xf32>, vector<8x32xf32>, vector<16x32xf32> -> vector<16x32xf32>
    %358 = vector.extract_strided_slice %247 {offsets = [16, 8], sizes = [16, 8], strides = [1, 1]} : vector<32x32xf32> to vector<16x8xf32>
    %359 = vector.extract_strided_slice %253 {offsets = [16, 8], sizes = [16, 8], strides = [1, 1]} : vector<32x32xf32> to vector<16x8xf32>
    %360 = vector.extract_strided_slice %254 {offsets = [16, 8], sizes = [16, 8], strides = [1, 1]} : vector<32x32xf32> to vector<16x8xf32>
    %361 = tpu.transpose %359, [1, 0] : vector<16x8xf32> -> vector<8x16xf32>
    %cst_137 = arith.constant dense<0.000000e+00> : vector<16x16xf32>
    %362 = tpu.matmul %358, %361, %cst_137 {dimension_numbers = #tpu.dot_dimension_numbers<[1], [0], [0], [1], [0, 0, 1, 1], [], []>} : vector<16x8xf32>, vector<8x16xf32>, vector<16x16xf32> -> vector<16x16xf32>
    %cst_138 = arith.constant 0.353553385 : f32
    %363 = vector.broadcast %cst_138 : f32 to vector<16x16xf32>
    %364 = arith.mulf %362, %363 : vector<16x16xf32>
    %cst_139 = arith.constant dense<0xFF800000> : vector<16xf32>
    %365 = vector.multi_reduction <maximumf>, %364, %cst_139 [1] : vector<16x16xf32> to vector<16xf32>
    %366 = vector.shape_cast %365 : vector<16xf32> to vector<16x1xf32>
    %367 = vector.broadcast %366 : vector<16x1xf32> to vector<16x16xf32>
    %368 = arith.subf %364, %367 : vector<16x16xf32>
    %369 = math.exp %368 : vector<16x16xf32>
    %cst_140 = arith.constant dense<0.000000e+00> : vector<16xf32>
    %370 = vector.multi_reduction <add>, %369, %cst_140 [1] : vector<16x16xf32> to vector<16xf32>
    %371 = vector.shape_cast %370 : vector<16xf32> to vector<16x1xf32>
    %372 = tpu.reciprocal %371 {approx = true} : vector<16x1xf32> -> vector<16x1xf32>
    %373 = vector.broadcast %372 : vector<16x1xf32> to vector<16x16xf32>
    %374 = arith.mulf %369, %373 : vector<16x16xf32>
    %cst_141 = arith.constant dense<0.000000e+00> : vector<16x8xf32>
    %375 = tpu.matmul %374, %360, %cst_141 {dimension_numbers = #tpu.dot_dimension_numbers<[1], [0], [0], [1], [0, 0, 1, 1], [], []>} : vector<16x16xf32>, vector<16x8xf32>, vector<16x8xf32> -> vector<16x8xf32>
    %c8_142 = arith.constant 8 : index
    %c0_143 = arith.constant 0 : index
    %376 = vector.load %arg10[%c8_142, %c0_143] : memref<32x32xf32, #tpu.memory_space<vmem>>, vector<8x32xf32>
    %cst_144 = arith.constant dense<0.000000e+00> : vector<16x32xf32>
    %377 = tpu.matmul %375, %376, %cst_144 {dimension_numbers = #tpu.dot_dimension_numbers<[1], [0], [0], [1], [0, 0, 1, 1], [], []>} : vector<16x8xf32>, vector<8x32xf32>, vector<16x32xf32> -> vector<16x32xf32>
    %378 = arith.addf %357, %377 : vector<16x32xf32>
    %379 = vector.extract_strided_slice %247 {offsets = [16, 16], sizes = [16, 8], strides = [1, 1]} : vector<32x32xf32> to vector<16x8xf32>
    %380 = vector.extract_strided_slice %253 {offsets = [16, 16], sizes = [16, 8], strides = [1, 1]} : vector<32x32xf32> to vector<16x8xf32>
    %381 = vector.extract_strided_slice %254 {offsets = [16, 16], sizes = [16, 8], strides = [1, 1]} : vector<32x32xf32> to vector<16x8xf32>
    %382 = tpu.transpose %380, [1, 0] : vector<16x8xf32> -> vector<8x16xf32>
    %cst_145 = arith.constant dense<0.000000e+00> : vector<16x16xf32>
    %383 = tpu.matmul %379, %382, %cst_145 {dimension_numbers = #tpu.dot_dimension_numbers<[1], [0], [0], [1], [0, 0, 1, 1], [], []>} : vector<16x8xf32>, vector<8x16xf32>, vector<16x16xf32> -> vector<16x16xf32>
    %cst_146 = arith.constant 0.353553385 : f32
    %384 = vector.broadcast %cst_146 : f32 to vector<16x16xf32>
    %385 = arith.mulf %383, %384 : vector<16x16xf32>
    %cst_147 = arith.constant dense<0xFF800000> : vector<16xf32>
    %386 = vector.multi_reduction <maximumf>, %385, %cst_147 [1] : vector<16x16xf32> to vector<16xf32>
    %387 = vector.shape_cast %386 : vector<16xf32> to vector<16x1xf32>
    %388 = vector.broadcast %387 : vector<16x1xf32> to vector<16x16xf32>
    %389 = arith.subf %385, %388 : vector<16x16xf32>
    %390 = math.exp %389 : vector<16x16xf32>
    %cst_148 = arith.constant dense<0.000000e+00> : vector<16xf32>
    %391 = vector.multi_reduction <add>, %390, %cst_148 [1] : vector<16x16xf32> to vector<16xf32>
    %392 = vector.shape_cast %391 : vector<16xf32> to vector<16x1xf32>
    %393 = tpu.reciprocal %392 {approx = true} : vector<16x1xf32> -> vector<16x1xf32>
    %394 = vector.broadcast %393 : vector<16x1xf32> to vector<16x16xf32>
    %395 = arith.mulf %390, %394 : vector<16x16xf32>
    %cst_149 = arith.constant dense<0.000000e+00> : vector<16x8xf32>
    %396 = tpu.matmul %395, %381, %cst_149 {dimension_numbers = #tpu.dot_dimension_numbers<[1], [0], [0], [1], [0, 0, 1, 1], [], []>} : vector<16x16xf32>, vector<16x8xf32>, vector<16x8xf32> -> vector<16x8xf32>
    %c16_150 = arith.constant 16 : index
    %c0_151 = arith.constant 0 : index
    %397 = vector.load %arg10[%c16_150, %c0_151] : memref<32x32xf32, #tpu.memory_space<vmem>>, vector<8x32xf32>
    %cst_152 = arith.constant dense<0.000000e+00> : vector<16x32xf32>
    %398 = tpu.matmul %396, %397, %cst_152 {dimension_numbers = #tpu.dot_dimension_numbers<[1], [0], [0], [1], [0, 0, 1, 1], [], []>} : vector<16x8xf32>, vector<8x32xf32>, vector<16x32xf32> -> vector<16x32xf32>
    %399 = arith.addf %378, %398 : vector<16x32xf32>
    %400 = vector.extract_strided_slice %247 {offsets = [16, 24], sizes = [16, 8], strides = [1, 1]} : vector<32x32xf32> to vector<16x8xf32>
    %401 = vector.extract_strided_slice %253 {offsets = [16, 24], sizes = [16, 8], strides = [1, 1]} : vector<32x32xf32> to vector<16x8xf32>
    %402 = vector.extract_strided_slice %254 {offsets = [16, 24], sizes = [16, 8], strides = [1, 1]} : vector<32x32xf32> to vector<16x8xf32>
    %403 = tpu.transpose %401, [1, 0] : vector<16x8xf32> -> vector<8x16xf32>
    %cst_153 = arith.constant dense<0.000000e+00> : vector<16x16xf32>
    %404 = tpu.matmul %400, %403, %cst_153 {dimension_numbers = #tpu.dot_dimension_numbers<[1], [0], [0], [1], [0, 0, 1, 1], [], []>} : vector<16x8xf32>, vector<8x16xf32>, vector<16x16xf32> -> vector<16x16xf32>
    %cst_154 = arith.constant 0.353553385 : f32
    %405 = vector.broadcast %cst_154 : f32 to vector<16x16xf32>
    %406 = arith.mulf %404, %405 : vector<16x16xf32>
    %cst_155 = arith.constant dense<0xFF800000> : vector<16xf32>
    %407 = vector.multi_reduction <maximumf>, %406, %cst_155 [1] : vector<16x16xf32> to vector<16xf32>
    %408 = vector.shape_cast %407 : vector<16xf32> to vector<16x1xf32>
    %409 = vector.broadcast %408 : vector<16x1xf32> to vector<16x16xf32>
    %410 = arith.subf %406, %409 : vector<16x16xf32>
    %411 = math.exp %410 : vector<16x16xf32>
    %cst_156 = arith.constant dense<0.000000e+00> : vector<16xf32>
    %412 = vector.multi_reduction <add>, %411, %cst_156 [1] : vector<16x16xf32> to vector<16xf32>
    %413 = vector.shape_cast %412 : vector<16xf32> to vector<16x1xf32>
    %414 = tpu.reciprocal %413 {approx = true} : vector<16x1xf32> -> vector<16x1xf32>
    %415 = vector.broadcast %414 : vector<16x1xf32> to vector<16x16xf32>
    %416 = arith.mulf %411, %415 : vector<16x16xf32>
    %cst_157 = arith.constant dense<0.000000e+00> : vector<16x8xf32>
    %417 = tpu.matmul %416, %402, %cst_157 {dimension_numbers = #tpu.dot_dimension_numbers<[1], [0], [0], [1], [0, 0, 1, 1], [], []>} : vector<16x16xf32>, vector<16x8xf32>, vector<16x8xf32> -> vector<16x8xf32>
    %c24_158 = arith.constant 24 : index
    %c0_159 = arith.constant 0 : index
    %418 = vector.load %arg10[%c24_158, %c0_159] : memref<32x32xf32, #tpu.memory_space<vmem>>, vector<8x32xf32>
    %cst_160 = arith.constant dense<0.000000e+00> : vector<16x32xf32>
    %419 = tpu.matmul %417, %418, %cst_160 {dimension_numbers = #tpu.dot_dimension_numbers<[1], [0], [0], [1], [0, 0, 1, 1], [], []>} : vector<16x8xf32>, vector<8x32xf32>, vector<16x32xf32> -> vector<16x32xf32>
    %420 = arith.addf %399, %419 : vector<16x32xf32>
    %421 = tpu.concatenate %337, %420 in 0 : vector<16x32xf32>, vector<16x32xf32> -> vector<32x32xf32>
    %c0_161 = arith.constant 0 : index
    %c0_162 = arith.constant 0 : index
    %422 = vector.load %arg11[%c0_161, %c0_162] : memref<1x32xf32, #tpu.memory_space<vmem>>, vector<1x32xf32>
    %423 = vector.broadcast %422 : vector<1x32xf32> to vector<32x32xf32>
    %424 = arith.addf %421, %423 : vector<32x32xf32>
    %425 = arith.addf %242, %424 : vector<32x32xf32>
    %c0_163 = arith.constant 0 : index
    %c0_164 = arith.constant 0 : index
    %426 = vector.load %arg14[%c0_163, %c0_164] : memref<1x32xf32, #tpu.memory_space<vmem>>, vector<1x32xf32>
    %c0_165 = arith.constant 0 : index
    %c0_166 = arith.constant 0 : index
    %427 = vector.load %arg15[%c0_165, %c0_166] : memref<1x32xf32, #tpu.memory_space<vmem>>, vector<1x32xf32>
    %cst_167 = arith.constant dense<0.000000e+00> : vector<32xf32>
    %428 = vector.multi_reduction <add>, %425, %cst_167 [1] : vector<32x32xf32> to vector<32xf32>
    %429 = vector.shape_cast %428 : vector<32xf32> to vector<32x1xf32>
    %cst_168 = arith.constant 3.200000e+01 : f32
    %430 = vector.broadcast %cst_168 : f32 to vector<32x1xf32>
    %431 = arith.divf %429, %430 : vector<32x1xf32>
    %432 = vector.broadcast %431 : vector<32x1xf32> to vector<32x32xf32>
    %433 = arith.subf %425, %432 : vector<32x32xf32>
    %434 = arith.mulf %433, %433 : vector<32x32xf32>
    %cst_169 = arith.constant dense<0.000000e+00> : vector<32xf32>
    %435 = vector.multi_reduction <add>, %434, %cst_169 [1] : vector<32x32xf32> to vector<32xf32>
    %436 = vector.shape_cast %435 : vector<32xf32> to vector<32x1xf32>
    %cst_170 = arith.constant 3.200000e+01 : f32
    %437 = vector.broadcast %cst_170 : f32 to vector<32x1xf32>
    %438 = arith.divf %436, %437 : vector<32x1xf32>
    %cst_171 = arith.constant 9.99999974E-6 : f32
    %439 = vector.broadcast %cst_171 : f32 to vector<32x1xf32>
    %440 = arith.addf %438, %439 : vector<32x1xf32>
    %441 = math.rsqrt %440 : vector<32x1xf32>
    %442 = vector.broadcast %441 : vector<32x1xf32> to vector<32x32xf32>
    %443 = arith.mulf %433, %442 : vector<32x32xf32>
    %444 = vector.broadcast %426 : vector<1x32xf32> to vector<32x32xf32>
    %445 = arith.mulf %443, %444 : vector<32x32xf32>
    %446 = vector.broadcast %427 : vector<1x32xf32> to vector<32x32xf32>
    %447 = arith.addf %445, %446 : vector<32x32xf32>
    %c0_172 = arith.constant 0 : index
    %c0_173 = arith.constant 0 : index
    %448 = vector.load %arg16[%c0_172, %c0_173] : memref<32x64xf32, #tpu.memory_space<vmem>>, vector<32x64xf32>
    %cst_174 = arith.constant dense<0.000000e+00> : vector<32x64xf32>
    %449 = tpu.matmul %447, %448, %cst_174 {dimension_numbers = #tpu.dot_dimension_numbers<[1], [0], [0], [1], [0, 0, 1, 1], [], []>} : vector<32x32xf32>, vector<32x64xf32>, vector<32x64xf32> -> vector<32x64xf32>
    %c0_175 = arith.constant 0 : index
    %c0_176 = arith.constant 0 : index
    %450 = vector.load %arg17[%c0_175, %c0_176] : memref<1x64xf32, #tpu.memory_space<vmem>>, vector<1x64xf32>
    %451 = vector.broadcast %450 : vector<1x64xf32> to vector<32x64xf32>
    %452 = arith.addf %449, %451 : vector<32x64xf32>
    %cst_177 = arith.constant 0.000000e+00 : f32
    %453 = vector.broadcast %cst_177 : f32 to vector<32x64xf32>
    %454 = arith.maximumf %452, %453 : vector<32x64xf32>
    %c0_178 = arith.constant 0 : index
    %c0_179 = arith.constant 0 : index
    %455 = vector.load %arg18[%c0_178, %c0_179] : memref<64x32xf32, #tpu.memory_space<vmem>>, vector<64x32xf32>
    %cst_180 = arith.constant dense<0.000000e+00> : vector<32x32xf32>
    %456 = tpu.matmul %454, %455, %cst_180 {dimension_numbers = #tpu.dot_dimension_numbers<[1], [0], [0], [1], [0, 0, 1, 1], [], []>} : vector<32x64xf32>, vector<64x32xf32>, vector<32x32xf32> -> vector<32x32xf32>
    %c0_181 = arith.constant 0 : index
    %c0_182 = arith.constant 0 : index
    %457 = vector.load %arg19[%c0_181, %c0_182] : memref<1x32xf32, #tpu.memory_space<vmem>>, vector<1x32xf32>
    %458 = vector.broadcast %457 : vector<1x32xf32> to vector<32x32xf32>
    %459 = arith.addf %456, %458 : vector<32x32xf32>
    %460 = arith.addf %447, %459 : vector<32x32xf32>
    %c0_183 = arith.constant 0 : index
    %c0_184 = arith.constant 0 : index
    %461 = vector.load %arg20[%c0_183, %c0_184] : memref<1x32xf32, #tpu.memory_space<vmem>>, vector<1x32xf32>
    %c0_185 = arith.constant 0 : index
    %c0_186 = arith.constant 0 : index
    %462 = vector.load %arg21[%c0_185, %c0_186] : memref<1x32xf32, #tpu.memory_space<vmem>>, vector<1x32xf32>
    %cst_187 = arith.constant dense<0.000000e+00> : vector<32xf32>
    %463 = vector.multi_reduction <add>, %460, %cst_187 [1] : vector<32x32xf32> to vector<32xf32>
    %464 = vector.shape_cast %463 : vector<32xf32> to vector<32x1xf32>
    %cst_188 = arith.constant 3.200000e+01 : f32
    %465 = vector.broadcast %cst_188 : f32 to vector<32x1xf32>
    %466 = arith.divf %464, %465 : vector<32x1xf32>
    %467 = vector.broadcast %466 : vector<32x1xf32> to vector<32x32xf32>
    %468 = arith.subf %460, %467 : vector<32x32xf32>
    %469 = arith.mulf %468, %468 : vector<32x32xf32>
    %cst_189 = arith.constant dense<0.000000e+00> : vector<32xf32>
    %470 = vector.multi_reduction <add>, %469, %cst_189 [1] : vector<32x32xf32> to vector<32xf32>
    %471 = vector.shape_cast %470 : vector<32xf32> to vector<32x1xf32>
    %cst_190 = arith.constant 3.200000e+01 : f32
    %472 = vector.broadcast %cst_190 : f32 to vector<32x1xf32>
    %473 = arith.divf %471, %472 : vector<32x1xf32>
    %cst_191 = arith.constant 9.99999974E-6 : f32
    %474 = vector.broadcast %cst_191 : f32 to vector<32x1xf32>
    %475 = arith.addf %473, %474 : vector<32x1xf32>
    %476 = math.rsqrt %475 : vector<32x1xf32>
    %477 = vector.broadcast %476 : vector<32x1xf32> to vector<32x32xf32>
    %478 = arith.mulf %468, %477 : vector<32x32xf32>
    %479 = vector.broadcast %461 : vector<1x32xf32> to vector<32x32xf32>
    %480 = arith.mulf %478, %479 : vector<32x32xf32>
    %481 = vector.broadcast %462 : vector<1x32xf32> to vector<32x32xf32>
    %482 = arith.addf %480, %481 : vector<32x32xf32>
    %c0_192 = arith.constant 0 : index
    %c0_193 = arith.constant 0 : index
    %483 = vector.load %arg22[%c0_192, %c0_193] : memref<1x32xf32, #tpu.memory_space<vmem>>, vector<1x32xf32>
    %c0_194 = arith.constant 0 : index
    %c0_195 = arith.constant 0 : index
    %484 = vector.load %arg23[%c0_194, %c0_195] : memref<1x32xf32, #tpu.memory_space<vmem>>, vector<1x32xf32>
    %cst_196 = arith.constant dense<0.000000e+00> : vector<32xf32>
    %485 = vector.multi_reduction <add>, %482, %cst_196 [1] : vector<32x32xf32> to vector<32xf32>
    %486 = vector.shape_cast %485 : vector<32xf32> to vector<32x1xf32>
    %cst_197 = arith.constant 3.200000e+01 : f32
    %487 = vector.broadcast %cst_197 : f32 to vector<32x1xf32>
    %488 = arith.divf %486, %487 : vector<32x1xf32>
    %489 = vector.broadcast %488 : vector<32x1xf32> to vector<32x32xf32>
    %490 = arith.subf %482, %489 : vector<32x32xf32>
    %491 = arith.mulf %490, %490 : vector<32x32xf32>
    %cst_198 = arith.constant dense<0.000000e+00> : vector<32xf32>
    %492 = vector.multi_reduction <add>, %491, %cst_198 [1] : vector<32x32xf32> to vector<32xf32>
    %493 = vector.shape_cast %492 : vector<32xf32> to vector<32x1xf32>
    %cst_199 = arith.constant 3.200000e+01 : f32
    %494 = vector.broadcast %cst_199 : f32 to vector<32x1xf32>
    %495 = arith.divf %493, %494 : vector<32x1xf32>
    %cst_200 = arith.constant 9.99999974E-6 : f32
    %496 = vector.broadcast %cst_200 : f32 to vector<32x1xf32>
    %497 = arith.addf %495, %496 : vector<32x1xf32>
    %498 = math.rsqrt %497 : vector<32x1xf32>
    %499 = vector.broadcast %498 : vector<32x1xf32> to vector<32x32xf32>
    %500 = arith.mulf %490, %499 : vector<32x32xf32>
    %501 = vector.broadcast %483 : vector<1x32xf32> to vector<32x32xf32>
    %502 = arith.mulf %500, %501 : vector<32x32xf32>
    %503 = vector.broadcast %484 : vector<1x32xf32> to vector<32x32xf32>
    %504 = arith.addf %502, %503 : vector<32x32xf32>
    %c0_201 = arith.constant 0 : index
    %c0_202 = arith.constant 0 : index
    %505 = vector.load %arg24[%c0_201, %c0_202] : memref<32x4xf32, #tpu.memory_space<vmem>>, vector<32x4xf32>
    %cst_203 = arith.constant dense<0.000000e+00> : vector<32x4xf32>
    %506 = tpu.matmul %504, %505, %cst_203 {dimension_numbers = #tpu.dot_dimension_numbers<[1], [0], [0], [1], [0, 0, 1, 1], [], []>} : vector<32x32xf32>, vector<32x4xf32>, vector<32x4xf32> -> vector<32x4xf32>
    %c0_204 = arith.constant 0 : index
    %c0_205 = arith.constant 0 : index
    %507 = vector.load %arg25[%c0_204, %c0_205] : memref<1x4xf32, #tpu.memory_space<vmem>>, vector<1x4xf32>
    %508 = vector.broadcast %507 : vector<1x4xf32> to vector<32x4xf32>
    %509 = arith.addf %506, %508 : vector<32x4xf32>
    %c0_206 = arith.constant 0 : index
    %c0_207 = arith.constant 0 : index
    %510 = vector.load %arg26[%c0_206, %c0_207] : memref<32x4xf32, #tpu.memory_space<vmem>>, vector<32x4xf32>
    tpu.vector_store %arg26[%c0_206, %c0_207], %509 {strides = array<i32>} : memref<32x4xf32, #tpu.memory_space<vmem>>, vector<32x4xf32>,
    return
  }
}

</mosaic_0001>

<bundles_post_ra>
// kernel: tile.13
= control target key start
LH: loop header
LB: loop body
LE: loop exit
PB: predicated region body
PF: predicated region fallthrough
CT: control target
= control target key end

     0   :  { %s22_s0 = inlined_call_operand.vmem [shape: f32[16], index: 0, kind: input, shape index: {}]   ;;  %s23_s1 = inlined_call_operand.vmem [shape: f32[2,16], index: 1, kind: output, shape index: {}]  }
   0x1   :  { %v4_v0 = vld [vmem:[%s22_s0] ss:$0 sm:$0xff] }
   0x2   :  { %5 = vst [vmem:[%s23_s1] sm:$0x3] %v4_v0 }

// kernel: tile.0
= control target key start
LH: loop header
LB: loop body
LE: loop exit
PB: predicated region body
PF: predicated region fallthrough
CT: control target
= control target key end

     0   :  { %s130_s8 = smov 125   ;;  %s131_s9 = smov 126   ;;  %vm7_vm0 = vcmask 7168   ;;  %s221_s0 = inlined_call_operand.vmem [shape: f32[2,16], index: 0, kind: input, shape index: {}]   ;;  %s222_s1 = inlined_call_operand.vmem [shape: f32[32,1], index: 1, kind: output, shape index: {}]  }
   0x1   :  { %v4_v0 = vld [vmem:[%s221_s0] sm:$0x3]  ;;  %s129_s0 = smov 127   ;;  %s132_s10 = smov 124  }
   0x2   :  { %5 = vst [vmem:[#allocation0] sm:$0x3] %v4_v0  ;;  %s133_s11 = smov 123   ;;  %s134_s12 = smov 122  }
   0x3   :  { %s135_s13 = smov 121   ;;  %s136_s14 = smov 120  }
   0x4   :  { %s137_s17 = smov 119   ;;  %s138_s18 = smov 118  }
   0x5   :  { %s139_s19 = smov 117   ;;  %s140_s20 = smov 116  }
   0x6   :  { %s141_s21 = smov 115   ;;  %s142_s22 = smov 114  }
   0x7   :  { %s143_s23 = smov 113  }
   0x9   :  { %v9_v1 = vld [vmem:[#allocation0] sm:$0x3]  }
   0xa   :  { %v21_v2 = vld [vmem:[#allocation0] sm:$0x3]   ;;  %10 = vrot.lane.b32.xlu0 %v9_v1, %s129_s0 }
   0xb   :  { %22 = vrot.lane.b32.xlu1 %v21_v2, %s130_s8  ;;  %v15_v3 = vld [vmem:[#allocation0] sm:$0x3]  }
   0xc   :  { %v27_v4 = vld [vmem:[#allocation0] sm:$0x3]  }
   0xd   :  { %v33_v5 = vld [vmem:[#allocation0] sm:$0x3]  }
   0xe   :  { %16 = vrot.lane.b32.xlu0 %v15_v3, %s131_s9  ;;  %v39_v6 = vld [vmem:[#allocation0] sm:$0x3]  }
   0xf   :  { %28 = vrot.lane.b32.xlu1 %v27_v4, %s132_s10  ;;  %v45_v7 = vld [vmem:[#allocation0] sm:$0x3]  }
  0x10   :  { %v51_v8 = vld [vmem:[#allocation0] sm:$0x3]  }
  0x11   :  { %v57_v9 = vld [vmem:[#allocation0] sm:$0x3]  }
  0x12   :  { %34 = vrot.lane.b32.xlu0 %v33_v5, %s133_s11  ;;  %v63_v10 = vld [vmem:[#allocation0] sm:$0x3]  }
  0x13   :  { %40 = vrot.lane.b32.xlu1 %v39_v6, %s134_s12  ;;  %v6_v11 = vld [vmem:[#allocation0] sm:$0x3]  }
  0x14   :  { %8 = vst.msk [vmem:[%s222_s1] ss:$16 sm:$0x3] %vm7_vm0, %v6_v11   ;;  %v69_v12 = vld [vmem:[#allocation0] sm:$0x3]  }
  0x15   :  { %v75_v13 = vld [vmem:[#allocation0] sm:$0x3]  }
  0x16   :  { %46 = vrot.lane.b32.xlu0 %v45_v7, %s135_s13  ;;  %v81_v14 = vld [vmem:[#allocation0] sm:$0x3]  }
  0x17   :  { %52 = vrot.lane.b32.xlu1 %v51_v8, %s136_s14  ;;  %v87_v15 = vld [vmem:[#allocation0] sm:$0x3]  }
  0x18   :  { %v93_v16 = vld [vmem:[#allocation0] sm:$0x3]  }
  0x1a   :  { %58 = vrot.lane.b32.xlu0 %v57_v9, %s137_s17 }
  0x1b   :  { %64 = vrot.lane.b32.xlu1 %v63_v10, %s138_s18 }
  0x1e   :  { %70 = vrot.lane.b32.xlu0 %v69_v12, %s139_s19 }
  0x1f   :  { %76 = vrot.lane.b32.xlu1 %v75_v13, %s140_s20 }
  0x22   :  { %82 = vrot.lane.b32.xlu0 %v81_v14, %s141_s21 }
  0x23   :  { %88 = vrot.lane.b32.xlu1 %v87_v15, %s142_s22 }
  0x26   :  { %94 = vrot.lane.b32.xlu0 %v93_v16, %s143_s23 }
  0x7c   :  { %v11_v17 = vpop.permute.xlu0 %10  }
  0x7d   :  { %v23_v18 = vpop.permute.xlu1 %22   ;;  %99 = vst.msk [vmem:[%s222_s1 + $0x1] ss:$16 sm:$0x3] %vm7_vm0, %v11_v17  }
  0x7e   :  { %101 = vst.msk [vmem:[%s222_s1 + $0x3] ss:$16 sm:$0x3] %vm7_vm0, %v23_v18  }
  0x80   :  { %v17_v19 = vpop.permute.xlu0 %16  }
  0x81   :  { %v29_v20 = vpop.permute.xlu1 %28   ;;  %100 = vst.msk [vmem:[%s222_s1 + $0x2] ss:$16 sm:$0x3] %vm7_vm0, %v17_v19  }
  0x82   :  { %102 = vst.msk [vmem:[%s222_s1 + $0x4] ss:$16 sm:$0x3] %vm7_vm0, %v29_v20  }
  0x84   :  { %v35_v21 = vpop.permute.xlu0 %34  }
  0x85   :  { %v41_v22 = vpop.permute.xlu1 %40   ;;  %103 = vst.msk [vmem:[%s222_s1 + $0x5] ss:$16 sm:$0x3] %vm7_vm0, %v35_v21  }
  0x86   :  { %104 = vst.msk [vmem:[%s222_s1 + $0x6] ss:$16 sm:$0x3] %vm7_vm0, %v41_v22  }
  0x88   :  { %v47_v23 = vpop.permute.xlu0 %46  }
  0x89   :  { %v53_v24 = vpop.permute.xlu1 %52   ;;  %105 = vst.msk [vmem:[%s222_s1 + $0x7] ss:$16 sm:$0x3] %vm7_vm0, %v47_v23  }
  0x8a   :  { %106 = vst.msk [vmem:[%s222_s1 + $0x8] ss:$16 sm:$0x3] %vm7_vm0, %v53_v24  }
  0x8c   :  { %v59_v25 = vpop.permute.xlu0 %58  }
  0x8d   :  { %v65_v26 = vpop.permute.xlu1 %64   ;;  %107 = vst.msk [vmem:[%s222_s1 + $0x9] ss:$16 sm:$0x3] %vm7_vm0, %v59_v25  }
  0x8e   :  { %108 = vst.msk [vmem:[%s222_s1 + $0xa] ss:$16 sm:$0x3] %vm7_vm0, %v65_v26  }
  0x90   :  { %v71_v27 = vpop.permute.xlu0 %70  }
  0x91   :  { %v77_v28 = vpop.permute.xlu1 %76   ;;  %109 = vst.msk [vmem:[%s222_s1 + $0xb] ss:$16 sm:$0x3] %vm7_vm0, %v71_v27  }
  0x92   :  { %110 = vst.msk [vmem:[%s222_s1 + $0xc] ss:$16 sm:$0x3] %vm7_vm0, %v77_v28  }
  0x94   :  { %v83_v29 = vpop.permute.xlu0 %82  }
  0x95   :  { %v89_v30 = vpop.permute.xlu1 %88   ;;  %111 = vst.msk [vmem:[%s222_s1 + $0xd] ss:$16 sm:$0x3] %vm7_vm0, %v83_v29  }
  0x96   :  { %112 = vst.msk [vmem:[%s222_s1 + $0xe] ss:$16 sm:$0x3] %vm7_vm0, %v89_v30  }
  0x98   :  { %v95_v31 = vpop.permute.xlu0 %94  }
  0x99   :  { %113 = vst.msk [vmem:[%s222_s1 + $0xf] ss:$16 sm:$0x3] %vm7_vm0, %v95_v31  }

// kernel: fwd.7
= control target key start
LH: loop header
LB: loop body
LE: loop exit
PB: predicated region body
PF: predicated region fallthrough
CT: control target
= control target key end

     0   :  { %vm40_vm0 = vcmask 261120   ;;  %vm241_vm1 = vcmask 31744   ;;  %vm254_vm2 = vcmask 1043456   ;;  %s991_s0 = inlined_call_operand.vmem [shape: f32[32,4], index: 0, kind: input, shape index: {}]   ;;  %s992_s2 = inlined_call_operand.vmem [shape: f32[32,32], index: 2, kind: input, shape index: {}]   ;;  %s993_s5 = inlined_call_operand.vmem [shape: f32[4,32], index: 5, kind: input, shape index: {}]   ;;  %s994_s4 = inlined_call_operand.vmem [shape: f32[4,32], index: 4, kind: input, shape index: {}]   ;;  %s995_s3 = inlined_call_operand.vmem [shape: f32[32,32], index: 3, kind: input, shape index: {}]   ;;  %s996_s6 = inlined_call_operand.vmem [shape: f32[4,32], index: 6, kind: input, shape index: {}]   ;;  %s997_s7 = inlined_call_operand.vmem [shape: f32[4,32], index: 7, kind: input, shape index: {}]   ;;  %s998_s1 = inlined_call_operand.vmem [shape: f32[32,4], index: 1, kind: input, shape index: {}]   ;;  %s999_s8 = inlined_call_operand.vmem [shape: f32[16,32], index: 8, kind: input, shape index: {}]   ;;  %s1000_s9 = inlined_call_operand.vmem [shape: f32[32,32], index: 9, kind: output, shape index: {}]  }
   0x1   :  { %v32_v0 = vld [vmem:[%s991_s0] sm:$0xff]  ;;  %v33_v1 = vld [vmem:[%s991_s0 + $0x8] sm:$0xff]  ;;  %v34_v2 = vld [vmem:[%s991_s0 + $0x10] sm:$0xff] }
   0x2   :  { %v795_v3 = vpack.c.bf16 %v33_v1, %v32_v0  ;;  %v35_v4 = vld [vmem:[%s991_s0 + $0x18] sm:$0xff]  ;;  %v36_v5 = vld [vmem:[%s992_s2] sm:$0xff]  ;;  %765 = vmatprep.mubr.msk.f32.mxu0 %vm241_vm1, %v32_v0  ;;  %v37_v9 = vld [vmem:[%s992_s2 + $0x8] sm:$0xff] }
   0x3   :  { %v799_v6 = vpack.c.bf16 %v35_v4, %v34_v2  ;;  %743 = vmatprep.mubr.msk.f32.mxu1 %vm40_vm0, %v36_v5  ;;  %v240_v7 = vld [vmem:[%s993_s5] sm:$0xf]  ;;  %v38_v10 = vld [vmem:[%s992_s2 + $0x10] sm:$0xff]  ;;  %v39_v11 = vld [vmem:[%s992_s2 + $0x18] sm:$0xff] }
   0x4   :  { %796 = vmatprep.subr.bf16.mxu1 %v795_v3  ;;  %v239_v8 = vld [vmem:[%s994_s4] sm:$0xf]  ;;  %763 = vmatprep.subr.msk.mxu0 %vm254_vm2, %v240_v7  ;;  %v139_v13 = vld [vmem:[%s995_s3 + $0x8] sm:$0xff]  ;;  %v140_v14 = vld [vmem:[%s995_s3 + $0x10] sm:$0xff] }
   0x5   :  { %798 = vmatpush3.bf16.msra.mxu1 %v795_v3  ;;  %764 = vmatpush3.msk.msra.mxu0 %vm254_vm2, %v240_v7  ;;  %v138_v12 = vld [vmem:[%s995_s3] sm:$0xff]  ;;  %v141_v15 = vld [vmem:[%s995_s3 + $0x18] sm:$0xff]  ;;  %v549_v27 = vld [vmem:[%s998_s1 + $0x8] sm:$0xff] }
   0x6   :  { %800 = vmatprep.subr.bf16.mxu1 %v799_v6  ;;  %766 = vmatmul.mubr.msk.f32.vlgmr.msra.gmra.mrb[0].mxu0 %vm241_vm1, %v33_v1  ;;  %v443_v16 = vld [vmem:[%s996_s6] sm:$0xf]  ;;  %v550_v28 = vld [vmem:[%s998_s1 + $0x10] sm:$0xff]  ;;  %v551_v29 = vld [vmem:[%s998_s1 + $0x18] sm:$0xff] }
   0x7   :  { %771 = vmatprep.subr.msk.mxu0 %vm254_vm2, %v239_v8  ;;  %v552_v19 = vld [vmem:[%s997_s7] sm:$0xf]  ;;  %v654_v32 = vld [vmem:[%s999_s8 + $0x8] sm:$0xff] }
   0x8   :  { %772 = vmatpush3.msk.msra.mxu0 %vm254_vm2, %v239_v8  ;;  %v548_v26 = vld [vmem:[%s998_s1] sm:$0xff] }
   0x9   :  { %802 = vmatpush3.bf16.msra.mxu1 %v799_v6  ;;  %779 = vmatprep.subr.msk.mxu0 %vm254_vm2, %v443_v16  ;;  %v653_v33 = vld [vmem:[%s999_s8] sm:$0xff] }
   0xa   :  { %804 = vmatprep.subr.bf16.mxu1 %v795_v3 }
   0xc   :  { %744 = vmatmul.mubr.msk.f32.vlgmr.msra.gmra.mrb[0].mxu1 %vm40_vm0, %v37_v9 }
   0xd   :  { %806 = vmatpush3.bf16.msra.mxu1 %v795_v3  ;;  %746 = vmatprep.mubr.msk.f32.mxu1 %vm40_vm0, %v38_v10 }
   0xe   :  { %808 = vmatprep.subr.bf16.mxu1 %v799_v6 }
  0x10   :  { %747 = vmatmul.mubr.msk.f32.gmra.mrb[2].mxu1 %vm40_vm0, %v39_v11 }
  0x11   :  { %810 = vmatpush3.bf16.msra.mxu1 %v799_v6  ;;  %757 = vmatprep.mubr.msk.f32.mxu1 %vm40_vm0, %v138_v12 }
  0x12   :  { %811 = vmatprep.subr.msk.mxu1 %vm254_vm2, %v240_v7 }
  0x14   :  { %758 = vmatmul.mubr.msk.f32.vlgmr.msra.gmra.mrb[4].mxu1 %vm40_vm0, %v139_v13 }
  0x15   :  { %760 = vmatprep.mubr.msk.f32.mxu1 %vm40_vm0, %v140_v14  ;;  %812 = vmatpush3.msk.msra.mxu1 %vm254_vm2, %v240_v7 }
  0x18   :  { %761 = vmatmul.mubr.msk.f32.gmra.mrb[6].mxu1 %vm40_vm0, %v141_v15 }
  0x19   :  { %768 = vmatprep.mubr.msk.f32.mxu1 %vm241_vm1, %v34_v2 }
  0x1c   :  { %769 = vmatmul.mubr.msk.f32.vlgmr.msra.gmra.mrb[8].mxu1 %vm241_vm1, %v35_v4 }
  0xdf   :  { %v745_v17 = vpop.f32.mrb[0].mxu1 }
  0xe0   :  { %v119_v18 = vpop.f32.mrb[1].mxu1 }
  0xe1   :  { %773 = vmatprep.mubr.msk.f32.mxu0 %vm241_vm1, %v119_v18 }
  0xe2   :  { %774 = vmatmul.mubr.msk.f32.vlgmr.msra.gmra.mrb[0].mxu0 %vm241_vm1, %v745_v17 }
  0xe3   :  { %v748_v20 = vpop.f32.mrb[2].mxu1  ;;  %780 = vmatpush3.msk.msra.mxu0 %vm254_vm2, %v443_v16 }
  0xe4   :  { %v129_v21 = vpop.f32.mrb[3].mxu1  ;;  %787 = vmatprep.subr.msk.mxu0 %vm254_vm2, %v552_v19 }
  0xe5   :  { %776 = vmatprep.mubr.msk.f32.mxu0 %vm241_vm1, %v129_v21 }
  0xe6   :  { %777 = vmatmul.mubr.msk.f32.gmra.mrb[2].mxu0 %vm241_vm1, %v748_v20 }
  0xe7   :  { %v759_v22 = vpop.f32.mrb[4].mxu1 }
  0xe8   :  { %v220_v23 = vpop.f32.mrb[5].mxu1 }
  0xe9   :  { %781 = vmatprep.mubr.msk.f32.mxu0 %vm241_vm1, %v220_v23 }
  0xea   :  { %782 = vmatmul.mubr.msk.f32.vlgmr.msra.gmra.mrb[0].mxu0 %vm241_vm1, %v759_v22 }
  0xeb   :  { %v762_v24 = vpop.f32.mrb[6].mxu1  ;;  %788 = vmatpush3.msk.msra.mxu0 %vm254_vm2, %v552_v19 }
  0xec   :  { %v230_v25 = vpop.f32.mrb[7].mxu1 }
  0xed   :  { %784 = vmatprep.mubr.msk.f32.mxu0 %vm241_vm1, %v230_v25 }
  0xee   :  { %785 = vmatmul.mubr.msk.f32.gmra.mrb[2].mxu0 %vm241_vm1, %v762_v24 }
  0xef   :  { %789 = vmatprep.mubr.msk.f32.mxu0 %vm241_vm1, %v548_v26  ;;  %v770_v30 = vpop.f32.mrb[8].mxu1 }
  0xf0   :  { %v334_v31 = vpop.f32.mrb[9].mxu1 }
  0xf2   :  { %790 = vmatmul.mubr.msk.f32.vlgmr.msra.gmra.mrb[0].mxu0 %vm241_vm1, %v549_v27 }
  0xf3   :  { %792 = vmatprep.mubr.msk.f32.mxu0 %vm241_vm1, %v550_v28 }
  0xf6   :  { %793 = vmatmul.mubr.msk.f32.gmra.mrb[2].mxu0 %vm241_vm1, %v551_v29 }
 0x1c5   :  { %v791_v34 = vpop.f32.mrb[0].mxu0 }
 0x1c6   :  { %v660_v35 = vadd.f32 %v791_v34, %v654_v32  ;;  %v634_v36 = vpop.f32.mrb[1].mxu0 }
 0x1c7   :  { %v659_v37 = vadd.f32 %v653_v33, %v634_v36 }
 0x1c8   :  { %664 = vst.msk [vmem:[%s1000_s9 + $0x8] sm:$0xff] %vm40_vm0, %v660_v35 }
 0x1c9   :  { %663 = vst.msk [vmem:[%s1000_s9] sm:$0xff] %vm40_vm0, %v659_v37  ;;  %v794_v38 = vpop.f32.mrb[2].mxu0 }
 0x1ca   :  { %v813_v39 = vadd.f32 %v794_v38, %v770_v30  ;;  %v644_v40 = vpop.f32.mrb[3].mxu0 }
 0x1cb   :  { %v814_v41 = vadd.f32 %v644_v40, %v334_v31 }
 0x1cc   :  { %v662_v42 = vadd.f32 %v813_v39, %v654_v32 }
 0x1cd   :  { %v661_v43 = vadd.f32 %v814_v41, %v653_v33 }
 0x1ce   :  { %666 = vst.msk [vmem:[%s1000_s9 + $0x18] sm:$0xff] %vm40_vm0, %v662_v42 }
 0x1cf   :  { %665 = vst.msk [vmem:[%s1000_s9 + $0x10] sm:$0xff] %vm40_vm0, %v661_v43 }

// kernel: fwd.9
= control target key start
LH: loop header
LB: loop body
LE: loop exit
PB: predicated region body
PF: predicated region fallthrough
CT: control target
= control target key end

     0   :  { %vm55_vm0 = vcmask 261120   ;;  %v1297_v41 = vmov 0   ;;  %s1558_s0 = inlined_call_operand.vmem [shape: f32[32,32], index: 0, kind: input, shape index: {}]   ;;  %s1559_s1 = inlined_call_operand.vmem [shape: f32[32,32], index: 1, kind: input, shape index: {}]   ;;  %s1560_s2 = inlined_call_operand.vmem [shape: f32[32,32], index: 2, kind: input, shape index: {}]   ;;  %s1561_s9 = inlined_call_operand.vmem [shape: f32[32,32], index: 9, kind: input, shape index: {}]   ;;  %s1562_s8 = inlined_call_operand.vmem [shape: f32[32,32], index: 8, kind: input, shape index: {}]   ;;  %s1563_s10 = inlined_call_operand.vmem [shape: f32[32,32], index: 10, kind: input, shape index: {}]   ;;  %s1564_s3 = inlined_call_operand.vmem [shape: f32[32,32], index: 3, kind: input, shape index: {}]   ;;  %s1565_s6 = inlined_call_operand.vmem [shape: f32[32,1], index: 6, kind: input, shape index: {}]   ;;  %s1566_s5 = inlined_call_operand.vmem [shape: f32[32,1], index: 5, kind: input, shape index: {}]   ;;  %s1567_s11 = inlined_call_operand.vmem [shape: f32[1,32], index: 11, kind: input, shape index: {}]   ;;  %s1568_s12 = inlined_call_operand.vmem [shape: f32[1,32], index: 12, kind: input, shape index: {}]   ;;  %s1569_s13 = inlined_call_operand.vmem [shape: f32[1,32], index: 13, kind: input, shape index: {}]   ;;  %s1570_s4 = inlined_call_operand.vmem [shape: f32[32,32], index: 4, kind: input, shape index: {}]   ;;  %s1571_s7 = inlined_call_operand.vmem [shape: f32[16,32], index: 7, kind: input, shape index: {}]   ;;  %s1572_s14 = inlined_call_operand.vmem [shape: f32[16,32], index: 14, kind: output, shape index: {}]  }
   0x1   :  { %v47_v0 = vld [vmem:[%s1558_s0] sm:$0xff]  ;;  %v48_v1 = vld [vmem:[%s1558_s0 + $0x8] sm:$0xff]  ;;  %v49_v2 = vld [vmem:[%s1558_s0 + $0x10] sm:$0xff]  ;;  %1286 = vset.pattern.permute.xlu1 %v1297_v41  ;;  %1285 = vset.pattern.permute.xlu0 %v1297_v41 }
   0x2   :  { %v1212_v3 = vpack.c.bf16 %v48_v1, %v47_v0  ;;  %v50_v4 = vld [vmem:[%s1558_s0 + $0x18] sm:$0xff]  ;;  %v51_v5 = vld [vmem:[%s1559_s1] sm:$0xff]  ;;  %v259_v9 = vld [vmem:[%s1561_s9 + $0x8] sm:$0xff] }
   0x3   :  { %v1216_v6 = vpack.c.bf16 %v50_v4, %v49_v2  ;;  %1111 = vmatprep.mubr.msk.f32.mxu0 %vm55_vm0, %v51_v5  ;;  %v153_v7 = vld [vmem:[%s1560_s2] sm:$0xff]  ;;  %v260_v11 = vld [vmem:[%s1561_s9 + $0x10] sm:$0xff]  ;;  %v261_v12 = vld [vmem:[%s1561_s9 + $0x18] sm:$0xff] }
   0x4   :  { %1213 = vmatprep.subr.bf16.mxu0 %v1212_v3  ;;  %1221 = vmatprep.subr.bf16.mxu1 %v1212_v3  ;;  %v258_v8 = vld [vmem:[%s1561_s9] sm:$0xff]  ;;  %v52_v13 = vld [vmem:[%s1559_s1 + $0x8] sm:$0xff]  ;;  %v53_v15 = vld [vmem:[%s1559_s1 + $0x10] sm:$0xff]  ;;  %v1232_v17 = vpack.c.bf16 %v261_v12, %v260_v11 }
   0x5   :  { %1215 = vmatpush3.bf16.msra.mxu0 %v1212_v3  ;;  %1223 = vmatpush3.bf16.msra.mxu1 %v1212_v3  ;;  %v1228_v10 = vpack.c.bf16 %v259_v9, %v258_v8  ;;  %v154_v14 = vld [vmem:[%s1560_s2 + $0x8] sm:$0xff]  ;;  %v155_v16 = vld [vmem:[%s1560_s2 + $0x10] sm:$0xff]  ;;  %v254_v18 = vld [vmem:[%s1562_s8] sm:$0xff] }
   0x6   :  { %1217 = vmatprep.subr.bf16.mxu0 %v1216_v6  ;;  %1225 = vmatprep.subr.bf16.mxu1 %v1216_v6  ;;  %v255_v19 = vld [vmem:[%s1562_s8 + $0x8] sm:$0xff]  ;;  %v54_v20 = vld [vmem:[%s1559_s1 + $0x18] sm:$0xff]  ;;  %v256_v23 = vld [vmem:[%s1562_s8 + $0x10] sm:$0xff] }
   0x7   :  { %1125 = vmatprep.mubr.msk.f32.mxu1 %vm55_vm0, %v153_v7  ;;  %v156_v21 = vld [vmem:[%s1560_s2 + $0x18] sm:$0xff]  ;;  %v1236_v22 = vpack.c.bf16 %v255_v19, %v254_v18  ;;  %v456_v26 = vld [vmem:[%s1563_s10] sm:$0xff]  ;;  %v457_v27 = vld [vmem:[%s1563_s10 + $0x8] sm:$0xff] }
   0x8   :  { %v257_v24 = vld [vmem:[%s1562_s8 + $0x18] sm:$0xff]  ;;  %v1244_v28 = vpack.c.bf16 %v457_v27, %v456_v26  ;;  %v458_v29 = vld [vmem:[%s1563_s10 + $0x10] sm:$0xff]  ;;  %v657_v40 = vld [vmem:[%s1564_s3] sm:$0xff] }
   0x9   :  { %1219 = vmatpush3.bf16.msra.mxu0 %v1216_v6  ;;  %1227 = vmatpush3.bf16.msra.mxu1 %v1216_v6  ;;  %v1240_v25 = vpack.c.bf16 %v257_v24, %v256_v23  ;;  %v459_v30 = vld [vmem:[%s1563_s10 + $0x18] sm:$0xff]  ;;  %v786_v42 = vld [vmem:[%s1565_s6] sm:$0xff]  ;;  %v787_v44 = vld [vmem:[%s1565_s6 + $0x8] sm:$0xff] }
   0xa   :  { %1229 = vmatprep.subr.bf16.mxu0 %v1228_v10  ;;  %v1248_v34 = vpack.c.bf16 %v459_v30, %v458_v29  ;;  %v661_v43 = vld [vmem:[%s1566_s5] sm:$0xff]  ;;  %792 = vperm.xlu1 %1286, %v786_v42   ;;  %v662_v45 = vld [vmem:[%s1566_s5 + $0x8] sm:$0xff]  ;;  %v664_v46 = vld [vmem:[%s1566_s5 + $0x18] sm:$0xff] }
   0xb   :  { %667 = vperm.xlu0 %1285, %v661_v43   ;;  %v663_v47 = vld [vmem:[%s1566_s5 + $0x10] sm:$0xff]  ;;  %v789_v48 = vld [vmem:[%s1565_s6 + $0x18] sm:$0xff]  ;;  %v1024_v50 = vld [vmem:[%s1567_s11] ss:$0 sm:$0xff] }
   0xc   :  { %1112 = vmatmul.mubr.msk.f32.vlgmr.msra.gmra.mrb[0].mxu0 %vm55_vm0, %v52_v13  ;;  %1126 = vmatmul.mubr.msk.f32.vlgmr.msra.gmra.mrb[0].mxu1 %vm55_vm0, %v154_v14  ;;  %v788_v49 = vld [vmem:[%s1565_s6 + $0x10] sm:$0xff] }
   0xd   :  { %1114 = vmatprep.mubr.msk.f32.mxu0 %vm55_vm0, %v53_v15  ;;  %1128 = vmatprep.mubr.msk.f32.mxu1 %vm55_vm0, %v155_v16 }
   0xe   :  { %1231 = vmatpush3.bf16.msra.mxu0 %v1228_v10  ;;  %797 = vperm.xlu1 %1286, %v787_v44  }
   0xf   :  { %1233 = vmatprep.subr.bf16.mxu0 %v1232_v17  ;;  %672 = vperm.xlu0 %1285, %v662_v45  }
  0x10   :  { %1115 = vmatmul.mubr.msk.f32.gmra.mrb[2].mxu0 %vm55_vm0, %v54_v20  ;;  %1129 = vmatmul.mubr.msk.f32.gmra.mrb[2].mxu1 %vm55_vm0, %v156_v21 }
  0x11   :  { %1139 = vmatprep.mubr.msk.f32.mxu0 %vm55_vm0, %v47_v0  ;;  %1181 = vmatprep.mubr.msk.f32.mxu1 %vm55_vm0, %v657_v40 }
  0x12   :  { %1235 = vmatpush3.bf16.msra.mxu0 %v1232_v17  ;;  %682 = vperm.xlu1 %1286, %v664_v46  }
  0x13   :  { %1237 = vmatprep.subr.bf16.mxu0 %v1236_v22  ;;  %677 = vperm.xlu0 %1285, %v663_v47  }
  0x15   :  { %1140 = vmatmul.mubr.msk.f32.vlgmr.msra.gmra.mrb[4].mxu0 %vm55_vm0, %v48_v1 }
  0x16   :  { %1239 = vmatpush3.bf16.msra.mxu0 %v1236_v22  ;;  %1142 = vmatprep.mubr.msk.f32.mxu0 %vm55_vm0, %v49_v2 }
  0x17   :  { %1241 = vmatprep.subr.bf16.mxu0 %v1240_v25  ;;  %807 = vperm.xlu1 %1286, %v789_v48  }
  0x18   :  { %802 = vperm.xlu0 %1285, %v788_v49  }
  0x19   :  { %1143 = vmatmul.mubr.msk.f32.gmra.mrb[6].mxu0 %vm55_vm0, %v50_v4 }
  0x1a   :  { %1243 = vmatpush3.bf16.msra.mxu0 %v1240_v25 }
  0x1b   :  { %1245 = vmatprep.subr.bf16.mxu0 %v1244_v28 }
  0xdf   :  { %v1113_v31 = vpop.f32.mrb[0].mxu0  ;;  %v1127_v32 = vpop.f32.mrb[0].mxu1 }
  0xe0   :  { %v134_v33 = vpop.f32.mrb[1].mxu0  ;;  %v235_v35 = vpop.f32.mrb[1].mxu1 }
  0xe1   :  { %1153 = vmatprep.mubr.msk.f32.mxu0 %vm55_vm0, %v134_v33  ;;  %v1025_v33 = vld [vmem:[%s1568_s12] ss:$0 sm:$0xff] }
  0xe2   :  { %1154 = vmatmul.mubr.msk.f32.vlgmr.msra.gmra.mrb[4].mxu0 %vm55_vm0, %v1113_v31 }
  0xe3   :  { %v1116_v36 = vpop.f32.mrb[2].mxu0  ;;  %1247 = vmatpush3.bf16.msra.mxu0 %v1244_v28  ;;  %v1130_v37 = vpop.f32.mrb[2].mxu1 }
  0xe4   :  { %v144_v38 = vpop.f32.mrb[3].mxu0  ;;  %1249 = vmatprep.subr.bf16.mxu0 %v1248_v34  ;;  %v245_v39 = vpop.f32.mrb[3].mxu1 }
  0xe5   :  { %1156 = vmatprep.mubr.msk.f32.mxu0 %vm55_vm0, %v144_v38  ;;  %v1026_v38 = vld [vmem:[%s1569_s13] ss:$0 sm:$0xff] }
  0xe6   :  { %1157 = vmatmul.mubr.msk.f32.gmra.mrb[6].mxu0 %vm55_vm0, %v1116_v36 }
  0xe7   :  { %1251 = vmatpush3.bf16.msra.mxu0 %v1248_v34  ;;  %1167 = vmatprep.mubr.msk.f32.mxu0 %vm55_vm0, %v235_v35 }
  0xea   :  { %1168 = vmatmul.mubr.msk.f32.vlgmr.msra.gmra.mrb[4].mxu0 %vm55_vm0, %v1127_v32 }
  0xeb   :  { %1170 = vmatprep.mubr.msk.f32.mxu0 %vm55_vm0, %v245_v39 }
  0xee   :  { %1171 = vmatmul.mubr.msk.f32.gmra.mrb[6].mxu0 %vm55_vm0, %v1130_v37 }
 0x1bd   :  { %v1169_v51 = vpop.f32.mrb[4].mxu0 }
 0x1be   :  { %v569_v52 = vadd.f32 %v1169_v51, %v1024_v50  ;;  %v538_v53 = vpop.f32.mrb[5].mxu0 }
 0x1bf   :  { %v568_v54 = vadd.f32 %v1024_v50, %v538_v53 }
 0x1c0   :  { %v573_v55 = vsel %vm55_vm0, %v569_v52, 0.0 }
 0x1c1   :  { %v572_v56 = vsel %vm55_vm0, %v568_v54, 0.0  ;;  %v1172_v57 = vpop.f32.mrb[6].mxu0 }
 0x1c2   :  { %v574_v58 = vadd.f32 %v573_v55, %v572_v56  ;;  %v548_v59 = vpop.f32.mrb[7].mxu0  ;;  %v571_v60 = vadd.f32 %v1172_v57, %v1024_v50 }
 0x1c3   :  { %v570_v61 = vadd.f32 %v1024_v50, %v548_v59 }
 0x1c4   :  { %v577_v0 = vsel %vm55_vm0, %v571_v60, 0.0 }
 0x1c5   :  { %v575_v62 = vsel %vm55_vm0, %v570_v61, 0.0 }
 0x1c6   :  { %v576_v63 = vadd.f32 %v575_v62, %v574_v58 }
 0x1c8   :  { %v578_v1 = vadd.f32 %v577_v0, %v576_v63 }
 0x1ca   :  { %v579_v2 = vrot.slane %v578_v1, 4 }
 0x1cc   :  { %v580_v3 = vadd.f32 %v579_v2, %v578_v1  ;;  %v658_v1 = vld [vmem:[%s1564_s3 + $0x8] sm:$0xff]  ;;  %v659_v2 = vld [vmem:[%s1564_s3 + $0x10] sm:$0xff] }
 0x1ce   :  { %v581_v4 = vrot.slane %v580_v3, 2 }
 0x1d0   :  { %v582_v5 = vadd.f32 %v581_v4, %v580_v3  ;;  %v660_v3 = vld [vmem:[%s1564_s3 + $0x18] sm:$0xff]  ;;  %v782_v4 = vld [vmem:[%s1570_s4] sm:$0xff] }
 0x1d2   :  { %v583_v6 = vrot.slane %v582_v5, 1 }
 0x1d4   :  { %v584_v7 = vadd.f32 %v583_v6, %v582_v5  ;;  %v783_v5 = vld [vmem:[%s1570_s4 + $0x8] sm:$0xff]  ;;  %v784_v6 = vld [vmem:[%s1570_s4 + $0x10] sm:$0xff] }
 0x1d6   :  { %v586_v8 = vmul.f32 0.03125, %v584_v7  ;;  %v785_v7 = vld [vmem:[%s1570_s4 + $0x18] sm:$0xff] }
 0x1d8   :  { %v587_v9 = vsub.f32 %v568_v54, %v586_v8  ;;  %v588_v10 = vsub.f32 %v569_v52, %v586_v8  ;;  %v589_v11 = vsub.f32 %v570_v61, %v586_v8  ;;  %v590_v12 = vsub.f32 %v571_v60, %v586_v8  ;;  %v915_v8 = vld [vmem:[%s1571_s7] sm:$0xff] }
 0x1da   :  { %v591_v13 = vmul.f32 %v587_v9, %v587_v9  ;;  %v592_v14 = vmul.f32 %v588_v10, %v588_v10  ;;  %v593_v15 = vmul.f32 %v589_v11, %v589_v11  ;;  %v594_v16 = vmul.f32 %v590_v12, %v590_v12 }
 0x1dc   :  { %v595_v17 = vsel %vm55_vm0, %v591_v13, 0.0  ;;  %v596_v18 = vsel %vm55_vm0, %v592_v14, 0.0  ;;  %v598_v20 = vsel %vm55_vm0, %v593_v15, 0.0  ;;  %v600_v22 = vsel %vm55_vm0, %v594_v16, 0.0 }
 0x1dd   :  { %v597_v19 = vadd.f32 %v596_v18, %v595_v17 }
 0x1df   :  { %v599_v21 = vadd.f32 %v598_v20, %v597_v19 }
 0x1e1   :  { %v601_v23 = vadd.f32 %v600_v22, %v599_v21 }
 0x1e3   :  { %v602_v24 = vrot.slane %v601_v23, 4 }
 0x1e5   :  { %v603_v25 = vadd.f32 %v602_v24, %v601_v23 }
 0x1e7   :  { %v604_v26 = vrot.slane %v603_v25, 2 }
 0x1e9   :  { %v605_v27 = vadd.f32 %v604_v26, %v603_v25 }
 0x1eb   :  { %v606_v28 = vrot.slane %v605_v27, 1 }
 0x1ed   :  { %v607_v29 = vadd.f32 %v606_v28, %v605_v27 }
 0x1ef   :  { %v608_v30 = vmul.f32 0.03125, %v607_v29 }
 0x1f1   :  { %v609_v31 = vadd.f32 1e-05, %v608_v30 }
 0x1f3   :  { %1287 = vrsqrt.f32 %v609_v31 }
 0x1fd   :  { %v1288_v32 = vpop.eup %1287 }
 0x1fe   :  { %v611_v34 = vmul.f32 %v1288_v32, %v587_v9  ;;  %v612_v35 = vmul.f32 %v1288_v32, %v588_v10  ;;  %v613_v36 = vmul.f32 %v1288_v32, %v589_v11  ;;  %v614_v37 = vmul.f32 %v1288_v32, %v590_v12  ;;  %v793_v9 = vpop.permute.xlu1 %792  ;;  %v668_v10 = vpop.permute.xlu0 %667 }
 0x200   :  { %v622_v39 = vmul.f32 %v1025_v33, %v611_v34  ;;  %v623_v40 = vmul.f32 %v1025_v33, %v612_v35  ;;  %v624_v41 = vmul.f32 %v1025_v33, %v613_v36  ;;  %v625_v42 = vmul.f32 %v1025_v33, %v614_v37 }
 0x202   :  { %v635_v43 = vadd.f32 %v1026_v38, %v624_v41  ;;  %v633_v44 = vadd.f32 %v1026_v38, %v622_v39  ;;  %v634_v45 = vadd.f32 %v1026_v38, %v623_v40  ;;  %v636_v46 = vadd.f32 %v1026_v38, %v625_v42  ;;  %v798_v11 = vpop.permute.xlu1 %797  ;;  %v673_v13 = vpop.permute.xlu0 %672 }
 0x204   :  { %v645_v47 = vmul.f32 1.442695, %v635_v43  ;;  %v641_v48 = vmul.f32 1.442695, %v633_v44  ;;  %v643_v49 = vmul.f32 1.442695, %v634_v45 }
 0x205   :  { %v647_v50 = vmul.f32 1.442695, %v636_v46  ;;  %vm637_vm1 = vcmp.gt.f32.partialorder %v633_v44, 0.0  ;;  %vm638_vm2 = vcmp.gt.f32.partialorder %v634_v45, 0.0  ;;  %vm639_vm3 = vcmp.gt.f32.partialorder %v635_v43, 0.0 }
 0x206   :  { %1289 = vpow2.f32 %v645_v47  ;;  %vm640_vm4 = vcmp.gt.f32.partialorder %v636_v46, 0.0  ;;  %v683_v18 = vpop.permute.xlu1 %682  ;;  %v678_v20 = vpop.permute.xlu0 %677 }
 0x207   :  { %1291 = vpow2.f32 %v641_v48 }
 0x208   :  { %1293 = vpow2.f32 %v643_v49 }
 0x209   :  { %1295 = vpow2.f32 %v647_v50 }
 0x20a   :  { %v808_v30 = vpop.permute.xlu1 %807  ;;  %v803_v33 = vpop.permute.xlu0 %802 }
 0x210   :  { %v1290_v51 = vpop.eup %1289 }
 0x211   :  { %v1292_v52 = vpop.eup %1291  ;;  %v1029_v53 = vadd.f32 -1.0, %v1290_v51 }
 0x212   :  { %v1294_v54 = vpop.eup %1293  ;;  %v1027_v55 = vadd.f32 -1.0, %v1292_v52 }
 0x213   :  { %v1296_v56 = vpop.eup %1295  ;;  %v1028_v57 = vadd.f32 -1.0, %v1294_v54  ;;  %v1510_v61 = vsel %vm639_vm3, %v635_v43, %v1029_v53  ;;  %v916_v43 = vld [vmem:[%s1571_s7 + $0x8] sm:$0xff] }
 0x214   :  { %v653_v58 = vsel %vm637_vm1, %v633_v44, %v1027_v55  ;;  %v1030_v59 = vadd.f32 -1.0, %v1296_v56 }
 0x215   :  { %v654_v60 = vsel %vm638_vm2, %v634_v45, %v1028_v57 }
 0x216   :  { %v1252_v62 = vpack.c.bf16 %v654_v60, %v653_v58  ;;  %v656_v63 = vsel %vm640_vm4, %v636_v46, %v1030_v59 }
 0x217   :  { %v1256_v0 = vpack.c.bf16 %v656_v63, %v1510_v61 }
 0x218   :  { %1253 = vmatprep.subr.bf16.mxu1 %v1252_v62 }
 0x219   :  { %1255 = vmatpush3.bf16.msra.mxu1 %v1252_v62 }
 0x21a   :  { %1257 = vmatprep.subr.bf16.mxu1 %v1256_v0 }
 0x21d   :  { %1259 = vmatpush3.bf16.msra.mxu1 %v1256_v0 }
 0x21e   :  { %1261 = vmatprep.subr.bf16.mxu1 %v1252_v62 }
 0x220   :  { %1182 = vmatmul.mubr.msk.f32.vlgmr.msra.gmra.mrb[4].mxu1 %vm55_vm0, %v658_v1 }
 0x221   :  { %1263 = vmatpush3.bf16.msra.mxu1 %v1252_v62  ;;  %1184 = vmatprep.mubr.msk.f32.mxu1 %vm55_vm0, %v659_v2 }
 0x222   :  { %1265 = vmatprep.subr.bf16.mxu1 %v1256_v0 }
 0x224   :  { %1185 = vmatmul.mubr.msk.f32.gmra.mrb[6].mxu1 %vm55_vm0, %v660_v3 }
 0x225   :  { %1267 = vmatpush3.bf16.msra.mxu1 %v1256_v0  ;;  %1195 = vmatprep.mubr.msk.f32.mxu1 %vm55_vm0, %v782_v4 }
 0x228   :  { %1196 = vmatmul.mubr.msk.f32.vlgmr.msra.gmra.mrb[8].mxu1 %vm55_vm0, %v783_v5 }
 0x229   :  { %1198 = vmatprep.mubr.msk.f32.mxu1 %vm55_vm0, %v784_v6 }
 0x22c   :  { %1199 = vmatmul.mubr.msk.f32.gmra.mrb[10].mxu1 %vm55_vm0, %v785_v7 }
 0x22d   :  { %1209 = vmatprep.mubr.msk.f32.mxu1 %vm55_vm0, %v915_v8 }
 0x2f3   :  { %v1183_v12 = vpop.f32.mrb[4].mxu1 }
 0x2f4   :  { %v763_v14 = vpop.f32.mrb[5].mxu1  ;;  %v769_v16 = vadd.f32 %v1183_v12, %v673_v13 }
 0x2f5   :  { %v764_v19 = vadd.f32 %v763_v14, %v668_v10 }
 0x2f6   :  { %v908_v22 = vmax.f32 %v769_v16, %v654_v60 }
 0x2f7   :  { %v1186_v15 = vpop.f32.mrb[6].mxu1  ;;  %v907_v26 = vmax.f32 %v764_v19, %v653_v58 }
 0x2f8   :  { %v773_v17 = vpop.f32.mrb[7].mxu1  ;;  %v779_v23 = vadd.f32 %v1186_v15, %v683_v18 }
 0x2f9   :  { %v774_v27 = vadd.f32 %v773_v17, %v678_v20 }
 0x2fa   :  { %v910_v34 = vmax.f32 %v779_v23, %v656_v63 }
 0x2fb   :  { %v1197_v21 = vpop.f32.mrb[8].mxu1  ;;  %v909_v37 = vmax.f32 %v774_v27, %v1510_v61 }
 0x2fc   :  { %v894_v24 = vadd.f32 %v1197_v21, %v798_v11  ;;  %v888_v25 = vpop.f32.mrb[9].mxu1 }
 0x2fd   :  { %v889_v28 = vadd.f32 %v888_v25, %v793_v9 }
 0x2fe   :  { %v912_v29 = vmax.f32 %v908_v22, %v894_v24 }
 0x2ff   :  { %v911_v31 = vmax.f32 %v907_v26, %v889_v28  ;;  %v1200_v32 = vpop.f32.mrb[10].mxu1 }
 0x300   :  { %v904_v35 = vadd.f32 %v1200_v32, %v808_v30  ;;  %v898_v36 = vpop.f32.mrb[11].mxu1 }
 0x301   :  { %v899_v38 = vadd.f32 %v898_v36, %v803_v33  ;;  %v1268_v39 = vpack.c.bf16 %v912_v29, %v911_v31 }
 0x302   :  { %v914_v40 = vmax.f32 %v910_v34, %v904_v35 }
 0x303   :  { %v913_v41 = vmax.f32 %v909_v37, %v899_v38  ;;  %1269 = vmatprep.subr.bf16.mxu1 %v1268_v39 }
 0x304   :  { %1271 = vmatpush3.bf16.msra.mxu1 %v1268_v39 }
 0x305   :  { %v1272_v42 = vpack.c.bf16 %v914_v40, %v913_v41 }
 0x307   :  { %1273 = vmatprep.subr.bf16.mxu1 %v1272_v42 }
 0x308   :  { %1275 = vmatpush3.bf16.msra.mxu1 %v1272_v42 }
 0x30b   :  { %1210 = vmatmul.mubr.msk.f32.vlgmr.msra.gmra.mrb[12].mxu1 %vm55_vm0, %v916_v43 }
 0x3de   :  { %v1211_v44 = vpop.f32.mrb[12].mxu1 }
 0x3df   :  { %999 = vst.msk [vmem:[%s1572_s14 + $0x8] sm:$0xff] %vm55_vm0, %v1211_v44  ;;  %v989_v45 = vpop.f32.mrb[13].mxu1 }
 0x3e0   :  { %998 = vst.msk [vmem:[%s1572_s14] sm:$0xff] %vm55_vm0, %v989_v45 }

// kernel: fwd.8
= control target key start
LH: loop header
LB: loop body
LE: loop exit
PB: predicated region body
PF: predicated region fallthrough
CT: control target
= control target key end

     0   :  { %vm59_vm0 = vcmask 261120   ;;  %vm163_vm1 = vcmask 64512   ;;  %s3531_s25 = smov 120   ;;  %s3533_s26 = smov 88   ;;  %vm249_vm3 = vcmask 130048   ;;  %vm2648_vm4 = vcmask 523264   ;;  %s4018_s1 = inlined_call_operand.vmem [shape: f32[32,96], index: 1, kind: input, shape index: {}]   ;;  %s4019_s0 = inlined_call_operand.vmem [shape: f32[32,32], index: 0, kind: input, shape index: {}]   ;;  %s4020_s2 = inlined_call_operand.vmem [shape: f32[1,96], index: 2, kind: input, shape index: {}]   ;;  %s4021_s3 = inlined_call_operand.vmem [shape: f32[32,32], index: 3, kind: input, shape index: {}]   ;;  %s4022_s4 = inlined_call_operand.vmem [shape: f32[1,32], index: 4, kind: input, shape index: {}]   ;;  %s4023_s7 = inlined_call_operand.vmem [shape: f32[32,64], index: 7, kind: input, shape index: {}]   ;;  %s4024_s5 = inlined_call_operand.vmem [shape: f32[1,32], index: 5, kind: input, shape index: {}]   ;;  %s4025_s6 = inlined_call_operand.vmem [shape: f32[1,32], index: 6, kind: input, shape index: {}]   ;;  %s4026_s9 = inlined_call_operand.vmem [shape: f32[64,32], index: 9, kind: input, shape index: {}]   ;;  %s4027_s8 = inlined_call_operand.vmem [shape: f32[1,64], index: 8, kind: input, shape index: {}]   ;;  %s4028_s10 = inlined_call_operand.vmem [shape: f32[1,32], index: 10, kind: input, shape index: {}]   ;;  %s4029_s11 = inlined_call_operand.vmem [shape: f32[1,32], index: 11, kind: input, shape index: {}]   ;;  %s4030_s12 = inlined_call_operand.vmem [shape: f32[1,32], index: 12, kind: input, shape index: {}]   ;;  %s4031_s13 = inlined_call_operand.vmem [shape: f32[32,32], index: 13, kind: output, shape index: {}]  }
   0x1   :  { %v48_v0 = vld [vmem:[%s4018_s1] sm:$0xff]  ;;  %v49_v1 = vld [vmem:[%s4018_s1 + $0x8] sm:$0xff]  ;;  %v50_v2 = vld [vmem:[%s4018_s1 + $0x10] sm:$0xff]  ;;  %s3534_s27 = smov 64   ;;  %s3535_s28 = smov 80  }
   0x2   :  { %v3234_v3 = vpack.c.bf16 %v49_v1, %v48_v0  ;;  %v51_v4 = vld [vmem:[%s4018_s1 + $0x18] sm:$0xff]  ;;  %v3627_v5 = vld [vmem:[%s4019_s0] sm:$0xff]  ;;  %v3634_v7 = vld [vmem:[%s4019_s0 + $0x8] sm:$0xff]  ;;  %s3536_s29 = smov 56   ;;  %s3537_s30 = smov 112  }
   0x3   :  { %v3238_v6 = vpack.c.bf16 %v51_v4, %v50_v2  ;;  %3040 = vmatprep.mubr.msk.f32.mxu1 %vm59_vm0, %v3627_v5  ;;  %v46_v8 = vld [vmem:[%s4019_s0 + $0x10] sm:$0xff]  ;;  %v47_v9 = vld [vmem:[%s4019_s0 + $0x18] sm:$0xff]  ;;  %v3649_v10 = vld [vmem:[%s4020_s2] ss:$0 sm:$0xff]  ;;  %s3532_s2 = smov 96   ;;  %s3538_s14 = smov 104  }
   0x4   :  { %3235 = vmatprep.subr.bf16.mxu1 %v3234_v3  ;;  %vm3678_vm2 = vmpackc.low %vm163_vm1, %vm163_vm1  ;;  %s3539_s15 = smov 72   ;;  %s3540_s1 = smov 48  }
   0x5   :  { %3237 = vmatpush3.bf16.msra.mxu1 %v3234_v3  ;;  %s3541_s22 = smov 40  }
   0x6   :  { %3239 = vmatprep.subr.bf16.mxu1 %v3238_v6 }
   0x9   :  { %3241 = vmatpush3.bf16.msra.mxu1 %v3238_v6 }
   0xc   :  { %3041 = vmatmul.mubr.msk.f32.vlgmr.msra.gmra.mrb[0].mxu1 %vm59_vm0, %v3634_v7 }
   0xd   :  { %3043 = vmatprep.mubr.msk.f32.mxu1 %vm59_vm0, %v46_v8 }
  0x10   :  { %3044 = vmatmul.mubr.msk.f32.gmra.mrb[2].mxu1 %vm59_vm0, %v47_v9 }
  0xdf   :  { %v3042_v11 = vpop.f32.mrb[0].mxu1 }
  0xe0   :  { %v3652_v12 = vadd.f32 %v3042_v11, %v3649_v10  ;;  %v138_v13 = vpop.f32.mrb[1].mxu1 }
  0xe1   :  { %v3655_v14 = vadd.f32 %v3649_v10, %v138_v13 }
  0xe3   :  { %360 = vrot.lane.b32.xlu1 %v3655_v14, %s3531_s25  ;;  %3050 = vmatprep.mubr.msk.f32.mxu1 %vm163_vm1, %v3655_v14  ;;  %v3663_v15 = vpack.i.bf16 %v3652_v12, %v3655_v14  ;;  %v3671_v16 = vpop.f32.mrb[2].mxu1 }
  0xe4   :  { %v3673_v17 = vpop.f32.mrb[3].mxu1 }
  0xe5   :  { %3370 = vrot.lane.b32.xlu0 %v3663_v15, %s3532_s2 }
  0xe7   :  { %362 = vrot.lane.b32.xlu1 %v3652_v12, %s3531_s25 }
  0xe9   :  { %3375 = vrot.lane.b32.xlu0 %v3663_v15, %s3533_s26 }
 0x155   :  { %v361_v18 = vpop.permute.xlu1 %360 }
 0x156   :  { %3064 = vmatprep.mubr.msk.f32.mxu0 %vm163_vm1, %v361_v18 }
 0x157   :  { %v3371_v19 = vpop.permute.xlu0 %3370 }
 0x158   :  { %v3373_v20 = vunpack.i.h.bf16 %v3371_v19  ;;  %v3372_v21 = vunpack.i.l.bf16 %v3371_v19 }
 0x159   :  { %v363_v28 = vpop.permute.xlu1 %362 }
 0x15a   :  { %v3242_v23 = vpack.c.bf16 %v3373_v20, %v3372_v21 }
 0x15b   :  { %v3376_v24 = vpop.permute.xlu0 %3375 }
 0x15c   :  { %v3378_v25 = vunpack.i.h.bf16 %v3376_v24  ;;  %v3377_v26 = vunpack.i.l.bf16 %v3376_v24  ;;  %3244 = vmatprep.subr.msk.bf16.mxu1 %vm3678_vm2, %v3242_v23 }
 0x15d   :  { %3247 = vmatpush3.bf16.xpose.msk.msra.mxu1 %vm3678_vm2, %v3242_v23 }
 0x15e   :  { %v3252_v27 = vpack.c.bf16 %v3378_v25, %v3377_v26 }
 0x160   :  { %3254 = vmatprep.subr.msk.bf16.mxu0 %vm3678_vm2, %v3252_v27 }
 0x161   :  { %3257 = vmatpush3.bf16.xpose.msk.msra.mxu0 %vm3678_vm2, %v3252_v27 }
 0x164   :  { %3051 = vmatmul.mubr.msk.f32.vlgmr.msra.gmra.mrb[4].mxu1 %vm163_vm1, %v3652_v12 }
 0x168   :  { %3065 = vmatmul.mubr.msk.f32.vlgmr.msra.gmra.mrb[0].mxu0 %vm163_vm1, %v363_v28 }
 0x237   :  { %v3052_v29 = vpop.f32.mrb[4].mxu1 }
 0x238   :  { %v248_v30 = vmul.f32 0.35355338, %v3052_v29  ;;  %v238_v31 = vpop.f32.mrb[5].mxu1 }
 0x239   :  { %v247_v32 = vmul.f32 0.35355338, %v238_v31 }
 0x23a   :  { %v253_v33 = vsel %vm249_vm3, %v248_v30, -inf }
 0x23b   :  { %v3066_v34 = vpop.f32.mrb[0].mxu0  ;;  %254 = vmax.xlane.f32.xlu1 %v253_v33  ;;  %v250_v35 = vsel %vm249_vm3, %v247_v32, -inf }
 0x23c   :  { %v442_v36 = vpop.f32.mrb[1].mxu0  ;;  %251 = vmax.xlane.f32.xlu0 %v250_v35  ;;  %v452_v38 = vmul.f32 0.35355338, %v3066_v34  ;;  %v3734_v35 = vadd.f32 %v3649_v10, %v3673_v17  ;;  %v3749_v17 = vld [vmem:[%s4021_s3] sm:$0xff] }
 0x23d   :  { %v451_v37 = vmul.f32 0.35355338, %v442_v36 }
 0x23e   :  { %v456_v40 = vsel %vm249_vm3, %v452_v38, -inf }
 0x23f   :  { %v453_v39 = vsel %vm249_vm3, %v451_v37, -inf }
 0x240   :  { %454 = vmax.xlane.f32.xlu0 %v453_v39 }
 0x244   :  { %457 = vmax.xlane.f32.xlu0 %v456_v40 }
 0x24c   :  { %3380 = vrot.lane.b32.xlu1 %v3663_v15, %s3534_s27 }
 0x2c8   :  { %v255_v41 = vpop.xlane.xlu1 %254 }
 0x2c9   :  { %v257_v42 = vsub.f32 %v248_v30, %v255_v41  ;;  %v252_v43 = vpop.xlane.xlu0 %251 }
 0x2ca   :  { %v256_v44 = vsub.f32 %v247_v32, %v252_v43 }
 0x2cb   :  { %v260_v45 = vmul.f32 1.442695, %v257_v42 }
 0x2cc   :  { %v258_v46 = vmul.f32 1.442695, %v256_v44  ;;  %v3381_v47 = vpop.permute.xlu1 %3380 }
 0x2cd   :  { %3449 = vpow2.f32 %v260_v45  ;;  %v3383_v48 = vunpack.i.h.bf16 %v3381_v47  ;;  %v3382_v49 = vunpack.i.l.bf16 %v3381_v47  ;;  %v455_v50 = vpop.xlane.xlu0 %454 }
 0x2ce   :  { %3451 = vpow2.f32 %v258_v46  ;;  %v459_v61 = vsub.f32 %v451_v37, %v455_v50  ;;  %v3742_v37 = vld [vmem:[%s4021_s3 + $0x8] sm:$0xff]  ;;  %v3761_v50 = vadd.f32 %v3671_v16, %v3649_v10 }
 0x2cf   :  { %v3248_v51 = vpack.c.bf16 %v3383_v48, %v3382_v49  ;;  %3074 = vmatprep.subr.mxu0 %v3742_v37 }
 0x2d0   :  { %v461_v62 = vmul.f32 1.442695, %v459_v61  ;;  %3075 = vmatpush3.msra.mxu0 %v3742_v37 }
 0x2d1   :  { %3249 = vmatprep.subr.bf16.mxu1 %v3248_v51  ;;  %v458_v52 = vpop.xlane.xlu0 %457  ;;  %3079 = vmatprep.subr.mxu0 %v3749_v17 }
 0x2d2   :  { %v460_v53 = vsub.f32 %v452_v38, %v458_v52  ;;  %3251 = vmatpush3.bf16.msra.mxu1 %v3248_v51  ;;  %v3767_v51 = vpack.i.bf16 %v3761_v50, %v3734_v35 }
 0x2d4   :  { %v463_v54 = vmul.f32 1.442695, %v460_v53 }
 0x2d6   :  { %3453 = vpow2.f32 %v463_v54 }
 0x2d7   :  { %v3450_v55 = vpop.eup %3449  ;;  %3455 = vpow2.f32 %v461_v62 }
 0x2d8   :  { %v3452_v56 = vpop.eup %3451  ;;  %v265_v57 = vsel %vm249_vm3, %v3450_v55, 0.0 }
 0x2d9   :  { %266 = vadd.xlane.f32.xlu0 %v265_v57  ;;  %v262_v58 = vsel %vm249_vm3, %v3452_v56, 0.0 }
 0x2da   :  { %263 = vadd.xlane.f32.xlu1 %v262_v58 }
 0x2e0   :  { %v3454_v59 = vpop.eup %3453 }
 0x2e1   :  { %v468_v60 = vsel %vm249_vm3, %v3454_v59, 0.0  ;;  %v3456_v63 = vpop.eup %3455 }
 0x2e2   :  { %469 = vadd.xlane.f32.xlu0 %v468_v60  ;;  %v465_v0 = vsel %vm249_vm3, %v3456_v63, 0.0 }
 0x2eb   :  { %3390 = vrot.lane.b32.xlu1 %v3663_v15, %s3535_s28 }
 0x2f8   :  { %3385 = vrot.lane.b32.xlu0 %v3663_v15, %s3536_s29 }
 0x2fc   :  { %727 = vrot.lane.b32.xlu0 %v3652_v12, %s3537_s30 }
 0x300   :  { %1011 = vrot.lane.b32.xlu0 %v3655_v14, %s3538_s14 }
 0x30f   :  { %466 = vadd.xlane.f32.xlu1 %v465_v0 }
 0x320   :  { %725 = vrot.lane.b32.xlu1 %v3655_v14, %s3537_s30 }
 0x324   :  { %3395 = vrot.lane.b32.xlu1 %v3663_v15, %s3539_s15 }
 0x328   :  { %1013 = vrot.lane.b32.xlu1 %v3652_v12, %s3538_s14 }
 0x366   :  { %v267_v1 = vpop.xlane.xlu0 %266 }
 0x367   :  { %3457 = vrcp.f32 %v267_v1  ;;  %v264_v2 = vpop.xlane.xlu1 %263 }
 0x368   :  { %3459 = vrcp.f32 %v264_v2 }
 0x36b   :  { %v3391_v4 = vpop.permute.xlu1 %3390 }
 0x36c   :  { %v3393_v9 = vunpack.i.h.bf16 %v3391_v4  ;;  %v3392_v14 = vunpack.i.l.bf16 %v3391_v4 }
 0x36e   :  { %v3262_v12 = vpack.c.bf16 %v3393_v9, %v3392_v14  ;;  %v3788_v14 = vld [vmem:[%s4021_s3 + $0x10] sm:$0xff] }
 0x36f   :  { %v470_v3 = vpop.xlane.xlu0 %469 }
 0x370   :  { %3461 = vrcp.f32 %v470_v3 }
 0x371   :  { %v3458_v6 = vpop.eup %3457 }
 0x372   :  { %v3460_v8 = vpop.eup %3459  ;;  %v271_v18 = vmul.f32 %v3458_v6, %v3450_v55 }
 0x373   :  { %v3386_v11 = vpop.permute.xlu0 %3385  ;;  %v270_v13 = vmul.f32 %v3460_v8, %v3452_v56 }
 0x374   :  { %v3388_v19 = vunpack.i.h.bf16 %v3386_v11  ;;  %v3387_v20 = vunpack.i.l.bf16 %v3386_v11 }
 0x375   :  { %3057 = vmatprep.mubr.msk.f32.mxu1 %vm249_vm3, %v270_v13 }
 0x376   :  { %v3258_v21 = vpack.c.bf16 %v3388_v19, %v3387_v20  ;;  %3058 = vmatmul.mubr.msk.f32.vlgmr.msra.gmra.mrb[6].mxu1 %vm249_vm3, %v271_v18 }
 0x377   :  { %v728_v33 = vpop.permute.xlu0 %727 }
 0x378   :  { %3259 = vmatprep.subr.bf16.mxu1 %v3258_v21 }
 0x379   :  { %3261 = vmatpush3.bf16.msra.mxu1 %v3258_v21 }
 0x37a   :  { %3264 = vmatprep.subr.msk.bf16.mxu1 %vm3678_vm2, %v3262_v12  ;;  %v3462_v26 = vpop.eup %3461 }
 0x37b   :  { %v474_v31 = vmul.f32 %v3462_v26, %v3454_v59  ;;  %v1012_v34 = vpop.permute.xlu0 %1011 }
 0x39c   :  { %v467_v23 = vpop.xlane.xlu1 %466 }
 0x39d   :  { %3463 = vrcp.f32 %v467_v23 }
 0x3a0   :  { %v726_v24 = vpop.permute.xlu1 %725 }
 0x3a4   :  { %v3396_v25 = vpop.permute.xlu1 %3395 }
 0x3a5   :  { %v3398_v28 = vunpack.i.h.bf16 %v3396_v25  ;;  %v3397_v29 = vunpack.i.l.bf16 %v3396_v25 }
 0x3a7   :  { %v3464_v27 = vpop.eup %3463  ;;  %v3272_v32 = vpack.c.bf16 %v3398_v28, %v3397_v29 }
 0x3a8   :  { %v473_v30 = vmul.f32 %v3464_v27, %v3456_v63  ;;  %v1014_v36 = vpop.permute.xlu1 %1013 }
 0x3aa   :  { %3071 = vmatprep.mubr.msk.f32.mxu1 %vm249_vm3, %v473_v30 }
 0x3ab   :  { %3072 = vmatmul.mubr.msk.f32.vlgmr.msra.gmra.mrb[8].mxu1 %vm249_vm3, %v474_v31 }
 0x3ac   :  { %3267 = vmatpush3.bf16.xpose.msk.msra.mxu1 %vm3678_vm2, %v3262_v12  ;;  %3088 = vmatprep.mubr.msk.f32.mxu1 %vm163_vm1, %v726_v24 }
 0x3ad   :  { %3274 = vmatprep.subr.msk.bf16.mxu1 %vm3678_vm2, %v3272_v32 }
 0x3b3   :  { %3089 = vmatmul.mubr.msk.f32.vlgmr.msra.gmra.mrb[10].mxu1 %vm163_vm1, %v728_v33 }
 0x3b4   :  { %3277 = vmatpush3.bf16.xpose.msk.msra.mxu1 %vm3678_vm2, %v3272_v32  ;;  %3107 = vmatprep.mubr.msk.f32.mxu1 %vm163_vm1, %v1012_v34 }
 0x3bb   :  { %3108 = vmatmul.mubr.msk.f32.vlgmr.msra.gmra.mrb[12].mxu1 %vm163_vm1, %v1014_v36 }
 0x3bc   :  { %3126 = vmatprep.mubr.msk.f32.mxu1 %vm163_vm1, %v3734_v35 }
 0x449   :  { %v3059_v38 = vpop.f32.mrb[6].mxu1 }
 0x44a   :  { %v350_v39 = vpop.f32.mrb[7].mxu1 }
 0x47e   :  { %v3073_v40 = vpop.f32.mrb[8].mxu1 }
 0x47f   :  { %v553_v41 = vpop.f32.mrb[9].mxu1 }
 0x480   :  { %3076 = vmatprep.mubr.msk.f32.mxu0 %vm163_vm1, %v553_v41 }
 0x481   :  { %3077 = vmatmul.mubr.msk.f32.vlgmr.msra.gmra.mrb[2].mxu0 %vm163_vm1, %v3073_v40 }
 0x482   :  { %3081 = vmatprep.mubr.msk.f32.mxu0 %vm163_vm1, %v350_v39  ;;  %3080 = vmatpush3.msra.mxu0 %v3749_v17 }
 0x486   :  { %v3090_v42 = vpop.f32.mrb[10].mxu1 }
 0x487   :  { %v817_v43 = vmul.f32 0.35355338, %v3090_v42  ;;  %v807_v44 = vpop.f32.mrb[11].mxu1 }
 0x488   :  { %v816_v45 = vmul.f32 0.35355338, %v807_v44 }
 0x489   :  { %v821_v46 = vsel %vm249_vm3, %v817_v43, -inf  ;;  %3082 = vmatmul.mubr.msk.f32.vlgmr.msra.gmra.mrb[2].mxu0 %vm163_vm1, %v3059_v38 }
 0x48a   :  { %822 = vmax.xlane.f32.xlu1 %v821_v46  ;;  %v818_v47 = vsel %vm249_vm3, %v816_v45, -inf }
 0x48b   :  { %819 = vmax.xlane.f32.xlu0 %v818_v47 }
 0x48e   :  { %v3109_v48 = vpop.f32.mrb[12].mxu1 }
 0x48f   :  { %v1093_v49 = vpop.f32.mrb[13].mxu1  ;;  %v1103_v9 = vmul.f32 0.35355338, %v3109_v48 }
 0x490   :  { %v1102_v52 = vmul.f32 0.35355338, %v1093_v49 }
 0x491   :  { %v1107_v11 = vsel %vm249_vm3, %v1103_v9, -inf }
 0x492   :  { %v1104_v53 = vsel %vm249_vm3, %v1102_v52, -inf }
 0x49b   :  { %3400 = vrot.lane.b32.xlu1 %v3663_v15, %s3540_s1 }
 0x49f   :  { %3410 = vrot.lane.b32.xlu1 %v3767_v51, %s3533_s26 }
 0x4a3   :  { %1497 = vrot.lane.b32.xlu1 %v3734_v35, %s3531_s25 }
 0x4c7   :  { %1105 = vmax.xlane.f32.xlu1 %v1104_v53 }
 0x517   :  { %v823_v10 = vpop.xlane.xlu1 %822 }
 0x518   :  { %v825_v16 = vsub.f32 %v817_v43, %v823_v10  ;;  %v820_v54 = vpop.xlane.xlu0 %819 }
 0x519   :  { %v824_v55 = vsub.f32 %v816_v45, %v820_v54 }
 0x51a   :  { %v828_v56 = vmul.f32 1.442695, %v825_v16 }
 0x51b   :  { %v826_v57 = vmul.f32 1.442695, %v824_v55  ;;  %v3401_v58 = vpop.permute.xlu1 %3400 }
 0x51c   :  { %v3403_v59 = vunpack.i.h.bf16 %v3401_v58  ;;  %v3402_v60 = vunpack.i.l.bf16 %v3401_v58 }
 0x51d   :  { %3465 = vpow2.f32 %v826_v57 }
 0x51e   :  { %v3268_v61 = vpack.c.bf16 %v3403_v59, %v3402_v60  ;;  %3467 = vpow2.f32 %v828_v56 }
 0x51f   :  { %v3411_v2 = vpop.permute.xlu1 %3410 }
 0x520   :  { %3269 = vmatprep.subr.bf16.mxu0 %v3268_v61  ;;  %v3413_v12 = vunpack.i.h.bf16 %v3411_v2  ;;  %v3412_v23 = vunpack.i.l.bf16 %v3411_v2 }
 0x521   :  { %3271 = vmatpush3.bf16.msra.mxu0 %v3268_v61 }
 0x522   :  { %3098 = vmatprep.subr.mxu0 %v3788_v14  ;;  %v3292_v29 = vpack.c.bf16 %v3413_v12, %v3412_v23 }
 0x523   :  { %v1498_v3 = vpop.permute.xlu1 %1497 }
 0x527   :  { %v3466_v62 = vpop.eup %3465 }
 0x528   :  { %v830_v63 = vsel %vm249_vm3, %v3466_v62, 0.0  ;;  %v3468_v0 = vpop.eup %3467 }
 0x529   :  { %831 = vadd.xlane.f32.xlu0 %v830_v63  ;;  %v833_v1 = vsel %vm249_vm3, %v3468_v0, 0.0 }
 0x52d   :  { %834 = vadd.xlane.f32.xlu0 %v833_v1 }
 0x543   :  { %3405 = vrot.lane.b32.xlu0 %v3767_v51, %s3532_s2 }
 0x547   :  { %1499 = vrot.lane.b32.xlu0 %v3761_v50, %s3531_s25 }
 0x554   :  { %v1106_v4 = vpop.xlane.xlu1 %1105 }
 0x555   :  { %v1110_v6 = vsub.f32 %v1102_v52, %v1106_v4 }
 0x557   :  { %v1112_v8 = vmul.f32 1.442695, %v1110_v6  ;;  %v3833_v6 = vld [vmem:[%s4021_s3 + $0x18] sm:$0xff] }
 0x559   :  { %3469 = vpow2.f32 %v1112_v8 }
 0x563   :  { %v3781_v13 = vpop.eup %3469 }
 0x564   :  { %v1116_v18 = vsel %vm249_vm3, %v3781_v13, 0.0 }
 0x566   :  { %1108 = vmax.xlane.f32.xlu0 %v1107_v11 }
 0x56a   :  { %1117 = vadd.xlane.f32.xlu0 %v1116_v18 }
 0x580   :  { %3415 = vrot.lane.b32.xlu0 %v3663_v15, %s3541_s22 }
 0x584   :  { %1863 = vrot.lane.b32.xlu0 %v3761_v50, %s3537_s30 }
 0x5b6   :  { %v832_v19 = vpop.xlane.xlu0 %831 }
 0x5b7   :  { %3471 = vrcp.f32 %v832_v19 }
 0x5ba   :  { %v835_v20 = vpop.xlane.xlu0 %834 }
 0x5bb   :  { %3473 = vrcp.f32 %v835_v20 }
 0x5be   :  { %v3406_v21 = vpop.permute.xlu0 %3405 }
 0x5bf   :  { %v3408_v24 = vunpack.i.h.bf16 %v3406_v21  ;;  %v3407_v25 = vunpack.i.l.bf16 %v3406_v21 }
 0x5c1   :  { %v3472_v26 = vpop.eup %3471  ;;  %v3282_v27 = vpack.c.bf16 %v3408_v24, %v3407_v25 }
 0x5c2   :  { %v838_v28 = vmul.f32 %v3472_v26, %v3466_v62  ;;  %v1500_v31 = vpop.permute.xlu0 %1499 }
 0x5c3   :  { %3284 = vmatprep.subr.msk.bf16.mxu1 %vm3678_vm2, %v3282_v27 }
 0x5c4   :  { %3095 = vmatprep.mubr.msk.f32.mxu0 %vm249_vm3, %v838_v28  ;;  %3287 = vmatpush3.bf16.xpose.msk.msra.mxu1 %vm3678_vm2, %v3282_v27 }
 0x5c5   :  { %v3474_v15 = vpop.eup %3473  ;;  %3294 = vmatprep.subr.msk.bf16.mxu1 %vm3678_vm2, %v3292_v29 }
 0x5c6   :  { %v839_v30 = vmul.f32 %v3474_v15, %v3468_v0 }
 0x5c8   :  { %3096 = vmatmul.mubr.msk.f32.vlgmr.msra.gmra.mrb[4].mxu0 %vm249_vm3, %v839_v30 }
 0x5c9   :  { %3099 = vmatpush3.msra.mxu0 %v3788_v14 }
 0x5cb   :  { %3127 = vmatmul.mubr.msk.f32.vlgmr.msra.gmra.mrb[14].mxu1 %vm163_vm1, %v3761_v50 }
 0x5cc   :  { %3297 = vmatpush3.bf16.xpose.msk.msra.mxu1 %vm3678_vm2, %v3292_v29  ;;  %3140 = vmatprep.mubr.msk.f32.mxu1 %vm163_vm1, %v1498_v3 }
 0x5d3   :  { %3141 = vmatmul.mubr.msk.f32.vlgmr.msra.gmra.mrb[16].mxu1 %vm163_vm1, %v1500_v31 }
 0x5f3   :  { %v1109_v32 = vpop.xlane.xlu0 %1108 }
 0x5f4   :  { %v1111_v33 = vsub.f32 %v1103_v9, %v1109_v32 }
 0x5f6   :  { %v1114_v34 = vmul.f32 1.442695, %v1111_v33 }
 0x5f7   :  { %v1118_v36 = vpop.xlane.xlu0 %1117 }
 0x5f8   :  { %3475 = vpow2.f32 %v1114_v34 }
 0x5f9   :  { %3477 = vrcp.f32 %v1118_v36 }
 0x5fb   :  { %v3416_v38 = vpop.permute.xlu0 %3415 }
 0x5fc   :  { %v3418_v39 = vunpack.i.h.bf16 %v3416_v38  ;;  %v3417_v40 = vunpack.i.l.bf16 %v3416_v38 }
 0x5fe   :  { %v3278_v41 = vpack.c.bf16 %v3418_v39, %v3417_v40 }
 0x5ff   :  { %v1864_v59 = vpop.permute.xlu0 %1863 }
 0x600   :  { %3279 = vmatprep.subr.bf16.mxu0 %v3278_v41 }
 0x602   :  { %v3476_v42 = vpop.eup %3475 }
 0x603   :  { %v1119_v43 = vsel %vm249_vm3, %v3476_v42, 0.0  ;;  %v3478_v52 = vpop.eup %3477 }
 0x604   :  { %1120 = vadd.xlane.f32.xlu1 %v1119_v43  ;;  %v1124_v16 = vmul.f32 %v3478_v52, %v3781_v13 }
 0x615   :  { %3420 = vrot.lane.b32.xlu1 %v3767_v51, %s3535_s28 }
 0x619   :  { %1861 = vrot.lane.b32.xlu1 %v3734_v35, %s3537_s30 }
 0x691   :  { %v1121_v44 = vpop.xlane.xlu1 %1120 }
 0x692   :  { %3479 = vrcp.f32 %v1121_v44 }
 0x695   :  { %v3421_v45 = vpop.permute.xlu1 %3420 }
 0x696   :  { %v3423_v46 = vunpack.i.h.bf16 %v3421_v45  ;;  %v3422_v47 = vunpack.i.l.bf16 %v3421_v45 }
 0x698   :  { %v3302_v48 = vpack.c.bf16 %v3423_v46, %v3422_v47 }
 0x699   :  { %v1862_v49 = vpop.permute.xlu1 %1861 }
 0x69a   :  { %3304 = vmatprep.subr.msk.bf16.mxu1 %vm3678_vm2, %v3302_v48  ;;  %3164 = vmatprep.mubr.msk.f32.mxu1 %vm163_vm1, %v1862_v49 }
 0x69b   :  { %v3097_v53 = vpop.f32.mrb[4].mxu0  ;;  %3307 = vmatpush3.bf16.xpose.msk.msra.mxu1 %vm3678_vm2, %v3302_v48 }
 0x69c   :  { %v918_v10 = vpop.f32.mrb[5].mxu0  ;;  %v3480_v54 = vpop.eup %3479 }
 0x69d   :  { %3100 = vmatprep.mubr.msk.f32.mxu0 %vm163_vm1, %v918_v10  ;;  %v1125_v60 = vmul.f32 %v3480_v54, %v3476_v42 }
 0x69e   :  { %3101 = vmatmul.mubr.msk.f32.vlgmr.msra.gmra.mrb[2].mxu0 %vm163_vm1, %v3097_v53  ;;  %v3128_v55 = vpop.f32.mrb[14].mxu1 }
 0x69f   :  { %3281 = vmatpush3.bf16.msra.mxu0 %v3278_v41  ;;  %v1387_v56 = vmul.f32 0.35355338, %v3128_v55  ;;  %3114 = vmatprep.mubr.msk.f32.mxu0 %vm249_vm3, %v1124_v16  ;;  %v1377_v57 = vpop.f32.mrb[15].mxu1 }
 0x6a0   :  { %v1386_v58 = vmul.f32 0.35355338, %v1377_v57  ;;  %3117 = vmatprep.subr.mxu0 %v3833_v6 }
 0x6a1   :  { %v1391_v61 = vsel %vm249_vm3, %v1387_v56, -inf }
 0x6a2   :  { %3165 = vmatmul.mubr.msk.f32.vlgmr.msra.gmra.mrb[18].mxu1 %vm163_vm1, %v1864_v59  ;;  %1392 = vmax.xlane.f32.xlu0 %v1391_v61  ;;  %v1388_v62 = vsel %vm249_vm3, %v1386_v58, -inf }
 0x6a3   :  { %3115 = vmatmul.mubr.msk.f32.vlgmr.msra.gmra.mrb[6].mxu0 %vm249_vm3, %v1125_v60  ;;  %1389 = vmax.xlane.f32.xlu1 %v1388_v62 }
 0x6a4   :  { %3118 = vmatpush3.msra.mxu0 %v3833_v6 }
 0x6a6   :  { %v3142_v63 = vpop.f32.mrb[16].mxu1 }
 0x6a7   :  { %v1589_v0 = vmul.f32 0.35355338, %v3142_v63  ;;  %v1579_v1 = vpop.f32.mrb[17].mxu1 }
 0x6a8   :  { %v1588_v2 = vmul.f32 0.35355338, %v1579_v1 }
 0x6a9   :  { %v1593_v3 = vsel %vm249_vm3, %v1589_v0, -inf }
 0x6aa   :  { %1594 = vmax.xlane.f32.xlu1 %v1593_v3  ;;  %v1590_v4 = vsel %vm249_vm3, %v1588_v2, -inf }
 0x6ab   :  { %1591 = vmax.xlane.f32.xlu0 %v1590_v4 }
 0x72f   :  { %v1393_v8 = vpop.xlane.xlu0 %1392 }
 0x730   :  { %v1395_v9 = vsub.f32 %v1387_v56, %v1393_v8  ;;  %v1390_v11 = vpop.xlane.xlu1 %1389 }
 0x731   :  { %v1394_v13 = vsub.f32 %v1386_v58, %v1390_v11 }
 0x732   :  { %v1398_v18 = vmul.f32 1.442695, %v1395_v9 }
 0x733   :  { %v1396_v19 = vmul.f32 1.442695, %v1394_v13 }
 0x734   :  { %3481 = vpow2.f32 %v1398_v18 }
 0x735   :  { %3483 = vpow2.f32 %v1396_v19  ;;  %v3881_v19 = vld [vmem:[%s4022_s4] ss:$0 sm:$0xff] }
 0x737   :  { %v1595_v20 = vpop.xlane.xlu1 %1594 }
 0x738   :  { %v1597_v21 = vsub.f32 %v1589_v0, %v1595_v20  ;;  %v1592_v12 = vpop.xlane.xlu0 %1591 }
 0x739   :  { %v1596_v23 = vsub.f32 %v1588_v2, %v1592_v12 }
 0x73a   :  { %v1600_v24 = vmul.f32 1.442695, %v1597_v21 }
 0x73b   :  { %v1598_v25 = vmul.f32 1.442695, %v1596_v23 }
 0x73c   :  { %3485 = vpow2.f32 %v1600_v24 }
 0x73d   :  { %3487 = vpow2.f32 %v1598_v25 }
 0x73e   :  { %v3482_v26 = vpop.eup %3481 }
 0x73f   :  { %v3484_v27 = vpop.eup %3483  ;;  %v1403_v28 = vsel %vm249_vm3, %v3482_v26, 0.0 }
 0x740   :  { %1404 = vadd.xlane.f32.xlu1 %v1403_v28  ;;  %v1400_v29 = vsel %vm249_vm3, %v3484_v27, 0.0 }
 0x741   :  { %1401 = vadd.xlane.f32.xlu0 %v1400_v29 }
 0x746   :  { %v3839_v15 = vpop.eup %3485 }
 0x747   :  { %v3488_v30 = vpop.eup %3487  ;;  %v1605_v31 = vsel %vm249_vm3, %v3839_v15, 0.0 }
 0x748   :  { %1606 = vadd.xlane.f32.xlu1 %v1605_v31  ;;  %v1602_v32 = vsel %vm249_vm3, %v3488_v30, 0.0 }
 0x749   :  { %1603 = vadd.xlane.f32.xlu0 %v1602_v32 }
 0x759   :  { %3430 = vrot.lane.b32.xlu1 %v3767_v51, %s3536_s29 }
 0x75d   :  { %3435 = vrot.lane.b32.xlu1 %v3767_v51, %s3539_s15 }
 0x75f   :  { %3425 = vrot.lane.b32.xlu0 %v3767_v51, %s3534_s27 }
 0x761   :  { %2148 = vrot.lane.b32.xlu1 %v3761_v50, %s3538_s14 }
 0x763   :  { %2146 = vrot.lane.b32.xlu0 %v3734_v35, %s3538_s14 }
 0x775   :  { %v3166_v33 = vpop.f32.mrb[18].mxu1 }
 0x776   :  { %v3116_v34 = vpop.f32.mrb[6].mxu0  ;;  %v1943_v36 = vpop.f32.mrb[19].mxu1  ;;  %v1953_v40 = vmul.f32 0.35355338, %v3166_v33 }
 0x777   :  { %v1204_v38 = vpop.f32.mrb[7].mxu0  ;;  %v1952_v39 = vmul.f32 0.35355338, %v1943_v36 }
 0x778   :  { %3119 = vmatprep.mubr.msk.f32.mxu0 %vm163_vm1, %v1204_v38  ;;  %v1957_v42 = vsel %vm249_vm3, %v1953_v40, -inf }
 0x779   :  { %3120 = vmatmul.mubr.msk.f32.vlgmr.msra.gmra.mrb[2].mxu0 %vm163_vm1, %v3116_v34  ;;  %v1954_v41 = vsel %vm249_vm3, %v1952_v39, -inf }
 0x782   :  { %1955 = vmax.xlane.f32.xlu0 %v1954_v41 }
 0x785   :  { %1958 = vmax.xlane.f32.xlu1 %v1957_v42 }
 0x796   :  { %3440 = vrot.lane.b32.xlu1 %v3767_v51, %s3540_s1 }
 0x79a   :  { %3445 = vrot.lane.b32.xlu1 %v3767_v51, %s3541_s22 }
 0x7cd   :  { %v1405_v50 = vpop.xlane.xlu1 %1404 }
 0x7ce   :  { %v1402_v35 = vpop.xlane.xlu0 %1401 }
 0x7cf   :  { %3489 = vrcp.f32 %v1402_v35 }
 0x7d0   :  { %3491 = vrcp.f32 %v1405_v50 }
 0x7d5   :  { %v1607_v43 = vpop.xlane.xlu1 %1606 }
 0x7d6   :  { %v1604_v44 = vpop.xlane.xlu0 %1603 }
 0x7d7   :  { %3493 = vrcp.f32 %v1604_v44 }
 0x7d8   :  { %3495 = vrcp.f32 %v1607_v43 }
 0x7d9   :  { %v3490_v45 = vpop.eup %3489  ;;  %v3431_v46 = vpop.permute.xlu1 %3430 }
 0x7da   :  { %v3426_v47 = vpop.permute.xlu0 %3425  ;;  %v1408_v48 = vmul.f32 %v3490_v45, %v3484_v27  ;;  %v3433_v49 = vunpack.i.h.bf16 %v3431_v46  ;;  %v3432_v52 = vunpack.i.l.bf16 %v3431_v46  ;;  %v3492_v54 = vpop.eup %3491 }
 0x7db   :  { %v3428_v53 = vunpack.i.h.bf16 %v3426_v47  ;;  %v3427_v10 = vunpack.i.l.bf16 %v3426_v47  ;;  %v1409_v61 = vmul.f32 %v3492_v54, %v3482_v26 }
 0x7dc   :  { %3133 = vmatprep.mubr.msk.f32.mxu0 %vm249_vm3, %v1408_v48  ;;  %v3298_v58 = vpack.c.bf16 %v3433_v49, %v3432_v52 }
 0x7dd   :  { %v3288_v16 = vpack.c.bf16 %v3428_v53, %v3427_v10  ;;  %v3436_v51 = vpop.permute.xlu1 %3435 }
 0x7de   :  { %v3438_v55 = vunpack.i.h.bf16 %v3436_v51  ;;  %v3437_v56 = vunpack.i.l.bf16 %v3436_v51  ;;  %v2147_v57 = vpop.permute.xlu0 %2146 }
 0x7df   :  { %3289 = vmatprep.subr.bf16.mxu0 %v3288_v16  ;;  %3183 = vmatprep.mubr.msk.f32.mxu1 %vm163_vm1, %v2147_v57 }
 0x7e0   :  { %v3312_v59 = vpack.c.bf16 %v3438_v55, %v3437_v56  ;;  %3291 = vmatpush3.bf16.msra.mxu0 %v3288_v16 }
 0x7e1   :  { %v3494_v60 = vpop.eup %3493  ;;  %3299 = vmatprep.subr.bf16.mxu0 %v3298_v58  ;;  %v2149_v1 = vpop.permute.xlu1 %2148 }
 0x7e2   :  { %v3496_v62 = vpop.eup %3495  ;;  %3314 = vmatprep.subr.msk.bf16.mxu1 %vm3678_vm2, %v3312_v59  ;;  %v1610_v63 = vmul.f32 %v3494_v60, %v3488_v30 }
 0x7e3   :  { %3134 = vmatmul.mubr.msk.f32.vlgmr.msra.gmra.mrb[8].mxu0 %vm249_vm3, %v1409_v61  ;;  %3317 = vmatpush3.bf16.xpose.msk.msra.mxu1 %vm3678_vm2, %v3312_v59  ;;  %v1611_v0 = vmul.f32 %v3496_v62, %v3839_v15 }
 0x7e4   :  { %3301 = vmatpush3.bf16.msra.mxu0 %v3298_v58  ;;  %3147 = vmatprep.mubr.msk.f32.mxu0 %vm249_vm3, %v1610_v63 }
 0x7e5   :  { %3150 = vmatprep.subr.mxu0 %v3742_v37 }
 0x7e7   :  { %3148 = vmatmul.mubr.msk.f32.vlgmr.msra.gmra.mrb[10].mxu0 %vm249_vm3, %v1611_v0 }
 0x7e8   :  { %3151 = vmatpush3.msra.mxu0 %v3742_v37 }
 0x7e9   :  { %3155 = vmatprep.subr.mxu0 %v3749_v17 }
 0x7ea   :  { %3184 = vmatmul.mubr.msk.f32.vlgmr.msra.gmra.mrb[20].mxu1 %vm163_vm1, %v2149_v1 }
 0x80f   :  { %v1956_v2 = vpop.xlane.xlu0 %1955 }
 0x810   :  { %v1960_v3 = vsub.f32 %v1952_v39, %v1956_v2 }
 0x812   :  { %v1962_v22 = vmul.f32 1.442695, %v1960_v3  ;;  %v1959_v4 = vpop.xlane.xlu1 %1958 }
 0x813   :  { %v1961_v8 = vsub.f32 %v1953_v40, %v1959_v4 }
 0x814   :  { %3497 = vpow2.f32 %v1962_v22 }
 0x815   :  { %v1964_v9 = vmul.f32 1.442695, %v1961_v8 }
 0x816   :  { %v3441_v26 = vpop.permute.xlu1 %3440 }
 0x817   :  { %3499 = vpow2.f32 %v1964_v9  ;;  %v3443_v15 = vunpack.i.h.bf16 %v3441_v26  ;;  %v3442_v30 = vunpack.i.l.bf16 %v3441_v26 }
 0x819   :  { %v3308_v33 = vpack.c.bf16 %v3443_v15, %v3442_v30  ;;  %v2522_v15 = vld [vmem:[%s4023_s7 + $0x8] sm:$0xff]  ;;  %v2523_v30 = vld [vmem:[%s4023_s7 + $0x10] sm:$0xff] }
 0x81a   :  { %v3446_v41 = vpop.permute.xlu1 %3445 }
 0x81b   :  { %v3448_v35 = vunpack.i.h.bf16 %v3446_v41  ;;  %v3447_v50 = vunpack.i.l.bf16 %v3446_v41 }
 0x81d   :  { %v3318_v45 = vpack.c.bf16 %v3448_v35, %v3447_v50 }
 0x81e   :  { %v3498_v11 = vpop.eup %3497 }
 0x81f   :  { %v1966_v13 = vsel %vm249_vm3, %v3498_v11, 0.0 }
 0x820   :  { %1967 = vadd.xlane.f32.xlu0 %v1966_v13  ;;  %v3529_v13 = vld [vmem:[%s4019_s0 + $0x10] sm:$0xff] }
 0x821   :  { %v3500_v18 = vpop.eup %3499 }
 0x822   :  { %v1969_v37 = vsel %vm249_vm3, %v3500_v18, 0.0 }
 0x824   :  { %1970 = vadd.xlane.f32.xlu0 %v1969_v37 }
 0x84c   :  { %v3121_v20 = vpop.f32.mrb[2].mxu0 }
 0x84d   :  { %v2439_v21 = vadd.f32 %v3121_v20, %v3881_v19  ;;  %v1286_v12 = vpop.f32.mrb[3].mxu0 }
 0x84e   :  { %v2438_v16 = vadd.f32 %v3881_v19, %v1286_v12 }
 0x84f   :  { %v3885_v23 = vadd.f32 %v2439_v21, %v3634_v7  ;;  %v3530_v21 = vld [vmem:[%s4019_s0 + $0x18] sm:$0xff] }
 0x851   :  { %v2451_v24 = vsel %vm59_vm0, %v3885_v23, 0.0 }
 0x852   :  { %2452 = vadd.xlane.f32.xlu1 %v2451_v24 }
 0x8ad   :  { %v1968_v25 = vpop.xlane.xlu0 %1967 }
 0x8ae   :  { %3501 = vrcp.f32 %v1968_v25 }
 0x8b1   :  { %v1971_v28 = vpop.xlane.xlu0 %1970 }
 0x8b2   :  { %3503 = vrcp.f32 %v1971_v28 }
 0x8b6   :  { %v3135_v27 = vpop.f32.mrb[8].mxu0 }
 0x8b7   :  { %v1488_v29 = vpop.f32.mrb[9].mxu0 }
 0x8b8   :  { %v3502_v40 = vpop.eup %3501 }
 0x8b9   :  { %v1974_v44 = vmul.f32 %v3502_v40, %v3498_v11 }
 0x8ba   :  { %v3149_v31 = vpop.f32.mrb[10].mxu0 }
 0x8bb   :  { %v1690_v32 = vpop.f32.mrb[11].mxu0 }
 0x8bc   :  { %3152 = vmatprep.mubr.msk.f32.mxu0 %vm163_vm1, %v1690_v32  ;;  %v3504_v42 = vpop.eup %3503 }
 0x8bd   :  { %3153 = vmatmul.mubr.msk.f32.vlgmr.msra.gmra.mrb[12].mxu0 %vm163_vm1, %v3149_v31  ;;  %v3185_v7 = vpop.f32.mrb[20].mxu1  ;;  %v2524_v31 = vld [vmem:[%s4023_s7 + $0x18] sm:$0xff] }
 0x8be   :  { %3156 = vmatpush3.msra.mxu0 %v3749_v17  ;;  %3157 = vmatprep.mubr.msk.f32.mxu0 %vm163_vm1, %v1488_v29  ;;  %v2228_v34 = vpop.f32.mrb[21].mxu1  ;;  %v2238_v38 = vmul.f32 0.35355338, %v3185_v7  ;;  %v1975_v17 = vmul.f32 %v3504_v42, %v3500_v18  ;;  %v2521_v29 = vld [vmem:[%s4023_s7] sm:$0xff]  ;;  %v3326_v32 = vpack.c.bf16 %v2524_v31, %v2523_v30 }
 0x8bf   :  { %3309 = vmatprep.subr.bf16.mxu0 %v3308_v33  ;;  %v2237_v36 = vmul.f32 0.35355338, %v2228_v34 }
 0x8c0   :  { %v2242_v43 = vsel %vm249_vm3, %v2238_v38, -inf }
 0x8c1   :  { %v2239_v39 = vsel %vm249_vm3, %v2237_v36, -inf }
 0x8c2   :  { %2240 = vmax.xlane.f32.xlu0 %v2239_v39 }
 0x8c5   :  { %3158 = vmatmul.mubr.msk.f32.vlgmr.msra.gmra.mrb[12].mxu0 %vm163_vm1, %v3135_v27 }
 0x8c6   :  { %3311 = vmatpush3.bf16.msra.mxu0 %v3308_v33  ;;  %2243 = vmax.xlane.f32.xlu0 %v2242_v43 }
 0x8c7   :  { %3171 = vmatprep.mubr.msk.f32.mxu0 %vm249_vm3, %v1974_v44  ;;  %3174 = vmatprep.subr.mxu0 %v3788_v14 }
 0x8c9   :  { %3172 = vmatmul.mubr.msk.f32.vlgmr.msra.gmra.mrb[14].mxu0 %vm249_vm3, %v1975_v17 }
 0x8ca   :  { %3175 = vmatpush3.msra.mxu0 %v3788_v14  ;;  %v2442_v14 = vadd.f32 %v2438_v16, %v3627_v5 }
 0x8cb   :  { %3319 = vmatprep.subr.bf16.mxu0 %v3318_v45 }
 0x8cc   :  { %v2448_v56 = vsel %vm59_vm0, %v2442_v14, 0.0 }
 0x8df   :  { %v2453_v11 = vpop.xlane.xlu1 %2452 }
 0x8e0   :  { %v2462_v18 = vmul.f32 0.03125, %v2453_v11 }
 0x8e2   :  { %v2466_v24 = vsub.f32 %v3885_v23, %v2462_v18  ;;  %v3322_v23 = vpack.c.bf16 %v2522_v15, %v2521_v29 }
 0x8e4   :  { %v2470_v27 = vmul.f32 %v2466_v24, %v2466_v24  ;;  %3323 = vmatprep.subr.bf16.mxu1 %v3322_v23 }
 0x8e5   :  { %3325 = vmatpush3.bf16.msra.mxu1 %v3322_v23 }
 0x8e6   :  { %v2476_v28 = vsel %vm59_vm0, %v2470_v27, 0.0  ;;  %3327 = vmatprep.subr.bf16.mxu1 %v3326_v32 }
 0x8e9   :  { %3329 = vmatpush3.bf16.msra.mxu1 %v3326_v32 }
 0x94f   :  { %v2241_v46 = vpop.xlane.xlu0 %2240 }
 0x950   :  { %v2245_v47 = vsub.f32 %v2237_v36, %v2241_v46 }
 0x952   :  { %v2247_v48 = vmul.f32 1.442695, %v2245_v47 }
 0x953   :  { %v2244_v49 = vpop.xlane.xlu0 %2243 }
 0x954   :  { %3505 = vpow2.f32 %v2247_v48  ;;  %v2246_v52 = vsub.f32 %v2238_v38, %v2244_v49  ;;  %v2902_v48 = vld [vmem:[%s4024_s5] ss:$0 sm:$0xff] }
 0x956   :  { %v2249_v53 = vmul.f32 1.442695, %v2246_v52  ;;  %v2903_v52 = vld [vmem:[%s4025_s6] ss:$0 sm:$0xff] }
 0x958   :  { %3507 = vpow2.f32 %v2249_v53 }
 0x95e   :  { %v3506_v10 = vpop.eup %3505 }
 0x95f   :  { %v2251_v51 = vsel %vm249_vm3, %v3506_v10, 0.0 }
 0x960   :  { %2252 = vadd.xlane.f32.xlu0 %v2251_v51 }
 0x962   :  { %v3508_v54 = vpop.eup %3507 }
 0x963   :  { %v2254_v55 = vsel %vm249_vm3, %v3508_v54, 0.0 }
 0x964   :  { %2255 = vadd.xlane.f32.xlu0 %v2254_v55 }
 0x968   :  { %2449 = vadd.xlane.f32.xlu0 %v2448_v56  ;;  %v2634_v56 = vld [vmem:[%s4026_s9 + $0x8] sm:$0xff] }
 0x99c   :  { %v3173_v57 = vpop.f32.mrb[14].mxu0 }
 0x99d   :  { %v2054_v58 = vpop.f32.mrb[15].mxu0 }
 0x99e   :  { %3176 = vmatprep.mubr.msk.f32.mxu0 %vm163_vm1, %v2054_v58 }
 0x99f   :  { %3177 = vmatmul.mubr.msk.f32.vlgmr.msra.gmra.mrb[12].mxu0 %vm163_vm1, %v3173_v57  ;;  %v2635_v57 = vld [vmem:[%s4026_s9 + $0x10] sm:$0xff] }
 0x9a0   :  { %3321 = vmatpush3.bf16.msra.mxu0 %v3318_v45 }
 0x9a1   :  { %3193 = vmatprep.subr.mxu0 %v3833_v6 }
 0x9ed   :  { %v2253_v59 = vpop.xlane.xlu0 %2252 }
 0x9ee   :  { %3509 = vrcp.f32 %v2253_v59  ;;  %v2636_v59 = vld [vmem:[%s4026_s9 + $0x18] sm:$0xff] }
 0x9f1   :  { %v2256_v60 = vpop.xlane.xlu0 %2255 }
 0x9f2   :  { %3511 = vrcp.f32 %v2256_v60  ;;  %v3334_v60 = vpack.c.bf16 %v2636_v59, %v2635_v57 }
 0x9f5   :  { %v2450_v2 = vpop.xlane.xlu0 %2449 }
 0x9f6   :  { %v2461_v4 = vmul.f32 0.03125, %v2450_v2 }
 0x9f8   :  { %v3510_v61 = vpop.eup %3509  ;;  %v2465_v37 = vsub.f32 %v2442_v14, %v2461_v4  ;;  %v2633_v14 = vld [vmem:[%s4026_s9] sm:$0xff] }
 0x9f9   :  { %v2259_v62 = vmul.f32 %v3510_v61, %v3506_v10  ;;  %v3330_v58 = vpack.c.bf16 %v2634_v56, %v2633_v14  ;;  %v2637_v61 = vld [vmem:[%s4026_s9 + $0x20] sm:$0xff] }
 0x9fa   :  { %v2469_v25 = vmul.f32 %v2465_v37, %v2465_v37 }
 0x9fb   :  { %3190 = vmatprep.mubr.msk.f32.mxu0 %vm249_vm3, %v2259_v62  ;;  %v2638_v62 = vld [vmem:[%s4026_s9 + $0x28] sm:$0xff] }
 0x9fc   :  { %v3512_v5 = vpop.eup %3511  ;;  %v2473_v26 = vsel %vm59_vm0, %v2469_v25, 0.0 }
 0x9fd   :  { %v2260_v63 = vmul.f32 %v3512_v5, %v3508_v54  ;;  %v3338_v5 = vpack.c.bf16 %v2638_v62, %v2637_v61 }
 0x9ff   :  { %3191 = vmatmul.mubr.msk.f32.vlgmr.msra.gmra.mrb[16].mxu0 %vm249_vm3, %v2260_v63  ;;  %v2639_v63 = vld [vmem:[%s4026_s9 + $0x30] sm:$0xff] }
 0xa00   :  { %3194 = vmatpush3.msra.mxu0 %v3833_v6 }
 0xa01   :  { %3331 = vmatprep.subr.bf16.mxu0 %v3330_v58 }
 0xad2   :  { %v3192_v0 = vpop.f32.mrb[16].mxu0 }
 0xad3   :  { %v2339_v1 = vpop.f32.mrb[17].mxu0 }
 0xad4   :  { %3195 = vmatprep.mubr.msk.f32.mxu0 %vm163_vm1, %v2339_v1 }
 0xad5   :  { %3196 = vmatmul.mubr.msk.f32.vlgmr.msra.gmra.mrb[12].mxu0 %vm163_vm1, %v3192_v0  ;;  %v2640_v0 = vld [vmem:[%s4026_s9 + $0x38] sm:$0xff] }
 0xad6   :  { %3333 = vmatpush3.bf16.msra.mxu0 %v3330_v58  ;;  %v3342_v1 = vpack.c.bf16 %v2640_v0, %v2639_v63 }
 0xad7   :  { %3335 = vmatprep.subr.bf16.mxu0 %v3334_v60 }
 0xada   :  { %3337 = vmatpush3.bf16.msra.mxu0 %v3334_v60 }
 0xadb   :  { %3339 = vmatprep.subr.bf16.mxu0 %v3338_v5 }
 0xade   :  { %3341 = vmatpush3.bf16.msra.mxu0 %v3338_v5 }
 0xadf   :  { %3343 = vmatprep.subr.bf16.mxu0 %v3342_v1 }
 0xae2   :  { %3345 = vmatpush3.bf16.msra.mxu0 %v3342_v1 }
 0xba8   :  { %v3197_v3 = vpop.f32.mrb[12].mxu0 }
 0xba9   :  { %v2420_v22 = vpop.f32.mrb[13].mxu0  ;;  %v2441_v8 = vadd.f32 %v3197_v3, %v3881_v19 }
 0xbaa   :  { %v2440_v9 = vadd.f32 %v3881_v19, %v2420_v22 }
 0xbab   :  { %v2445_v12 = vadd.f32 %v3530_v21, %v2441_v8 }
 0xbac   :  { %v2444_v6 = vadd.f32 %v3529_v13, %v2440_v9 }
 0xbad   :  { %v2457_v19 = vsel %vm59_vm0, %v2445_v12, 0.0 }
 0xbae   :  { %v2454_v20 = vsel %vm59_vm0, %v2444_v6, 0.0 }
 0xbaf   :  { %2455 = vadd.xlane.f32.xlu0 %v2454_v20 }
 0xbb3   :  { %2458 = vadd.xlane.f32.xlu0 %v2457_v19 }
 0xbb7   :  { %2474 = vadd.xlane.f32.xlu0 %v2473_v26 }
 0xbbb   :  { %2477 = vadd.xlane.f32.xlu0 %v2476_v28 }
 0xc3c   :  { %v2456_v33 = vpop.xlane.xlu0 %2455 }
 0xc3d   :  { %v2463_v7 = vmul.f32 0.03125, %v2456_v33 }
 0xc3f   :  { %v2467_v34 = vsub.f32 %v2444_v6, %v2463_v7  ;;  %v2909_v7 = vld [vmem:[%s4028_s10] ss:$0 sm:$0xff] }
 0xc40   :  { %v2459_v36 = vpop.xlane.xlu0 %2458 }
 0xc41   :  { %v2464_v38 = vmul.f32 0.03125, %v2459_v36  ;;  %v2471_v39 = vmul.f32 %v2467_v34, %v2467_v34 }
 0xc43   :  { %v2468_v40 = vsub.f32 %v2445_v12, %v2464_v38  ;;  %v2479_v41 = vsel %vm59_vm0, %v2471_v39, 0.0 }
 0xc44   :  { %2480 = vadd.xlane.f32.xlu0 %v2479_v41  ;;  %v2475_v42 = vpop.xlane.xlu0 %2474 }
 0xc45   :  { %v2485_v35 = vmul.f32 0.03125, %v2475_v42  ;;  %v2472_v50 = vmul.f32 %v2468_v40, %v2468_v40 }
 0xc47   :  { %v2489_v43 = vadd.f32 1e-05, %v2485_v35  ;;  %v2482_v44 = vsel %vm59_vm0, %v2472_v50, 0.0 }
 0xc48   :  { %2483 = vadd.xlane.f32.xlu0 %v2482_v44  ;;  %v2478_v17 = vpop.xlane.xlu0 %2477 }
 0xc49   :  { %3513 = vrsqrt.f32 %v2489_v43  ;;  %v2486_v45 = vmul.f32 0.03125, %v2478_v17 }
 0xc4b   :  { %v2490_v46 = vadd.f32 1e-05, %v2486_v45 }
 0xc4d   :  { %3515 = vrsqrt.f32 %v2490_v46 }
 0xc53   :  { %v3514_v47 = vpop.eup %3513 }
 0xc54   :  { %v2497_v49 = vmul.f32 %v3514_v47, %v2465_v37 }
 0xc56   :  { %v2507_v53 = vmul.f32 %v2902_v48, %v2497_v49 }
 0xc57   :  { %v3516_v10 = vpop.eup %3515 }
 0xc58   :  { %v2498_v16 = vmul.f32 %v3516_v10, %v2466_v24  ;;  %v3946_v51 = vadd.f32 %v2903_v52, %v2507_v53  ;;  %v2904_v24 = vld [vmem:[%s4027_s8] ss:$0 sm:$0xff] }
 0xc5a   :  { %3206 = vmatprep.mubr.msk.f32.mxu1 %vm59_vm0, %v3946_v51  ;;  %v2508_v54 = vmul.f32 %v2902_v48, %v2498_v16 }
 0xc5c   :  { %v3950_v55 = vadd.f32 %v2903_v52, %v2508_v54 }
 0xc5e   :  { %3207 = vmatmul.mubr.msk.f32.vlgmr.msra.gmra.mrb[22].mxu1 %vm59_vm0, %v3950_v55 }
 0xcd1   :  { %v2481_v2 = vpop.xlane.xlu0 %2480 }
 0xcd2   :  { %v2487_v3 = vmul.f32 0.03125, %v2481_v2 }
 0xcd4   :  { %v2491_v22 = vadd.f32 1e-05, %v2487_v3 }
 0xcd5   :  { %v2484_v4 = vpop.xlane.xlu0 %2483 }
 0xcd6   :  { %3517 = vrsqrt.f32 %v2491_v22  ;;  %v2488_v8 = vmul.f32 0.03125, %v2484_v4 }
 0xcd8   :  { %v2492_v9 = vadd.f32 1e-05, %v2488_v8 }
 0xcda   :  { %3519 = vrsqrt.f32 %v2492_v9 }
 0xce0   :  { %v3518_v11 = vpop.eup %3517 }
 0xce1   :  { %v2499_v13 = vmul.f32 %v3518_v11, %v2467_v34 }
 0xce3   :  { %v2509_v6 = vmul.f32 %v2902_v48, %v2499_v13  ;;  %v2914_v13 = vld [vmem:[%s4029_s11] ss:$0 sm:$0xff] }
 0xce4   :  { %v3520_v18 = vpop.eup %3519 }
 0xce5   :  { %v2519_v37 = vadd.f32 %v2903_v52, %v2509_v6  ;;  %v2500_v20 = vmul.f32 %v3520_v18, %v2468_v40  ;;  %v2915_v18 = vld [vmem:[%s4030_s12] ss:$0 sm:$0xff] }
 0xce7   :  { %3209 = vmatprep.mubr.msk.f32.mxu1 %vm59_vm0, %v2519_v37  ;;  %v2510_v21 = vmul.f32 %v2902_v48, %v2500_v20 }
 0xce9   :  { %v2520_v12 = vadd.f32 %v2903_v52, %v2510_v21 }
 0xceb   :  { %3210 = vmatmul.mubr.msk.f32.gmra.mrb[24].mxu1 %vm59_vm0, %v2520_v12 }
 0xd31   :  { %v3208_v19 = vpop.f32.mrb[22].mxu1 }
 0xd32   :  { %v2616_v25 = vadd.f32 %v3208_v19, %v2904_v24  ;;  %v2610_v26 = vpop.f32.mrb[23].mxu1 }
 0xd33   :  { %v2611_v27 = vadd.f32 %v2904_v24, %v2610_v26 }
 0xd34   :  { %v2630_v29 = vmax.f32 %v2616_v25, 0.0 }
 0xd35   :  { %v2629_v28 = vmax.f32 %v2611_v27, 0.0 }
 0xd37   :  { %3228 = vmatprep.mubr.msk.f32.mxu0 %vm2648_vm4, %v2629_v28 }
 0xd38   :  { %3229 = vmatmul.mubr.msk.f32.vlgmr.msra.gmra.mrb[18].mxu0 %vm2648_vm4, %v2630_v29 }
 0xdbe   :  { %v3211_v15 = vpop.f32.mrb[24].mxu1 }
 0xdbf   :  { %v2626_v23 = vadd.f32 %v3211_v15, %v2904_v24  ;;  %v2620_v30 = vpop.f32.mrb[25].mxu1 }
 0xdc0   :  { %v2621_v31 = vadd.f32 %v2904_v24, %v2620_v30 }
 0xdc1   :  { %v2632_v33 = vmax.f32 %v2626_v23, 0.0 }
 0xdc2   :  { %v2631_v32 = vmax.f32 %v2621_v31, 0.0 }
 0xdc4   :  { %3231 = vmatprep.mubr.msk.f32.mxu0 %vm2648_vm4, %v2631_v32 }
 0xdc5   :  { %3232 = vmatmul.mubr.msk.f32.gmra.mrb[20].mxu0 %vm2648_vm4, %v2632_v33 }
 0xe0b   :  { %v3230_v34 = vpop.f32.mrb[18].mxu0 }
 0xe0c   :  { %v2727_v36 = vpop.f32.mrb[19].mxu0  ;;  %v2733_v38 = vadd.f32 %v3230_v34, %v2909_v7 }
 0xe0d   :  { %v2728_v39 = vadd.f32 %v2909_v7, %v2727_v36 }
 0xe0e   :  { %v2747_v42 = vadd.f32 %v2733_v38, %v3950_v55 }
 0xe0f   :  { %v2746_v40 = vadd.f32 %v2728_v39, %v3946_v51 }
 0xe10   :  { %v2755_v35 = vsel %vm59_vm0, %v2747_v42, 0.0 }
 0xe11   :  { %v2752_v41 = vsel %vm59_vm0, %v2746_v40, 0.0 }
 0xe12   :  { %2753 = vadd.xlane.f32.xlu0 %v2752_v41 }
 0xe16   :  { %2756 = vadd.xlane.f32.xlu0 %v2755_v35 }
 0xe98   :  { %v3233_v50 = vpop.f32.mrb[20].mxu0 }
 0xe99   :  { %v2743_v43 = vadd.f32 %v3233_v50, %v2909_v7  ;;  %v2737_v44 = vpop.f32.mrb[21].mxu0 }
 0xe9a   :  { %v2738_v17 = vadd.f32 %v2909_v7, %v2737_v44 }
 0xe9b   :  { %v2749_v45 = vadd.f32 %v2743_v43, %v2520_v12 }
 0xe9c   :  { %v2748_v46 = vadd.f32 %v2738_v17, %v2519_v37 }
 0xe9d   :  { %v2761_v47 = vsel %vm59_vm0, %v2749_v45, 0.0 }
 0xe9e   :  { %2762 = vadd.xlane.f32.xlu1 %v2761_v47  ;;  %v2758_v48 = vsel %vm59_vm0, %v2748_v46, 0.0 }
 0xe9f   :  { %2759 = vadd.xlane.f32.xlu0 %v2758_v48  ;;  %v2754_v49 = vpop.xlane.xlu0 %2753 }
 0xea0   :  { %v2764_v52 = vmul.f32 0.03125, %v2754_v49 }
 0xea2   :  { %v2768_v53 = vsub.f32 %v2746_v40, %v2764_v52 }
 0xea3   :  { %v2757_v10 = vpop.xlane.xlu0 %2756 }
 0xea4   :  { %v2765_v16 = vmul.f32 0.03125, %v2757_v10  ;;  %v2772_v51 = vmul.f32 %v2768_v53, %v2768_v53 }
 0xea6   :  { %v2769_v54 = vsub.f32 %v2747_v42, %v2765_v16  ;;  %v2776_v55 = vsel %vm59_vm0, %v2772_v51, 0.0 }
 0xea7   :  { %2777 = vadd.xlane.f32.xlu0 %v2776_v55 }
 0xea8   :  { %v2773_v14 = vmul.f32 %v2769_v54, %v2769_v54 }
 0xeaa   :  { %v2779_v56 = vsel %vm59_vm0, %v2773_v14, 0.0 }
 0xeab   :  { %2780 = vadd.xlane.f32.xlu1 %v2779_v56 }
 0xf2b   :  { %v2763_v57 = vpop.xlane.xlu1 %2762 }
 0xf2c   :  { %v2767_v58 = vmul.f32 0.03125, %v2763_v57  ;;  %v2760_v59 = vpop.xlane.xlu0 %2759 }
 0xf2d   :  { %v2766_v60 = vmul.f32 0.03125, %v2760_v59 }
 0xf2e   :  { %v2771_v61 = vsub.f32 %v2749_v45, %v2767_v58 }
 0xf2f   :  { %v2770_v62 = vsub.f32 %v2748_v46, %v2766_v60 }
 0xf30   :  { %v2775_v5 = vmul.f32 %v2771_v61, %v2771_v61 }
 0xf31   :  { %v2774_v63 = vmul.f32 %v2770_v62, %v2770_v62 }
 0xf32   :  { %v2785_v0 = vsel %vm59_vm0, %v2775_v5, 0.0 }
 0xf33   :  { %2786 = vadd.xlane.f32.xlu1 %v2785_v0  ;;  %v2782_v1 = vsel %vm59_vm0, %v2774_v63, 0.0 }
 0xf34   :  { %2783 = vadd.xlane.f32.xlu0 %v2782_v1  ;;  %v2778_v2 = vpop.xlane.xlu0 %2777 }
 0xf35   :  { %v2788_v3 = vmul.f32 0.03125, %v2778_v2 }
 0xf37   :  { %v2792_v22 = vadd.f32 1e-05, %v2788_v3 }
 0xf38   :  { %v2781_v4 = vpop.xlane.xlu1 %2780 }
 0xf39   :  { %3521 = vrsqrt.f32 %v2792_v22  ;;  %v2789_v8 = vmul.f32 0.03125, %v2781_v4 }
 0xf3b   :  { %v2793_v9 = vadd.f32 1e-05, %v2789_v8 }
 0xf3d   :  { %3523 = vrsqrt.f32 %v2793_v9 }
 0xf43   :  { %v3522_v11 = vpop.eup %3521 }
 0xf44   :  { %v2800_v6 = vmul.f32 %v3522_v11, %v2768_v53 }
 0xf46   :  { %v2810_v37 = vmul.f32 %v2914_v13, %v2800_v6 }
 0xf47   :  { %v3524_v20 = vpop.eup %3523 }
 0xf48   :  { %v2820_v21 = vadd.f32 %v2915_v18, %v2810_v37  ;;  %v2801_v12 = vmul.f32 %v3524_v20, %v2769_v54 }
 0xf4a   :  { %2824 = vst.msk [vmem:[%s4031_s13] sm:$0xff] %vm59_vm0, %v2820_v21  ;;  %v2811_v24 = vmul.f32 %v2914_v13, %v2801_v12 }
 0xf4c   :  { %v2821_v19 = vadd.f32 %v2915_v18, %v2811_v24 }
 0xf4e   :  { %2825 = vst.msk [vmem:[%s4031_s13 + $0x8] sm:$0xff] %vm59_vm0, %v2821_v19 }
 0xfc0   :  { %v2787_v25 = vpop.xlane.xlu1 %2786 }
 0xfc1   :  { %v2791_v26 = vmul.f32 0.03125, %v2787_v25  ;;  %v2784_v27 = vpop.xlane.xlu0 %2783 }
 0xfc2   :  { %v2790_v28 = vmul.f32 0.03125, %v2784_v27 }
 0xfc3   :  { %v2795_v29 = vadd.f32 1e-05, %v2791_v26 }
 0xfc4   :  { %v2794_v15 = vadd.f32 1e-05, %v2790_v28 }
 0xfc5   :  { %3525 = vrsqrt.f32 %v2795_v29 }
 0xfc6   :  { %3527 = vrsqrt.f32 %v2794_v15 }
 0xfcf   :  { %v3526_v23 = vpop.eup %3525 }
 0xfd0   :  { %v3528_v30 = vpop.eup %3527  ;;  %v2803_v31 = vmul.f32 %v3526_v23, %v2771_v61 }
 0xfd1   :  { %v2802_v32 = vmul.f32 %v3528_v30, %v2770_v62 }
 0xfd2   :  { %v2813_v33 = vmul.f32 %v2914_v13, %v2803_v31 }
 0xfd3   :  { %v2812_v7 = vmul.f32 %v2914_v13, %v2802_v32 }
 0xfd4   :  { %v2823_v34 = vadd.f32 %v2915_v18, %v2813_v33 }
 0xfd5   :  { %v2822_v36 = vadd.f32 %v2915_v18, %v2812_v7 }
 0xfd6   :  { %2827 = vst.msk [vmem:[%s4031_s13 + $0x18] sm:$0xff] %vm59_vm0, %v2823_v34 }
 0xfd7   :  { %2826 = vst.msk [vmem:[%s4031_s13 + $0x10] sm:$0xff] %vm59_vm0, %v2822_v36 }

// kernel: fwd.10
= control target key start
LH: loop header
LB: loop body
LE: loop exit
PB: predicated region body
PF: predicated region fallthrough
CT: control target
= control target key end

     0   :  { %vm63_vm0 = vcmask 261120   ;;  %v2775_v8 = vmov 0.0   ;;  %vm2776_vm1 = vmmov 0   ;;  %s2778_s16 = smov 96   ;;  %s2779_s17 = smov 88   ;;  %vm148_vm2 = vcmask 64512   ;;  %s3188_s1 = inlined_call_operand.vmem [shape: f32[32,96], index: 1, kind: input, shape index: {}]   ;;  %s3189_s0 = inlined_call_operand.vmem [shape: f32[16,32], index: 0, kind: input, shape index: {}]   ;;  %s3190_s2 = inlined_call_operand.vmem [shape: f32[1,96], index: 2, kind: input, shape index: {}]   ;;  %s3191_s3 = inlined_call_operand.vmem [shape: f32[32,32], index: 3, kind: input, shape index: {}]   ;;  %s3192_s4 = inlined_call_operand.vmem [shape: f32[1,32], index: 4, kind: input, shape index: {}]   ;;  %s3193_s5 = inlined_call_operand.vmem [shape: f32[1,32], index: 5, kind: input, shape index: {}]   ;;  %s3194_s6 = inlined_call_operand.vmem [shape: f32[1,32], index: 6, kind: input, shape index: {}]   ;;  %s3195_s7 = inlined_call_operand.vmem [shape: f32[32,64], index: 7, kind: input, shape index: {}]   ;;  %s3196_s9 = inlined_call_operand.vmem [shape: f32[64,32], index: 9, kind: input, shape index: {}]   ;;  %s3197_s8 = inlined_call_operand.vmem [shape: f32[1,64], index: 8, kind: input, shape index: {}]   ;;  %s3198_s10 = inlined_call_operand.vmem [shape: f32[1,32], index: 10, kind: input, shape index: {}]   ;;  %s3199_s11 = inlined_call_operand.vmem [shape: f32[1,32], index: 11, kind: input, shape index: {}]   ;;  %s3200_s12 = inlined_call_operand.vmem [shape: f32[1,32], index: 12, kind: input, shape index: {}]   ;;  %s3201_s13 = inlined_call_operand.vmem [shape: f32[1,32], index: 13, kind: input, shape index: {}]   ;;  %s3202_s14 = inlined_call_operand.vmem [shape: f32[1,32], index: 14, kind: input, shape index: {}]   ;;  %s3203_s15 = inlined_call_operand.vmem [shape: f32[16,32], index: 15, kind: output, shape index: {}]  }
   0x1   :  { %v52_v0 = vld [vmem:[%s3188_s1] sm:$0xff]  ;;  %v53_v1 = vld [vmem:[%s3188_s1 + $0x8] sm:$0xff]  ;;  %v54_v2 = vld [vmem:[%s3188_s1 + $0x10] sm:$0xff]  ;;  %2541 = vmatprep.subr.mxu1 %v2775_v8  ;;  %2543 = vmatprep.mubr.msk.f32.mxu1 %vm2776_vm1, %v2775_v8  ;;  %s2781_s18 = smov 64   ;;  %s2782_s19 = smov 80   ;;  %vm2229_vm3 = vcmask 523264  }
   0x2   :  { %v2686_v3 = vpack.c.bf16 %v53_v1, %v52_v0  ;;  %v55_v4 = vld [vmem:[%s3188_s1 + $0x18] sm:$0xff]  ;;  %v2883_v5 = vld [vmem:[%s3189_s0] sm:$0xff]  ;;  %v2890_v7 = vld [vmem:[%s3189_s0 + $0x8] sm:$0xff]  ;;  %s2777_s0 = smov 120   ;;  %s2783_s20 = smov 112  }
   0x3   :  { %v2690_v6 = vpack.c.bf16 %v55_v4, %v54_v2  ;;  %2533 = vmatprep.mubr.msk.f32.mxu0 %vm63_vm0, %v2883_v5  ;;  %v2407_v9 = vld [vmem:[%s3190_s2] ss:$0 sm:$0xff]  ;;  %s2780_s2 = smov 56   ;;  %v2939_v35 = vld [vmem:[%s3191_s3 + $0x8] sm:$0xff]  ;;  %s2784_s25 = smov 72  }
   0x4   :  { %2687 = vmatprep.subr.bf16.mxu0 %v2686_v3  ;;  %v2954_v44 = vld [vmem:[%s3191_s3] sm:$0xff]  ;;  %s2785_s26 = smov 104   ;;  %s2786_s27 = smov 48  }
   0x5   :  { %2689 = vmatpush3.bf16.msra.mxu0 %v2686_v3  ;;  %s2787_s1 = smov 40  }
   0x6   :  { %2691 = vmatprep.subr.bf16.mxu0 %v2690_v6 }
   0x9   :  { %2693 = vmatpush3.bf16.msra.mxu0 %v2690_v6 }
   0xa   :  { %2536 = vmatprep.subr.mxu0 %v2775_v8 }
   0xc   :  { %2534 = vmatmul.mubr.msk.f32.vlgmr.msra.gmra.mrb[0].mxu0 %vm63_vm0, %v2890_v7 }
   0xd   :  { %2538 = vmatprep.mubr.msk.f32.mxu0 %vm2776_vm1, %v2775_v8 }
  0xdf   :  { %v2535_v10 = vpop.f32.mrb[0].mxu0 }
  0xe0   :  { %v2903_v11 = vadd.f32 %v2535_v10, %v2407_v9  ;;  %v136_v12 = vpop.f32.mrb[1].mxu0  ;;  %v2993_v10 = vld [vmem:[%s3191_s3 + $0x10] sm:$0xff] }
  0xe1   :  { %v2905_v13 = vadd.f32 %v2407_v9, %v136_v12 }
  0xe3   :  { %312 = vrot.lane.b32.xlu1 %v2905_v13, %s2777_s0  ;;  %146 = vrot.lane.b32.xlu0 %v2905_v13, %s2778_s16 }
  0xe7   :  { %314 = vrot.lane.b32.xlu0 %v2905_v13, %s2779_s17 }
 0x155   :  { %v147_v14 = vpop.permute.xlu0 %146  ;;  %v313_v16 = vpop.permute.xlu1 %312 }
 0x156   :  { %2537 = vmatpush3.xpose.msk.msra.mxu0 %vm148_vm2, %v147_v14 }
 0x157   :  { %2546 = vmatprep.subr.mxu0 %v2775_v8 }
 0x159   :  { %2539 = vmatmul.mubr.msk.f32.vlgmr.msra.gmra.mrb[2].mxu0 %vm148_vm2, %v2905_v13  ;;  %v315_v15 = vpop.permute.xlu0 %314 }
 0x15a   :  { %2547 = vmatpush3.xpose.msk.msra.mxu0 %vm148_vm2, %v315_v15  ;;  %2548 = vmatprep.mubr.msk.f32.mxu0 %vm2776_vm1, %v2775_v8 }
 0x15b   :  { %2556 = vmatprep.subr.mxu0 %v2775_v8 }
 0x15d   :  { %2549 = vmatmul.mubr.msk.f32.vlgmr.msra.gmra.mrb[4].mxu0 %vm148_vm2, %v313_v16 }
 0x15e   :  { %2558 = vmatprep.mubr.msk.f32.mxu0 %vm2776_vm1, %v2775_v8  ;;  %2557 = vmatpush3.msra.mxu0 %v2939_v35 }
 0x15f   :  { %2566 = vmatprep.subr.mxu0 %v2775_v8 }
 0x22c   :  { %v219_v17 = vpop.f32.mrb[2].mxu0 }
 0x22d   :  { %v223_v18 = vmul.f32 0.35355338, %v219_v17  ;;  %v2540_v19 = vpop.f32.mrb[3].mxu0 }
 0x22f   :  { %v224_v20 = vsel %vm148_vm2, %v223_v18, -inf }
 0x230   :  { %225 = vmax.xlane.f32.xlu1 %v224_v20  ;;  %v386_v21 = vpop.f32.mrb[4].mxu0 }
 0x231   :  { %v390_v22 = vmul.f32 0.35355338, %v386_v21  ;;  %v2550_v23 = vpop.f32.mrb[5].mxu0 }
 0x233   :  { %v391_v24 = vsel %vm148_vm2, %v390_v22, -inf }
 0x234   :  { %392 = vmax.xlane.f32.xlu0 %v391_v24 }
 0x2bd   :  { %v226_v25 = vpop.xlane.xlu1 %225 }
 0x2be   :  { %v227_v26 = vsub.f32 %v223_v18, %v226_v25 }
 0x2c0   :  { %v228_v27 = vmul.f32 1.442695, %v227_v26 }
 0x2c1   :  { %v393_v28 = vpop.xlane.xlu0 %392 }
 0x2c2   :  { %2731 = vpow2.f32 %v228_v27  ;;  %v394_v29 = vsub.f32 %v390_v22, %v393_v28 }
 0x2c4   :  { %v395_v30 = vmul.f32 1.442695, %v394_v29 }
 0x2c6   :  { %2733 = vpow2.f32 %v395_v30 }
 0x2cc   :  { %v2732_v31 = vpop.eup %2731 }
 0x2cd   :  { %v230_v32 = vsel %vm148_vm2, %v2732_v31, 0.0 }
 0x2ce   :  { %231 = vadd.xlane.f32.xlu0 %v230_v32 }
 0x2d0   :  { %v2734_v33 = vpop.eup %2733 }
 0x2d1   :  { %v397_v34 = vsel %vm148_vm2, %v2734_v33, 0.0 }
 0x2d2   :  { %398 = vadd.xlane.f32.xlu1 %v397_v34 }
 0x2e3   :  { %402 = vrot.lane.b32.xlu1 %v2905_v13, %s2780_s2 }
 0x2e4   :  { %235 = vrot.lane.b32.xlu0 %v2905_v13, %s2781_s18 }
 0x2e7   :  { %627 = vrot.lane.b32.xlu1 %v2905_v13, %s2782_s19 }
 0x2e8   :  { %625 = vrot.lane.b32.xlu0 %v2905_v13, %s2783_s20 }
 0x35b   :  { %v232_v36 = vpop.xlane.xlu0 %231 }
 0x35c   :  { %2735 = vrcp.f32 %v232_v36 }
 0x35f   :  { %v399_v37 = vpop.xlane.xlu1 %398  ;;  %v236_v38 = vpop.permute.xlu0 %235 }
 0x360   :  { %2737 = vrcp.f32 %v399_v37  ;;  %2542 = vmatpush3.msra.mxu1 %v236_v38 }
 0x361   :  { %2551 = vmatprep.subr.mxu1 %v2775_v8 }
 0x363   :  { %v403_v41 = vpop.permute.xlu1 %402  ;;  %v626_v50 = vpop.permute.xlu0 %625 }
 0x366   :  { %v2736_v39 = vpop.eup %2735 }
 0x367   :  { %v234_v40 = vmul.f32 %v2736_v39, %v2732_v31  ;;  %v628_v48 = vpop.permute.xlu1 %627 }
 0x369   :  { %2544 = vmatmul.mubr.msk.f32.vlgmr.msra.gmra.mrb[0].mxu1 %vm148_vm2, %v234_v40 }
 0x36a   :  { %v2738_v42 = vpop.eup %2737  ;;  %2552 = vmatpush3.msra.mxu1 %v403_v41  ;;  %2553 = vmatprep.mubr.msk.f32.mxu1 %vm2776_vm1, %v2775_v8 }
 0x36b   :  { %v401_v43 = vmul.f32 %v2738_v42, %v2734_v33  ;;  %2561 = vmatprep.subr.mxu1 %v2775_v8  ;;  %v3029_v33 = vld [vmem:[%s3191_s3 + $0x18] sm:$0xff] }
 0x36d   :  { %2554 = vmatmul.mubr.msk.f32.vlgmr.msra.gmra.mrb[2].mxu1 %vm148_vm2, %v401_v43 }
 0x36e   :  { %2563 = vmatprep.mubr.msk.f32.mxu1 %vm2776_vm1, %v2775_v8  ;;  %2562 = vmatpush3.msra.mxu1 %v2954_v44 }
 0x36f   :  { %2571 = vmatprep.subr.mxu1 %v2775_v8 }
 0x43c   :  { %v307_v45 = vpop.f32.mrb[0].mxu1 }
 0x43d   :  { %v2545_v46 = vpop.f32.mrb[1].mxu1  ;;  %2564 = vmatmul.mubr.msk.f32.vlgmr.msra.gmra.mrb[4].mxu1 %vm148_vm2, %v307_v45 }
 0x43e   :  { %2573 = vmatprep.mubr.msk.f32.mxu1 %vm2776_vm1, %v2775_v8 }
 0x440   :  { %v474_v47 = vpop.f32.mrb[2].mxu1 }
 0x441   :  { %v2555_v49 = vpop.f32.mrb[3].mxu1  ;;  %2559 = vmatmul.mubr.msk.f32.vlgmr.msra.gmra.mrb[6].mxu0 %vm148_vm2, %v474_v47 }
 0x442   :  { %2567 = vmatpush3.xpose.msk.msra.mxu0 %vm148_vm2, %v628_v48  ;;  %2568 = vmatprep.mubr.msk.f32.mxu0 %vm2776_vm1, %v2775_v8 }
 0x443   :  { %2576 = vmatprep.subr.mxu0 %v2775_v8 }
 0x445   :  { %2569 = vmatmul.mubr.msk.f32.vlgmr.msra.gmra.mrb[8].mxu0 %vm148_vm2, %v626_v50 }
 0x446   :  { %2578 = vmatprep.mubr.msk.f32.mxu0 %vm2776_vm1, %v2775_v8  ;;  %2577 = vmatpush3.msra.mxu0 %v2993_v10 }
 0x447   :  { %2586 = vmatprep.subr.mxu0 %v2775_v8 }
 0x510   :  { %v621_v51 = vpop.f32.mrb[4].mxu1 }
 0x511   :  { %v2565_v52 = vpop.f32.mrb[5].mxu1 }
 0x514   :  { %v548_v53 = vpop.f32.mrb[6].mxu0 }
 0x515   :  { %v2969_v54 = vadd.f32 %v621_v51, %v548_v53  ;;  %v2560_v55 = vpop.f32.mrb[7].mxu0 }
 0x518   :  { %v699_v56 = vpop.f32.mrb[8].mxu0 }
 0x519   :  { %v703_v57 = vmul.f32 0.35355338, %v699_v56  ;;  %v2570_v58 = vpop.f32.mrb[9].mxu0 }
 0x51b   :  { %v704_v59 = vsel %vm148_vm2, %v703_v57, -inf }
 0x51c   :  { %705 = vmax.xlane.f32.xlu1 %v704_v59 }
 0x52d   :  { %868 = vrot.lane.b32.xlu1 %v2905_v13, %s2784_s25 }
 0x531   :  { %866 = vrot.lane.b32.xlu1 %v2905_v13, %s2785_s26 }
 0x535   :  { %1108 = vrot.lane.b32.xlu1 %v2903_v11, %s2778_s16 }
 0x5a9   :  { %v706_v60 = vpop.xlane.xlu1 %705 }
 0x5aa   :  { %v707_v61 = vsub.f32 %v703_v57, %v706_v60 }
 0x5ac   :  { %v708_v62 = vmul.f32 1.442695, %v707_v61 }
 0x5ad   :  { %v869_v4 = vpop.permute.xlu1 %868 }
 0x5ae   :  { %2739 = vpow2.f32 %v708_v62 }
 0x5b1   :  { %v867_v9 = vpop.permute.xlu1 %866 }
 0x5b5   :  { %v1109_v27 = vpop.permute.xlu1 %1108 }
 0x5b8   :  { %v2740_v63 = vpop.eup %2739 }
 0x5b9   :  { %v710_v0 = vsel %vm148_vm2, %v2740_v63, 0.0 }
 0x5ba   :  { %711 = vadd.xlane.f32.xlu0 %v710_v0 }
 0x5d0   :  { %715 = vrot.lane.b32.xlu0 %v2905_v13, %s2786_s27 }
 0x647   :  { %v712_v1 = vpop.xlane.xlu0 %711 }
 0x648   :  { %2741 = vrcp.f32 %v712_v1 }
 0x64b   :  { %v716_v2 = vpop.permute.xlu0 %715 }
 0x64c   :  { %2572 = vmatpush3.msra.mxu1 %v716_v2 }
 0x64d   :  { %2581 = vmatprep.subr.mxu1 %v2775_v8 }
 0x652   :  { %v2742_v3 = vpop.eup %2741 }
 0x653   :  { %v714_v6 = vmul.f32 %v2742_v3, %v2740_v63 }
 0x655   :  { %2574 = vmatmul.mubr.msk.f32.vlgmr.msra.gmra.mrb[6].mxu1 %vm148_vm2, %v714_v6 }
 0x656   :  { %2582 = vmatpush3.xpose.msk.msra.mxu1 %vm148_vm2, %v869_v4  ;;  %2583 = vmatprep.mubr.msk.f32.mxu1 %vm2776_vm1, %v2775_v8 }
 0x657   :  { %2591 = vmatprep.subr.mxu1 %v2775_v8 }
 0x659   :  { %2584 = vmatmul.mubr.msk.f32.vlgmr.msra.gmra.mrb[8].mxu1 %vm148_vm2, %v867_v9 }
 0x65a   :  { %2593 = vmatprep.mubr.msk.f32.mxu1 %vm2776_vm1, %v2775_v8  ;;  %2592 = vmatpush3.msra.mxu1 %v3029_v33 }
 0x65b   :  { %2601 = vmatprep.subr.mxu1 %v2775_v8 }
 0x728   :  { %v787_v12 = vpop.f32.mrb[6].mxu1 }
 0x729   :  { %v2575_v14 = vpop.f32.mrb[7].mxu1  ;;  %2579 = vmatmul.mubr.msk.f32.vlgmr.msra.gmra.mrb[10].mxu0 %vm148_vm2, %v787_v12 }
 0x72a   :  { %2588 = vmatprep.mubr.msk.f32.mxu0 %vm2776_vm1, %v2775_v8 }
 0x72c   :  { %v940_v15 = vpop.f32.mrb[8].mxu1 }
 0x72d   :  { %v944_v16 = vmul.f32 0.35355338, %v940_v15  ;;  %v2585_v17 = vpop.f32.mrb[9].mxu1 }
 0x72f   :  { %v945_v18 = vsel %vm148_vm2, %v944_v16, -inf }
 0x730   :  { %946 = vmax.xlane.f32.xlu0 %v945_v18 }
 0x746   :  { %956 = vrot.lane.b32.xlu0 %v2905_v13, %s2787_s1 }
 0x74a   :  { %1274 = vrot.lane.b32.xlu0 %v2903_v11, %s2779_s17 }
 0x7bd   :  { %v947_v19 = vpop.xlane.xlu0 %946 }
 0x7be   :  { %v948_v20 = vsub.f32 %v944_v16, %v947_v19 }
 0x7c0   :  { %v949_v21 = vmul.f32 1.442695, %v948_v20 }
 0x7c1   :  { %v957_v22 = vpop.permute.xlu0 %956 }
 0x7c2   :  { %2743 = vpow2.f32 %v949_v21  ;;  %2587 = vmatpush3.msra.mxu0 %v957_v22 }
 0x7c3   :  { %2596 = vmatprep.subr.mxu0 %v2775_v8 }
 0x7c5   :  { %v1275_v31 = vpop.permute.xlu0 %1274 }
 0x7cc   :  { %v2744_v23 = vpop.eup %2743 }
 0x7cd   :  { %v951_v24 = vsel %vm148_vm2, %v2744_v23, 0.0 }
 0x7ce   :  { %952 = vadd.xlane.f32.xlu1 %v951_v24 }
 0x7df   :  { %1272 = vrot.lane.b32.xlu1 %v2903_v11, %s2777_s0 }
 0x7fc   :  { %v861_v25 = vpop.f32.mrb[10].mxu0 }
 0x7fd   :  { %v865_v13 = vadd.f32 %v861_v25, %v2969_v54  ;;  %v2580_v26 = vpop.f32.mrb[11].mxu0 }
 0x85b   :  { %v953_v28 = vpop.xlane.xlu1 %952 }
 0x85c   :  { %2745 = vrcp.f32 %v953_v28 }
 0x85f   :  { %v1273_v32 = vpop.permute.xlu1 %1272 }
 0x866   :  { %v2746_v29 = vpop.eup %2745 }
 0x867   :  { %v955_v30 = vmul.f32 %v2746_v29, %v2744_v23 }
 0x869   :  { %2589 = vmatmul.mubr.msk.f32.vlgmr.msra.gmra.mrb[12].mxu0 %vm148_vm2, %v955_v30 }
 0x86a   :  { %2597 = vmatpush3.xpose.msk.msra.mxu0 %vm148_vm2, %v1109_v27  ;;  %2598 = vmatprep.mubr.msk.f32.mxu0 %vm2776_vm1, %v2775_v8 }
 0x86b   :  { %2606 = vmatprep.subr.mxu0 %v2775_v8 }
 0x86d   :  { %2599 = vmatmul.mubr.msk.f32.vlgmr.msra.gmra.mrb[14].mxu0 %vm148_vm2, %v2903_v11 }
 0x86e   :  { %2607 = vmatpush3.xpose.msk.msra.mxu0 %vm148_vm2, %v1275_v31  ;;  %2608 = vmatprep.mubr.msk.f32.mxu0 %vm2776_vm1, %v2775_v8  ;;  %v2442_v31 = vld [vmem:[%s3192_s4] ss:$0 sm:$0xff] }
 0x86f   :  { %2616 = vmatprep.subr.mxu0 %v2775_v8 }
 0x871   :  { %2609 = vmatmul.mubr.msk.f32.vlgmr.msra.gmra.mrb[16].mxu0 %vm148_vm2, %v1273_v32 }
 0x872   :  { %2617 = vmatpush3.msra.mxu0 %v2939_v35  ;;  %2618 = vmatprep.mubr.msk.f32.mxu0 %vm2776_vm1, %v2775_v8 }
 0x873   :  { %2626 = vmatprep.subr.mxu0 %v2775_v8 }
 0x93c   :  { %v1028_v34 = vpop.f32.mrb[12].mxu0 }
 0x93d   :  { %v2590_v36 = vpop.f32.mrb[13].mxu0  ;;  %2594 = vmatmul.mubr.msk.f32.vlgmr.msra.gmra.mrb[10].mxu1 %vm148_vm2, %v1028_v34 }
 0x93e   :  { %2603 = vmatprep.mubr.msk.f32.mxu1 %vm2776_vm1, %v2775_v8 }
 0x940   :  { %v1180_v35 = vpop.f32.mrb[14].mxu0 }
 0x941   :  { %v1184_v37 = vmul.f32 0.35355338, %v1180_v35  ;;  %v2600_v38 = vpop.f32.mrb[15].mxu0 }
 0x943   :  { %v1185_v39 = vsel %vm148_vm2, %v1184_v37, -inf }
 0x944   :  { %1186 = vmax.xlane.f32.xlu0 %v1185_v39  ;;  %v1346_v40 = vpop.f32.mrb[16].mxu0 }
 0x945   :  { %v1350_v41 = vmul.f32 0.35355338, %v1346_v40  ;;  %v2610_v42 = vpop.f32.mrb[17].mxu0 }
 0x947   :  { %v1351_v43 = vsel %vm148_vm2, %v1350_v41, -inf }
 0x948   :  { %1352 = vmax.xlane.f32.xlu1 %v1351_v43 }
 0x959   :  { %1196 = vrot.lane.b32.xlu1 %v2903_v11, %s2781_s18 }
 0x95d   :  { %1586 = vrot.lane.b32.xlu1 %v2903_v11, %s2782_s19 }
 0x961   :  { %1584 = vrot.lane.b32.xlu1 %v2903_v11, %s2783_s20 }
 0x9d1   :  { %v1187_v45 = vpop.xlane.xlu0 %1186 }
 0x9d2   :  { %v1188_v46 = vsub.f32 %v1184_v37, %v1187_v45 }
 0x9d4   :  { %v1189_v47 = vmul.f32 1.442695, %v1188_v46 }
 0x9d5   :  { %v1353_v48 = vpop.xlane.xlu1 %1352 }
 0x9d6   :  { %2747 = vpow2.f32 %v1189_v47  ;;  %v1354_v49 = vsub.f32 %v1350_v41, %v1353_v48 }
 0x9d8   :  { %v1355_v50 = vmul.f32 1.442695, %v1354_v49 }
 0x9d9   :  { %v1197_v51 = vpop.permute.xlu1 %1196 }
 0x9da   :  { %2749 = vpow2.f32 %v1355_v50  ;;  %2602 = vmatpush3.msra.mxu1 %v1197_v51 }
 0x9db   :  { %2611 = vmatprep.subr.mxu1 %v2775_v8 }
 0x9dd   :  { %v1587_v4 = vpop.permute.xlu1 %1586 }
 0x9e0   :  { %v2748_v52 = vpop.eup %2747 }
 0x9e1   :  { %v1191_v53 = vsel %vm148_vm2, %v2748_v52, 0.0 }
 0x9e2   :  { %1192 = vadd.xlane.f32.xlu0 %v1191_v53 }
 0x9e4   :  { %v2750_v54 = vpop.eup %2749 }
 0x9e5   :  { %v1357_v55 = vsel %vm148_vm2, %v2750_v54, 0.0 }
 0x9e6   :  { %1358 = vadd.xlane.f32.xlu0 %v1357_v55 }
 0x9fc   :  { %1362 = vrot.lane.b32.xlu0 %v2903_v11, %s2780_s2 }
 0xa10   :  { %v1102_v56 = vpop.f32.mrb[10].mxu1 }
 0xa11   :  { %v3049_v57 = vadd.f32 %v1102_v56, %v865_v13  ;;  %v2595_v58 = vpop.f32.mrb[11].mxu1 }
 0xa13   :  { %v2071_v36 = vadd.f32 %v2442_v31, %v3049_v57 }
 0xa15   :  { %v2073_v39 = vadd.f32 %v2071_v36, %v2883_v5 }
 0xa17   :  { %v2077_v40 = vsel %vm63_vm0, %v2073_v39, 0.0 }
 0xa6f   :  { %v1193_v59 = vpop.xlane.xlu0 %1192 }
 0xa70   :  { %2751 = vrcp.f32 %v1193_v59 }
 0xa73   :  { %v1359_v60 = vpop.xlane.xlu0 %1358 }
 0xa74   :  { %2753 = vrcp.f32 %v1359_v60 }
 0xa77   :  { %v1363_v63 = vpop.permute.xlu0 %1362 }
 0xa7a   :  { %v2752_v61 = vpop.eup %2751 }
 0xa7b   :  { %v1195_v62 = vmul.f32 %v2752_v61, %v2748_v52 }
 0xa7d   :  { %2604 = vmatmul.mubr.msk.f32.vlgmr.msra.gmra.mrb[12].mxu1 %vm148_vm2, %v1195_v62 }
 0xa7e   :  { %v2754_v0 = vpop.eup %2753  ;;  %2612 = vmatpush3.msra.mxu1 %v1363_v63  ;;  %2613 = vmatprep.mubr.msk.f32.mxu1 %vm2776_vm1, %v2775_v8 }
 0xa7f   :  { %v1361_v1 = vmul.f32 %v2754_v0, %v2750_v54  ;;  %2621 = vmatprep.subr.mxu1 %v2775_v8 }
 0xa81   :  { %2614 = vmatmul.mubr.msk.f32.vlgmr.msra.gmra.mrb[14].mxu1 %vm148_vm2, %v1361_v1 }
 0xa82   :  { %2622 = vmatpush3.msra.mxu1 %v2954_v44  ;;  %2623 = vmatprep.mubr.msk.f32.mxu1 %vm2776_vm1, %v2775_v8  ;;  %v1585_v44 = vpop.permute.xlu1 %1584 }
 0xa83   :  { %2631 = vmatprep.subr.mxu1 %v2775_v8 }
 0xb50   :  { %v1268_v2 = vpop.f32.mrb[12].mxu1 }
 0xb51   :  { %v2605_v3 = vpop.f32.mrb[13].mxu1  ;;  %2624 = vmatmul.mubr.msk.f32.vlgmr.msra.gmra.mrb[16].mxu1 %vm148_vm2, %v1268_v2 }
 0xb52   :  { %2633 = vmatprep.mubr.msk.f32.mxu1 %vm2776_vm1, %v2775_v8 }
 0xb54   :  { %v1434_v6 = vpop.f32.mrb[14].mxu1 }
 0xb55   :  { %v2615_v9 = vpop.f32.mrb[15].mxu1  ;;  %2619 = vmatmul.mubr.msk.f32.vlgmr.msra.gmra.mrb[18].mxu0 %vm148_vm2, %v1434_v6 }
 0xb56   :  { %2627 = vmatpush3.xpose.msk.msra.mxu0 %vm148_vm2, %v1587_v4  ;;  %2628 = vmatprep.mubr.msk.f32.mxu0 %vm2776_vm1, %v2775_v8 }
 0xb57   :  { %2636 = vmatprep.subr.mxu0 %v2775_v8 }
 0xb59   :  { %2629 = vmatmul.mubr.msk.f32.vlgmr.msra.gmra.mrb[20].mxu0 %vm148_vm2, %v1585_v44 }
 0xb5a   :  { %2637 = vmatpush3.msra.mxu0 %v2993_v10  ;;  %2638 = vmatprep.mubr.msk.f32.mxu0 %vm2776_vm1, %v2775_v8 }
 0xb5b   :  { %2646 = vmatprep.subr.mxu0 %v2775_v8 }
 0xc24   :  { %v1580_v12 = vpop.f32.mrb[16].mxu1 }
 0xc25   :  { %v2625_v14 = vpop.f32.mrb[17].mxu1 }
 0xc28   :  { %v1507_v15 = vpop.f32.mrb[18].mxu0 }
 0xc29   :  { %v1581_v16 = vadd.f32 %v1580_v12, %v1507_v15  ;;  %v2620_v17 = vpop.f32.mrb[19].mxu0  ;;  %v2444_v15 = vld [vmem:[%s3194_s6] ss:$0 sm:$0xff] }
 0xc2c   :  { %v1658_v18 = vpop.f32.mrb[20].mxu0 }
 0xc2d   :  { %v1662_v19 = vmul.f32 0.35355338, %v1658_v18  ;;  %v2630_v20 = vpop.f32.mrb[21].mxu0  ;;  %v2120_v18 = vld [vmem:[%s3195_s7] sm:$0xff] }
 0xc2f   :  { %v1663_v21 = vsel %vm148_vm2, %v1662_v19, -inf }
 0xc30   :  { %1664 = vmax.xlane.f32.xlu0 %v1663_v21  ;;  %v2122_v21 = vld [vmem:[%s3195_s7 + $0x10] sm:$0xff] }
 0xc46   :  { %1674 = vrot.lane.b32.xlu0 %v2903_v11, %s2786_s27 }
 0xc4a   :  { %1824 = vrot.lane.b32.xlu0 %v2903_v11, %s2785_s26 }
 0xcbd   :  { %v1665_v10 = vpop.xlane.xlu0 %1664 }
 0xcbe   :  { %v1666_v22 = vsub.f32 %v1662_v19, %v1665_v10  ;;  %v2121_v19 = vld [vmem:[%s3195_s7 + $0x8] sm:$0xff]  ;;  %v2123_v10 = vld [vmem:[%s3195_s7 + $0x18] sm:$0xff] }
 0xcbf   :  { %v2694_v20 = vpack.c.bf16 %v2121_v19, %v2120_v18 }
 0xcc0   :  { %v1667_v23 = vmul.f32 1.442695, %v1666_v22  ;;  %v2698_v22 = vpack.c.bf16 %v2123_v10, %v2122_v21 }
 0xcc1   :  { %v1675_v24 = vpop.permute.xlu0 %1674 }
 0xcc2   :  { %2755 = vpow2.f32 %v1667_v23  ;;  %2632 = vmatpush3.msra.mxu1 %v1675_v24  ;;  %v2214_v23 = vld [vmem:[%s3196_s9] sm:$0xff]  ;;  %v2215_v24 = vld [vmem:[%s3196_s9 + $0x8] sm:$0xff] }
 0xcc3   :  { %2641 = vmatprep.subr.mxu1 %v2775_v8 }
 0xcc5   :  { %v1825_v30 = vpop.permute.xlu0 %1824 }
 0xccc   :  { %v2756_v25 = vpop.eup %2755 }
 0xccd   :  { %v1669_v13 = vsel %vm148_vm2, %v2756_v25, 0.0 }
 0xcce   :  { %1670 = vadd.xlane.f32.xlu1 %v1669_v13  ;;  %v2702_v13 = vpack.c.bf16 %v2215_v24, %v2214_v23 }
 0xcdf   :  { %1826 = vrot.lane.b32.xlu1 %v2903_v11, %s2784_s25 }
 0xd5b   :  { %v1671_v26 = vpop.xlane.xlu1 %1670 }
 0xd5c   :  { %2757 = vrcp.f32 %v1671_v26  ;;  %v2217_v26 = vld [vmem:[%s3196_s9 + $0x18] sm:$0xff] }
 0xd5f   :  { %v1827_v29 = vpop.permute.xlu1 %1826 }
 0xd66   :  { %v2758_v27 = vpop.eup %2757 }
 0xd67   :  { %v1673_v28 = vmul.f32 %v2758_v27, %v2756_v25  ;;  %v2216_v25 = vld [vmem:[%s3196_s9 + $0x10] sm:$0xff] }
 0xd68   :  { %v2706_v27 = vpack.c.bf16 %v2217_v26, %v2216_v25 }
 0xd69   :  { %2634 = vmatmul.mubr.msk.f32.vlgmr.msra.gmra.mrb[18].mxu1 %vm148_vm2, %v1673_v28  ;;  %v2218_v28 = vld [vmem:[%s3196_s9 + $0x20] sm:$0xff] }
 0xd6a   :  { %2642 = vmatpush3.xpose.msk.msra.mxu1 %vm148_vm2, %v1827_v29  ;;  %2643 = vmatprep.mubr.msk.f32.mxu1 %vm2776_vm1, %v2775_v8  ;;  %v2219_v29 = vld [vmem:[%s3196_s9 + $0x28] sm:$0xff] }
 0xd6b   :  { %2651 = vmatprep.subr.mxu1 %v2775_v8 }
 0xd6d   :  { %2644 = vmatmul.mubr.msk.f32.vlgmr.msra.gmra.mrb[20].mxu1 %vm148_vm2, %v1825_v30  ;;  %v2710_v30 = vpack.c.bf16 %v2219_v29, %v2218_v28 }
 0xd6e   :  { %2652 = vmatpush3.msra.mxu1 %v3029_v33  ;;  %2653 = vmatprep.mubr.msk.f32.mxu1 %vm2776_vm1, %v2775_v8 }
 0xd6f   :  { %2703 = vmatprep.subr.bf16.mxu1 %v2702_v13 }
 0xe3c   :  { %v1746_v32 = vpop.f32.mrb[18].mxu1 }
 0xe3d   :  { %v2635_v34 = vpop.f32.mrb[19].mxu1  ;;  %2639 = vmatmul.mubr.msk.f32.vlgmr.msra.gmra.mrb[22].mxu0 %vm148_vm2, %v1746_v32 }
 0xe3e   :  { %2648 = vmatprep.mubr.msk.f32.mxu0 %vm2776_vm1, %v2775_v8 }
 0xe40   :  { %v1898_v35 = vpop.f32.mrb[20].mxu1 }
 0xe41   :  { %v1902_v37 = vmul.f32 0.35355338, %v1898_v35  ;;  %v2645_v38 = vpop.f32.mrb[21].mxu1 }
 0xe43   :  { %v1903_v33 = vsel %vm148_vm2, %v1902_v37, -inf }
 0xe44   :  { %1904 = vmax.xlane.f32.xlu1 %v1903_v33  ;;  %v2220_v33 = vld [vmem:[%s3196_s9 + $0x30] sm:$0xff] }
 0xe48   :  { %2078 = vadd.xlane.f32.xlu1 %v2077_v40 }
 0xed1   :  { %v1905_v41 = vpop.xlane.xlu1 %1904 }
 0xed2   :  { %v1906_v42 = vsub.f32 %v1902_v37, %v1905_v41  ;;  %v2445_v41 = vld [vmem:[%s3197_s8] ss:$0 sm:$0xff] }
 0xed4   :  { %v1907_v43 = vmul.f32 1.442695, %v1906_v42 }
 0xed5   :  { %v2079_v54 = vpop.xlane.xlu1 %2078 }
 0xed6   :  { %2759 = vpow2.f32 %v1907_v43  ;;  %v2084_v55 = vmul.f32 0.03125, %v2079_v54 }
 0xed8   :  { %v2086_v58 = vsub.f32 %v2073_v39, %v2084_v55  ;;  %v2221_v39 = vld [vmem:[%s3196_s9 + $0x38] sm:$0xff] }
 0xed9   :  { %v2714_v40 = vpack.c.bf16 %v2221_v39, %v2220_v33  ;;  %v2453_v33 = vld [vmem:[%s3201_s13] ss:$0 sm:$0xff] }
 0xeda   :  { %v2088_v62 = vmul.f32 %v2086_v58, %v2086_v58 }
 0xedc   :  { %v2090_v63 = vsel %vm63_vm0, %v2088_v62, 0.0 }
 0xee0   :  { %v2760_v45 = vpop.eup %2759 }
 0xee1   :  { %v1909_v8 = vsel %vm148_vm2, %v2760_v45, 0.0 }
 0xee2   :  { %1910 = vadd.xlane.f32.xlu0 %v1909_v8 }
 0xef8   :  { %1914 = vrot.lane.b32.xlu0 %v2903_v11, %s2787_s1 }
 0xf10   :  { %v1819_v46 = vpop.f32.mrb[22].mxu0 }
 0xf11   :  { %v1823_v47 = vadd.f32 %v1819_v46, %v1581_v16  ;;  %v2640_v48 = vpop.f32.mrb[23].mxu0 }
 0xf12   :  { %v2448_v48 = vld [vmem:[%s3198_s10] ss:$0 sm:$0xff] }
 0xf6f   :  { %v1911_v49 = vpop.xlane.xlu0 %1910 }
 0xf70   :  { %2761 = vrcp.f32 %v1911_v49 }
 0xf73   :  { %v1915_v5 = vpop.permute.xlu0 %1914 }
 0xf74   :  { %2647 = vmatpush3.msra.mxu0 %v1915_v5 }
 0xf75   :  { %2695 = vmatprep.subr.bf16.mxu0 %v2694_v20 }
 0xf7a   :  { %v2762_v50 = vpop.eup %2761 }
 0xf7b   :  { %v1913_v51 = vmul.f32 %v2762_v50, %v2760_v45 }
 0xf7d   :  { %2649 = vmatmul.mubr.msk.f32.vlgmr.msra.gmra.mrb[24].mxu0 %vm148_vm2, %v1913_v51 }
 0xf7e   :  { %2697 = vmatpush3.bf16.msra.mxu0 %v2694_v20 }
 0xf7f   :  { %2699 = vmatprep.subr.bf16.mxu0 %v2698_v22 }
 0xf82   :  { %2701 = vmatpush3.bf16.msra.mxu0 %v2698_v22 }
0x1050   :  { %v1986_v52 = vpop.f32.mrb[24].mxu0 }
0x1051   :  { %v2650_v53 = vpop.f32.mrb[25].mxu0  ;;  %2654 = vmatmul.mubr.msk.f32.vlgmr.msra.gmra.mrb[22].mxu1 %vm148_vm2, %v1986_v52 }
0x1052   :  { %2705 = vmatpush3.bf16.msra.mxu1 %v2702_v13 }
0x1053   :  { %2707 = vmatprep.subr.bf16.mxu1 %v2706_v27 }
0x1056   :  { %2709 = vmatpush3.bf16.msra.mxu1 %v2706_v27 }
0x1057   :  { %2711 = vmatprep.subr.bf16.mxu1 %v2710_v30 }
0x105a   :  { %2713 = vmatpush3.bf16.msra.mxu1 %v2710_v30 }
0x105b   :  { %2715 = vmatprep.subr.bf16.mxu1 %v2714_v40 }
0x105e   :  { %2717 = vmatpush3.bf16.msra.mxu1 %v2714_v40  ;;  %v2454_v40 = vld [vmem:[%s3202_s14] ss:$0 sm:$0xff] }
0x1124   :  { %v2059_v56 = vpop.f32.mrb[22].mxu1 }
0x1125   :  { %v2063_v57 = vadd.f32 %v2059_v56, %v1823_v47  ;;  %v2655_v11 = vpop.f32.mrb[23].mxu1 }
0x1127   :  { %v2072_v59 = vadd.f32 %v2442_v31, %v2063_v57 }
0x1129   :  { %v2074_v60 = vadd.f32 %v2072_v59, %v2890_v7  ;;  %v2443_v7 = vld [vmem:[%s3193_s5] ss:$0 sm:$0xff] }
0x112b   :  { %v2080_v61 = vsel %vm63_vm0, %v2074_v60, 0.0 }
0x112c   :  { %2081 = vadd.xlane.f32.xlu1 %v2080_v61 }
0x1130   :  { %2091 = vadd.xlane.f32.xlu1 %v2090_v63 }
0x11b9   :  { %v2082_v0 = vpop.xlane.xlu1 %2081 }
0x11ba   :  { %v2085_v1 = vmul.f32 0.03125, %v2082_v0 }
0x11bc   :  { %v2087_v2 = vsub.f32 %v2074_v60, %v2085_v1 }
0x11bd   :  { %v2092_v3 = vpop.xlane.xlu1 %2091 }
0x11be   :  { %v2096_v4 = vmul.f32 0.03125, %v2092_v3  ;;  %v2089_v6 = vmul.f32 %v2087_v2, %v2087_v2 }
0x11c0   :  { %v2098_v9 = vadd.f32 1e-05, %v2096_v4  ;;  %v2093_v44 = vsel %vm63_vm0, %v2089_v6, 0.0 }
0x11c1   :  { %2094 = vadd.xlane.f32.xlu1 %v2093_v44 }
0x11c2   :  { %2763 = vrsqrt.f32 %v2098_v9 }
0x11cc   :  { %v2764_v12 = vpop.eup %2763 }
0x11cd   :  { %v2102_v14 = vmul.f32 %v2764_v12, %v2086_v58  ;;  %v2451_v12 = vld [vmem:[%s3199_s11] ss:$0 sm:$0xff] }
0x11cf   :  { %v2110_v16 = vmul.f32 %v2443_v7, %v2102_v14  ;;  %v2452_v14 = vld [vmem:[%s3200_s12] ss:$0 sm:$0xff] }
0x11d1   :  { %v2118_v17 = vadd.f32 %v2444_v15, %v2110_v16 }
0x11d3   :  { %2664 = vmatprep.mubr.msk.f32.mxu0 %vm63_vm0, %v2118_v17 }
0x124e   :  { %v2095_v31 = vpop.xlane.xlu1 %2094 }
0x124f   :  { %v2097_v32 = vmul.f32 0.03125, %v2095_v31 }
0x1251   :  { %v2099_v34 = vadd.f32 1e-05, %v2097_v32 }
0x1253   :  { %2765 = vrsqrt.f32 %v2099_v34 }
0x125d   :  { %v2766_v36 = vpop.eup %2765 }
0x125e   :  { %v2103_v35 = vmul.f32 %v2766_v36, %v2087_v2 }
0x1260   :  { %v2111_v37 = vmul.f32 %v2443_v7, %v2103_v35 }
0x1262   :  { %v2119_v38 = vadd.f32 %v2444_v15, %v2111_v37 }
0x1264   :  { %2665 = vmatmul.mubr.msk.f32.vlgmr.msra.gmra.mrb[26].mxu0 %vm63_vm0, %v2119_v38 }
0x1337   :  { %v2666_v42 = vpop.f32.mrb[26].mxu0 }
0x1338   :  { %v2209_v43 = vadd.f32 %v2666_v42, %v2445_v41  ;;  %v2203_v45 = vpop.f32.mrb[27].mxu0 }
0x1339   :  { %v2204_v8 = vadd.f32 %v2445_v41, %v2203_v45 }
0x133a   :  { %v2213_v47 = vmax.f32 %v2209_v43, 0.0 }
0x133b   :  { %v2212_v46 = vmax.f32 %v2204_v8, 0.0 }
0x133d   :  { %2683 = vmatprep.mubr.msk.f32.mxu1 %vm2229_vm3, %v2212_v46 }
0x133e   :  { %2684 = vmatmul.mubr.msk.f32.vlgmr.msra.gmra.mrb[24].mxu1 %vm2229_vm3, %v2213_v47 }
0x1411   :  { %v2685_v49 = vpop.f32.mrb[24].mxu1 }
0x1412   :  { %v2302_v5 = vpop.f32.mrb[25].mxu1  ;;  %v2308_v50 = vadd.f32 %v2685_v49, %v2448_v48 }
0x1413   :  { %v2303_v51 = vadd.f32 %v2448_v48, %v2302_v5 }
0x1414   :  { %v2312_v54 = vadd.f32 %v2308_v50, %v2119_v38 }
0x1415   :  { %v2311_v52 = vadd.f32 %v2303_v51, %v2118_v17 }
0x1416   :  { %v2318_v55 = vsel %vm63_vm0, %v2312_v54, 0.0 }
0x1417   :  { %v2315_v53 = vsel %vm63_vm0, %v2311_v52, 0.0 }
0x1418   :  { %2316 = vadd.xlane.f32.xlu1 %v2315_v53 }
0x141c   :  { %2319 = vadd.xlane.f32.xlu1 %v2318_v55 }
0x14a5   :  { %v2317_v56 = vpop.xlane.xlu1 %2316 }
0x14a6   :  { %v2321_v57 = vmul.f32 0.03125, %v2317_v56 }
0x14a8   :  { %v2323_v11 = vsub.f32 %v2311_v52, %v2321_v57 }
0x14a9   :  { %v2320_v58 = vpop.xlane.xlu1 %2319 }
0x14aa   :  { %v2322_v59 = vmul.f32 0.03125, %v2320_v58  ;;  %v2325_v60 = vmul.f32 %v2323_v11, %v2323_v11 }
0x14ac   :  { %v2324_v61 = vsub.f32 %v2312_v54, %v2322_v59  ;;  %v2327_v62 = vsel %vm63_vm0, %v2325_v60, 0.0 }
0x14ad   :  { %2328 = vadd.xlane.f32.xlu0 %v2327_v62 }
0x14ae   :  { %v2326_v63 = vmul.f32 %v2324_v61, %v2324_v61 }
0x14b0   :  { %v2330_v0 = vsel %vm63_vm0, %v2326_v63, 0.0 }
0x14b1   :  { %2331 = vadd.xlane.f32.xlu1 %v2330_v0 }
0x153a   :  { %v2329_v1 = vpop.xlane.xlu0 %2328 }
0x153b   :  { %v2333_v2 = vmul.f32 0.03125, %v2329_v1 }
0x153d   :  { %v2335_v3 = vadd.f32 1e-05, %v2333_v2 }
0x153e   :  { %v2332_v4 = vpop.xlane.xlu1 %2331 }
0x153f   :  { %2767 = vrsqrt.f32 %v2335_v3  ;;  %v2334_v6 = vmul.f32 0.03125, %v2332_v4 }
0x1541   :  { %v2336_v9 = vadd.f32 1e-05, %v2334_v6 }
0x1543   :  { %2769 = vrsqrt.f32 %v2336_v9 }
0x1549   :  { %v2768_v44 = vpop.eup %2767 }
0x154a   :  { %v2339_v7 = vmul.f32 %v2768_v44, %v2323_v11 }
0x154c   :  { %v2347_v15 = vmul.f32 %v2451_v12, %v2339_v7 }
0x154d   :  { %v2770_v16 = vpop.eup %2769 }
0x154e   :  { %v2355_v17 = vadd.f32 %v2452_v14, %v2347_v15  ;;  %v2340_v18 = vmul.f32 %v2770_v16, %v2324_v61 }
0x1550   :  { %v2359_v19 = vsel %vm63_vm0, %v2355_v17, 0.0  ;;  %v2348_v20 = vmul.f32 %v2451_v12, %v2340_v18 }
0x1551   :  { %2360 = vadd.xlane.f32.xlu1 %v2359_v19 }
0x1552   :  { %v2356_v21 = vadd.f32 %v2452_v14, %v2348_v20 }
0x1554   :  { %v2362_v10 = vsel %vm63_vm0, %v2356_v21, 0.0 }
0x1555   :  { %2363 = vadd.xlane.f32.xlu1 %v2362_v10 }
0x15de   :  { %v2361_v22 = vpop.xlane.xlu1 %2360 }
0x15df   :  { %v2365_v23 = vmul.f32 0.03125, %v2361_v22 }
0x15e1   :  { %v2367_v24 = vsub.f32 %v2355_v17, %v2365_v23 }
0x15e2   :  { %v2364_v25 = vpop.xlane.xlu1 %2363 }
0x15e3   :  { %v2366_v13 = vmul.f32 0.03125, %v2364_v25  ;;  %v2369_v26 = vmul.f32 %v2367_v24, %v2367_v24 }
0x15e5   :  { %v2368_v27 = vsub.f32 %v2356_v21, %v2366_v13  ;;  %v2371_v28 = vsel %vm63_vm0, %v2369_v26, 0.0 }
0x15e6   :  { %2372 = vadd.xlane.f32.xlu1 %v2371_v28 }
0x15e7   :  { %v2370_v29 = vmul.f32 %v2368_v27, %v2368_v27 }
0x15e9   :  { %v2374_v30 = vsel %vm63_vm0, %v2370_v29, 0.0 }
0x15ea   :  { %2375 = vadd.xlane.f32.xlu1 %v2374_v30 }
0x1673   :  { %v2373_v31 = vpop.xlane.xlu1 %2372 }
0x1674   :  { %v2377_v32 = vmul.f32 0.03125, %v2373_v31 }
0x1676   :  { %v2379_v34 = vadd.f32 1e-05, %v2377_v32 }
0x1677   :  { %v2376_v36 = vpop.xlane.xlu1 %2375 }
0x1678   :  { %2771 = vrsqrt.f32 %v2379_v34  ;;  %v2378_v35 = vmul.f32 0.03125, %v2376_v36 }
0x167a   :  { %v2380_v37 = vadd.f32 1e-05, %v2378_v35 }
0x167c   :  { %2773 = vrsqrt.f32 %v2380_v37 }
0x1682   :  { %v2772_v38 = vpop.eup %2771 }
0x1683   :  { %v2383_v39 = vmul.f32 %v2772_v38, %v2367_v24 }
0x1685   :  { %v2391_v41 = vmul.f32 %v2453_v33, %v2383_v39 }
0x1686   :  { %v2774_v42 = vpop.eup %2773 }
0x1687   :  { %v2399_v43 = vadd.f32 %v2454_v40, %v2391_v41  ;;  %v2384_v45 = vmul.f32 %v2774_v42, %v2368_v27 }
0x1689   :  { %2401 = vst.msk [vmem:[%s3203_s15] sm:$0xff] %vm63_vm0, %v2399_v43  ;;  %v2392_v8 = vmul.f32 %v2453_v33, %v2384_v45 }
0x168b   :  { %v2400_v46 = vadd.f32 %v2454_v40, %v2392_v8 }
0x168d   :  { %2402 = vst.msk [vmem:[%s3203_s15 + $0x8] sm:$0xff] %vm63_vm0, %v2400_v46 }

// kernel: fwd.13
= control target key start
LH: loop header
LB: loop body
LE: loop exit
PB: predicated region body
PF: predicated region fallthrough
CT: control target
= control target key end

     0   :  { %vm102_vm0 = vcmask 261120   ;;  %vm206_vm1 = vcmask 64512   ;;  %s7011_s29 = smov 96   ;;  %v292_v29 = vlaneseq  ;;  %vm301_vm4 = vcmask 130048   ;;  %s7013_s30 = smov 64   ;;  %s7988_s2 = inlined_call_operand.vmem [shape: f32[32,96], index: 2, kind: input, shape index: {}]   ;;  %s7989_s0 = inlined_call_operand.vmem [shape: f32[32,32], index: 0, kind: input, shape index: {}]   ;;  %s7990_s3 = inlined_call_operand.vmem [shape: f32[1,96], index: 3, kind: input, shape index: {}]   ;;  %s7991_s4 = inlined_call_operand.vmem [shape: f32[32,32], index: 4, kind: input, shape index: {}]   ;;  %s7992_s5 = inlined_call_operand.vmem [shape: f32[1,32], index: 5, kind: input, shape index: {}]   ;;  %s7993_s6 = inlined_call_operand.vmem [shape: f32[32,32], index: 6, kind: input, shape index: {}]   ;;  %s7994_s12 = inlined_call_operand.vmem [shape: f32[1,32], index: 12, kind: input, shape index: {}]   ;;  %s7995_s13 = inlined_call_operand.vmem [shape: f32[1,32], index: 13, kind: input, shape index: {}]   ;;  %s7996_s8 = inlined_call_operand.vmem [shape: f32[32,64], index: 8, kind: input, shape index: {}]   ;;  %s7997_s1 = inlined_call_operand.vmem [shape: f32[32,32], index: 1, kind: input, shape index: {}]   ;;  %s7998_s7 = inlined_call_operand.vmem [shape: f32[1,32], index: 7, kind: input, shape index: {}]   ;;  %s7999_s9 = inlined_call_operand.vmem [shape: f32[1,64], index: 9, kind: input, shape index: {}]   ;;  %s8000_s10 = inlined_call_operand.vmem [shape: f32[32,32], index: 10, kind: input, shape index: {}]   ;;  %s8001_s11 = inlined_call_operand.vmem [shape: f32[1,32], index: 11, kind: input, shape index: {}]   ;;  %s8002_s16 = inlined_call_operand.vmem [shape: f32[32,64], index: 16, kind: input, shape index: {}]   ;;  %s8003_s14 = inlined_call_operand.vmem [shape: f32[1,32], index: 14, kind: input, shape index: {}]   ;;  %s8004_s15 = inlined_call_operand.vmem [shape: f32[1,32], index: 15, kind: input, shape index: {}]   ;;  %s8005_s18 = inlined_call_operand.vmem [shape: f32[64,32], index: 18, kind: input, shape index: {}]   ;;  %s8006_s17 = inlined_call_operand.vmem [shape: f32[1,64], index: 17, kind: input, shape index: {}]   ;;  %s8007_s19 = inlined_call_operand.vmem [shape: f32[1,32], index: 19, kind: input, shape index: {}]   ;;  %s8008_s20 = inlined_call_operand.vmem [shape: f32[1,32], index: 20, kind: input, shape index: {}]   ;;  %s8009_s21 = inlined_call_operand.vmem [shape: f32[1,32], index: 21, kind: input, shape index: {}]   ;;  %s8010_s24 = inlined_call_operand.vmem [shape: f32[32,4], index: 24, kind: input, shape index: {}]   ;;  %s8011_s22 = inlined_call_operand.vmem [shape: f32[1,32], index: 22, kind: input, shape index: {}]   ;;  %s8012_s23 = inlined_call_operand.vmem [shape: f32[1,32], index: 23, kind: input, shape index: {}]   ;;  %s8013_s25 = inlined_call_operand.vmem [shape: f32[1,4], index: 25, kind: input, shape index: {}]   ;;  %s8014_s26 = inlined_call_operand.vmem [shape: f32[32,4], index: 26, kind: output, shape index: {}]  }
   0x1   :  { %8031 = sst [smem:[#allocation2_spill]] %s7988_s2  ;;  %s8029_s2 = smov 88   ;;  %vm7217_vm2 = vmpackc.low %vm206_vm1, %vm206_vm1  ;;  %vm5287_vm6 = vcmask 523264   ;;  %vm5645_vm7 = vcmask 31744  }
   0x2   :  { %8032 = sst [smem:[#allocation3_spill]] %s7989_s0  ;;  %v293_v30 = vshrl.u32 %v292_v29, 7  ;;  %v296_v32 = vand.u32 127, %v292_v29  ;;  %s8021_s0 = smov 72  }
   0x3   :  { %8033 = sst [smem:[#allocation4_spill]] %s7990_s3  ;;  %s8023_s3 = smov 80  }
   0x4   :  { %8034 = sst [smem:[#allocation5_spill]] %s7991_s4  ;;  %v294_v31 = vadd.s32 8, %v293_v30  ;;  %vm7238_vm5 = vcmp.gt.s32.totalorder %v296_v32, %v293_v30  ;;  %s8025_s27 = smov 104  }
   0x5   :  { %8035 = sst [smem:[#allocation6_spill]] %s7992_s5  ;;  %s8044_s5 = sld [smem:[#allocation4_spill]] }
   0x6   :  { %8036 = sst [smem:[#allocation7_spill]] %s7993_s6  ;;  %s8043_s6 = sld [smem:[#allocation3_spill]]  ;;  %vm7234_vm3 = vcmp.gt.s32.totalorder %v296_v32, %v294_v31 }
   0x7   :  { %8037 = sst [smem:[#allocation8_spill]] %s7994_s12  ;;  %s7016_s12 = smov 56  }
   0x8   :  { %8038 = sst [smem:[#allocation9_spill]] %s7995_s13  ;;  %s8042_s13 = sld [smem:[#allocation2_spill]] }
   0x9   :  { %8039 = sst [smem:[#allocation10_spill]] %s7996_s8  ;;  %s8051_s28 = sld [smem:[#allocation5_spill]] }
   0xa   :  { %8040 = sst [smem:[#allocation11_spill]] %s7997_s1  ;;  %s7010_s1 = smov 120  }
   0xb   :  { %8041 = sst [smem:[#allocation12_spill]] %s7998_s7  ;;  %v7190_v10 = vld [vmem:[%s8044_s5] ss:$0 sm:$0xff]  ;;  %s8027_s7 = smov 112  }
   0xc   :  { %v83_v5 = vld [vmem:[%s8043_s6] sm:$0xff]  ;;  %v7175_v7 = vld [vmem:[%s8043_s6 + $0x8] sm:$0xff]  ;;  %v85_v8 = vld [vmem:[%s8043_s6 + $0x10] sm:$0xff]  ;;  %s7019_s4 = smov 48   ;;  %s7020_s5 = smov 40  }
   0xd   :  { %6058 = vmatprep.mubr.msk.f32.mxu0 %vm102_vm0, %v83_v5  ;;  %v86_v9 = vld [vmem:[%s8043_s6 + $0x18] sm:$0xff]  ;;  %s8061_s8 = smov 104  }
   0xe   :  { %v91_v0 = vld [vmem:[%s8042_s13] sm:$0xff]  ;;  %v92_v1 = vld [vmem:[%s8042_s13 + $0x8] sm:$0xff]  ;;  %v93_v2 = vld [vmem:[%s8042_s13 + $0x10] sm:$0xff] }
   0xf   :  { %v6446_v3 = vpack.c.bf16 %v92_v1, %v91_v0  ;;  %v94_v4 = vld [vmem:[%s8042_s13 + $0x18] sm:$0xff]  ;;  %v7278_v32 = vld [vmem:[%s8051_s28 + $0x8] sm:$0xff] }
  0x10   :  { %v6450_v6 = vpack.c.bf16 %v94_v4, %v93_v2 }
  0x11   :  { %6447 = vmatprep.subr.bf16.mxu0 %v6446_v3 }
  0x12   :  { %6449 = vmatpush3.bf16.msra.mxu0 %v6446_v3 }
  0x13   :  { %6451 = vmatprep.subr.bf16.mxu0 %v6450_v6 }
  0x16   :  { %6453 = vmatpush3.bf16.msra.mxu0 %v6450_v6 }
  0x19   :  { %6059 = vmatmul.mubr.msk.f32.vlgmr.msra.gmra.mrb[0].mxu0 %vm102_vm0, %v7175_v7 }
  0x1a   :  { %6061 = vmatprep.mubr.msk.f32.mxu0 %vm102_vm0, %v85_v8 }
  0x1d   :  { %6062 = vmatmul.mubr.msk.f32.gmra.mrb[2].mxu0 %vm102_vm0, %v86_v9 }
  0xec   :  { %v6060_v11 = vpop.f32.mrb[0].mxu0 }
  0xed   :  { %v7193_v12 = vadd.f32 %v6060_v11, %v7190_v10  ;;  %v181_v13 = vpop.f32.mrb[1].mxu0 }
  0xee   :  { %v7196_v14 = vadd.f32 %v7190_v10, %v181_v13 }
  0xf0   :  { %412 = vrot.lane.b32.xlu1 %v7196_v14, %s7010_s1  ;;  %6068 = vmatprep.mubr.msk.f32.mxu1 %vm206_vm1, %v7196_v14  ;;  %v7204_v15 = vpack.i.bf16 %v7193_v12, %v7196_v14  ;;  %v7212_v16 = vpop.f32.mrb[2].mxu0 }
  0xf1   :  { %v7232_v28 = vpop.f32.mrb[3].mxu0 }
  0xf2   :  { %6698 = vrot.lane.b32.xlu0 %v7204_v15, %s7011_s29 }
  0xf4   :  { %414 = vrot.lane.b32.xlu1 %v7193_v12, %s7010_s1 }
  0xf6   :  { %6703 = vrot.lane.b32.xlu0 %v7204_v15, %s8029_s2 }
 0x162   :  { %v413_v17 = vpop.permute.xlu1 %412 }
 0x163   :  { %6082 = vmatprep.mubr.msk.f32.mxu0 %vm206_vm1, %v413_v17 }
 0x164   :  { %v6699_v18 = vpop.permute.xlu0 %6698 }
 0x165   :  { %v6701_v19 = vunpack.i.h.bf16 %v6699_v18  ;;  %v6700_v20 = vunpack.i.l.bf16 %v6699_v18 }
 0x166   :  { %v415_v27 = vpop.permute.xlu1 %414 }
 0x167   :  { %v6454_v22 = vpack.c.bf16 %v6701_v19, %v6700_v20 }
 0x168   :  { %v6704_v23 = vpop.permute.xlu0 %6703 }
 0x169   :  { %v6706_v24 = vunpack.i.h.bf16 %v6704_v23  ;;  %v6705_v25 = vunpack.i.l.bf16 %v6704_v23  ;;  %6456 = vmatprep.subr.msk.bf16.mxu1 %vm7217_vm2, %v6454_v22 }
 0x16a   :  { %6459 = vmatpush3.bf16.xpose.msk.msra.mxu1 %vm7217_vm2, %v6454_v22 }
 0x16b   :  { %v6464_v26 = vpack.c.bf16 %v6706_v24, %v6705_v25 }
 0x16d   :  { %6466 = vmatprep.subr.msk.bf16.mxu0 %vm7217_vm2, %v6464_v26 }
 0x16e   :  { %6469 = vmatpush3.bf16.xpose.msk.msra.mxu0 %vm7217_vm2, %v6464_v26 }
 0x171   :  { %6069 = vmatmul.mubr.msk.f32.vlgmr.msra.gmra.mrb[0].mxu1 %vm206_vm1, %v7193_v12 }
 0x175   :  { %6083 = vmatmul.mubr.msk.f32.vlgmr.msra.gmra.mrb[4].mxu0 %vm206_vm1, %v415_v27 }
 0x244   :  { %v6070_v33 = vpop.f32.mrb[0].mxu1 }
 0x245   :  { %v291_v35 = vmul.f32 0.35355338, %v6070_v33  ;;  %v281_v36 = vpop.f32.mrb[1].mxu1 }
 0x246   :  { %v290_v38 = vmul.f32 0.35355338, %v281_v36 }
 0x247   :  { %v300_v39 = vsel %vm7234_vm3, -1e+30, %v291_v35 }
 0x248   :  { %v6084_v40 = vpop.f32.mrb[4].mxu0  ;;  %v305_v41 = vsel %vm301_vm4, %v300_v39, -inf  ;;  %v299_v42 = vsel %vm7238_vm5, -1e+30, %v290_v38 }
 0x249   :  { %v494_v43 = vpop.f32.mrb[5].mxu0  ;;  %306 = vmax.xlane.f32.xlu1 %v305_v41  ;;  %v302_v44 = vsel %vm301_vm4, %v299_v42, -inf  ;;  %v504_v45 = vmul.f32 0.35355338, %v6084_v40  ;;  %v7290_v40 = vld [vmem:[%s8051_s28] sm:$0xff] }
 0x24a   :  { %v503_v46 = vmul.f32 0.35355338, %v494_v43  ;;  %303 = vmax.xlane.f32.xlu0 %v302_v44  ;;  %6097 = vmatprep.subr.mxu0 %v7290_v40 }
 0x24b   :  { %v506_v49 = vsel %vm7234_vm3, -1e+30, %v504_v45  ;;  %6098 = vmatpush3.msra.mxu0 %v7290_v40 }
 0x24c   :  { %v505_v47 = vsel %vm7238_vm5, -1e+30, %v503_v46  ;;  %v510_v50 = vsel %vm301_vm4, %v506_v49, -inf }
 0x24d   :  { %v507_v48 = vsel %vm301_vm4, %v505_v47, -inf }
 0x24e   :  { %508 = vmax.xlane.f32.xlu0 %v507_v48 }
 0x252   :  { %511 = vmax.xlane.f32.xlu0 %v510_v50 }
 0x2d6   :  { %v307_v51 = vpop.xlane.xlu1 %306 }
 0x2d7   :  { %v309_v52 = vsub.f32 %v300_v39, %v307_v51  ;;  %v304_v53 = vpop.xlane.xlu0 %303 }
 0x2d8   :  { %v308_v54 = vsub.f32 %v299_v42, %v304_v53 }
 0x2d9   :  { %v312_v55 = vmul.f32 1.442695, %v309_v52  ;;  %v7309_v52 = vadd.f32 %v7190_v10, %v7232_v28 }
 0x2da   :  { %v310_v56 = vmul.f32 1.442695, %v308_v54 }
 0x2db   :  { %6847 = vpow2.f32 %v312_v55  ;;  %v509_v57 = vpop.xlane.xlu0 %508 }
 0x2dc   :  { %6849 = vpow2.f32 %v310_v56  ;;  %v513_v58 = vsub.f32 %v505_v47, %v509_v57 }
 0x2de   :  { %v515_v59 = vmul.f32 1.442695, %v513_v58 }
 0x2df   :  { %v512_v60 = vpop.xlane.xlu0 %511 }
 0x2e0   :  { %6851 = vpow2.f32 %v515_v59  ;;  %v514_v61 = vsub.f32 %v506_v49, %v512_v60 }
 0x2e2   :  { %v517_v62 = vmul.f32 1.442695, %v514_v61 }
 0x2e4   :  { %6853 = vpow2.f32 %v517_v62 }
 0x2e5   :  { %v6848_v63 = vpop.eup %6847 }
 0x2e6   :  { %v6850_v0 = vpop.eup %6849  ;;  %v317_v1 = vsel %vm301_vm4, %v6848_v63, 0.0 }
 0x2e7   :  { %318 = vadd.xlane.f32.xlu0 %v317_v1  ;;  %v314_v2 = vsel %vm301_vm4, %v6850_v0, 0.0  ;;  %v7326_v1 = vadd.f32 %v7212_v16, %v7190_v10 }
 0x2e8   :  { %315 = vadd.xlane.f32.xlu1 %v314_v2 }
 0x2e9   :  { %v7332_v2 = vpack.i.bf16 %v7326_v1, %v7309_v52 }
 0x2ea   :  { %v6852_v3 = vpop.eup %6851 }
 0x2eb   :  { %v519_v4 = vsel %vm301_vm4, %v6852_v3, 0.0 }
 0x2ec   :  { %520 = vadd.xlane.f32.xlu1 %v519_v4 }
 0x2ee   :  { %v6854_v5 = vpop.eup %6853 }
 0x2ef   :  { %v522_v6 = vsel %vm301_vm4, %v6854_v5, 0.0 }
 0x2f0   :  { %523 = vadd.xlane.f32.xlu0 %v522_v6 }
 0x2fd   :  { %6708 = vrot.lane.b32.xlu1 %v7204_v15, %s7013_s30 }
 0x301   :  { %6718 = vrot.lane.b32.xlu1 %v7204_v15, %s8023_s3 }
 0x305   :  { %779 = vrot.lane.b32.xlu1 %v7196_v14, %s8027_s7 }
 0x306   :  { %6713 = vrot.lane.b32.xlu0 %v7204_v15, %s7016_s12 }
 0x309   :  { %6723 = vrot.lane.b32.xlu1 %v7204_v15, %s8021_s0 }
 0x30a   :  { %781 = vrot.lane.b32.xlu0 %v7193_v12, %s8027_s7 }
 0x30d   :  { %1069 = vrot.lane.b32.xlu1 %v7193_v12, %s8025_s27 }
 0x30e   :  { %1067 = vrot.lane.b32.xlu0 %v7196_v14, %s8025_s27 }
 0x374   :  { %v319_v8 = vpop.xlane.xlu0 %318 }
 0x375   :  { %v316_v9 = vpop.xlane.xlu1 %315 }
 0x376   :  { %6855 = vrcp.f32 %v316_v9 }
 0x377   :  { %6857 = vrcp.f32 %v319_v8 }
 0x379   :  { %v521_v11 = vpop.xlane.xlu1 %520 }
 0x37a   :  { %6859 = vrcp.f32 %v521_v11 }
 0x37d   :  { %v6709_v13 = vpop.permute.xlu1 %6708  ;;  %v524_v17 = vpop.xlane.xlu0 %523 }
 0x37e   :  { %v6711_v18 = vunpack.i.h.bf16 %v6709_v13  ;;  %v6710_v19 = vunpack.i.l.bf16 %v6709_v13  ;;  %6861 = vrcp.f32 %v524_v17 }
 0x380   :  { %v6856_v20 = vpop.eup %6855  ;;  %v6460_v22 = vpack.c.bf16 %v6711_v18, %v6710_v19 }
 0x381   :  { %v6858_v23 = vpop.eup %6857  ;;  %v6714_v24 = vpop.permute.xlu0 %6713  ;;  %v322_v25 = vmul.f32 %v6856_v20, %v6850_v0 }
 0x382   :  { %v6716_v12 = vunpack.i.h.bf16 %v6714_v24  ;;  %v6715_v26 = vunpack.i.l.bf16 %v6714_v24  ;;  %6461 = vmatprep.subr.bf16.mxu1 %v6460_v22  ;;  %v6719_v27 = vpop.permute.xlu1 %6718  ;;  %v323_v29 = vmul.f32 %v6858_v23, %v6848_v63 }
 0x383   :  { %6463 = vmatpush3.bf16.msra.mxu1 %v6460_v22  ;;  %6075 = vmatprep.mubr.msk.f32.mxu1 %vm301_vm4, %v322_v25  ;;  %v6721_v33 = vunpack.i.h.bf16 %v6719_v27  ;;  %v6720_v35 = vunpack.i.l.bf16 %v6719_v27 }
 0x384   :  { %v6860_v14 = vpop.eup %6859  ;;  %v6470_v30 = vpack.c.bf16 %v6716_v12, %v6715_v26 }
 0x385   :  { %v527_v31 = vmul.f32 %v6860_v14, %v6852_v3  ;;  %v6474_v39 = vpack.c.bf16 %v6721_v33, %v6720_v35  ;;  %v782_v50 = vpop.permute.xlu0 %781 }
 0x386   :  { %6076 = vmatmul.mubr.msk.f32.vlgmr.msra.gmra.mrb[2].mxu1 %vm301_vm4, %v323_v29  ;;  %6471 = vmatprep.subr.bf16.mxu1 %v6470_v30  ;;  %v780_v41 = vpop.permute.xlu1 %779 }
 0x387   :  { %6473 = vmatpush3.bf16.msra.mxu1 %v6470_v30  ;;  %6089 = vmatprep.mubr.msk.f32.mxu1 %vm301_vm4, %v527_v31 }
 0x388   :  { %v6862_v36 = vpop.eup %6861  ;;  %6092 = vmatprep.subr.mxu1 %v7278_v32 }
 0x389   :  { %v528_v38 = vmul.f32 %v6862_v36, %v6854_v5  ;;  %v1068_v51 = vpop.permute.xlu0 %1067  ;;  %v7357_v36 = vld [vmem:[%s8051_s28 + $0x10] sm:$0xff] }
 0x38a   :  { %v6724_v43 = vpop.permute.xlu1 %6723 }
 0x38b   :  { %6090 = vmatmul.mubr.msk.f32.vlgmr.msra.gmra.mrb[4].mxu1 %vm301_vm4, %v528_v38  ;;  %v6726_v45 = vunpack.i.h.bf16 %v6724_v43  ;;  %v6725_v46 = vunpack.i.l.bf16 %v6724_v43 }
 0x38c   :  { %6093 = vmatpush3.msra.mxu1 %v7278_v32 }
 0x38d   :  { %6476 = vmatprep.subr.msk.bf16.mxu1 %vm7217_vm2, %v6474_v39  ;;  %v6484_v49 = vpack.c.bf16 %v6726_v45, %v6725_v46 }
 0x38e   :  { %v1070_v53 = vpop.permute.xlu1 %1069 }
 0x459   :  { %v6077_v42 = vpop.f32.mrb[2].mxu1 }
 0x45a   :  { %v402_v44 = vpop.f32.mrb[3].mxu1 }
 0x45b   :  { %6099 = vmatprep.mubr.msk.f32.mxu0 %vm206_vm1, %v402_v44 }
 0x45c   :  { %6100 = vmatmul.mubr.msk.f32.vlgmr.msra.gmra.mrb[6].mxu0 %vm206_vm1, %v6077_v42 }
 0x45e   :  { %v6091_v47 = vpop.f32.mrb[4].mxu1 }
 0x45f   :  { %v607_v48 = vpop.f32.mrb[5].mxu1 }
 0x460   :  { %6094 = vmatprep.mubr.msk.f32.mxu1 %vm206_vm1, %v607_v48 }
 0x461   :  { %6095 = vmatmul.mubr.msk.f32.vlgmr.msra.gmra.mrb[6].mxu1 %vm206_vm1, %v6091_v47 }
 0x462   :  { %6479 = vmatpush3.bf16.xpose.msk.msra.mxu1 %vm7217_vm2, %v6474_v39  ;;  %6106 = vmatprep.mubr.msk.f32.mxu1 %vm206_vm1, %v780_v41 }
 0x463   :  { %6486 = vmatprep.subr.msk.bf16.mxu1 %vm7217_vm2, %v6484_v49 }
 0x469   :  { %6107 = vmatmul.mubr.msk.f32.vlgmr.msra.gmra.mrb[8].mxu1 %vm206_vm1, %v782_v50 }
 0x46a   :  { %6489 = vmatpush3.bf16.xpose.msk.msra.mxu1 %vm7217_vm2, %v6484_v49  ;;  %6125 = vmatprep.mubr.msk.f32.mxu1 %vm206_vm1, %v1068_v51 }
 0x471   :  { %6126 = vmatmul.mubr.msk.f32.vlgmr.msra.gmra.mrb[10].mxu1 %vm206_vm1, %v1070_v53 }
 0x472   :  { %6144 = vmatprep.mubr.msk.f32.mxu1 %vm206_vm1, %v7309_v52 }
 0x534   :  { %v7314_v54 = vpop.f32.mrb[6].mxu1 }
 0x535   :  { %v7316_v55 = vpop.f32.mrb[7].mxu1 }
 0x53c   :  { %v6108_v56 = vpop.f32.mrb[8].mxu1 }
 0x53d   :  { %v871_v57 = vmul.f32 0.35355338, %v6108_v56  ;;  %v861_v58 = vpop.f32.mrb[9].mxu1 }
 0x53e   :  { %v870_v59 = vmul.f32 0.35355338, %v861_v58 }
 0x53f   :  { %v873_v60 = vsel %vm7234_vm3, -1e+30, %v871_v57 }
 0x540   :  { %v877_v28 = vsel %vm301_vm4, %v873_v60, -inf  ;;  %v872_v61 = vsel %vm7238_vm5, -1e+30, %v870_v59 }
 0x541   :  { %878 = vmax.xlane.f32.xlu1 %v877_v28  ;;  %v874_v62 = vsel %vm301_vm4, %v872_v61, -inf }
 0x542   :  { %875 = vmax.xlane.f32.xlu0 %v874_v62 }
 0x544   :  { %v6127_v63 = vpop.f32.mrb[10].mxu1 }
 0x545   :  { %v1149_v0 = vpop.f32.mrb[11].mxu1  ;;  %v1159_v29 = vmul.f32 0.35355338, %v6127_v63 }
 0x546   :  { %v1158_v3 = vmul.f32 0.35355338, %v1149_v0 }
 0x547   :  { %v1161_v30 = vsel %vm7234_vm3, -1e+30, %v1159_v29 }
 0x548   :  { %v1160_v4 = vsel %vm7238_vm5, -1e+30, %v1158_v3  ;;  %v1165_v31 = vsel %vm301_vm4, %v1161_v30, -inf }
 0x549   :  { %v1162_v10 = vsel %vm301_vm4, %v1160_v4, -inf }
 0x552   :  { %6728 = vrot.lane.b32.xlu1 %v7204_v15, %s7019_s4 }
 0x556   :  { %6738 = vrot.lane.b32.xlu1 %v7332_v2, %s8029_s2  ;;  %s8057_s2 = sld [smem:[#allocation11_spill]] }
 0x55a   :  { %1557 = vrot.lane.b32.xlu1 %v7309_v52, %s7010_s1 }
 0x57e   :  { %1163 = vmax.xlane.f32.xlu1 %v1162_v10 }
 0x5ce   :  { %v879_v16 = vpop.xlane.xlu1 %878 }
 0x5cf   :  { %v881_v5 = vsub.f32 %v873_v60, %v879_v16  ;;  %v876_v6 = vpop.xlane.xlu0 %875 }
 0x5d0   :  { %v880_v8 = vsub.f32 %v872_v61, %v876_v6 }
 0x5d1   :  { %v884_v9 = vmul.f32 1.442695, %v881_v5 }
 0x5d2   :  { %v882_v11 = vmul.f32 1.442695, %v880_v8  ;;  %v6729_v13 = vpop.permute.xlu1 %6728 }
 0x5d3   :  { %v6731_v17 = vunpack.i.h.bf16 %v6729_v13  ;;  %v6730_v18 = vunpack.i.l.bf16 %v6729_v13 }
 0x5d4   :  { %6863 = vpow2.f32 %v882_v11 }
 0x5d5   :  { %v6480_v19 = vpack.c.bf16 %v6731_v17, %v6730_v18  ;;  %6865 = vpow2.f32 %v884_v9 }
 0x5d6   :  { %v6739_v25 = vpop.permute.xlu1 %6738 }
 0x5d7   :  { %6481 = vmatprep.subr.bf16.mxu0 %v6480_v19  ;;  %v6741_v42 = vunpack.i.h.bf16 %v6739_v25  ;;  %v6740_v43 = vunpack.i.l.bf16 %v6739_v25 }
 0x5d8   :  { %6483 = vmatpush3.bf16.msra.mxu0 %v6480_v19 }
 0x5d9   :  { %6116 = vmatprep.subr.mxu0 %v7357_v36  ;;  %v6504_v49 = vpack.c.bf16 %v6741_v42, %v6740_v43 }
 0x5da   :  { %v1558_v12 = vpop.permute.xlu1 %1557 }
 0x5de   :  { %v6864_v20 = vpop.eup %6863 }
 0x5df   :  { %v886_v22 = vsel %vm301_vm4, %v6864_v20, 0.0  ;;  %v6866_v23 = vpop.eup %6865 }
 0x5e0   :  { %887 = vadd.xlane.f32.xlu0 %v886_v22  ;;  %v889_v24 = vsel %vm301_vm4, %v6866_v23, 0.0 }
 0x5e4   :  { %890 = vadd.xlane.f32.xlu0 %v889_v24 }
 0x5fa   :  { %6733 = vrot.lane.b32.xlu0 %v7332_v2, %s7011_s29 }
 0x5fe   :  { %1559 = vrot.lane.b32.xlu0 %v7326_v1, %s7010_s1 }
 0x60b   :  { %v1164_v26 = vpop.xlane.xlu1 %1163 }
 0x60c   :  { %v1168_v14 = vsub.f32 %v1160_v4, %v1164_v26 }
 0x60e   :  { %v1170_v27 = vmul.f32 1.442695, %v1168_v14 }
 0x610   :  { %6867 = vpow2.f32 %v1170_v27 }
 0x61a   :  { %v7350_v33 = vpop.eup %6867 }
 0x61b   :  { %v1174_v35 = vsel %vm301_vm4, %v7350_v33, 0.0 }
 0x61d   :  { %1166 = vmax.xlane.f32.xlu0 %v1165_v31 }
 0x621   :  { %1175 = vadd.xlane.f32.xlu0 %v1174_v35 }
 0x637   :  { %6743 = vrot.lane.b32.xlu0 %v7204_v15, %s7020_s5 }
 0x63b   :  { %1925 = vrot.lane.b32.xlu0 %v7326_v1, %s8027_s7 }
 0x66d   :  { %v888_v38 = vpop.xlane.xlu0 %887 }
 0x66e   :  { %6869 = vrcp.f32 %v888_v38 }
 0x671   :  { %v891_v39 = vpop.xlane.xlu0 %890 }
 0x672   :  { %6871 = vrcp.f32 %v891_v39  ;;  %v7410_v39 = vld [vmem:[%s8051_s28 + $0x18] sm:$0xff]  ;;  %s8052_s28 = sld [smem:[#allocation6_spill]] }
 0x675   :  { %v6734_v41 = vpop.permute.xlu0 %6733 }
 0x676   :  { %v6736_v44 = vunpack.i.h.bf16 %v6734_v41  ;;  %v6735_v45 = vunpack.i.l.bf16 %v6734_v41 }
 0x678   :  { %v6870_v46 = vpop.eup %6869  ;;  %v6494_v47 = vpack.c.bf16 %v6736_v44, %v6735_v45 }
 0x679   :  { %v894_v48 = vmul.f32 %v6870_v46, %v6864_v20  ;;  %v1560_v51 = vpop.permute.xlu0 %1559 }
 0x67a   :  { %6496 = vmatprep.subr.msk.bf16.mxu1 %vm7217_vm2, %v6494_v47 }
 0x67b   :  { %6113 = vmatprep.mubr.msk.f32.mxu0 %vm301_vm4, %v894_v48  ;;  %6499 = vmatpush3.bf16.xpose.msk.msra.mxu1 %vm7217_vm2, %v6494_v47 }
 0x67c   :  { %v6872_v15 = vpop.eup %6871  ;;  %6506 = vmatprep.subr.msk.bf16.mxu1 %vm7217_vm2, %v6504_v49 }
 0x67d   :  { %v895_v50 = vmul.f32 %v6872_v15, %v6866_v23 }
 0x67f   :  { %6114 = vmatmul.mubr.msk.f32.vlgmr.msra.gmra.mrb[8].mxu0 %vm301_vm4, %v895_v50 }
 0x680   :  { %6117 = vmatpush3.msra.mxu0 %v7357_v36 }
 0x682   :  { %6145 = vmatmul.mubr.msk.f32.vlgmr.msra.gmra.mrb[12].mxu1 %vm206_vm1, %v7326_v1 }
 0x683   :  { %6509 = vmatpush3.bf16.xpose.msk.msra.mxu1 %vm7217_vm2, %v6504_v49  ;;  %6158 = vmatprep.mubr.msk.f32.mxu1 %vm206_vm1, %v1558_v12 }
 0x68a   :  { %6159 = vmatmul.mubr.msk.f32.vlgmr.msra.gmra.mrb[14].mxu1 %vm206_vm1, %v1560_v51 }
 0x6aa   :  { %v1167_v53 = vpop.xlane.xlu0 %1166 }
 0x6ab   :  { %v1169_v56 = vsub.f32 %v1161_v30, %v1167_v53 }
 0x6ad   :  { %v1172_v57 = vmul.f32 1.442695, %v1169_v56 }
 0x6ae   :  { %v1176_v58 = vpop.xlane.xlu0 %1175 }
 0x6af   :  { %6873 = vpow2.f32 %v1172_v57 }
 0x6b0   :  { %6875 = vrcp.f32 %v1176_v58 }
 0x6b2   :  { %v6744_v59 = vpop.permute.xlu0 %6743 }
 0x6b3   :  { %v6746_v60 = vunpack.i.h.bf16 %v6744_v59  ;;  %v6745_v28 = vunpack.i.l.bf16 %v6744_v59 }
 0x6b5   :  { %v6490_v61 = vpack.c.bf16 %v6746_v60, %v6745_v28 }
 0x6b6   :  { %v1926_v23 = vpop.permute.xlu0 %1925 }
 0x6b7   :  { %6491 = vmatprep.subr.bf16.mxu0 %v6490_v61 }
 0x6b9   :  { %v6874_v62 = vpop.eup %6873 }
 0x6ba   :  { %v1177_v63 = vsel %vm301_vm4, %v6874_v62, 0.0  ;;  %v6876_v6 = vpop.eup %6875 }
 0x6bb   :  { %1178 = vadd.xlane.f32.xlu1 %v1177_v63  ;;  %v1182_v13 = vmul.f32 %v6876_v6, %v7350_v33 }
 0x6cc   :  { %6748 = vrot.lane.b32.xlu1 %v7332_v2, %s8023_s3  ;;  %s8058_s3 = sld [smem:[#allocation12_spill]] }
 0x6d0   :  { %1923 = vrot.lane.b32.xlu1 %v7309_v52, %s8027_s7 }
 0x748   :  { %v1179_v0 = vpop.xlane.xlu1 %1178 }
 0x749   :  { %6877 = vrcp.f32 %v1179_v0 }
 0x74c   :  { %v6749_v3 = vpop.permute.xlu1 %6748 }
 0x74d   :  { %v6751_v4 = vunpack.i.h.bf16 %v6749_v3  ;;  %v6750_v10 = vunpack.i.l.bf16 %v6749_v3 }
 0x74f   :  { %v6514_v16 = vpack.c.bf16 %v6751_v4, %v6750_v10 }
 0x750   :  { %v1924_v5 = vpop.permute.xlu1 %1923 }
 0x751   :  { %6516 = vmatprep.subr.msk.bf16.mxu1 %vm7217_vm2, %v6514_v16  ;;  %6182 = vmatprep.mubr.msk.f32.mxu1 %vm206_vm1, %v1924_v5 }
 0x752   :  { %v6115_v8 = vpop.f32.mrb[8].mxu0  ;;  %6519 = vmatpush3.bf16.xpose.msk.msra.mxu1 %vm7217_vm2, %v6514_v16 }
 0x753   :  { %v974_v9 = vpop.f32.mrb[9].mxu0  ;;  %v6878_v11 = vpop.eup %6877 }
 0x754   :  { %6118 = vmatprep.mubr.msk.f32.mxu0 %vm206_vm1, %v974_v9  ;;  %v1183_v22 = vmul.f32 %v6878_v11, %v6874_v62 }
 0x755   :  { %6119 = vmatmul.mubr.msk.f32.vlgmr.msra.gmra.mrb[6].mxu0 %vm206_vm1, %v6115_v8  ;;  %v6146_v17 = vpop.f32.mrb[12].mxu1 }
 0x756   :  { %6493 = vmatpush3.bf16.msra.mxu0 %v6490_v61  ;;  %v1445_v18 = vmul.f32 0.35355338, %v6146_v17  ;;  %6132 = vmatprep.mubr.msk.f32.mxu0 %vm301_vm4, %v1182_v13  ;;  %v1435_v19 = vpop.f32.mrb[13].mxu1 }
 0x757   :  { %v1444_v20 = vmul.f32 0.35355338, %v1435_v19  ;;  %6135 = vmatprep.subr.mxu0 %v7410_v39 }
 0x758   :  { %v1447_v24 = vsel %vm7234_vm3, -1e+30, %v1445_v18 }
 0x759   :  { %6133 = vmatmul.mubr.msk.f32.vlgmr.msra.gmra.mrb[10].mxu0 %vm301_vm4, %v1183_v22  ;;  %6183 = vmatmul.mubr.msk.f32.vlgmr.msra.gmra.mrb[16].mxu1 %vm206_vm1, %v1926_v23  ;;  %v1451_v25 = vsel %vm301_vm4, %v1447_v24, -inf  ;;  %v1446_v12 = vsel %vm7238_vm5, -1e+30, %v1444_v20 }
 0x75a   :  { %1452 = vmax.xlane.f32.xlu0 %v1451_v25  ;;  %v1448_v26 = vsel %vm301_vm4, %v1446_v12, -inf  ;;  %6136 = vmatpush3.msra.mxu0 %v7410_v39 }
 0x75b   :  { %1449 = vmax.xlane.f32.xlu1 %v1448_v26 }
 0x75d   :  { %v6160_v14 = vpop.f32.mrb[14].mxu1 }
 0x75e   :  { %v1649_v27 = vmul.f32 0.35355338, %v6160_v14  ;;  %v1639_v29 = vpop.f32.mrb[15].mxu1 }
 0x75f   :  { %v1648_v30 = vmul.f32 0.35355338, %v1639_v29 }
 0x760   :  { %v1651_v31 = vsel %vm7234_vm3, -1e+30, %v1649_v27 }
 0x761   :  { %v1655_v33 = vsel %vm301_vm4, %v1651_v31, -inf  ;;  %v1650_v35 = vsel %vm7238_vm5, -1e+30, %v1648_v30 }
 0x762   :  { %1656 = vmax.xlane.f32.xlu1 %v1655_v33  ;;  %v1652_v38 = vsel %vm301_vm4, %v1650_v35, -inf }
 0x763   :  { %1653 = vmax.xlane.f32.xlu0 %v1652_v38 }
 0x7e7   :  { %v1453_v41 = vpop.xlane.xlu0 %1452 }
 0x7e8   :  { %v1455_v42 = vsub.f32 %v1447_v24, %v1453_v41  ;;  %v1450_v43 = vpop.xlane.xlu1 %1449 }
 0x7e9   :  { %v1454_v44 = vsub.f32 %v1446_v12, %v1450_v43 }
 0x7ea   :  { %v1458_v45 = vmul.f32 1.442695, %v1455_v42 }
 0x7eb   :  { %v1456_v46 = vmul.f32 1.442695, %v1454_v44 }
 0x7ec   :  { %6879 = vpow2.f32 %v1458_v45 }
 0x7ed   :  { %6881 = vpow2.f32 %v1456_v46 }
 0x7ef   :  { %v1657_v47 = vpop.xlane.xlu1 %1656 }
 0x7f0   :  { %v1659_v48 = vsub.f32 %v1651_v31, %v1657_v47  ;;  %v1654_v49 = vpop.xlane.xlu0 %1653 }
 0x7f1   :  { %v1658_v15 = vsub.f32 %v1650_v35, %v1654_v49 }
 0x7f2   :  { %v1662_v50 = vmul.f32 1.442695, %v1659_v48 }
 0x7f3   :  { %v1660_v51 = vmul.f32 1.442695, %v1658_v15 }
 0x7f4   :  { %6883 = vpow2.f32 %v1662_v50 }
 0x7f5   :  { %6885 = vpow2.f32 %v1660_v51 }
 0x7f6   :  { %v6880_v53 = vpop.eup %6879 }
 0x7f7   :  { %v6882_v56 = vpop.eup %6881  ;;  %v1463_v57 = vsel %vm301_vm4, %v6880_v53, 0.0 }
 0x7f8   :  { %1464 = vadd.xlane.f32.xlu1 %v1463_v57  ;;  %v1460_v58 = vsel %vm301_vm4, %v6882_v56, 0.0 }
 0x7f9   :  { %1461 = vadd.xlane.f32.xlu0 %v1460_v58 }
 0x7fe   :  { %v7416_v59 = vpop.eup %6883 }
 0x7ff   :  { %v6886_v60 = vpop.eup %6885  ;;  %v1667_v28 = vsel %vm301_vm4, %v7416_v59, 0.0 }
 0x800   :  { %1668 = vadd.xlane.f32.xlu1 %v1667_v28  ;;  %v1664_v61 = vsel %vm301_vm4, %v6886_v60, 0.0 }
 0x801   :  { %1665 = vadd.xlane.f32.xlu0 %v1664_v61 }
 0x811   :  { %6758 = vrot.lane.b32.xlu1 %v7332_v2, %s7016_s12  ;;  %s8054_s12 = sld [smem:[#allocation8_spill]] }
 0x815   :  { %6763 = vrot.lane.b32.xlu1 %v7332_v2, %s8021_s0 }
 0x817   :  { %6753 = vrot.lane.b32.xlu0 %v7332_v2, %s7013_s30  ;;  %s8053_s30 = sld [smem:[#allocation7_spill]] }
 0x819   :  { %2212 = vrot.lane.b32.xlu1 %v7326_v1, %s8025_s27 }
 0x81b   :  { %2210 = vrot.lane.b32.xlu0 %v7309_v52, %s8025_s27 }
 0x82c   :  { %v6134_v62 = vpop.f32.mrb[10].mxu0  ;;  %v6184_v63 = vpop.f32.mrb[16].mxu1 }
 0x82d   :  { %v1262_v0 = vpop.f32.mrb[11].mxu0  ;;  %v2005_v3 = vpop.f32.mrb[17].mxu1  ;;  %v2015_v10 = vmul.f32 0.35355338, %v6184_v63 }
 0x82e   :  { %6137 = vmatprep.mubr.msk.f32.mxu0 %vm206_vm1, %v1262_v0  ;;  %v2014_v4 = vmul.f32 0.35355338, %v2005_v3 }
 0x82f   :  { %6138 = vmatmul.mubr.msk.f32.vlgmr.msra.gmra.mrb[6].mxu0 %vm206_vm1, %v6134_v62  ;;  %v2017_v1 = vsel %vm7234_vm3, -1e+30, %v2015_v10 }
 0x830   :  { %v2016_v16 = vsel %vm7238_vm5, -1e+30, %v2014_v4  ;;  %v2021_v52 = vsel %vm301_vm4, %v2017_v1, -inf }
 0x831   :  { %v2018_v5 = vsel %vm301_vm4, %v2016_v16, -inf }
 0x83a   :  { %2019 = vmax.xlane.f32.xlu0 %v2018_v5 }
 0x83d   :  { %2022 = vmax.xlane.f32.xlu1 %v2021_v52 }
 0x84e   :  { %6768 = vrot.lane.b32.xlu1 %v7332_v2, %s7019_s4 }
 0x852   :  { %6773 = vrot.lane.b32.xlu1 %v7332_v2, %s7020_s5  ;;  %s8056_s5 = sld [smem:[#allocation10_spill]] }
 0x885   :  { %v1465_v8 = vpop.xlane.xlu1 %1464 }
 0x886   :  { %v1462_v6 = vpop.xlane.xlu0 %1461 }
 0x887   :  { %6887 = vrcp.f32 %v1462_v6 }
 0x888   :  { %6889 = vrcp.f32 %v1465_v8 }
 0x88d   :  { %v1669_v9 = vpop.xlane.xlu1 %1668 }
 0x88e   :  { %v1666_v11 = vpop.xlane.xlu0 %1665 }
 0x88f   :  { %6891 = vrcp.f32 %v1666_v11 }
 0x890   :  { %6893 = vrcp.f32 %v1669_v9 }
 0x891   :  { %v6888_v13 = vpop.eup %6887  ;;  %v6759_v17 = vpop.permute.xlu1 %6758 }
 0x892   :  { %v6754_v18 = vpop.permute.xlu0 %6753  ;;  %v1468_v19 = vmul.f32 %v6888_v13, %v6882_v56  ;;  %v6761_v20 = vunpack.i.h.bf16 %v6759_v17  ;;  %v6760_v22 = vunpack.i.l.bf16 %v6759_v17  ;;  %v6890_v12 = vpop.eup %6889 }
 0x893   :  { %v6756_v23 = vunpack.i.h.bf16 %v6754_v18  ;;  %v6755_v24 = vunpack.i.l.bf16 %v6754_v18  ;;  %v1469_v33 = vmul.f32 %v6890_v12, %v6880_v53  ;;  %v7462_v53 = vld [vmem:[%s8052_s28] ss:$0 sm:$0xff] }
 0x894   :  { %6151 = vmatprep.mubr.msk.f32.mxu0 %vm301_vm4, %v1468_v19  ;;  %v6510_v29 = vpack.c.bf16 %v6761_v20, %v6760_v22 }
 0x895   :  { %v6764_v25 = vpop.permute.xlu1 %6763  ;;  %v6500_v2 = vpack.c.bf16 %v6756_v23, %v6755_v24 }
 0x896   :  { %v6766_v26 = vunpack.i.h.bf16 %v6764_v25  ;;  %v6765_v14 = vunpack.i.l.bf16 %v6764_v25  ;;  %v2211_v27 = vpop.permute.xlu0 %2210 }
 0x897   :  { %6501 = vmatprep.subr.bf16.mxu0 %v6500_v2  ;;  %6201 = vmatprep.mubr.msk.f32.mxu1 %vm206_vm1, %v2211_v27 }
 0x898   :  { %v6524_v30 = vpack.c.bf16 %v6766_v26, %v6765_v14  ;;  %6503 = vmatpush3.bf16.msra.mxu0 %v6500_v2 }
 0x899   :  { %v6892_v31 = vpop.eup %6891  ;;  %6511 = vmatprep.subr.bf16.mxu0 %v6510_v29  ;;  %v2213_v42 = vpop.permute.xlu1 %2212 }
 0x89a   :  { %v6894_v35 = vpop.eup %6893  ;;  %6526 = vmatprep.subr.msk.bf16.mxu1 %vm7217_vm2, %v6524_v30  ;;  %v1672_v38 = vmul.f32 %v6892_v31, %v6886_v60 }
 0x89b   :  { %6152 = vmatmul.mubr.msk.f32.vlgmr.msra.gmra.mrb[12].mxu0 %vm301_vm4, %v1469_v33  ;;  %6529 = vmatpush3.bf16.xpose.msk.msra.mxu1 %vm7217_vm2, %v6524_v30  ;;  %v1673_v41 = vmul.f32 %v6894_v35, %v7416_v59 }
 0x89c   :  { %6513 = vmatpush3.bf16.msra.mxu0 %v6510_v29  ;;  %6165 = vmatprep.mubr.msk.f32.mxu0 %vm301_vm4, %v1672_v38 }
 0x89d   :  { %6168 = vmatprep.subr.mxu0 %v7278_v32 }
 0x89f   :  { %6166 = vmatmul.mubr.msk.f32.vlgmr.msra.gmra.mrb[14].mxu0 %vm301_vm4, %v1673_v41 }
 0x8a0   :  { %6169 = vmatpush3.msra.mxu0 %v7278_v32 }
 0x8a1   :  { %6173 = vmatprep.subr.mxu0 %v7290_v40 }
 0x8a2   :  { %6202 = vmatmul.mubr.msk.f32.vlgmr.msra.gmra.mrb[18].mxu1 %vm206_vm1, %v2213_v42 }
 0x8c7   :  { %v2020_v43 = vpop.xlane.xlu0 %2019 }
 0x8c8   :  { %v2024_v44 = vsub.f32 %v2016_v16, %v2020_v43 }
 0x8ca   :  { %v2026_v45 = vmul.f32 1.442695, %v2024_v44  ;;  %v2023_v46 = vpop.xlane.xlu1 %2022 }
 0x8cb   :  { %v2025_v47 = vsub.f32 %v2017_v1, %v2023_v46 }
 0x8cc   :  { %6895 = vpow2.f32 %v2026_v45 }
 0x8cd   :  { %v2028_v48 = vmul.f32 1.442695, %v2025_v47 }
 0x8ce   :  { %v6769_v62 = vpop.permute.xlu1 %6768 }
 0x8cf   :  { %6897 = vpow2.f32 %v2028_v48  ;;  %v6771_v4 = vunpack.i.h.bf16 %v6769_v62 }
 0x8d2   :  { %v6774_v9 = vpop.permute.xlu1 %6773 }
 0x8d3   :  { %v6775_v19 = vunpack.i.l.bf16 %v6774_v9 }
 0x8d6   :  { %v6896_v49 = vpop.eup %6895 }
 0x8d7   :  { %v2030_v15 = vsel %vm301_vm4, %v6896_v49, 0.0 }
 0x8d8   :  { %2031 = vadd.xlane.f32.xlu0 %v2030_v15 }
 0x8d9   :  { %v6898_v50 = vpop.eup %6897 }
 0x8da   :  { %v2033_v32 = vsel %vm301_vm4, %v6898_v50, 0.0 }
 0x8dc   :  { %2034 = vadd.xlane.f32.xlu0 %v2033_v32 }
 0x902   :  { %v6139_v51 = vpop.f32.mrb[6].mxu0 }
 0x903   :  { %v6662_v56 = vadd.f32 %v6139_v51, %v7314_v54  ;;  %v1344_v57 = vpop.f32.mrb[7].mxu0  ;;  %v6770_v54 = vunpack.i.l.bf16 %v6769_v62 }
 0x904   :  { %v6663_v58 = vadd.f32 %v1344_v57, %v7316_v55 }
 0x905   :  { %v2505_v59 = vadd.f32 %v6662_v56, %v7462_v53  ;;  %v6520_v16 = vpack.c.bf16 %v6771_v4, %v6770_v54 }
 0x906   :  { %v2504_v14 = vadd.f32 %v6663_v58, %v7462_v53 }
 0x907   :  { %v7468_v60 = vadd.f32 %v2505_v59, %v7175_v7  ;;  %v2587_v59 = vld [vmem:[%s8053_s30] sm:$0xff] }
 0x909   :  { %v2517_v28 = vsel %vm102_vm0, %v7468_v60, 0.0 }
 0x90a   :  { %2518 = vadd.xlane.f32.xlu1 %v2517_v28 }
 0x965   :  { %v2032_v61 = vpop.xlane.xlu0 %2031 }
 0x966   :  { %6899 = vrcp.f32 %v2032_v61  ;;  %v2589_v61 = vld [vmem:[%s8053_s30 + $0x10] sm:$0xff] }
 0x969   :  { %v2035_v0 = vpop.xlane.xlu0 %2034 }
 0x96a   :  { %6901 = vrcp.f32 %v2035_v0 }
 0x96e   :  { %v6153_v63 = vpop.f32.mrb[12].mxu0 }
 0x96f   :  { %v1548_v3 = vpop.f32.mrb[13].mxu0 }
 0x970   :  { %v6900_v6 = vpop.eup %6899 }
 0x971   :  { %v2038_v18 = vmul.f32 %v6900_v6, %v6896_v49 }
 0x972   :  { %v6167_v10 = vpop.f32.mrb[14].mxu0 }
 0x973   :  { %v1752_v55 = vpop.f32.mrb[15].mxu0 }
 0x974   :  { %6170 = vmatprep.mubr.msk.f32.mxu0 %vm206_vm1, %v1752_v55  ;;  %v6902_v17 = vpop.eup %6901 }
 0x975   :  { %6171 = vmatmul.mubr.msk.f32.vlgmr.msra.gmra.mrb[16].mxu0 %vm206_vm1, %v6167_v10  ;;  %v6203_v7 = vpop.f32.mrb[18].mxu1  ;;  %v2039_v37 = vmul.f32 %v6902_v17, %v6898_v50 }
 0x976   :  { %6174 = vmatpush3.msra.mxu0 %v7290_v40  ;;  %6175 = vmatprep.mubr.msk.f32.mxu0 %vm206_vm1, %v1548_v3  ;;  %v2292_v5 = vpop.f32.mrb[19].mxu1  ;;  %v2302_v1 = vmul.f32 0.35355338, %v6203_v7  ;;  %v6776_v40 = vunpack.i.h.bf16 %v6774_v9 }
 0x977   :  { %6521 = vmatprep.subr.bf16.mxu0 %v6520_v16  ;;  %v2301_v52 = vmul.f32 0.35355338, %v2292_v5 }
 0x978   :  { %v2304_v13 = vsel %vm7234_vm3, -1e+30, %v2302_v1  ;;  %v6530_v22 = vpack.c.bf16 %v6776_v40, %v6775_v19  ;;  %v2696_v40 = vld [vmem:[%s8056_s5 + $0x8] sm:$0xff]  ;;  %v2697_v19 = vld [vmem:[%s8056_s5 + $0x10] sm:$0xff] }
 0x979   :  { %v2303_v8 = vsel %vm7238_vm5, -1e+30, %v2301_v52  ;;  %v2308_v20 = vsel %vm301_vm4, %v2304_v13, -inf }
 0x97a   :  { %v2305_v11 = vsel %vm301_vm4, %v2303_v8, -inf }
 0x97b   :  { %2306 = vmax.xlane.f32.xlu0 %v2305_v11 }
 0x97d   :  { %6176 = vmatmul.mubr.msk.f32.vlgmr.msra.gmra.mrb[16].mxu0 %vm206_vm1, %v6153_v63 }
 0x97e   :  { %6523 = vmatpush3.bf16.msra.mxu0 %v6520_v16  ;;  %6189 = vmatprep.mubr.msk.f32.mxu0 %vm301_vm4, %v2038_v18  ;;  %v7518_v16 = vld [vmem:[%s8054_s12] ss:$0 sm:$0xff] }
 0x97f   :  { %2309 = vmax.xlane.f32.xlu0 %v2308_v20  ;;  %6192 = vmatprep.subr.mxu0 %v7357_v36  ;;  %v2695_v18 = vld [vmem:[%s8056_s5] sm:$0xff] }
 0x980   :  { %v6542_v20 = vpack.c.bf16 %v2696_v40, %v2695_v18 }
 0x981   :  { %6190 = vmatmul.mubr.msk.f32.vlgmr.msra.gmra.mrb[18].mxu0 %vm301_vm4, %v2039_v37  ;;  %v2698_v37 = vld [vmem:[%s8056_s5 + $0x18] sm:$0xff] }
 0x982   :  { %6193 = vmatpush3.msra.mxu0 %v7357_v36  ;;  %v7007_v36 = vld [vmem:[%s8043_s6] sm:$0xff] }
 0x983   :  { %6531 = vmatprep.subr.bf16.mxu0 %v6530_v22  ;;  %v2508_v31 = vadd.f32 %v7007_v36, %v2504_v14 }
 0x985   :  { %v2514_v33 = vsel %vm102_vm0, %v2508_v31, 0.0 }
 0x997   :  { %v2519_v42 = vpop.xlane.xlu1 %2518 }
 0x998   :  { %v2528_v44 = vmul.f32 0.03125, %v2519_v42 }
 0x99a   :  { %v2532_v48 = vsub.f32 %v7468_v60, %v2528_v44  ;;  %v2588_v60 = vld [vmem:[%s8053_s30 + $0x8] sm:$0xff] }
 0x99b   :  { %v6534_v28 = vpack.c.bf16 %v2588_v60, %v2587_v59 }
 0x99c   :  { %v2536_v56 = vmul.f32 %v2532_v48, %v2532_v48 }
 0x99d   :  { %6535 = vmatprep.subr.bf16.mxu1 %v6534_v28 }
 0x99e   :  { %v2542_v58 = vsel %vm102_vm0, %v2536_v56, 0.0  ;;  %6537 = vmatpush3.bf16.msra.mxu1 %v6534_v28 }
 0xa08   :  { %v2307_v34 = vpop.xlane.xlu0 %2306 }
 0xa09   :  { %v2311_v23 = vsub.f32 %v2303_v8, %v2307_v34  ;;  %v6546_v34 = vpack.c.bf16 %v2698_v37, %v2697_v19 }
 0xa0b   :  { %v2313_v24 = vmul.f32 1.442695, %v2311_v23  ;;  %v88_v23 = vld [vmem:[%s8057_s2 + $0x8] sm:$0xff] }
 0xa0c   :  { %v2310_v25 = vpop.xlane.xlu0 %2309 }
 0xa0d   :  { %6903 = vpow2.f32 %v2313_v24  ;;  %v2312_v2 = vsub.f32 %v2304_v13, %v2310_v25  ;;  %v89_v24 = vld [vmem:[%s8057_s2 + $0x10] sm:$0xff]  ;;  %v90_v25 = vld [vmem:[%s8057_s2 + $0x18] sm:$0xff] }
 0xa0f   :  { %v2315_v12 = vmul.f32 1.442695, %v2312_v2  ;;  %v7570_v2 = vld [vmem:[%s8058_s3] ss:$0 sm:$0xff]  ;;  %s8062_s3 = smov 80  }
 0xa11   :  { %6905 = vpow2.f32 %v2315_v12 }
 0xa17   :  { %v6904_v26 = vpop.eup %6903 }
 0xa18   :  { %v2317_v27 = vsel %vm301_vm4, %v6904_v26, 0.0 }
 0xa19   :  { %2318 = vadd.xlane.f32.xlu0 %v2317_v27 }
 0xa1b   :  { %v6906_v29 = vpop.eup %6905 }
 0xa1c   :  { %v2320_v30 = vsel %vm301_vm4, %v6906_v29, 0.0 }
 0xa1d   :  { %2321 = vadd.xlane.f32.xlu0 %v2320_v30 }
 0xa21   :  { %2515 = vadd.xlane.f32.xlu0 %v2514_v33 }
 0xa54   :  { %v6191_v35 = vpop.f32.mrb[18].mxu0 }
 0xa55   :  { %v2118_v38 = vpop.f32.mrb[19].mxu0 }
 0xa56   :  { %6194 = vmatprep.mubr.msk.f32.mxu0 %vm206_vm1, %v2118_v38  ;;  %v7009_v38 = vld [vmem:[%s8043_s6 + $0x18] sm:$0xff] }
 0xa57   :  { %6195 = vmatmul.mubr.msk.f32.vlgmr.msra.gmra.mrb[16].mxu0 %vm206_vm1, %v6191_v35 }
 0xa58   :  { %6533 = vmatpush3.bf16.msra.mxu0 %v6530_v22  ;;  %v87_v22 = vld [vmem:[%s8057_s2] sm:$0xff]  ;;  %s8063_s2 = smov 72  }
 0xa59   :  { %6211 = vmatprep.subr.mxu0 %v7410_v39 }
 0xaa6   :  { %v2319_v41 = vpop.xlane.xlu0 %2318 }
 0xaa7   :  { %6907 = vrcp.f32 %v2319_v41 }
 0xaaa   :  { %v2322_v43 = vpop.xlane.xlu0 %2321 }
 0xaab   :  { %6909 = vrcp.f32 %v2322_v43 }
 0xaae   :  { %v2516_v45 = vpop.xlane.xlu0 %2515 }
 0xaaf   :  { %v2527_v46 = vmul.f32 0.03125, %v2516_v45 }
 0xab1   :  { %v6908_v47 = vpop.eup %6907  ;;  %v2531_v49 = vsub.f32 %v2508_v31, %v2527_v46  ;;  %v7008_v31 = vld [vmem:[%s8043_s6 + $0x10] sm:$0xff]  ;;  %s8060_s6 = smov 112  }
 0xab2   :  { %v2325_v15 = vmul.f32 %v6908_v47, %v6904_v26 }
 0xab3   :  { %v2535_v50 = vmul.f32 %v2531_v49, %v2531_v49 }
 0xab4   :  { %6208 = vmatprep.mubr.msk.f32.mxu0 %vm301_vm4, %v2325_v15 }
 0xab5   :  { %v6910_v32 = vpop.eup %6909  ;;  %v2539_v51 = vsel %vm102_vm0, %v2535_v50, 0.0 }
 0xab6   :  { %2540 = vadd.xlane.f32.xlu0 %v2539_v51  ;;  %v2326_v57 = vmul.f32 %v6910_v32, %v6906_v29 }
 0xab8   :  { %6209 = vmatmul.mubr.msk.f32.vlgmr.msra.gmra.mrb[20].mxu0 %vm301_vm4, %v2326_v57 }
 0xab9   :  { %6212 = vmatpush3.msra.mxu0 %v7410_v39  ;;  %v2590_v39 = vld [vmem:[%s8053_s30 + $0x18] sm:$0xff]  ;;  %s8055_s30 = sld [smem:[#allocation9_spill]] }
 0xaba   :  { %2543 = vadd.xlane.f32.xlu0 %v2542_v58  ;;  %v6538_v62 = vpack.c.bf16 %v2590_v39, %v2589_v61  ;;  %6543 = vmatprep.subr.bf16.mxu0 %v6542_v20 }
 0xabc   :  { %6539 = vmatprep.subr.bf16.mxu1 %v6538_v62 }
 0xabd   :  { %6541 = vmatpush3.bf16.msra.mxu1 %v6538_v62 }
 0xabf   :  { %v7523_v5 = vld [vmem:[%s8055_s30] ss:$0 sm:$0xff] }
 0xb43   :  { %v2541_v63 = vpop.xlane.xlu0 %2540 }
 0xb44   :  { %v2551_v0 = vmul.f32 0.03125, %v2541_v63 }
 0xb46   :  { %v2555_v3 = vadd.f32 1e-05, %v2551_v0 }
 0xb47   :  { %v2544_v4 = vpop.xlane.xlu0 %2543 }
 0xb48   :  { %6911 = vrsqrt.f32 %v2555_v3  ;;  %v2552_v54 = vmul.f32 0.03125, %v2544_v4 }
 0xb4a   :  { %v2556_v10 = vadd.f32 1e-05, %v2552_v54 }
 0xb4c   :  { %6913 = vrsqrt.f32 %v2556_v10 }
 0xb52   :  { %v6912_v55 = vpop.eup %6911 }
 0xb53   :  { %v2563_v7 = vmul.f32 %v6912_v55, %v2531_v49 }
 0xb55   :  { %v2573_v1 = vmul.f32 %v7518_v16, %v2563_v7 }
 0xb56   :  { %v6914_v52 = vpop.eup %6913 }
 0xb57   :  { %v2564_v6 = vmul.f32 %v6914_v52, %v2532_v48  ;;  %v7527_v8 = vadd.f32 %v7523_v5, %v2573_v1 }
 0xb59   :  { %6224 = vmatprep.mubr.msk.f32.mxu1 %vm102_vm0, %v7527_v8  ;;  %v2574_v9 = vmul.f32 %v7518_v16, %v2564_v6 }
 0xb5b   :  { %v7533_v11 = vadd.f32 %v7523_v5, %v2574_v9 }
 0xb5d   :  { %6225 = vmatmul.mubr.msk.f32.vlgmr.msra.gmra.mrb[20].mxu1 %vm102_vm0, %v7533_v11 }
 0xb8b   :  { %v6210_v13 = vpop.f32.mrb[20].mxu0 }
 0xb8c   :  { %v2405_v17 = vpop.f32.mrb[21].mxu0 }
 0xb8d   :  { %6213 = vmatprep.mubr.msk.f32.mxu0 %vm206_vm1, %v2405_v17 }
 0xb8e   :  { %6214 = vmatmul.mubr.msk.f32.vlgmr.msra.gmra.mrb[16].mxu0 %vm206_vm1, %v6210_v13 }
 0xb8f   :  { %6238 = vmatprep.mubr.msk.f32.mxu0 %vm102_vm0, %v87_v22  ;;  %6545 = vmatpush3.bf16.msra.mxu0 %v6542_v20 }
 0xb90   :  { %6547 = vmatprep.subr.bf16.mxu0 %v6546_v34 }
 0xb93   :  { %6549 = vmatpush3.bf16.msra.mxu0 %v6546_v34 }
 0xb96   :  { %6239 = vmatmul.mubr.msk.f32.vlgmr.msra.gmra.mrb[22].mxu0 %vm102_vm0, %v88_v23 }
 0xb97   :  { %6241 = vmatprep.mubr.msk.f32.mxu0 %vm102_vm0, %v89_v24 }
 0xb9a   :  { %6242 = vmatmul.mubr.msk.f32.gmra.mrb[24].mxu0 %vm102_vm0, %v90_v25 }
 0xc30   :  { %v6226_v12 = vpop.f32.mrb[20].mxu1 }
 0xc31   :  { %v2676_v26 = vpop.f32.mrb[21].mxu1  ;;  %v7602_v61 = vadd.f32 %v6226_v12, %v7570_v2 }
 0xc32   :  { %v7573_v14 = vadd.f32 %v7570_v2, %v2676_v26 }
 0xc34   :  { %3002 = vrot.lane.b32.xlu1 %v7573_v14, %s7010_s1 }
 0xc61   :  { %v6215_v27 = vpop.f32.mrb[16].mxu0 }
 0xc62   :  { %v2486_v29 = vpop.f32.mrb[17].mxu0  ;;  %v2507_v30 = vadd.f32 %v6215_v27, %v7462_v53 }
 0xc63   :  { %v2506_v36 = vadd.f32 %v7462_v53, %v2486_v29  ;;  %v5731_v53 = vld [vmem:[%s7999_s9] ss:$0 sm:$0xff]  ;;  %s8059_s9 = smov 88  }
 0xc64   :  { %v2511_v41 = vadd.f32 %v7009_v38, %v2507_v30 }
 0xc65   :  { %v2510_v33 = vadd.f32 %v7008_v31, %v2506_v36 }
 0xc66   :  { %v2523_v42 = vsel %vm102_vm0, %v2511_v41, 0.0 }
 0xc67   :  { %v2520_v35 = vsel %vm102_vm0, %v2510_v33, 0.0 }
 0xc68   :  { %2521 = vadd.xlane.f32.xlu0 %v2520_v35 }
 0xc69   :  { %v6240_v43 = vpop.f32.mrb[22].mxu0 }
 0xc6a   :  { %v2790_v44 = vadd.f32 %v6240_v43, %v5731_v53  ;;  %v2784_v45 = vpop.f32.mrb[23].mxu0 }
 0xc6b   :  { %v2785_v46 = vadd.f32 %v5731_v53, %v2784_v45 }
 0xc6c   :  { %2524 = vadd.xlane.f32.xlu0 %v2523_v42 }
 0xc6d   :  { %v7590_v47 = vpack.i.bf16 %v2790_v44, %v2785_v46  ;;  %v6550_v48 = vpack.c.bf16 %v2790_v44, %v2785_v46  ;;  %v6243_v39 = vpop.f32.mrb[24].mxu0 }
 0xc6e   :  { %v2794_v62 = vpop.f32.mrb[25].mxu0  ;;  %v2800_v22 = vadd.f32 %v6243_v39, %v5731_v53 }
 0xc6f   :  { %6552 = vmatprep.subr.msk.bf16.mxu1 %vm7217_vm2, %v6550_v48  ;;  %v2795_v34 = vadd.f32 %v5731_v53, %v2794_v62 }
 0xc70   :  { %6555 = vmatpush3.bf16.xpose.msk.msra.mxu1 %vm7217_vm2, %v6550_v48 }
 0xc71   :  { %v7627_v23 = vpack.c.bf16 %v2800_v22, %v2795_v34  ;;  %v7629_v24 = vpack.i.bf16 %v2800_v22, %v2795_v34 }
 0xca6   :  { %v3003_v49 = vpop.permute.xlu1 %3002 }
 0xca7   :  { %6262 = vmatprep.mubr.msk.f32.mxu0 %vm206_vm1, %v3003_v49 }
 0xcf5   :  { %v2522_v15 = vpop.xlane.xlu0 %2521 }
 0xcf6   :  { %v2529_v50 = vmul.f32 0.03125, %v2522_v15 }
 0xcf8   :  { %v2533_v32 = vsub.f32 %v2510_v33, %v2529_v50 }
 0xcf9   :  { %v2525_v51 = vpop.xlane.xlu0 %2524 }
 0xcfa   :  { %v2530_v56 = vmul.f32 0.03125, %v2525_v51  ;;  %v2537_v57 = vmul.f32 %v2533_v32, %v2533_v32 }
 0xcfc   :  { %v2534_v58 = vsub.f32 %v2511_v41, %v2530_v56  ;;  %v2545_v59 = vsel %vm102_vm0, %v2537_v57, 0.0 }
 0xcfd   :  { %2546 = vadd.xlane.f32.xlu0 %v2545_v59 }
 0xcfe   :  { %v2538_v60 = vmul.f32 %v2534_v58, %v2534_v58 }
 0xd00   :  { %v2548_v28 = vsel %vm102_vm0, %v2538_v60, 0.0 }
 0xd01   :  { %2549 = vadd.xlane.f32.xlu0 %v2548_v28 }
 0xd17   :  { %6778 = vrot.lane.b32.xlu0 %v7590_v47, %s7010_s1 }
 0xd1b   :  { %3004 = vrot.lane.b32.xlu0 %v7602_v61, %s7010_s1 }
 0xd8a   :  { %v2547_v63 = vpop.xlane.xlu0 %2546 }
 0xd8b   :  { %v2553_v0 = vmul.f32 0.03125, %v2547_v63 }
 0xd8d   :  { %v2557_v3 = vadd.f32 1e-05, %v2553_v0 }
 0xd8e   :  { %v2550_v4 = vpop.xlane.xlu0 %2549 }
 0xd8f   :  { %6915 = vrsqrt.f32 %v2557_v3  ;;  %v2554_v54 = vmul.f32 0.03125, %v2550_v4 }
 0xd91   :  { %v2558_v10 = vadd.f32 1e-05, %v2554_v54 }
 0xd92   :  { %v6779_v55 = vpop.permute.xlu0 %6778 }
 0xd93   :  { %6917 = vrsqrt.f32 %v2558_v10  ;;  %v6781_v7 = vunpack.i.h.bf16 %v6779_v55  ;;  %v6780_v1 = vunpack.i.l.bf16 %v6779_v55 }
 0xd95   :  { %v6560_v52 = vpack.c.bf16 %v6781_v7, %v6780_v1 }
 0xd96   :  { %v3005_v18 = vpop.permute.xlu0 %3004 }
 0xd97   :  { %6562 = vmatprep.subr.msk.bf16.mxu0 %vm7217_vm2, %v6560_v52 }
 0xd98   :  { %6565 = vmatpush3.bf16.xpose.msk.msra.mxu0 %vm7217_vm2, %v6560_v52 }
 0xd99   :  { %v6916_v6 = vpop.eup %6915 }
 0xd9a   :  { %v2565_v9 = vmul.f32 %v6916_v6, %v2533_v32 }
 0xd9c   :  { %v2575_v13 = vmul.f32 %v7518_v16, %v2565_v9 }
 0xd9d   :  { %v6918_v17 = vpop.eup %6917 }
 0xd9e   :  { %v7612_v40 = vadd.f32 %v7523_v5, %v2575_v13  ;;  %v2566_v19 = vmul.f32 %v6918_v17, %v2534_v58 }
 0xd9f   :  { %6263 = vmatmul.mubr.msk.f32.vlgmr.msra.gmra.mrb[26].mxu0 %vm206_vm1, %v3005_v18 }
 0xda0   :  { %6227 = vmatprep.mubr.msk.f32.mxu1 %vm102_vm0, %v7612_v40  ;;  %v2576_v20 = vmul.f32 %v7518_v16, %v2566_v19 }
 0xda2   :  { %v7619_v37 = vadd.f32 %v7523_v5, %v2576_v20 }
 0xda4   :  { %6228 = vmatmul.mubr.msk.f32.gmra.mrb[22].mxu1 %vm102_vm0, %v7619_v37 }
 0xda5   :  { %6248 = vmatprep.mubr.msk.f32.mxu1 %vm206_vm1, %v7573_v14 }
 0xda8   :  { %6249 = vmatmul.mubr.msk.f32.vlgmr.msra.gmra.mrb[24].mxu1 %vm206_vm1, %v7602_v61 }
 0xe72   :  { %v6264_v25 = vpop.f32.mrb[26].mxu0 }
 0xe73   :  { %v3084_v16 = vpop.f32.mrb[27].mxu0  ;;  %v3094_v35 = vmul.f32 0.35355338, %v6264_v25 }
 0xe74   :  { %v3093_v31 = vmul.f32 0.35355338, %v3084_v16 }
 0xe75   :  { %v3098_v41 = vsel %vm301_vm4, %v3094_v35, -inf }
 0xe76   :  { %v3095_v38 = vsel %vm301_vm4, %v3093_v31, -inf }
 0xe77   :  { %v7631_v12 = vpop.f32.mrb[22].mxu1 }
 0xe78   :  { %v7633_v5 = vpop.f32.mrb[23].mxu1 }
 0xe7b   :  { %v6250_v26 = vpop.f32.mrb[24].mxu1 }
 0xe7c   :  { %v2891_v27 = vmul.f32 0.35355338, %v6250_v26  ;;  %v2881_v29 = vpop.f32.mrb[25].mxu1 }
 0xe7d   :  { %v2890_v30 = vmul.f32 0.35355338, %v2881_v29 }
 0xe7e   :  { %v2895_v36 = vsel %vm301_vm4, %v2891_v27, -inf }
 0xe7f   :  { %2896 = vmax.xlane.f32.xlu1 %v2895_v36  ;;  %v2892_v33 = vsel %vm301_vm4, %v2890_v30, -inf }
 0xe80   :  { %2893 = vmax.xlane.f32.xlu0 %v2892_v33 }
 0xe84   :  { %3096 = vmax.xlane.f32.xlu0 %v3095_v38  ;;  %v7679_v38 = vadd.f32 %v7570_v2, %v7633_v5  ;;  %v7696_v5 = vld [vmem:[%s8000_s10 + $0x8] sm:$0xff] }
 0xe85   :  { %6272 = vmatprep.subr.mxu0 %v7696_v5 }
 0xe86   :  { %6273 = vmatpush3.msra.mxu0 %v7696_v5 }
 0xe88   :  { %3099 = vmax.xlane.f32.xlu0 %v3098_v41 }
 0xf0c   :  { %v2897_v53 = vpop.xlane.xlu1 %2896 }
 0xf0d   :  { %v2894_v42 = vpop.xlane.xlu0 %2893  ;;  %v2899_v45 = vsub.f32 %v2891_v27, %v2897_v53 }
 0xf0e   :  { %v2898_v60 = vsub.f32 %v2890_v30, %v2894_v42  ;;  %v7689_v42 = vadd.f32 %v7631_v12, %v7570_v2 }
 0xf0f   :  { %v2902_v15 = vmul.f32 1.442695, %v2899_v45 }
 0xf10   :  { %v2900_v28 = vmul.f32 1.442695, %v2898_v60 }
 0xf11   :  { %v3097_v43 = vpop.xlane.xlu0 %3096 }
 0xf12   :  { %v3101_v44 = vsub.f32 %v3093_v31, %v3097_v43 }
 0xf14   :  { %v3103_v46 = vmul.f32 1.442695, %v3101_v44 }
 0xf15   :  { %v3100_v48 = vpop.xlane.xlu0 %3099 }
 0xf16   :  { %6919 = vpow2.f32 %v3103_v46  ;;  %v3102_v49 = vsub.f32 %v3094_v35, %v3100_v48 }
 0xf18   :  { %v3105_v50 = vmul.f32 1.442695, %v3102_v49 }
 0xf1a   :  { %6921 = vpow2.f32 %v3105_v50 }
 0xf1b   :  { %6923 = vpow2.f32 %v2902_v15 }
 0xf1c   :  { %6925 = vpow2.f32 %v2900_v28 }
 0xf20   :  { %v6920_v32 = vpop.eup %6919 }
 0xf21   :  { %v3107_v51 = vsel %vm301_vm4, %v6920_v32, 0.0 }
 0xf22   :  { %3108 = vadd.xlane.f32.xlu1 %v3107_v51 }
 0xf24   :  { %v6922_v56 = vpop.eup %6921 }
 0xf25   :  { %v3110_v57 = vsel %vm301_vm4, %v6922_v56, 0.0  ;;  %v6924_v58 = vpop.eup %6923 }
 0xf26   :  { %3111 = vadd.xlane.f32.xlu0 %v3110_v57  ;;  %v2907_v59 = vsel %vm301_vm4, %v6924_v58, 0.0  ;;  %v6926_v39 = vpop.eup %6925 }
 0xf27   :  { %v2904_v62 = vsel %vm301_vm4, %v6926_v39, 0.0 }
 0xf2a   :  { %2908 = vadd.xlane.f32.xlu0 %v2907_v59 }
 0xf33   :  { %6783 = vrot.lane.b32.xlu1 %v7590_v47, %s7011_s29 }
 0xf40   :  { %6788 = vrot.lane.b32.xlu0 %v7590_v47, %s8059_s9 }
 0xf44   :  { %3369 = vrot.lane.b32.xlu0 %v7602_v61, %s8060_s6 }
 0xf48   :  { %3653 = vrot.lane.b32.xlu0 %v7573_v14, %s8061_s8 }
 0xf57   :  { %2905 = vadd.xlane.f32.xlu1 %v2904_v62 }
 0xf68   :  { %6793 = vrot.lane.b32.xlu1 %v7590_v47, %s8060_s6 }
 0xf6c   :  { %3367 = vrot.lane.b32.xlu1 %v7573_v14, %s8060_s6 }
 0xf70   :  { %6798 = vrot.lane.b32.xlu1 %v7590_v47, %s8061_s8 }
 0xf74   :  { %3655 = vrot.lane.b32.xlu1 %v7602_v61, %s8061_s8 }
 0xfaf   :  { %v3109_v63 = vpop.xlane.xlu1 %3108 }
 0xfb0   :  { %6927 = vrcp.f32 %v3109_v63 }
 0xfb3   :  { %v6784_v0 = vpop.permute.xlu1 %6783  ;;  %v3112_v3 = vpop.xlane.xlu0 %3111 }
 0xfb4   :  { %v6786_v4 = vunpack.i.h.bf16 %v6784_v0  ;;  %v6785_v54 = vunpack.i.l.bf16 %v6784_v0 }
 0xfb6   :  { %v6556_v10 = vpack.c.bf16 %v6786_v4, %v6785_v54 }
 0xfb7   :  { %v2909_v55 = vpop.xlane.xlu0 %2908 }
 0xfb8   :  { %6557 = vmatprep.subr.bf16.mxu1 %v6556_v10  ;;  %6929 = vrcp.f32 %v2909_v55 }
 0xfb9   :  { %6559 = vmatpush3.bf16.msra.mxu1 %v6556_v10 }
 0xfba   :  { %v6928_v9 = vpop.eup %6927 }
 0xfbb   :  { %v6789_v7 = vpop.permute.xlu0 %6788  ;;  %v3115_v16 = vmul.f32 %v6928_v9, %v6920_v32 }
 0xfbc   :  { %v6791_v1 = vunpack.i.h.bf16 %v6789_v7  ;;  %v6790_v52 = vunpack.i.l.bf16 %v6789_v7 }
 0xfbe   :  { %v6566_v6 = vpack.c.bf16 %v6791_v1, %v6790_v52 }
 0xfbf   :  { %v3370_v33 = vpop.permute.xlu0 %3369 }
 0xfc0   :  { %6567 = vmatprep.subr.bf16.mxu1 %v6566_v6 }
 0xfc2   :  { %v6930_v13 = vpop.eup %6929 }
 0xfc3   :  { %v2913_v34 = vmul.f32 %v6930_v13, %v6924_v58  ;;  %v3654_v35 = vpop.permute.xlu0 %3653 }
 0xfe4   :  { %v2906_v14 = vpop.xlane.xlu1 %2905 }
 0xfe5   :  { %6931 = vrcp.f32 %v2906_v14  ;;  %v7743_v14 = vld [vmem:[%s8000_s10 + $0x10] sm:$0xff] }
 0xfe6   :  { %6933 = vrcp.f32 %v3112_v3 }
 0xfe8   :  { %v6794_v61 = vpop.permute.xlu1 %6793 }
 0xfe9   :  { %v6796_v18 = vunpack.i.h.bf16 %v6794_v61  ;;  %v6795_v19 = vunpack.i.l.bf16 %v6794_v61 }
 0xfeb   :  { %v6570_v26 = vpack.c.bf16 %v6796_v18, %v6795_v19 }
 0xfec   :  { %v3368_v20 = vpop.permute.xlu1 %3367 }
 0xfef   :  { %v6932_v17 = vpop.eup %6931 }
 0xff0   :  { %v2912_v22 = vmul.f32 %v6932_v17, %v6926_v39  ;;  %v6934_v25 = vpop.eup %6933  ;;  %v6799_v29 = vpop.permute.xlu1 %6798 }
 0xff1   :  { %v3116_v27 = vmul.f32 %v6934_v25, %v6922_v56  ;;  %v6801_v30 = vunpack.i.h.bf16 %v6799_v29  ;;  %v6800_v36 = vunpack.i.l.bf16 %v6799_v29 }
 0xff2   :  { %6255 = vmatprep.mubr.msk.f32.mxu1 %vm301_vm4, %v2912_v22 }
 0xff3   :  { %6256 = vmatmul.mubr.msk.f32.vlgmr.msra.gmra.mrb[26].mxu1 %vm301_vm4, %v2913_v34  ;;  %v6580_v31 = vpack.c.bf16 %v6801_v30, %v6800_v36 }
 0xff4   :  { %6569 = vmatpush3.bf16.msra.mxu1 %v6566_v6  ;;  %6269 = vmatprep.mubr.msk.f32.mxu1 %vm301_vm4, %v3115_v16  ;;  %v3656_v41 = vpop.permute.xlu1 %3655 }
 0xff5   :  { %6572 = vmatprep.subr.msk.bf16.mxu1 %vm7217_vm2, %v6570_v26 }
 0xff7   :  { %6270 = vmatmul.mubr.msk.f32.vlgmr.msra.gmra.mrb[28].mxu1 %vm301_vm4, %v3116_v27 }
 0xff8   :  { %6286 = vmatprep.mubr.msk.f32.mxu1 %vm206_vm1, %v3368_v20 }
 0xffd   :  { %6575 = vmatpush3.bf16.xpose.msk.msra.mxu1 %vm7217_vm2, %v6570_v26 }
 0xffe   :  { %6582 = vmatprep.subr.msk.bf16.mxu1 %vm7217_vm2, %v6580_v31 }
0x1004   :  { %6287 = vmatmul.mubr.msk.f32.vlgmr.msra.gmra.mrb[30].mxu1 %vm206_vm1, %v3370_v33 }
0x1005   :  { %6585 = vmatpush3.bf16.xpose.msk.msra.mxu1 %vm7217_vm2, %v6580_v31  ;;  %6305 = vmatprep.mubr.msk.f32.mxu1 %vm206_vm1, %v3654_v35 }
0x1006   :  { %6592 = vmatprep.subr.msk.bf16.mxu1 %vm7217_vm2, %v7627_v23 }
0x100c   :  { %6306 = vmatmul.mubr.msk.f32.vlgmr.msra.gmra.mrb[32].mxu1 %vm206_vm1, %v3656_v41 }
0x100d   :  { %6595 = vmatpush3.bf16.xpose.msk.msra.mxu1 %vm7217_vm2, %v7627_v23  ;;  %6324 = vmatprep.mubr.msk.f32.mxu1 %vm206_vm1, %v7679_v38  ;;  %v7703_v23 = vld [vmem:[%s8000_s10] sm:$0xff] }
0x100e   :  { %6277 = vmatprep.subr.mxu0 %v7703_v23 }
0x1014   :  { %6325 = vmatmul.mubr.msk.f32.vlgmr.msra.gmra.mrb[34].mxu1 %vm206_vm1, %v7689_v42 }
0x10c6   :  { %v6257_v2 = vpop.f32.mrb[26].mxu1 }
0x10c7   :  { %v2992_v12 = vpop.f32.mrb[27].mxu1 }
0x10ca   :  { %v6271_v53 = vpop.f32.mrb[28].mxu1 }
0x10cb   :  { %v3195_v43 = vpop.f32.mrb[29].mxu1 }
0x10cc   :  { %6274 = vmatprep.mubr.msk.f32.mxu0 %vm206_vm1, %v3195_v43 }
0x10cd   :  { %6275 = vmatmul.mubr.msk.f32.vlgmr.msra.gmra.mrb[28].mxu0 %vm206_vm1, %v6271_v53 }
0x10ce   :  { %6279 = vmatprep.mubr.msk.f32.mxu0 %vm206_vm1, %v2992_v12  ;;  %6278 = vmatpush3.msra.mxu0 %v7703_v23 }
0x10d5   :  { %6280 = vmatmul.mubr.msk.f32.vlgmr.msra.gmra.mrb[28].mxu0 %vm206_vm1, %v6257_v2 }
0x10d7   :  { %v6288_v44 = vpop.f32.mrb[30].mxu1 }
0x10d8   :  { %v3459_v45 = vmul.f32 0.35355338, %v6288_v44  ;;  %v3449_v46 = vpop.f32.mrb[31].mxu1 }
0x10d9   :  { %v3458_v48 = vmul.f32 0.35355338, %v3449_v46 }
0x10da   :  { %v3463_v49 = vsel %vm301_vm4, %v3459_v45, -inf }
0x10db   :  { %3464 = vmax.xlane.f32.xlu1 %v3463_v49  ;;  %v3460_v15 = vsel %vm301_vm4, %v3458_v48, -inf }
0x10dc   :  { %3461 = vmax.xlane.f32.xlu0 %v3460_v15 }
0x10df   :  { %v6307_v50 = vpop.f32.mrb[32].mxu1 }
0x10e0   :  { %v3735_v32 = vpop.f32.mrb[33].mxu1  ;;  %v7721_v57 = vmul.f32 0.35355338, %v6307_v50 }
0x10e1   :  { %v3744_v61 = vmul.f32 0.35355338, %v3735_v32 }
0x10e2   :  { %v3749_v58 = vsel %vm301_vm4, %v7721_v57, -inf }
0x10e3   :  { %v3746_v9 = vsel %vm301_vm4, %v3744_v61, -inf }
0x10e7   :  { %v6326_v51 = vpop.f32.mrb[34].mxu1 }
0x10e8   :  { %v7713_v56 = vpop.f32.mrb[35].mxu1  ;;  %v7731_v59 = vmul.f32 0.35355338, %v6326_v51 }
0x10e9   :  { %v4026_v49 = vmul.f32 0.35355338, %v7713_v56 }
0x10ea   :  { %v4031_v60 = vsel %vm301_vm4, %v7731_v59, -inf }
0x10eb   :  { %v4028_v15 = vsel %vm301_vm4, %v4026_v49, -inf }
0x10ec   :  { %6803 = vrot.lane.b32.xlu1 %v7590_v47, %s8062_s3 }
0x10f0   :  { %4137 = vrot.lane.b32.xlu1 %v7679_v38, %s7010_s1 }
0x10f4   :  { %4139 = vrot.lane.b32.xlu1 %v7689_v42, %s7010_s1 }
0x1118   :  { %3750 = vmax.xlane.f32.xlu1 %v3749_v58 }
0x1129   :  { %6813 = vrot.lane.b32.xlu1 %v7590_v47, %s8063_s2 }
0x112d   :  { %4501 = vrot.lane.b32.xlu1 %v7679_v38, %s8060_s6 }
0x1131   :  { %4503 = vrot.lane.b32.xlu1 %v7689_v42, %s8060_s6 }
0x1155   :  { %4032 = vmax.xlane.f32.xlu1 %v4031_v60 }
0x1168   :  { %v3465_v28 = vpop.xlane.xlu1 %3464 }
0x1169   :  { %v3467_v39 = vsub.f32 %v3459_v45, %v3465_v28  ;;  %v3462_v62 = vpop.xlane.xlu0 %3461 }
0x116a   :  { %v3466_v63 = vsub.f32 %v3458_v48, %v3462_v62 }
0x116b   :  { %v3470_v0 = vmul.f32 1.442695, %v3467_v39 }
0x116c   :  { %v3468_v3 = vmul.f32 1.442695, %v3466_v63  ;;  %v6804_v4 = vpop.permute.xlu1 %6803 }
0x116d   :  { %v6806_v47 = vunpack.i.h.bf16 %v6804_v4  ;;  %v6805_v54 = vunpack.i.l.bf16 %v6804_v4 }
0x116e   :  { %6935 = vpow2.f32 %v3468_v3 }
0x116f   :  { %v6576_v10 = vpack.c.bf16 %v6806_v47, %v6805_v54  ;;  %6937 = vpow2.f32 %v3470_v0 }
0x1170   :  { %v4138_v55 = vpop.permute.xlu1 %4137 }
0x1171   :  { %6577 = vmatprep.subr.bf16.mxu0 %v6576_v10  ;;  %6338 = vmatprep.mubr.msk.f32.mxu1 %vm206_vm1, %v4138_v55 }
0x1172   :  { %6579 = vmatpush3.bf16.msra.mxu0 %v6576_v10 }
0x1173   :  { %6296 = vmatprep.subr.mxu0 %v7743_v14 }
0x1174   :  { %v4140_v17 = vpop.permute.xlu1 %4139 }
0x1178   :  { %v6936_v7 = vpop.eup %6935 }
0x1179   :  { %v3472_v1 = vsel %vm301_vm4, %v6936_v7, 0.0  ;;  %v6938_v52 = vpop.eup %6937 }
0x117a   :  { %3473 = vadd.xlane.f32.xlu0 %v3472_v1  ;;  %v3475_v6 = vsel %vm301_vm4, %v6938_v52, 0.0 }
0x117e   :  { %3476 = vadd.xlane.f32.xlu0 %v3475_v6 }
0x1194   :  { %6808 = vrot.lane.b32.xlu0 %v7629_v24, %s7010_s1 }
0x11a5   :  { %v3751_v19 = vpop.xlane.xlu1 %3750 }
0x11a6   :  { %v3753_v41 = vsub.f32 %v7721_v57, %v3751_v19 }
0x11a8   :  { %v3756_v53 = vmul.f32 1.442695, %v3753_v41 }
0x11a9   :  { %v6814_v16 = vpop.permute.xlu1 %6813 }
0x11aa   :  { %v6816_v29 = vunpack.i.h.bf16 %v6814_v16  ;;  %v6815_v30 = vunpack.i.l.bf16 %v6814_v16 }
0x11ac   :  { %v6586_v33 = vpack.c.bf16 %v6816_v29, %v6815_v30 }
0x11ad   :  { %v4502_v35 = vpop.permute.xlu1 %4501 }
0x11b1   :  { %v4504_v32 = vpop.permute.xlu1 %4503 }
0x11b3   :  { %3747 = vmax.xlane.f32.xlu0 %v3746_v9 }
0x11e2   :  { %v4033_v57 = vpop.xlane.xlu1 %4032 }
0x11e3   :  { %v4035_v58 = vsub.f32 %v7731_v59, %v4033_v57 }
0x11e5   :  { %v4038_v63 = vmul.f32 1.442695, %v4035_v58 }
0x1207   :  { %v3474_v13 = vpop.xlane.xlu0 %3473 }
0x1208   :  { %6939 = vrcp.f32 %v3474_v13 }
0x120b   :  { %v3477_v18 = vpop.xlane.xlu0 %3476 }
0x120c   :  { %6941 = vrcp.f32 %v3477_v18 }
0x120f   :  { %v6809_v20 = vpop.permute.xlu0 %6808 }
0x1210   :  { %v6811_v22 = vunpack.i.h.bf16 %v6809_v20  ;;  %v6810_v34 = vunpack.i.l.bf16 %v6809_v20  ;;  %v7783_v20 = vld [vmem:[%s8000_s10 + $0x18] sm:$0xff] }
0x1212   :  { %v6940_v25 = vpop.eup %6939  ;;  %v6600_v26 = vpack.c.bf16 %v6811_v22, %v6810_v34 }
0x1213   :  { %v3480_v27 = vmul.f32 %v6940_v25, %v6936_v7 }
0x1214   :  { %6602 = vmatprep.subr.msk.bf16.mxu1 %vm7217_vm2, %v6600_v26 }
0x1215   :  { %6293 = vmatprep.mubr.msk.f32.mxu0 %vm301_vm4, %v3480_v27  ;;  %6605 = vmatpush3.bf16.xpose.msk.msra.mxu1 %vm7217_vm2, %v6600_v26 }
0x1216   :  { %v6942_v36 = vpop.eup %6941 }
0x1217   :  { %v3481_v31 = vmul.f32 %v6942_v36, %v6938_v52 }
0x1219   :  { %6294 = vmatmul.mubr.msk.f32.vlgmr.msra.gmra.mrb[30].mxu0 %vm301_vm4, %v3481_v31 }
0x121a   :  { %6297 = vmatpush3.msra.mxu0 %v7743_v14 }
0x121b   :  { %6587 = vmatprep.subr.bf16.mxu0 %v6586_v33 }
0x121c   :  { %6339 = vmatmul.mubr.msk.f32.vlgmr.msra.gmra.mrb[36].mxu1 %vm206_vm1, %v4140_v17 }
0x121d   :  { %6362 = vmatprep.mubr.msk.f32.mxu1 %vm206_vm1, %v4502_v35 }
0x1240   :  { %v3748_v2 = vpop.xlane.xlu0 %3747 }
0x1241   :  { %v3752_v12 = vsub.f32 %v3744_v61, %v3748_v2 }
0x1243   :  { %v3754_v43 = vmul.f32 1.442695, %v3752_v12 }
0x1245   :  { %6943 = vpow2.f32 %v3754_v43 }
0x1246   :  { %6945 = vpow2.f32 %v3756_v53 }
0x124f   :  { %v6944_v44 = vpop.eup %6943 }
0x1250   :  { %v3758_v45 = vsel %vm301_vm4, %v6944_v44, 0.0  ;;  %v6946_v46 = vpop.eup %6945 }
0x1251   :  { %3759 = vadd.xlane.f32.xlu0 %v3758_v45  ;;  %v3761_v48 = vsel %vm301_vm4, %v6946_v46, 0.0 }
0x1255   :  { %3762 = vadd.xlane.f32.xlu0 %v3761_v48 }
0x126b   :  { %6818 = vrot.lane.b32.xlu0 %v7629_v24, %s8060_s6 }
0x128a   :  { %4029 = vmax.xlane.f32.xlu0 %v4028_v15 }
0x12de   :  { %v3760_v50 = vpop.xlane.xlu0 %3759 }
0x12df   :  { %6947 = vrcp.f32 %v3760_v50 }
0x12e2   :  { %v3763_v51 = vpop.xlane.xlu0 %3762 }
0x12e3   :  { %6949 = vrcp.f32 %v3763_v51 }
0x12e4   :  { %6951 = vpow2.f32 %v4038_v63 }
0x12e6   :  { %v6819_v60 = vpop.permute.xlu0 %6818 }
0x12e7   :  { %v6821_v28 = vunpack.i.h.bf16 %v6819_v60  ;;  %v6820_v39 = vunpack.i.l.bf16 %v6819_v60 }
0x12e9   :  { %v6610_v62 = vpack.c.bf16 %v6821_v28, %v6820_v39  ;;  %v6948_v0 = vpop.eup %6947 }
0x12ea   :  { %v3766_v47 = vmul.f32 %v6948_v0, %v6944_v44 }
0x12eb   :  { %6612 = vmatprep.subr.msk.bf16.mxu1 %vm7217_vm2, %v6610_v62 }
0x12ec   :  { %v6295_v56 = vpop.f32.mrb[30].mxu0  ;;  %6615 = vmatpush3.bf16.xpose.msk.msra.mxu1 %vm7217_vm2, %v6610_v62 }
0x12ed   :  { %v3560_v3 = vpop.f32.mrb[31].mxu0  ;;  %v6950_v4 = vpop.eup %6949 }
0x12ee   :  { %6298 = vmatprep.mubr.msk.f32.mxu0 %vm206_vm1, %v3560_v3  ;;  %v3767_v10 = vmul.f32 %v6950_v4, %v6946_v46  ;;  %v7775_v6 = vpop.eup %6951 }
0x12ef   :  { %6299 = vmatmul.mubr.msk.f32.vlgmr.msra.gmra.mrb[28].mxu0 %vm206_vm1, %v6295_v56  ;;  %v6340_v59 = vpop.f32.mrb[36].mxu1  ;;  %v4043_v61 = vsel %vm301_vm4, %v7775_v6, 0.0 }
0x12f0   :  { %6589 = vmatpush3.bf16.msra.mxu0 %v6586_v33  ;;  %6312 = vmatprep.mubr.msk.f32.mxu0 %vm301_vm4, %v3766_v47  ;;  %v4219_v54 = vpop.f32.mrb[37].mxu1  ;;  %v4229_v7 = vmul.f32 0.35355338, %v6340_v59 }
0x12f1   :  { %v4228_v55 = vmul.f32 0.35355338, %v4219_v54  ;;  %6315 = vmatprep.subr.mxu0 %v7783_v20 }
0x12f2   :  { %v4233_v52 = vsel %vm301_vm4, %v4229_v7, -inf }
0x12f3   :  { %6313 = vmatmul.mubr.msk.f32.vlgmr.msra.gmra.mrb[32].mxu0 %vm301_vm4, %v3767_v10  ;;  %6363 = vmatmul.mubr.msk.f32.vlgmr.msra.gmra.mrb[38].mxu1 %vm206_vm1, %v4504_v32  ;;  %v4230_v1 = vsel %vm301_vm4, %v4228_v55, -inf }
0x12f4   :  { %4231 = vmax.xlane.f32.xlu0 %v4230_v1  ;;  %6316 = vmatpush3.msra.mxu0 %v7783_v20 }
0x12f8   :  { %4234 = vmax.xlane.f32.xlu0 %v4233_v52 }
0x12fc   :  { %4044 = vadd.xlane.f32.xlu0 %v4043_v61 }
0x1317   :  { %v4030_v9 = vpop.xlane.xlu0 %4029 }
0x1318   :  { %v4034_v13 = vsub.f32 %v4026_v49, %v4030_v9 }
0x131a   :  { %v4036_v17 = vmul.f32 1.442695, %v4034_v13 }
0x131c   :  { %6953 = vpow2.f32 %v4036_v17 }
0x1326   :  { %v6954_v18 = vpop.eup %6953 }
0x1327   :  { %v4040_v19 = vsel %vm301_vm4, %v6954_v18, 0.0 }
0x1328   :  { %4041 = vadd.xlane.f32.xlu1 %v4040_v19 }
0x1381   :  { %v4232_v22 = vpop.xlane.xlu0 %4231 }
0x1382   :  { %v4236_v34 = vsub.f32 %v4228_v55, %v4232_v22 }
0x1384   :  { %v4238_v25 = vmul.f32 1.442695, %v4236_v34 }
0x1385   :  { %v4235_v16 = vpop.xlane.xlu0 %4234 }
0x1386   :  { %6955 = vpow2.f32 %v4238_v25  ;;  %v4237_v26 = vsub.f32 %v4229_v7, %v4235_v16 }
0x1388   :  { %v4240_v27 = vmul.f32 1.442695, %v4237_v26 }
0x1389   :  { %v4045_v46 = vpop.xlane.xlu0 %4044 }
0x138a   :  { %6957 = vpow2.f32 %v4240_v27 }
0x1390   :  { %v6956_v29 = vpop.eup %6955 }
0x1391   :  { %v4242_v30 = vsel %vm301_vm4, %v6956_v29, 0.0 }
0x1392   :  { %4243 = vadd.xlane.f32.xlu1 %v4242_v30 }
0x1394   :  { %v6958_v36 = vpop.eup %6957 }
0x1395   :  { %v4245_v31 = vsel %vm301_vm4, %v6958_v36, 0.0 }
0x1396   :  { %4246 = vadd.xlane.f32.xlu0 %v4245_v31 }
0x13a3   :  { %6823 = vrot.lane.b32.xlu1 %v7629_v24, %s7011_s29 }
0x13a7   :  { %6833 = vrot.lane.b32.xlu1 %v7629_v24, %s8061_s8 }
0x13ab   :  { %4786 = vrot.lane.b32.xlu1 %v7679_v38, %s8061_s8 }
0x13ac   :  { %6828 = vrot.lane.b32.xlu0 %v7629_v24, %s8059_s9 }
0x13b0   :  { %4788 = vrot.lane.b32.xlu0 %v7689_v42, %s8061_s8 }
0x13b5   :  { %v4042_v33 = vpop.xlane.xlu1 %4041 }
0x13b6   :  { %6959 = vrcp.f32 %v4042_v33 }
0x13b7   :  { %6961 = vrcp.f32 %v4045_v46 }
0x13c0   :  { %v6960_v35 = vpop.eup %6959 }
0x13c1   :  { %v4048_v43 = vmul.f32 %v6960_v35, %v6954_v18  ;;  %v6962_v57 = vpop.eup %6961  ;;  %v7824_v18 = vld [vmem:[%s8001_s11] ss:$0 sm:$0xff] }
0x13c2   :  { %v4049_v56 = vmul.f32 %v6962_v57, %v7775_v6 }
0x13c6   :  { %v6314_v41 = vpop.f32.mrb[32].mxu0  ;;  %v6364_v2 = vpop.f32.mrb[38].mxu1 }
0x13c7   :  { %v3846_v12 = vpop.f32.mrb[33].mxu0  ;;  %v4583_v53 = vpop.f32.mrb[39].mxu1  ;;  %v4593_v44 = vmul.f32 0.35355338, %v6364_v2 }
0x13c8   :  { %6317 = vmatprep.mubr.msk.f32.mxu0 %vm206_vm1, %v3846_v12  ;;  %v4592_v38 = vmul.f32 0.35355338, %v4583_v53 }
0x13c9   :  { %6318 = vmatmul.mubr.msk.f32.vlgmr.msra.gmra.mrb[28].mxu0 %vm206_vm1, %v6314_v41  ;;  %v4597_v42 = vsel %vm301_vm4, %v4593_v44, -inf }
0x13ca   :  { %6331 = vmatprep.mubr.msk.f32.mxu0 %vm301_vm4, %v4048_v43  ;;  %v4594_v45 = vsel %vm301_vm4, %v4592_v38, -inf }
0x13cf   :  { %4595 = vmax.xlane.f32.xlu1 %v4594_v45  ;;  %4598 = vmax.xlane.f32.xlu0 %v4597_v42 }
0x141f   :  { %v4244_v48 = vpop.xlane.xlu1 %4243 }
0x1420   :  { %6963 = vrcp.f32 %v4244_v48 }
0x1423   :  { %v6824_v49 = vpop.permute.xlu1 %6823  ;;  %v4247_v15 = vpop.xlane.xlu0 %4246 }
0x1424   :  { %v6826_v50 = vunpack.i.h.bf16 %v6824_v49  ;;  %v6825_v32 = vunpack.i.l.bf16 %v6824_v49  ;;  %6965 = vrcp.f32 %v4247_v15 }
0x1426   :  { %v6596_v51 = vpack.c.bf16 %v6826_v50, %v6825_v32 }
0x1427   :  { %v6834_v58 = vpop.permute.xlu1 %6833  ;;  %v6829_v60 = vpop.permute.xlu0 %6828 }
0x1428   :  { %v6836_v28 = vunpack.i.h.bf16 %v6834_v58  ;;  %v6835_v39 = vunpack.i.l.bf16 %v6834_v58  ;;  %v6831_v62 = vunpack.i.h.bf16 %v6829_v60  ;;  %v6830_v63 = vunpack.i.l.bf16 %v6829_v60  ;;  %6597 = vmatprep.subr.bf16.mxu0 %v6596_v51 }
0x1429   :  { %6599 = vmatpush3.bf16.msra.mxu0 %v6596_v51 }
0x142a   :  { %v6964_v0 = vpop.eup %6963  ;;  %v6620_v3 = vpack.c.bf16 %v6836_v28, %v6835_v39  ;;  %v6606_v4 = vpack.c.bf16 %v6831_v62, %v6830_v63 }
0x142b   :  { %v4787_v47 = vpop.permute.xlu1 %4786  ;;  %v4250_v59 = vmul.f32 %v6964_v0, %v6956_v29  ;;  %v4789_v55 = vpop.permute.xlu0 %4788 }
0x142c   :  { %6332 = vmatmul.mubr.msk.f32.vlgmr.msra.gmra.mrb[34].mxu0 %vm301_vm4, %v4049_v56  ;;  %6607 = vmatprep.subr.bf16.mxu0 %v6606_v4 }
0x142d   :  { %6622 = vmatprep.subr.msk.bf16.mxu1 %vm7217_vm2, %v6620_v3  ;;  %6381 = vmatprep.mubr.msk.f32.mxu1 %vm206_vm1, %v4787_v47 }
0x142e   :  { %v6966_v54 = vpop.eup %6965  ;;  %6609 = vmatpush3.bf16.msra.mxu0 %v6606_v4  ;;  %6345 = vmatprep.mubr.msk.f32.mxu0 %vm301_vm4, %v4250_v59 }
0x142f   :  { %v4251_v10 = vmul.f32 %v6966_v54, %v6958_v36  ;;  %6625 = vmatpush3.bf16.xpose.msk.msra.mxu1 %vm7217_vm2, %v6620_v3  ;;  %6348 = vmatprep.subr.mxu0 %v7696_v5 }
0x1431   :  { %6346 = vmatmul.mubr.msk.f32.vlgmr.msra.gmra.mrb[36].mxu0 %vm301_vm4, %v4251_v10 }
0x1432   :  { %6349 = vmatpush3.msra.mxu0 %v7696_v5 }
0x1433   :  { %6353 = vmatprep.subr.mxu0 %v7703_v23 }
0x1436   :  { %6382 = vmatmul.mubr.msk.f32.vlgmr.msra.gmra.mrb[40].mxu1 %vm206_vm1, %v4789_v55 }
0x145c   :  { %v4596_v7 = vpop.xlane.xlu1 %4595  ;;  %v4599_v1 = vpop.xlane.xlu0 %4598 }
0x145d   :  { %v4600_v52 = vsub.f32 %v4592_v38, %v4596_v7  ;;  %v4601_v6 = vsub.f32 %v4593_v44, %v4599_v1 }
0x145f   :  { %v4602_v61 = vmul.f32 1.442695, %v4600_v52  ;;  %v4604_v9 = vmul.f32 1.442695, %v4601_v6 }
0x1461   :  { %6967 = vpow2.f32 %v4602_v61 }
0x1462   :  { %6969 = vpow2.f32 %v4604_v9 }
0x146b   :  { %v6968_v21 = vpop.eup %6967 }
0x146c   :  { %v6970_v13 = vpop.eup %6969  ;;  %v4606_v17 = vsel %vm301_vm4, %v6968_v21, 0.0 }
0x146d   :  { %4607 = vadd.xlane.f32.xlu0 %v4606_v17  ;;  %v4609_v5 = vsel %vm301_vm4, %v6970_v13, 0.0 }
0x146e   :  { %4610 = vadd.xlane.f32.xlu1 %v4609_v5 }
0x1483   :  { %6838 = vrot.lane.b32.xlu0 %v7629_v24, %s8062_s3 }
0x149c   :  { %v6319_v19 = vpop.f32.mrb[28].mxu0 }
0x149d   :  { %v3928_v22 = vpop.f32.mrb[29].mxu0 }
0x149e   :  { %v5078_v34 = vadd.f32 %v7824_v18, %v3928_v22 }
0x14a0   :  { %v7828_v25 = vadd.f32 %v5078_v34, %v7527_v8 }
0x14a2   :  { %v5088_v16 = vsel %vm102_vm0, %v7828_v25, 0.0 }
0x14a3   :  { %5089 = vadd.xlane.f32.xlu0 %v5088_v16 }
0x14fa   :  { %v4608_v26 = vpop.xlane.xlu0 %4607 }
0x14fb   :  { %v4611_v36 = vpop.xlane.xlu1 %4610  ;;  %6971 = vrcp.f32 %v4608_v26 }
0x14fc   :  { %6973 = vrcp.f32 %v4611_v36  ;;  %v5162_v36 = vld [vmem:[%s8002_s16 + $0x10] sm:$0xff] }
0x14fe   :  { %v6839_v29 = vpop.permute.xlu0 %6838 }
0x14ff   :  { %v6333_v27 = vpop.f32.mrb[34].mxu0  ;;  %v6841_v31 = vunpack.i.h.bf16 %v6839_v29  ;;  %v6840_v33 = vunpack.i.l.bf16 %v6839_v29 }
0x1500   :  { %v4128_v30 = vpop.f32.mrb[35].mxu0 }
0x1501   :  { %v6616_v2 = vpack.c.bf16 %v6841_v31, %v6840_v33  ;;  %v5163_v31 = vld [vmem:[%s8002_s16 + $0x18] sm:$0xff] }
0x1502   :  { %v6634_v33 = vpack.c.bf16 %v5163_v31, %v5162_v36 }
0x1504   :  { %v6347_v35 = vpop.f32.mrb[36].mxu0 }
0x1505   :  { %v4330_v41 = vpop.f32.mrb[37].mxu0  ;;  %v6972_v53 = vpop.eup %6971 }
0x1506   :  { %6350 = vmatprep.mubr.msk.f32.mxu0 %vm206_vm1, %v4330_v41  ;;  %v6974_v45 = vpop.eup %6973  ;;  %v4614_v42 = vmul.f32 %v6972_v53, %v6968_v21 }
0x1507   :  { %6351 = vmatmul.mubr.msk.f32.vlgmr.msra.gmra.mrb[38].mxu0 %vm206_vm1, %v6347_v35  ;;  %v4615_v46 = vmul.f32 %v6974_v45, %v6970_v13 }
0x1508   :  { %6354 = vmatpush3.msra.mxu0 %v7703_v23  ;;  %6355 = vmatprep.mubr.msk.f32.mxu0 %vm206_vm1, %v4128_v30 }
0x1509   :  { %v6383_v8 = vpop.f32.mrb[40].mxu1  ;;  %6617 = vmatprep.subr.bf16.mxu0 %v6616_v2 }
0x150a   :  { %v4868_v12 = vpop.f32.mrb[41].mxu1  ;;  %v4878_v44 = vmul.f32 0.35355338, %v6383_v8 }
0x150b   :  { %v4877_v43 = vmul.f32 0.35355338, %v4868_v12 }
0x150c   :  { %v4882_v23 = vsel %vm301_vm4, %v4878_v44, -inf }
0x150d   :  { %v4879_v38 = vsel %vm301_vm4, %v4877_v43, -inf }
0x150e   :  { %4880 = vmax.xlane.f32.xlu1 %v4879_v38 }
0x150f   :  { %6356 = vmatmul.mubr.msk.f32.vlgmr.msra.gmra.mrb[38].mxu0 %vm206_vm1, %v6333_v27 }
0x1510   :  { %6619 = vmatpush3.bf16.msra.mxu0 %v6616_v2  ;;  %6369 = vmatprep.mubr.msk.f32.mxu0 %vm301_vm4, %v4614_v42 }
0x1511   :  { %6372 = vmatprep.subr.mxu0 %v7743_v14 }
0x1512   :  { %4883 = vmax.xlane.f32.xlu1 %v4882_v23 }
0x1513   :  { %6370 = vmatmul.mubr.msk.f32.vlgmr.msra.gmra.mrb[40].mxu0 %vm301_vm4, %v4615_v46 }
0x1514   :  { %6373 = vmatpush3.msra.mxu0 %v7743_v14  ;;  %v5079_v14 = vadd.f32 %v6319_v19, %v7824_v18 }
0x1516   :  { %v5083_v39 = vadd.f32 %v5079_v14, %v7533_v11 }
0x1518   :  { %v5091_v0 = vsel %vm102_vm0, %v5083_v39, 0.0 }
0x1530   :  { %v5090_v52 = vpop.xlane.xlu0 %5089 }
0x1531   :  { %v5100_v9 = vmul.f32 0.03125, %v5090_v52 }
0x1533   :  { %v5104_v19 = vsub.f32 %v7828_v25, %v5100_v9 }
0x1535   :  { %v5108_v27 = vmul.f32 %v5104_v19, %v5104_v19 }
0x1537   :  { %v5112_v29 = vsel %vm102_vm0, %v5108_v27, 0.0 }
0x159b   :  { %v4881_v48 = vpop.xlane.xlu1 %4880 }
0x159c   :  { %v4885_v49 = vsub.f32 %v4877_v43, %v4881_v48 }
0x159e   :  { %v4887_v32 = vmul.f32 1.442695, %v4885_v49 }
0x159f   :  { %v4884_v15 = vpop.xlane.xlu1 %4883 }
0x15a0   :  { %v4886_v50 = vsub.f32 %v4878_v44, %v4884_v15 }
0x15a2   :  { %v4889_v51 = vmul.f32 1.442695, %v4886_v50 }
0x15a4   :  { %6975 = vpow2.f32 %v4889_v51 }
0x15a5   :  { %6977 = vpow2.f32 %v4887_v32  ;;  %v5801_v32 = vld [vmem:[%s8003_s14] ss:$0 sm:$0xff] }
0x15ae   :  { %v6976_v57 = vpop.eup %6975 }
0x15af   :  { %v4894_v58 = vsel %vm301_vm4, %v6976_v57, 0.0  ;;  %v6978_v60 = vpop.eup %6977 }
0x15b0   :  { %4895 = vadd.xlane.f32.xlu1 %v4894_v58  ;;  %v4891_v28 = vsel %vm301_vm4, %v6978_v60, 0.0 }
0x15b4   :  { %4892 = vadd.xlane.f32.xlu1 %v4891_v28 }
0x15c5   :  { %6843 = vrot.lane.b32.xlu1 %v7629_v24, %s8063_s2 }
0x15e6   :  { %v6371_v62 = vpop.f32.mrb[40].mxu0 }
0x15e7   :  { %v4694_v63 = vpop.f32.mrb[41].mxu0 }
0x15e8   :  { %6374 = vmatprep.mubr.msk.f32.mxu0 %vm206_vm1, %v4694_v63  ;;  %v5272_v63 = vld [vmem:[%s8005_s18] sm:$0xff] }
0x15e9   :  { %5092 = vadd.xlane.f32.xlu1 %v5091_v0  ;;  %6375 = vmatmul.mubr.msk.f32.vlgmr.msra.gmra.mrb[38].mxu0 %vm206_vm1, %v6371_v62  ;;  %v5273_v0 = vld [vmem:[%s8005_s18 + $0x8] sm:$0xff] }
0x163d   :  { %v4896_v56 = vpop.xlane.xlu1 %4895 }
0x163e   :  { %6979 = vrcp.f32 %v4896_v56  ;;  %v5274_v56 = vld [vmem:[%s8005_s18 + $0x10] sm:$0xff] }
0x1641   :  { %v4893_v3 = vpop.xlane.xlu1 %4892 }
0x1642   :  { %6981 = vrcp.f32 %v4893_v3  ;;  %v6638_v3 = vpack.c.bf16 %v5273_v0, %v5272_v63 }
0x1645   :  { %v6844_v4 = vpop.permute.xlu1 %6843 }
0x1646   :  { %v6846_v47 = vunpack.i.h.bf16 %v6844_v4  ;;  %v6845_v24 = vunpack.i.l.bf16 %v6844_v4  ;;  %v5275_v4 = vld [vmem:[%s8005_s18 + $0x18] sm:$0xff] }
0x1648   :  { %v6626_v59 = vpack.c.bf16 %v6846_v47, %v6845_v24  ;;  %v6980_v54 = vpop.eup %6979  ;;  %v6642_v47 = vpack.c.bf16 %v5275_v4, %v5274_v56  ;;  %v5276_v24 = vld [vmem:[%s8005_s18 + $0x20] sm:$0xff] }
0x1649   :  { %v4900_v55 = vmul.f32 %v6980_v54, %v6976_v57  ;;  %v5802_v57 = vld [vmem:[%s8004_s15] ss:$0 sm:$0xff] }
0x164a   :  { %6627 = vmatprep.subr.bf16.mxu0 %v6626_v59 }
0x164b   :  { %6629 = vmatpush3.bf16.msra.mxu0 %v6626_v59  ;;  %v5277_v59 = vld [vmem:[%s8005_s18 + $0x28] sm:$0xff] }
0x164c   :  { %v6982_v11 = vpop.eup %6981  ;;  %6391 = vmatprep.subr.mxu0 %v7783_v20  ;;  %v6646_v54 = vpack.c.bf16 %v5277_v59, %v5276_v24 }
0x164d   :  { %v4899_v10 = vmul.f32 %v6982_v11, %v6978_v60  ;;  %v5278_v11 = vld [vmem:[%s8005_s18 + $0x30] sm:$0xff] }
0x164f   :  { %6388 = vmatprep.mubr.msk.f32.mxu0 %vm301_vm4, %v4899_v10  ;;  %v5279_v10 = vld [vmem:[%s8005_s18 + $0x38] sm:$0xff] }
0x1650   :  { %6389 = vmatmul.mubr.msk.f32.vlgmr.msra.gmra.mrb[42].mxu0 %vm301_vm4, %v4900_v55  ;;  %v6650_v55 = vpack.c.bf16 %v5279_v10, %v5278_v11 }
0x1651   :  { %6392 = vmatpush3.msra.mxu0 %v7783_v20 }
0x1652   :  { %6639 = vmatprep.subr.bf16.mxu0 %v6638_v3 }
0x1676   :  { %v5093_v17 = vpop.xlane.xlu1 %5092 }
0x1677   :  { %v5101_v20 = vmul.f32 0.03125, %v5093_v17 }
0x1679   :  { %v5105_v16 = vsub.f32 %v5083_v39, %v5101_v20 }
0x167b   :  { %v5109_v30 = vmul.f32 %v5105_v16, %v5105_v16 }
0x1723   :  { %v6390_v7 = vpop.f32.mrb[42].mxu0 }
0x1724   :  { %v4979_v1 = vpop.f32.mrb[43].mxu0 }
0x1725   :  { %6393 = vmatprep.mubr.msk.f32.mxu0 %vm206_vm1, %v4979_v1 }
0x1726   :  { %6394 = vmatmul.mubr.msk.f32.vlgmr.msra.gmra.mrb[38].mxu0 %vm206_vm1, %v6390_v7 }
0x1727   :  { %6641 = vmatpush3.bf16.msra.mxu0 %v6638_v3 }
0x1728   :  { %6643 = vmatprep.subr.bf16.mxu0 %v6642_v47 }
0x172b   :  { %6645 = vmatpush3.bf16.msra.mxu0 %v6642_v47 }
0x172c   :  { %6647 = vmatprep.subr.bf16.mxu0 %v6646_v54 }
0x172f   :  { %6649 = vmatpush3.bf16.msra.mxu0 %v6646_v54 }
0x1730   :  { %6651 = vmatprep.subr.bf16.mxu0 %v6650_v55 }
0x1733   :  { %6653 = vmatpush3.bf16.msra.mxu0 %v6650_v55 }
0x17f9   :  { %v6395_v6 = vpop.f32.mrb[38].mxu0 }
0x17fa   :  { %v5060_v61 = vpop.f32.mrb[39].mxu0  ;;  %v5081_v21 = vadd.f32 %v6395_v6, %v7824_v18 }
0x17fb   :  { %v5080_v13 = vadd.f32 %v7824_v18, %v5060_v61  ;;  %v5115_v18 = vsel %vm102_vm0, %v5109_v30, 0.0 }
0x17fc   :  { %v5085_v22 = vadd.f32 %v5081_v21, %v7619_v37  ;;  %v5161_v37 = vld [vmem:[%s8002_s16 + $0x8] sm:$0xff] }
0x17fd   :  { %v5084_v5 = vadd.f32 %v5080_v13, %v7612_v40  ;;  %v5160_v40 = vld [vmem:[%s8002_s16] sm:$0xff] }
0x17fe   :  { %v5097_v26 = vsel %vm102_vm0, %v5085_v22, 0.0  ;;  %v6630_v25 = vpack.c.bf16 %v5161_v37, %v5160_v40 }
0x17ff   :  { %v5094_v34 = vsel %vm102_vm0, %v5084_v5, 0.0 }
0x1800   :  { %5095 = vadd.xlane.f32.xlu0 %v5094_v34  ;;  %6631 = vmatprep.subr.bf16.mxu1 %v6630_v25 }
0x1801   :  { %6633 = vmatpush3.bf16.msra.mxu1 %v6630_v25 }
0x1802   :  { %6635 = vmatprep.subr.bf16.mxu1 %v6634_v33 }
0x1804   :  { %5098 = vadd.xlane.f32.xlu0 %v5097_v26 }
0x1805   :  { %6637 = vmatpush3.bf16.msra.mxu1 %v6634_v33 }
0x1808   :  { %5113 = vadd.xlane.f32.xlu0 %v5112_v29 }
0x180c   :  { %5116 = vadd.xlane.f32.xlu0 %v5115_v18 }
0x188d   :  { %v5096_v35 = vpop.xlane.xlu0 %5095 }
0x188e   :  { %v5102_v41 = vmul.f32 0.03125, %v5096_v35 }
0x1890   :  { %v5106_v2 = vsub.f32 %v5084_v5, %v5102_v41  ;;  %v5808_v41 = vld [vmem:[%s8007_s19] ss:$0 sm:$0xff] }
0x1891   :  { %v5099_v8 = vpop.xlane.xlu0 %5098 }
0x1892   :  { %v5103_v12 = vmul.f32 0.03125, %v5099_v8  ;;  %v5110_v53 = vmul.f32 %v5106_v2, %v5106_v2 }
0x1894   :  { %v5107_v43 = vsub.f32 %v5085_v22, %v5103_v12  ;;  %v5118_v44 = vsel %vm102_vm0, %v5110_v53, 0.0 }
0x1895   :  { %5119 = vadd.xlane.f32.xlu0 %v5118_v44  ;;  %v5114_v38 = vpop.xlane.xlu0 %5113 }
0x1896   :  { %v5124_v45 = vmul.f32 0.03125, %v5114_v38  ;;  %v5111_v42 = vmul.f32 %v5107_v43, %v5107_v43 }
0x1898   :  { %v5128_v46 = vadd.f32 1e-05, %v5124_v45  ;;  %v5121_v23 = vsel %vm102_vm0, %v5111_v42, 0.0 }
0x1899   :  { %5122 = vadd.xlane.f32.xlu1 %v5121_v23  ;;  %v5117_v48 = vpop.xlane.xlu0 %5116 }
0x189a   :  { %6983 = vrsqrt.f32 %v5128_v46  ;;  %v5125_v49 = vmul.f32 0.03125, %v5117_v48 }
0x189c   :  { %v5129_v15 = vadd.f32 1e-05, %v5125_v49 }
0x189e   :  { %6985 = vrsqrt.f32 %v5129_v15 }
0x18a4   :  { %v6984_v50 = vpop.eup %6983 }
0x18a5   :  { %v5136_v51 = vmul.f32 %v6984_v50, %v5104_v19 }
0x18a7   :  { %v5146_v58 = vmul.f32 %v5801_v32, %v5136_v51 }
0x18a8   :  { %v6986_v60 = vpop.eup %6985 }
0x18a9   :  { %v5137_v28 = vmul.f32 %v6986_v60, %v5105_v16  ;;  %v7887_v14 = vadd.f32 %v5802_v57, %v5146_v58  ;;  %v5803_v16 = vld [vmem:[%s8006_s17] ss:$0 sm:$0xff] }
0x18ab   :  { %6404 = vmatprep.mubr.msk.f32.mxu1 %vm102_vm0, %v7887_v14  ;;  %v5147_v39 = vmul.f32 %v5801_v32, %v5137_v28 }
0x18ad   :  { %v7891_v62 = vadd.f32 %v5802_v57, %v5147_v39 }
0x18af   :  { %6405 = vmatmul.mubr.msk.f32.vlgmr.msra.gmra.mrb[42].mxu1 %vm102_vm0, %v7891_v62 }
0x1922   :  { %v5120_v7 = vpop.xlane.xlu0 %5119 }
0x1923   :  { %v5126_v1 = vmul.f32 0.03125, %v5120_v7 }
0x1925   :  { %v5130_v52 = vadd.f32 1e-05, %v5126_v1 }
0x1926   :  { %v5123_v6 = vpop.xlane.xlu1 %5122 }
0x1927   :  { %6987 = vrsqrt.f32 %v5130_v52  ;;  %v5127_v61 = vmul.f32 0.03125, %v5123_v6 }
0x1929   :  { %v5131_v9 = vadd.f32 1e-05, %v5127_v61 }
0x192b   :  { %6989 = vrsqrt.f32 %v5131_v9 }
0x1931   :  { %v6988_v21 = vpop.eup %6987 }
0x1932   :  { %v5138_v13 = vmul.f32 %v6988_v21, %v5106_v2 }
0x1934   :  { %v5148_v17 = vmul.f32 %v5801_v32, %v5138_v13  ;;  %v5813_v13 = vld [vmem:[%s8008_s20] ss:$0 sm:$0xff] }
0x1935   :  { %v6990_v5 = vpop.eup %6989 }
0x1936   :  { %v5158_v19 = vadd.f32 %v5802_v57, %v5148_v17  ;;  %v5139_v20 = vmul.f32 %v6990_v5, %v5107_v43 }
0x1938   :  { %6407 = vmatprep.mubr.msk.f32.mxu1 %vm102_vm0, %v5158_v19  ;;  %v5149_v22 = vmul.f32 %v5801_v32, %v5139_v20 }
0x193a   :  { %v5159_v34 = vadd.f32 %v5802_v57, %v5149_v22 }
0x193c   :  { %6408 = vmatmul.mubr.msk.f32.gmra.mrb[44].mxu1 %vm102_vm0, %v5159_v34 }
0x1982   :  { %v6406_v26 = vpop.f32.mrb[42].mxu1 }
0x1983   :  { %v5255_v27 = vadd.f32 %v6406_v26, %v5803_v16  ;;  %v5249_v29 = vpop.f32.mrb[43].mxu1 }
0x1984   :  { %v5250_v30 = vadd.f32 %v5803_v16, %v5249_v29 }
0x1985   :  { %v5269_v40 = vmax.f32 %v5255_v27, 0.0 }
0x1986   :  { %v5268_v18 = vmax.f32 %v5250_v30, 0.0 }
0x1988   :  { %6426 = vmatprep.mubr.msk.f32.mxu0 %vm5287_vm6, %v5268_v18 }
0x1989   :  { %6427 = vmatmul.mubr.msk.f32.vlgmr.msra.gmra.mrb[44].mxu0 %vm5287_vm6, %v5269_v40 }
0x1a0f   :  { %v6409_v37 = vpop.f32.mrb[44].mxu1 }
0x1a10   :  { %v5265_v25 = vadd.f32 %v6409_v37, %v5803_v16  ;;  %v5259_v36 = vpop.f32.mrb[45].mxu1 }
0x1a11   :  { %v5260_v31 = vadd.f32 %v5803_v16, %v5259_v36 }
0x1a12   :  { %v5271_v35 = vmax.f32 %v5265_v25, 0.0 }
0x1a13   :  { %v5270_v33 = vmax.f32 %v5260_v31, 0.0 }
0x1a15   :  { %6429 = vmatprep.mubr.msk.f32.mxu0 %vm5287_vm6, %v5270_v33 }
0x1a16   :  { %6430 = vmatmul.mubr.msk.f32.gmra.mrb[46].mxu0 %vm5287_vm6, %v5271_v35 }
0x1a5c   :  { %v6428_v2 = vpop.f32.mrb[44].mxu0 }
0x1a5d   :  { %v5372_v8 = vadd.f32 %v6428_v2, %v5808_v41  ;;  %v5366_v12 = vpop.f32.mrb[45].mxu0 }
0x1a5e   :  { %v5367_v53 = vadd.f32 %v5808_v41, %v5366_v12 }
0x1a5f   :  { %v5386_v43 = vadd.f32 %v5372_v8, %v7891_v62 }
0x1a60   :  { %v5385_v44 = vadd.f32 %v5367_v53, %v7887_v14 }
0x1a61   :  { %v5394_v38 = vsel %vm102_vm0, %v5386_v43, 0.0 }
0x1a62   :  { %5395 = vadd.xlane.f32.xlu1 %v5394_v38  ;;  %v5391_v45 = vsel %vm102_vm0, %v5385_v44, 0.0 }
0x1a63   :  { %5392 = vadd.xlane.f32.xlu0 %v5391_v45 }
0x1ae9   :  { %v6431_v42 = vpop.f32.mrb[46].mxu0 }
0x1aea   :  { %v5382_v46 = vadd.f32 %v6431_v42, %v5808_v41  ;;  %v5376_v23 = vpop.f32.mrb[47].mxu0 }
0x1aeb   :  { %v5377_v48 = vadd.f32 %v5808_v41, %v5376_v23 }
0x1aec   :  { %v5388_v49 = vadd.f32 %v5382_v46, %v5159_v34 }
0x1aed   :  { %v5387_v15 = vadd.f32 %v5377_v48, %v5158_v19  ;;  %v5814_v19 = vld [vmem:[%s8009_s21] ss:$0 sm:$0xff] }
0x1aee   :  { %v5400_v50 = vsel %vm102_vm0, %v5388_v49, 0.0 }
0x1aef   :  { %v5396_v32 = vpop.xlane.xlu1 %5395  ;;  %5401 = vadd.xlane.f32.xlu1 %v5400_v50  ;;  %v5397_v51 = vsel %vm102_vm0, %v5387_v15, 0.0 }
0x1af0   :  { %v5404_v57 = vmul.f32 0.03125, %v5396_v32  ;;  %5398 = vadd.xlane.f32.xlu0 %v5397_v51  ;;  %v5393_v58 = vpop.xlane.xlu0 %5392  ;;  %v5537_v51 = vld [vmem:[%s8010_s24] sm:$0xff] }
0x1af1   :  { %v5403_v60 = vmul.f32 0.03125, %v5393_v58 }
0x1af2   :  { %v5408_v28 = vsub.f32 %v5386_v43, %v5404_v57  ;;  %v5538_v57 = vld [vmem:[%s8010_s24 + $0x8] sm:$0xff] }
0x1af3   :  { %v5407_v14 = vsub.f32 %v5385_v44, %v5403_v60  ;;  %v6654_v58 = vpack.c.bf16 %v5538_v57, %v5537_v51  ;;  %v5539_v60 = vld [vmem:[%s8010_s24 + $0x10] sm:$0xff] }
0x1af4   :  { %v5412_v39 = vmul.f32 %v5408_v28, %v5408_v28 }
0x1af5   :  { %v5411_v62 = vmul.f32 %v5407_v14, %v5407_v14  ;;  %6655 = vmatprep.subr.bf16.mxu1 %v6654_v58 }
0x1af6   :  { %v5418_v63 = vsel %vm102_vm0, %v5412_v39, 0.0  ;;  %6657 = vmatpush3.bf16.msra.mxu1 %v6654_v58 }
0x1af7   :  { %5419 = vadd.xlane.f32.xlu1 %v5418_v63  ;;  %v5415_v0 = vsel %vm102_vm0, %v5411_v62, 0.0 }
0x1af8   :  { %5416 = vadd.xlane.f32.xlu0 %v5415_v0 }
0x1b7c   :  { %v5402_v56 = vpop.xlane.xlu1 %5401 }
0x1b7d   :  { %v5406_v3 = vmul.f32 0.03125, %v5402_v56  ;;  %v5399_v4 = vpop.xlane.xlu0 %5398 }
0x1b7e   :  { %v5405_v47 = vmul.f32 0.03125, %v5399_v4 }
0x1b7f   :  { %v5410_v24 = vsub.f32 %v5388_v49, %v5406_v3 }
0x1b80   :  { %v5409_v59 = vsub.f32 %v5387_v15, %v5405_v47 }
0x1b81   :  { %v5414_v54 = vmul.f32 %v5410_v24, %v5410_v24 }
0x1b82   :  { %v5413_v11 = vmul.f32 %v5409_v59, %v5409_v59 }
0x1b83   :  { %v5424_v10 = vsel %vm102_vm0, %v5414_v54, 0.0 }
0x1b84   :  { %5425 = vadd.xlane.f32.xlu1 %v5424_v10  ;;  %v5420_v55 = vpop.xlane.xlu1 %5419  ;;  %v5421_v7 = vsel %vm102_vm0, %v5413_v11, 0.0 }
0x1b85   :  { %v5428_v1 = vmul.f32 0.03125, %v5420_v55  ;;  %5422 = vadd.xlane.f32.xlu0 %v5421_v7  ;;  %v5417_v52 = vpop.xlane.xlu0 %5416 }
0x1b86   :  { %v5427_v6 = vmul.f32 0.03125, %v5417_v52 }
0x1b87   :  { %v5432_v61 = vadd.f32 1e-05, %v5428_v1 }
0x1b88   :  { %v5431_v9 = vadd.f32 1e-05, %v5427_v6  ;;  %v5815_v6 = vld [vmem:[%s8011_s22] ss:$0 sm:$0xff] }
0x1b89   :  { %6991 = vrsqrt.f32 %v5432_v61 }
0x1b8a   :  { %6993 = vrsqrt.f32 %v5431_v9 }
0x1b93   :  { %v6992_v21 = vpop.eup %6991 }
0x1b94   :  { %v6994_v17 = vpop.eup %6993  ;;  %v5440_v5 = vmul.f32 %v6992_v21, %v5408_v28  ;;  %v5540_v28 = vld [vmem:[%s8010_s24 + $0x18] sm:$0xff] }
0x1b95   :  { %v5439_v20 = vmul.f32 %v6994_v17, %v5407_v14  ;;  %v6658_v14 = vpack.c.bf16 %v5540_v28, %v5539_v60 }
0x1b96   :  { %v5450_v22 = vmul.f32 %v5813_v13, %v5440_v5 }
0x1b97   :  { %v5449_v34 = vmul.f32 %v5813_v13, %v5439_v20  ;;  %6659 = vmatprep.subr.bf16.mxu1 %v6658_v14 }
0x1b98   :  { %v5460_v16 = vadd.f32 %v5814_v19, %v5450_v22  ;;  %6661 = vmatpush3.bf16.msra.mxu1 %v6658_v14 }
0x1b99   :  { %v5459_v26 = vadd.f32 %v5814_v19, %v5449_v34 }
0x1b9a   :  { %v5468_v27 = vsel %vm102_vm0, %v5460_v16, 0.0 }
0x1b9b   :  { %5469 = vadd.xlane.f32.xlu1 %v5468_v27  ;;  %v5465_v29 = vsel %vm102_vm0, %v5459_v26, 0.0 }
0x1b9c   :  { %5466 = vadd.xlane.f32.xlu0 %v5465_v29 }
0x1c11   :  { %v5426_v30 = vpop.xlane.xlu1 %5425 }
0x1c12   :  { %v5430_v18 = vmul.f32 0.03125, %v5426_v30  ;;  %v5423_v40 = vpop.xlane.xlu0 %5422 }
0x1c13   :  { %v5429_v37 = vmul.f32 0.03125, %v5423_v40 }
0x1c14   :  { %v5434_v25 = vadd.f32 1e-05, %v5430_v18 }
0x1c15   :  { %v5433_v36 = vadd.f32 1e-05, %v5429_v37 }
0x1c16   :  { %6995 = vrsqrt.f32 %v5434_v25 }
0x1c17   :  { %6997 = vrsqrt.f32 %v5433_v36 }
0x1c20   :  { %v6996_v31 = vpop.eup %6995 }
0x1c21   :  { %v6998_v33 = vpop.eup %6997  ;;  %v5442_v35 = vmul.f32 %v6996_v31, %v5410_v24 }
0x1c22   :  { %v5441_v41 = vmul.f32 %v6998_v33, %v5409_v59 }
0x1c23   :  { %v5452_v2 = vmul.f32 %v5813_v13, %v5442_v35  ;;  %v5817_v35 = vld [vmem:[%s8013_s25] ss:$0 sm:$0xff] }
0x1c24   :  { %v5451_v8 = vmul.f32 %v5813_v13, %v5441_v41  ;;  %v5816_v13 = vld [vmem:[%s8012_s23] ss:$0 sm:$0xff] }
0x1c25   :  { %v5462_v12 = vadd.f32 %v5814_v19, %v5452_v2 }
0x1c26   :  { %v5461_v53 = vadd.f32 %v5814_v19, %v5451_v8 }
0x1c27   :  { %v5474_v43 = vsel %vm102_vm0, %v5462_v12, 0.0 }
0x1c28   :  { %5475 = vadd.xlane.f32.xlu1 %v5474_v43  ;;  %v5470_v44 = vpop.xlane.xlu1 %5469  ;;  %v5471_v38 = vsel %vm102_vm0, %v5461_v53, 0.0 }
0x1c29   :  { %v5478_v45 = vmul.f32 0.03125, %v5470_v44  ;;  %5472 = vadd.xlane.f32.xlu0 %v5471_v38  ;;  %v5467_v42 = vpop.xlane.xlu0 %5466 }
0x1c2a   :  { %v5477_v46 = vmul.f32 0.03125, %v5467_v42 }
0x1c2b   :  { %v5482_v23 = vsub.f32 %v5460_v16, %v5478_v45 }
0x1c2c   :  { %v5481_v48 = vsub.f32 %v5459_v26, %v5477_v46 }
0x1c2d   :  { %v5486_v49 = vmul.f32 %v5482_v23, %v5482_v23 }
0x1c2e   :  { %v5485_v15 = vmul.f32 %v5481_v48, %v5481_v48 }
0x1c2f   :  { %v5492_v50 = vsel %vm102_vm0, %v5486_v49, 0.0 }
0x1c30   :  { %5493 = vadd.xlane.f32.xlu1 %v5492_v50  ;;  %v5489_v32 = vsel %vm102_vm0, %v5485_v15, 0.0 }
0x1c31   :  { %5490 = vadd.xlane.f32.xlu0 %v5489_v32 }
0x1cb5   :  { %v5476_v39 = vpop.xlane.xlu1 %5475 }
0x1cb6   :  { %v5480_v62 = vmul.f32 0.03125, %v5476_v39  ;;  %v5473_v63 = vpop.xlane.xlu0 %5472 }
0x1cb7   :  { %v5479_v0 = vmul.f32 0.03125, %v5473_v63 }
0x1cb8   :  { %v5484_v56 = vsub.f32 %v5462_v12, %v5480_v62 }
0x1cb9   :  { %v5483_v3 = vsub.f32 %v5461_v53, %v5479_v0 }
0x1cba   :  { %v5488_v4 = vmul.f32 %v5484_v56, %v5484_v56 }
0x1cbb   :  { %v5487_v47 = vmul.f32 %v5483_v3, %v5483_v3 }
0x1cbc   :  { %v5498_v24 = vsel %vm102_vm0, %v5488_v4, 0.0 }
0x1cbd   :  { %5499 = vadd.xlane.f32.xlu1 %v5498_v24  ;;  %v5494_v59 = vpop.xlane.xlu1 %5493  ;;  %v5495_v54 = vsel %vm102_vm0, %v5487_v47, 0.0 }
0x1cbe   :  { %v5502_v11 = vmul.f32 0.03125, %v5494_v59  ;;  %5496 = vadd.xlane.f32.xlu0 %v5495_v54  ;;  %v5491_v10 = vpop.xlane.xlu0 %5490 }
0x1cbf   :  { %v5501_v55 = vmul.f32 0.03125, %v5491_v10 }
0x1cc0   :  { %v5506_v7 = vadd.f32 1e-05, %v5502_v11 }
0x1cc1   :  { %v5505_v1 = vadd.f32 1e-05, %v5501_v55 }
0x1cc2   :  { %6999 = vrsqrt.f32 %v5506_v7 }
0x1cc3   :  { %7001 = vrsqrt.f32 %v5505_v1 }
0x1ccc   :  { %v7000_v52 = vpop.eup %6999 }
0x1ccd   :  { %v7002_v61 = vpop.eup %7001  ;;  %v5514_v9 = vmul.f32 %v7000_v52, %v5482_v23 }
0x1cce   :  { %v5513_v21 = vmul.f32 %v7002_v61, %v5481_v48 }
0x1ccf   :  { %v5524_v17 = vmul.f32 %v5815_v6, %v5514_v9 }
0x1cd0   :  { %v5523_v5 = vmul.f32 %v5815_v6, %v5513_v21 }
0x1cd1   :  { %v5534_v20 = vadd.f32 %v5816_v13, %v5524_v17 }
0x1cd2   :  { %v5533_v19 = vadd.f32 %v5816_v13, %v5523_v5 }
0x1cd4   :  { %6440 = vmatprep.mubr.msk.f32.mxu1 %vm102_vm0, %v5533_v19 }
0x1cd5   :  { %6441 = vmatmul.mubr.msk.f32.vlgmr.msra.gmra.mrb[46].mxu1 %vm102_vm0, %v5534_v20 }
0x1d4a   :  { %v5500_v22 = vpop.xlane.xlu1 %5499 }
0x1d4b   :  { %v5504_v34 = vmul.f32 0.03125, %v5500_v22  ;;  %v5497_v16 = vpop.xlane.xlu0 %5496 }
0x1d4c   :  { %v5503_v26 = vmul.f32 0.03125, %v5497_v16 }
0x1d4d   :  { %v5508_v27 = vadd.f32 1e-05, %v5504_v34 }
0x1d4e   :  { %v5507_v29 = vadd.f32 1e-05, %v5503_v26 }
0x1d4f   :  { %7003 = vrsqrt.f32 %v5508_v27 }
0x1d50   :  { %7005 = vrsqrt.f32 %v5507_v29 }
0x1d59   :  { %v7004_v30 = vpop.eup %7003 }
0x1d5a   :  { %v7006_v18 = vpop.eup %7005  ;;  %v5516_v40 = vmul.f32 %v7004_v30, %v5484_v56 }
0x1d5b   :  { %v5515_v37 = vmul.f32 %v7006_v18, %v5483_v3 }
0x1d5c   :  { %v5526_v25 = vmul.f32 %v5815_v6, %v5516_v40 }
0x1d5d   :  { %v5525_v36 = vmul.f32 %v5815_v6, %v5515_v37 }
0x1d5e   :  { %v5536_v33 = vadd.f32 %v5816_v13, %v5526_v25 }
0x1d5f   :  { %v5535_v31 = vadd.f32 %v5816_v13, %v5525_v36 }
0x1d61   :  { %6443 = vmatprep.mubr.msk.f32.mxu1 %vm102_vm0, %v5535_v31 }
0x1d62   :  { %6444 = vmatmul.mubr.msk.f32.gmra.mrb[48].mxu1 %vm102_vm0, %v5536_v33 }
0x1da8   :  { %v6442_v41 = vpop.f32.mrb[46].mxu1 }
0x1da9   :  { %v5632_v2 = vadd.f32 %v6442_v41, %v5817_v35  ;;  %v5626_v8 = vpop.f32.mrb[47].mxu1 }
0x1daa   :  { %v5627_v12 = vadd.f32 %v5817_v35, %v5626_v8 }
0x1dab   :  { %5647 = vst.msk [vmem:[%s8014_s26 + $0x8] sm:$0xff] %vm5645_vm7, %v5632_v2 }
0x1dac   :  { %5646 = vst.msk [vmem:[%s8014_s26] sm:$0xff] %vm5645_vm7, %v5627_v12 }
0x1e35   :  { %v6445_v53 = vpop.f32.mrb[48].mxu1 }
0x1e36   :  { %v5642_v43 = vadd.f32 %v6445_v53, %v5817_v35  ;;  %v5636_v44 = vpop.f32.mrb[49].mxu1 }
0x1e37   :  { %v5637_v38 = vadd.f32 %v5817_v35, %v5636_v44 }
0x1e38   :  { %5649 = vst.msk [vmem:[%s8014_s26 + $0x18] sm:$0xff] %vm5645_vm7, %v5642_v43 }
0x1e39   :  { %5648 = vst.msk [vmem:[%s8014_s26 + $0x10] sm:$0xff] %vm5645_vm7, %v5637_v38 }

</bundles_post_ra>
